<compile_context>
chip_gen: v7x
topology: tpu7x:2x2x1
jax: 0.10.0
libtpu: 0.0.40
codegen_flags: <defaults>
</compile_context>

<pallas_src>
import functools

import jax
import jax.numpy as jnp
from jax.experimental import pallas as pl
from jax.experimental.pallas import tpu as pltpu

# --- scaled-down config consistent with the module structure (lane-aligned) ---
VOCAB = 65
VPAD = 128              # vocab padded to a full 128-lane tile (lm_head & one-hot gather)
N_EMBD = 128            # module uses 384
N_HEAD = 4              # module uses 6
HEAD_SIZE = N_EMBD // N_HEAD
N_LAYER = 2             # module uses 6
BLOCK_SIZE = 64         # module uses 256
LN_EPS = 1e-5           # nn.LayerNorm default
NEG_BIAS = -1e30        # finite additive causal-mask bias (no -inf -> no NaN hazard)


def _layernorm(h, g, b):
    # f32 statistics, biased variance (matches PyTorch LayerNorm)
    mu = jnp.mean(h, axis=-1, keepdims=True)
    var = jnp.mean((h - mu) ** 2, axis=-1, keepdims=True)
    return (h - mu) * jax.lax.rsqrt(var + LN_EPS) * g + b


def gpt_kernel(T, b_blk,                            # static: seq len, batch elems per grid block
               idx_ref,                             # (b_blk*T, 1) int32 token ids
               tok_emb_ref,                         # (VPAD, C)  bf16 (rows >= VOCAB never selected)
               pos_ref,                             # (T, C)     f32
               ln1_g, ln1_b,                        # (L, 1, C)  f32
               wqkv,                                # (L, C, 3C) bf16  (Head linears: no bias)
               wo, bo,                              # (L, C, C)  bf16, (L, 1, C) f32
               ln2_g, ln2_b,                        # (L, 1, C)  f32
               w1, b1,                              # (L, C, 4C) bf16, (L, 1, 4C) f32
               w2, b2,                              # (L, 4C, C) bf16, (L, 1, C) f32
               lnf_g, lnf_b,                        # (1, C)     f32
               w_lm, b_lm,                          # (C, VPAD)  bf16, (1, VPAD) f32
               o_ref,                               # (b_blk*T, VPAD) f32
               attn_cat):                           # scratch: (b_blk*T, C) bf16 head-concat buffer
    C = N_EMBD
    H = HEAD_SIZE
    BT = b_blk * T

    # ---- fused embedding: one-hot(idx) @ tok_emb on the MXU + positional add ----
    lane = jax.lax.broadcasted_iota(jnp.int32, (BT, VPAD), 1)
    onehot = (lane == idx_ref[...]).astype(jnp.bfloat16)                 # (BT, VPAD)
    tok = jnp.dot(onehot, tok_emb_ref[...],
                  preferred_element_type=jnp.float32)                    # (BT, C)
    x = (tok.reshape(b_blk, T, C) + pos_ref[...]).reshape(BT, C)         # f32 residual stream

    # ---- causal additive bias (T, T), hoisted out of layer/head loops ----
    row = jax.lax.broadcasted_iota(jnp.int32, (T, T), 0)
    col = jax.lax.broadcasted_iota(jnp.int32, (T, T), 1)
    bias = jnp.where(col <= row, 0.0, NEG_BIAS).astype(jnp.float32)

    qk_dims = (((2,), (2,)), ((0,), (0,)))   # (b,t,h) x (b,s,h) -> (b,t,s)
    pv_dims = (((2,), (1,)), ((0,), (0,)))   # (b,t,s) x (b,s,h) -> (b,t,h)

    # TODO(synk): at the real config (C=384, T=256, L=6) move this static layer loop
    # onto a grid=(N_LAYER,) "arbitrary" axis (residual stream in persistent VMEM
    # scratch, weights blocked on the leading L axis) so VMEM holds ~1 layer only.
    for l in range(N_LAYER):                        # static unroll, L small
        # ---- multi-head causal self-attention on ln1(x) ----
        h1 = _layernorm(x, ln1_g[l], ln1_b[l])
        qkv = jnp.dot(h1.astype(jnp.bfloat16), wqkv[l],
                      preferred_element_type=jnp.float32)                # (BT, 3C)
        qkv = qkv.astype(jnp.bfloat16)                                   # cast ONCE

        for hd in range(N_HEAD):                    # static unroll, N_HEAD small
            s = hd * H
            qh = qkv[:, s:s + H].reshape(b_blk, T, H)
            kh = qkv[:, C + s:C + s + H].reshape(b_blk, T, H)
            vh = qkv[:, 2 * C + s:2 * C + s + H].reshape(b_blk, T, H)
            # NOTE: reference Head has NO 1/sqrt(head_size) scaling -> reproduce exactly.
            w = jax.lax.dot_general(qh, kh, qk_dims,
                                    preferred_element_type=jnp.float32)  # (b, T, T)
            w = w + bias
            w = w - jnp.max(w, axis=-1, keepdims=True)
            e = jnp.exp(w)                                               # f32 softmax
            p = e * pl.reciprocal(jnp.sum(e, axis=-1, keepdims=True), approx=True)
            ph = jax.lax.dot_general(p.astype(jnp.bfloat16), vh, pv_dims,
                                     preferred_element_type=jnp.float32) # (b, T, H)
            # concat heads at static 32-lane offsets -> one K=128 output projection
            attn_cat[:, s:s + H] = ph.reshape(BT, H).astype(jnp.bfloat16)

        attn = jnp.dot(attn_cat[...], wo[l],
                       preferred_element_type=jnp.float32) + bo[l]       # (BT, C)
        x = x + attn                                 # attn/proj dropout = identity (eval)

        # ---- feed-forward on ln2(x) ----
        h2 = _layernorm(x, ln2_g[l], ln2_b[l])
        ff = jnp.dot(h2.astype(jnp.bfloat16), w1[l],
                     preferred_element_type=jnp.float32) + b1[l]
        ff = jnp.maximum(ff, 0.0)                                        # ReLU
        ff = jnp.dot(ff.astype(jnp.bfloat16), w2[l],
                     preferred_element_type=jnp.float32) + b2[l]
        x = x + ff                                   # ffwd dropout = identity (eval)

    # ---- final LayerNorm + lm_head (lane-dense, padded to VPAD) ----
    hf = _layernorm(x, lnf_g[...], lnf_b[...])
    logits = jnp.dot(hf.astype(jnp.bfloat16), w_lm[...],
                     preferred_element_type=jnp.float32) + b_lm[...]
    o_ref[...] = logits.astype(o_ref.dtype)


def _resident_spec(shape):
    # Full-array block; same block (0,...) every grid step -> stays VMEM-resident.
    zeros = (0,) * len(shape)
    return pl.BlockSpec(shape, lambda i, _z=zeros: _z)


@jax.jit
def gpt_forward(idx, params):
    """Returns logits of shape (B, T, VOCAB). (targets=None path -> loss is None.)"""
    B, T = idx.shape
    # 2 batch blocks when possible: one per TensorCore on v7x ("parallel" grid);
    # on v5e/v6e it is a cheap 2-step loop with weights resident across steps.
    if B >= 2 and B % 2 == 0:
        b_blk, n_blk = B // 2, 2
    else:
        b_blk, n_blk = B, 1
    bt_blk = b_blk * T

    idx_flat = idx.reshape(B * T, 1).astype(jnp.int32)
    pos = params['pos_emb'][:T]

    args = (idx_flat, params['tok_emb_pad'], pos,
            params['ln1_g'], params['ln1_b'], params['wqkv'],
            params['wo'], params['bo'],
            params['ln2_g'], params['ln2_b'],
            params['w1'], params['b1'], params['w2'], params['b2'],
            params['lnf_g'], params['lnf_b'],
            params['w_lm'], params['b_lm'])

    in_specs = [pl.BlockSpec((bt_blk, 1), lambda i: (i, 0))]        # idx: split over batch blocks
    in_specs += [_resident_spec(a.shape) for a in args[1:]]         # weights/embeddings resident

    logits_pad = pl.pallas_call(
        functools.partial(gpt_kernel, T, b_blk),
        out_shape=jax.ShapeDtypeStruct((B * T, VPAD), jnp.float32),
        grid=(n_blk,),
        in_specs=in_specs,
        out_specs=pl.BlockSpec((bt_blk, VPAD), lambda i: (i, 0)),
        scratch_shapes=[pltpu.VMEM((bt_blk, N_EMBD), jnp.bfloat16)],
        compiler_params=pltpu.CompilerParams(
            dimension_semantics=("parallel",),
            vmem_limit_bytes=32 * 1024 * 1024),
    )(*args)

    return logits_pad[:, :VOCAB].reshape(B, T, VOCAB)


def init_params(key):
    keys = iter(jax.random.split(key, 16))

    def nrm(shape):
        # matches _init_weights: normal(mean=0, std=0.02) for Linear / Embedding
        return (0.02 * jax.random.normal(next(keys), shape)).astype(jnp.float32)

    L, C = N_LAYER, N_EMBD
    # token embedding padded to 128 rows (rows >= VOCAB are never selected);
    # lm_head padded to 128 lanes (padded cols zero, sliced off in the wrapper).
    tok_emb_pad = jnp.zeros((VPAD, C), jnp.float32).at[:VOCAB].set(nrm((VOCAB, C)))
    w_lm = jnp.zeros((C, VPAD), jnp.float32).at[:, :VOCAB].set(nrm((C, VOCAB)))

    return {
        'tok_emb_pad': tok_emb_pad.astype(jnp.bfloat16),
        'pos_emb': nrm((BLOCK_SIZE, C)),
        # per-layer weights stacked on a leading (N_LAYER, ...) axis
        'ln1_g': jnp.ones((L, 1, C), jnp.float32),
        'ln1_b': jnp.zeros((L, 1, C), jnp.float32),
        'wqkv': nrm((L, C, 3 * C)).astype(jnp.bfloat16),   # fused q|k|v (Head has bias=False)
        'wo': nrm((L, C, C)).astype(jnp.bfloat16),
        'bo': jnp.zeros((L, 1, C), jnp.float32),
        'ln2_g': jnp.ones((L, 1, C), jnp.float32),
        'ln2_b': jnp.zeros((L, 1, C), jnp.float32),
        'w1': nrm((L, C, 4 * C)).astype(jnp.bfloat16),
        'b1': jnp.zeros((L, 1, 4 * C), jnp.float32),
        'w2': nrm((L, 4 * C, C)).astype(jnp.bfloat16),
        'b2': jnp.zeros((L, 1, C), jnp.float32),
        'lnf_g': jnp.ones((1, C), jnp.float32),
        'lnf_b': jnp.zeros((1, C), jnp.float32),
        'w_lm': w_lm.astype(jnp.bfloat16),
        'b_lm': jnp.zeros((1, VPAD), jnp.float32),
    }


if __name__ == "__main__":
    key = jax.random.PRNGKey(0)
    pkey, ikey = jax.random.split(key)
    params = init_params(pkey)

    B, T = 2, BLOCK_SIZE          # B*T = 128 rows -> fills the MXU M dimension
    idx = jax.random.randint(ikey, (B, T), 0, VOCAB, dtype=jnp.int32)

    logits = gpt_forward(idx, params)
    jax.block_until_ready(logits)
    assert logits.shape == (B, T, VOCAB)
    assert bool(jnp.all(jnp.isfinite(logits)))
    print("KERNEL_OK")
</pallas_src>

<mosaic_0001>
module attributes {stable_mosaic.version = 11 : i64} {
  func.func @gpt_kernel(%arg0: i32, %arg1: memref<64x1xi32, #tpu.memory_space<vmem>>, %arg2: memref<128x128xbf16, #tpu.memory_space<vmem>>, %arg3: memref<64x128xf32, #tpu.memory_space<vmem>>, %arg4: memref<2x1x128xf32, #tpu.memory_space<vmem>>, %arg5: memref<2x1x128xf32, #tpu.memory_space<vmem>>, %arg6: memref<2x128x384xbf16, #tpu.memory_space<vmem>>, %arg7: memref<2x128x128xbf16, #tpu.memory_space<vmem>>, %arg8: memref<2x1x128xf32, #tpu.memory_space<vmem>>, %arg9: memref<2x1x128xf32, #tpu.memory_space<vmem>>, %arg10: memref<2x1x128xf32, #tpu.memory_space<vmem>>, %arg11: memref<2x128x512xbf16, #tpu.memory_space<vmem>>, %arg12: memref<2x1x512xf32, #tpu.memory_space<vmem>>, %arg13: memref<2x512x128xbf16, #tpu.memory_space<vmem>>, %arg14: memref<2x1x128xf32, #tpu.memory_space<vmem>>, %arg15: memref<1x128xf32, #tpu.memory_space<vmem>>, %arg16: memref<1x128xf32, #tpu.memory_space<vmem>>, %arg17: memref<128x128xbf16, #tpu.memory_space<vmem>>, %arg18: memref<1x128xf32, #tpu.memory_space<vmem>>, %arg19: memref<64x128xf32, #tpu.memory_space<vmem>>, %arg20: memref<64x128xbf16, #tpu.memory_space<vmem>>) attributes {dimension_semantics = [#tpu.dimension_semantics<parallel>], iteration_bounds = array<i64: 2>, scalar_prefetch = 0 : i64, scratch_operands = 1 : i64, tpu.core_type = #tpu.core_type<tc>, window_params = [{transform_indices = @transform_0, window_bounds = array<i64: 64, 1>}, {pipeline_mode = #tpu.pipeline_mode<synchronous>, transform_indices = @transform_1, window_bounds = array<i64: 128, 128>}, {pipeline_mode = #tpu.pipeline_mode<synchronous>, transform_indices = @transform_2, window_bounds = array<i64: 64, 128>}, {pipeline_mode = #tpu.pipeline_mode<synchronous>, transform_indices = @transform_3, window_bounds = array<i64: 2, 1, 128>}, {pipeline_mode = #tpu.pipeline_mode<synchronous>, transform_indices = @transform_4, window_bounds = array<i64: 2, 1, 128>}, {pipeline_mode = #tpu.pipeline_mode<synchronous>, transform_indices = @transform_5, window_bounds = array<i64: 2, 128, 384>}, {pipeline_mode = #tpu.pipeline_mode<synchronous>, transform_indices = @transform_6, window_bounds = array<i64: 2, 128, 128>}, {pipeline_mode = #tpu.pipeline_mode<synchronous>, transform_indices = @transform_7, window_bounds = array<i64: 2, 1, 128>}, {pipeline_mode = #tpu.pipeline_mode<synchronous>, transform_indices = @transform_8, window_bounds = array<i64: 2, 1, 128>}, {pipeline_mode = #tpu.pipeline_mode<synchronous>, transform_indices = @transform_9, window_bounds = array<i64: 2, 1, 128>}, {pipeline_mode = #tpu.pipeline_mode<synchronous>, transform_indices = @transform_10, window_bounds = array<i64: 2, 128, 512>}, {pipeline_mode = #tpu.pipeline_mode<synchronous>, transform_indices = @transform_11, window_bounds = array<i64: 2, 1, 512>}, {pipeline_mode = #tpu.pipeline_mode<synchronous>, transform_indices = @transform_12, window_bounds = array<i64: 2, 512, 128>}, {pipeline_mode = #tpu.pipeline_mode<synchronous>, transform_indices = @transform_13, window_bounds = array<i64: 2, 1, 128>}, {pipeline_mode = #tpu.pipeline_mode<synchronous>, transform_indices = @transform_14, window_bounds = array<i64: 1, 128>}, {pipeline_mode = #tpu.pipeline_mode<synchronous>, transform_indices = @transform_15, window_bounds = array<i64: 1, 128>}, {pipeline_mode = #tpu.pipeline_mode<synchronous>, transform_indices = @transform_16, window_bounds = array<i64: 128, 128>}, {pipeline_mode = #tpu.pipeline_mode<synchronous>, transform_indices = @transform_17, window_bounds = array<i64: 1, 128>}, {transform_indices = @transform_18, window_bounds = array<i64: 64, 128>}]} {
    %0 = tpu.iota {dimensions = array<i32: 1>} : vector<64x128xi32>
    %c0 = arith.constant 0 : index
    %c0_0 = arith.constant 0 : index
    %1 = vector.load %arg1[%c0, %c0_0] : memref<64x1xi32, #tpu.memory_space<vmem>>, vector<64x1xi32>
    %2 = vector.broadcast %1 : vector<64x1xi32> to vector<64x128xi32>
    %3 = arith.cmpi eq, %0, %2 : vector<64x128xi32>
    %4 = arith.extui %3 : vector<64x128xi1> to vector<64x128xi32>
    %5 = arith.sitofp %4 : vector<64x128xi32> to vector<64x128xf32>
    %6 = arith.truncf %5 : vector<64x128xf32> to vector<64x128xbf16>
    %c0_1 = arith.constant 0 : index
    %c0_2 = arith.constant 0 : index
    %7 = vector.load %arg2[%c0_1, %c0_2] : memref<128x128xbf16, #tpu.memory_space<vmem>>, vector<128x128xbf16>
    %cst = arith.constant dense<0.000000e+00> : vector<64x128xf32>
    %8 = tpu.matmul %6, %7, %cst {dimension_numbers = #tpu.dot_dimension_numbers<[1], [0], [0], [1], [0, 0, 1, 1], [], []>} : vector<64x128xbf16>, vector<128x128xbf16>, vector<64x128xf32> -> vector<64x128xf32>
    %9 = vector.shape_cast %8 : vector<64x128xf32> to vector<1x64x128xf32>
    %c0_3 = arith.constant 0 : index
    %c0_4 = arith.constant 0 : index
    %10 = vector.load %arg3[%c0_3, %c0_4] : memref<64x128xf32, #tpu.memory_space<vmem>>, vector<64x128xf32>
    %11 = vector.shape_cast %10 : vector<64x128xf32> to vector<1x64x128xf32>
    %12 = arith.addf %9, %11 : vector<1x64x128xf32>
    %13 = vector.shape_cast %12 : vector<1x64x128xf32> to vector<64x128xf32>
    %14 = tpu.iota {dimensions = array<i32: 0>} : vector<64x64xi32>
    %15 = tpu.iota {dimensions = array<i32: 1>} : vector<64x64xi32>
    %16 = arith.cmpi sle, %15, %14 : vector<64x64xi32>
    %cst_5 = arith.constant 0.000000e+00 : f32
    %cst_6 = arith.constant -1.000000e+30 : f32
    %17 = vector.broadcast %cst_5 : f32 to vector<64x64xf32>
    %18 = vector.broadcast %cst_6 : f32 to vector<64x64xf32>
    %19 = arith.select %16, %17, %18 : vector<64x64xi1>, vector<64x64xf32>
    %c0_7 = arith.constant 0 : index
    %c0_8 = arith.constant 0 : index
    %c0_9 = arith.constant 0 : index
    %20 = vector.load %arg4[%c0_7, %c0_8, %c0_9] : memref<2x1x128xf32, #tpu.memory_space<vmem>>, vector<1x1x128xf32>
    %21 = vector.shape_cast %20 : vector<1x1x128xf32> to vector<1x128xf32>
    %c0_10 = arith.constant 0 : index
    %c0_11 = arith.constant 0 : index
    %c0_12 = arith.constant 0 : index
    %22 = vector.load %arg5[%c0_10, %c0_11, %c0_12] : memref<2x1x128xf32, #tpu.memory_space<vmem>>, vector<1x1x128xf32>
    %23 = vector.shape_cast %22 : vector<1x1x128xf32> to vector<1x128xf32>
    %cst_13 = arith.constant dense<0.000000e+00> : vector<64xf32>
    %24 = vector.multi_reduction <add>, %13, %cst_13 [1] : vector<64x128xf32> to vector<64xf32>
    %25 = vector.shape_cast %24 : vector<64xf32> to vector<64x1xf32>
    %cst_14 = arith.constant 1.280000e+02 : f32
    %26 = vector.broadcast %cst_14 : f32 to vector<64x1xf32>
    %27 = arith.divf %25, %26 : vector<64x1xf32>
    %28 = vector.broadcast %27 : vector<64x1xf32> to vector<64x128xf32>
    %29 = arith.subf %13, %28 : vector<64x128xf32>
    %30 = arith.mulf %29, %29 : vector<64x128xf32>
    %cst_15 = arith.constant dense<0.000000e+00> : vector<64xf32>
    %31 = vector.multi_reduction <add>, %30, %cst_15 [1] : vector<64x128xf32> to vector<64xf32>
    %32 = vector.shape_cast %31 : vector<64xf32> to vector<64x1xf32>
    %cst_16 = arith.constant 1.280000e+02 : f32
    %33 = vector.broadcast %cst_16 : f32 to vector<64x1xf32>
    %34 = arith.divf %32, %33 : vector<64x1xf32>
    %35 = vector.broadcast %27 : vector<64x1xf32> to vector<64x128xf32>
    %36 = arith.subf %13, %35 : vector<64x128xf32>
    %cst_17 = arith.constant 9.99999974E-6 : f32
    %37 = vector.broadcast %cst_17 : f32 to vector<64x1xf32>
    %38 = arith.addf %34, %37 : vector<64x1xf32>
    %39 = math.rsqrt %38 : vector<64x1xf32>
    %40 = vector.broadcast %39 : vector<64x1xf32> to vector<64x128xf32>
    %41 = arith.mulf %36, %40 : vector<64x128xf32>
    %42 = vector.broadcast %21 : vector<1x128xf32> to vector<64x128xf32>
    %43 = arith.mulf %41, %42 : vector<64x128xf32>
    %44 = vector.broadcast %23 : vector<1x128xf32> to vector<64x128xf32>
    %45 = arith.addf %43, %44 : vector<64x128xf32>
    %46 = arith.truncf %45 : vector<64x128xf32> to vector<64x128xbf16>
    %c0_18 = arith.constant 0 : index
    %c0_19 = arith.constant 0 : index
    %c0_20 = arith.constant 0 : index
    %47 = vector.load %arg6[%c0_18, %c0_19, %c0_20] : memref<2x128x384xbf16, #tpu.memory_space<vmem>>, vector<1x128x384xbf16>
    %48 = vector.shape_cast %47 : vector<1x128x384xbf16> to vector<128x384xbf16>
    %cst_21 = arith.constant dense<0.000000e+00> : vector<64x384xf32>
    %49 = tpu.matmul %46, %48, %cst_21 {dimension_numbers = #tpu.dot_dimension_numbers<[1], [0], [0], [1], [0, 0, 1, 1], [], []>} : vector<64x128xbf16>, vector<128x384xbf16>, vector<64x384xf32> -> vector<64x384xf32>
    %50 = arith.truncf %49 : vector<64x384xf32> to vector<64x384xbf16>
    %51 = vector.extract_strided_slice %50 {offsets = [0, 0], sizes = [64, 32], strides = [1, 1]} : vector<64x384xbf16> to vector<64x32xbf16>
    %52 = vector.shape_cast %51 : vector<64x32xbf16> to vector<1x64x32xbf16>
    %53 = vector.extract_strided_slice %50 {offsets = [0, 128], sizes = [64, 32], strides = [1, 1]} : vector<64x384xbf16> to vector<64x32xbf16>
    %54 = vector.shape_cast %53 : vector<64x32xbf16> to vector<1x64x32xbf16>
    %55 = vector.extract_strided_slice %50 {offsets = [0, 256], sizes = [64, 32], strides = [1, 1]} : vector<64x384xbf16> to vector<64x32xbf16>
    %56 = vector.shape_cast %55 : vector<64x32xbf16> to vector<1x64x32xbf16>
    %cst_22 = arith.constant dense<0.000000e+00> : vector<1x64x64xf32>
    %57 = tpu.matmul %52, %54, %cst_22 {dimension_numbers = #tpu.dot_dimension_numbers<[2], [2], [1], [1], [0, 0, 0, 1, 1, 1], [0], [0]>} : vector<1x64x32xbf16>, vector<1x64x32xbf16>, vector<1x64x64xf32> -> vector<1x64x64xf32>
    %58 = vector.shape_cast %19 : vector<64x64xf32> to vector<1x64x64xf32>
    %59 = arith.addf %57, %58 : vector<1x64x64xf32>
    %cst_23 = arith.constant dense<0xFF800000> : vector<1x64xf32>
    %60 = vector.multi_reduction <maximumf>, %59, %cst_23 [2] : vector<1x64x64xf32> to vector<1x64xf32>
    %61 = vector.shape_cast %60 : vector<1x64xf32> to vector<1x64x1xf32>
    %62 = vector.broadcast %61 : vector<1x64x1xf32> to vector<1x64x64xf32>
    %63 = arith.subf %59, %62 : vector<1x64x64xf32>
    %64 = math.exp %63 : vector<1x64x64xf32>
    %cst_24 = arith.constant dense<0.000000e+00> : vector<1x64xf32>
    %65 = vector.multi_reduction <add>, %64, %cst_24 [2] : vector<1x64x64xf32> to vector<1x64xf32>
    %66 = vector.shape_cast %65 : vector<1x64xf32> to vector<1x64x1xf32>
    %67 = tpu.reciprocal %66 {approx = true} : vector<1x64x1xf32> -> vector<1x64x1xf32>
    %68 = vector.broadcast %67 : vector<1x64x1xf32> to vector<1x64x64xf32>
    %69 = arith.mulf %64, %68 : vector<1x64x64xf32>
    %70 = arith.truncf %69 : vector<1x64x64xf32> to vector<1x64x64xbf16>
    %cst_25 = arith.constant dense<0.000000e+00> : vector<1x64x32xf32>
    %71 = tpu.matmul %70, %56, %cst_25 {dimension_numbers = #tpu.dot_dimension_numbers<[2], [1], [1], [2], [0, 0, 0, 1, 1, 2], [0], [0]>} : vector<1x64x64xbf16>, vector<1x64x32xbf16>, vector<1x64x32xf32> -> vector<1x64x32xf32>
    %72 = vector.shape_cast %71 : vector<1x64x32xf32> to vector<64x32xf32>
    %73 = arith.truncf %72 : vector<64x32xf32> to vector<64x32xbf16>
    %c0_26 = arith.constant 0 : index
    %c0_27 = arith.constant 0 : index
    %74 = vector.load %arg20[%c0_26, %c0_27] : memref<64x128xbf16, #tpu.memory_space<vmem>>, vector<64x32xbf16>
    tpu.vector_store %arg20[%c0_26, %c0_27], %73 {strides = array<i32>} : memref<64x128xbf16, #tpu.memory_space<vmem>>, vector<64x32xbf16>,
    %75 = vector.extract_strided_slice %50 {offsets = [0, 32], sizes = [64, 32], strides = [1, 1]} : vector<64x384xbf16> to vector<64x32xbf16>
    %76 = vector.shape_cast %75 : vector<64x32xbf16> to vector<1x64x32xbf16>
    %77 = vector.extract_strided_slice %50 {offsets = [0, 160], sizes = [64, 32], strides = [1, 1]} : vector<64x384xbf16> to vector<64x32xbf16>
    %78 = vector.shape_cast %77 : vector<64x32xbf16> to vector<1x64x32xbf16>
    %79 = vector.extract_strided_slice %50 {offsets = [0, 288], sizes = [64, 32], strides = [1, 1]} : vector<64x384xbf16> to vector<64x32xbf16>
    %80 = vector.shape_cast %79 : vector<64x32xbf16> to vector<1x64x32xbf16>
    %cst_28 = arith.constant dense<0.000000e+00> : vector<1x64x64xf32>
    %81 = tpu.matmul %76, %78, %cst_28 {dimension_numbers = #tpu.dot_dimension_numbers<[2], [2], [1], [1], [0, 0, 0, 1, 1, 1], [0], [0]>} : vector<1x64x32xbf16>, vector<1x64x32xbf16>, vector<1x64x64xf32> -> vector<1x64x64xf32>
    %82 = vector.shape_cast %19 : vector<64x64xf32> to vector<1x64x64xf32>
    %83 = arith.addf %81, %82 : vector<1x64x64xf32>
    %cst_29 = arith.constant dense<0xFF800000> : vector<1x64xf32>
    %84 = vector.multi_reduction <maximumf>, %83, %cst_29 [2] : vector<1x64x64xf32> to vector<1x64xf32>
    %85 = vector.shape_cast %84 : vector<1x64xf32> to vector<1x64x1xf32>
    %86 = vector.broadcast %85 : vector<1x64x1xf32> to vector<1x64x64xf32>
    %87 = arith.subf %83, %86 : vector<1x64x64xf32>
    %88 = math.exp %87 : vector<1x64x64xf32>
    %cst_30 = arith.constant dense<0.000000e+00> : vector<1x64xf32>
    %89 = vector.multi_reduction <add>, %88, %cst_30 [2] : vector<1x64x64xf32> to vector<1x64xf32>
    %90 = vector.shape_cast %89 : vector<1x64xf32> to vector<1x64x1xf32>
    %91 = tpu.reciprocal %90 {approx = true} : vector<1x64x1xf32> -> vector<1x64x1xf32>
    %92 = vector.broadcast %91 : vector<1x64x1xf32> to vector<1x64x64xf32>
    %93 = arith.mulf %88, %92 : vector<1x64x64xf32>
    %94 = arith.truncf %93 : vector<1x64x64xf32> to vector<1x64x64xbf16>
    %cst_31 = arith.constant dense<0.000000e+00> : vector<1x64x32xf32>
    %95 = tpu.matmul %94, %80, %cst_31 {dimension_numbers = #tpu.dot_dimension_numbers<[2], [1], [1], [2], [0, 0, 0, 1, 1, 2], [0], [0]>} : vector<1x64x64xbf16>, vector<1x64x32xbf16>, vector<1x64x32xf32> -> vector<1x64x32xf32>
    %96 = vector.shape_cast %95 : vector<1x64x32xf32> to vector<64x32xf32>
    %97 = arith.truncf %96 : vector<64x32xf32> to vector<64x32xbf16>
    %c0_32 = arith.constant 0 : index
    %c32 = arith.constant 32 : index
    %98 = vector.load %arg20[%c0_32, %c32] : memref<64x128xbf16, #tpu.memory_space<vmem>>, vector<64x32xbf16>
    tpu.vector_store %arg20[%c0_32, %c32], %97 {strides = array<i32>} : memref<64x128xbf16, #tpu.memory_space<vmem>>, vector<64x32xbf16>,
    %99 = vector.extract_strided_slice %50 {offsets = [0, 64], sizes = [64, 32], strides = [1, 1]} : vector<64x384xbf16> to vector<64x32xbf16>
    %100 = vector.shape_cast %99 : vector<64x32xbf16> to vector<1x64x32xbf16>
    %101 = vector.extract_strided_slice %50 {offsets = [0, 192], sizes = [64, 32], strides = [1, 1]} : vector<64x384xbf16> to vector<64x32xbf16>
    %102 = vector.shape_cast %101 : vector<64x32xbf16> to vector<1x64x32xbf16>
    %103 = vector.extract_strided_slice %50 {offsets = [0, 320], sizes = [64, 32], strides = [1, 1]} : vector<64x384xbf16> to vector<64x32xbf16>
    %104 = vector.shape_cast %103 : vector<64x32xbf16> to vector<1x64x32xbf16>
    %cst_33 = arith.constant dense<0.000000e+00> : vector<1x64x64xf32>
    %105 = tpu.matmul %100, %102, %cst_33 {dimension_numbers = #tpu.dot_dimension_numbers<[2], [2], [1], [1], [0, 0, 0, 1, 1, 1], [0], [0]>} : vector<1x64x32xbf16>, vector<1x64x32xbf16>, vector<1x64x64xf32> -> vector<1x64x64xf32>
    %106 = vector.shape_cast %19 : vector<64x64xf32> to vector<1x64x64xf32>
    %107 = arith.addf %105, %106 : vector<1x64x64xf32>
    %cst_34 = arith.constant dense<0xFF800000> : vector<1x64xf32>
    %108 = vector.multi_reduction <maximumf>, %107, %cst_34 [2] : vector<1x64x64xf32> to vector<1x64xf32>
    %109 = vector.shape_cast %108 : vector<1x64xf32> to vector<1x64x1xf32>
    %110 = vector.broadcast %109 : vector<1x64x1xf32> to vector<1x64x64xf32>
    %111 = arith.subf %107, %110 : vector<1x64x64xf32>
    %112 = math.exp %111 : vector<1x64x64xf32>
    %cst_35 = arith.constant dense<0.000000e+00> : vector<1x64xf32>
    %113 = vector.multi_reduction <add>, %112, %cst_35 [2] : vector<1x64x64xf32> to vector<1x64xf32>
    %114 = vector.shape_cast %113 : vector<1x64xf32> to vector<1x64x1xf32>
    %115 = tpu.reciprocal %114 {approx = true} : vector<1x64x1xf32> -> vector<1x64x1xf32>
    %116 = vector.broadcast %115 : vector<1x64x1xf32> to vector<1x64x64xf32>
    %117 = arith.mulf %112, %116 : vector<1x64x64xf32>
    %118 = arith.truncf %117 : vector<1x64x64xf32> to vector<1x64x64xbf16>
    %cst_36 = arith.constant dense<0.000000e+00> : vector<1x64x32xf32>
    %119 = tpu.matmul %118, %104, %cst_36 {dimension_numbers = #tpu.dot_dimension_numbers<[2], [1], [1], [2], [0, 0, 0, 1, 1, 2], [0], [0]>} : vector<1x64x64xbf16>, vector<1x64x32xbf16>, vector<1x64x32xf32> -> vector<1x64x32xf32>
    %120 = vector.shape_cast %119 : vector<1x64x32xf32> to vector<64x32xf32>
    %121 = arith.truncf %120 : vector<64x32xf32> to vector<64x32xbf16>
    %c0_37 = arith.constant 0 : index
    %c64 = arith.constant 64 : index
    %122 = vector.load %arg20[%c0_37, %c64] : memref<64x128xbf16, #tpu.memory_space<vmem>>, vector<64x32xbf16>
    tpu.vector_store %arg20[%c0_37, %c64], %121 {strides = array<i32>} : memref<64x128xbf16, #tpu.memory_space<vmem>>, vector<64x32xbf16>,
    %123 = vector.extract_strided_slice %50 {offsets = [0, 96], sizes = [64, 32], strides = [1, 1]} : vector<64x384xbf16> to vector<64x32xbf16>
    %124 = vector.shape_cast %123 : vector<64x32xbf16> to vector<1x64x32xbf16>
    %125 = vector.extract_strided_slice %50 {offsets = [0, 224], sizes = [64, 32], strides = [1, 1]} : vector<64x384xbf16> to vector<64x32xbf16>
    %126 = vector.shape_cast %125 : vector<64x32xbf16> to vector<1x64x32xbf16>
    %127 = vector.extract_strided_slice %50 {offsets = [0, 352], sizes = [64, 32], strides = [1, 1]} : vector<64x384xbf16> to vector<64x32xbf16>
    %128 = vector.shape_cast %127 : vector<64x32xbf16> to vector<1x64x32xbf16>
    %cst_38 = arith.constant dense<0.000000e+00> : vector<1x64x64xf32>
    %129 = tpu.matmul %124, %126, %cst_38 {dimension_numbers = #tpu.dot_dimension_numbers<[2], [2], [1], [1], [0, 0, 0, 1, 1, 1], [0], [0]>} : vector<1x64x32xbf16>, vector<1x64x32xbf16>, vector<1x64x64xf32> -> vector<1x64x64xf32>
    %130 = vector.shape_cast %19 : vector<64x64xf32> to vector<1x64x64xf32>
    %131 = arith.addf %129, %130 : vector<1x64x64xf32>
    %cst_39 = arith.constant dense<0xFF800000> : vector<1x64xf32>
    %132 = vector.multi_reduction <maximumf>, %131, %cst_39 [2] : vector<1x64x64xf32> to vector<1x64xf32>
    %133 = vector.shape_cast %132 : vector<1x64xf32> to vector<1x64x1xf32>
    %134 = vector.broadcast %133 : vector<1x64x1xf32> to vector<1x64x64xf32>
    %135 = arith.subf %131, %134 : vector<1x64x64xf32>
    %136 = math.exp %135 : vector<1x64x64xf32>
    %cst_40 = arith.constant dense<0.000000e+00> : vector<1x64xf32>
    %137 = vector.multi_reduction <add>, %136, %cst_40 [2] : vector<1x64x64xf32> to vector<1x64xf32>
    %138 = vector.shape_cast %137 : vector<1x64xf32> to vector<1x64x1xf32>
    %139 = tpu.reciprocal %138 {approx = true} : vector<1x64x1xf32> -> vector<1x64x1xf32>
    %140 = vector.broadcast %139 : vector<1x64x1xf32> to vector<1x64x64xf32>
    %141 = arith.mulf %136, %140 : vector<1x64x64xf32>
    %142 = arith.truncf %141 : vector<1x64x64xf32> to vector<1x64x64xbf16>
    %cst_41 = arith.constant dense<0.000000e+00> : vector<1x64x32xf32>
    %143 = tpu.matmul %142, %128, %cst_41 {dimension_numbers = #tpu.dot_dimension_numbers<[2], [1], [1], [2], [0, 0, 0, 1, 1, 2], [0], [0]>} : vector<1x64x64xbf16>, vector<1x64x32xbf16>, vector<1x64x32xf32> -> vector<1x64x32xf32>
    %144 = vector.shape_cast %143 : vector<1x64x32xf32> to vector<64x32xf32>
    %145 = arith.truncf %144 : vector<64x32xf32> to vector<64x32xbf16>
    %c0_42 = arith.constant 0 : index
    %c96 = arith.constant 96 : index
    %146 = vector.load %arg20[%c0_42, %c96] : memref<64x128xbf16, #tpu.memory_space<vmem>>, vector<64x32xbf16>
    tpu.vector_store %arg20[%c0_42, %c96], %145 {strides = array<i32>} : memref<64x128xbf16, #tpu.memory_space<vmem>>, vector<64x32xbf16>,
    %c0_43 = arith.constant 0 : index
    %c0_44 = arith.constant 0 : index
    %147 = vector.load %arg20[%c0_43, %c0_44] : memref<64x128xbf16, #tpu.memory_space<vmem>>, vector<64x128xbf16>
    %c0_45 = arith.constant 0 : index
    %c0_46 = arith.constant 0 : index
    %c0_47 = arith.constant 0 : index
    %148 = vector.load %arg7[%c0_45, %c0_46, %c0_47] : memref<2x128x128xbf16, #tpu.memory_space<vmem>>, vector<1x128x128xbf16>
    %149 = vector.shape_cast %148 : vector<1x128x128xbf16> to vector<128x128xbf16>
    %cst_48 = arith.constant dense<0.000000e+00> : vector<64x128xf32>
    %150 = tpu.matmul %147, %149, %cst_48 {dimension_numbers = #tpu.dot_dimension_numbers<[1], [0], [0], [1], [0, 0, 1, 1], [], []>} : vector<64x128xbf16>, vector<128x128xbf16>, vector<64x128xf32> -> vector<64x128xf32>
    %c0_49 = arith.constant 0 : index
    %c0_50 = arith.constant 0 : index
    %c0_51 = arith.constant 0 : index
    %151 = vector.load %arg8[%c0_49, %c0_50, %c0_51] : memref<2x1x128xf32, #tpu.memory_space<vmem>>, vector<1x1x128xf32>
    %152 = vector.shape_cast %151 : vector<1x1x128xf32> to vector<1x128xf32>
    %153 = vector.broadcast %152 : vector<1x128xf32> to vector<64x128xf32>
    %154 = arith.addf %150, %153 : vector<64x128xf32>
    %155 = arith.addf %13, %154 : vector<64x128xf32>
    %c0_52 = arith.constant 0 : index
    %c0_53 = arith.constant 0 : index
    %c0_54 = arith.constant 0 : index
    %156 = vector.load %arg9[%c0_52, %c0_53, %c0_54] : memref<2x1x128xf32, #tpu.memory_space<vmem>>, vector<1x1x128xf32>
    %157 = vector.shape_cast %156 : vector<1x1x128xf32> to vector<1x128xf32>
    %c0_55 = arith.constant 0 : index
    %c0_56 = arith.constant 0 : index
    %c0_57 = arith.constant 0 : index
    %158 = vector.load %arg10[%c0_55, %c0_56, %c0_57] : memref<2x1x128xf32, #tpu.memory_space<vmem>>, vector<1x1x128xf32>
    %159 = vector.shape_cast %158 : vector<1x1x128xf32> to vector<1x128xf32>
    %cst_58 = arith.constant dense<0.000000e+00> : vector<64xf32>
    %160 = vector.multi_reduction <add>, %155, %cst_58 [1] : vector<64x128xf32> to vector<64xf32>
    %161 = vector.shape_cast %160 : vector<64xf32> to vector<64x1xf32>
    %cst_59 = arith.constant 1.280000e+02 : f32
    %162 = vector.broadcast %cst_59 : f32 to vector<64x1xf32>
    %163 = arith.divf %161, %162 : vector<64x1xf32>
    %164 = vector.broadcast %163 : vector<64x1xf32> to vector<64x128xf32>
    %165 = arith.subf %155, %164 : vector<64x128xf32>
    %166 = arith.mulf %165, %165 : vector<64x128xf32>
    %cst_60 = arith.constant dense<0.000000e+00> : vector<64xf32>
    %167 = vector.multi_reduction <add>, %166, %cst_60 [1] : vector<64x128xf32> to vector<64xf32>
    %168 = vector.shape_cast %167 : vector<64xf32> to vector<64x1xf32>
    %cst_61 = arith.constant 1.280000e+02 : f32
    %169 = vector.broadcast %cst_61 : f32 to vector<64x1xf32>
    %170 = arith.divf %168, %169 : vector<64x1xf32>
    %171 = vector.broadcast %163 : vector<64x1xf32> to vector<64x128xf32>
    %172 = arith.subf %155, %171 : vector<64x128xf32>
    %cst_62 = arith.constant 9.99999974E-6 : f32
    %173 = vector.broadcast %cst_62 : f32 to vector<64x1xf32>
    %174 = arith.addf %170, %173 : vector<64x1xf32>
    %175 = math.rsqrt %174 : vector<64x1xf32>
    %176 = vector.broadcast %175 : vector<64x1xf32> to vector<64x128xf32>
    %177 = arith.mulf %172, %176 : vector<64x128xf32>
    %178 = vector.broadcast %157 : vector<1x128xf32> to vector<64x128xf32>
    %179 = arith.mulf %177, %178 : vector<64x128xf32>
    %180 = vector.broadcast %159 : vector<1x128xf32> to vector<64x128xf32>
    %181 = arith.addf %179, %180 : vector<64x128xf32>
    %182 = arith.truncf %181 : vector<64x128xf32> to vector<64x128xbf16>
    %c0_63 = arith.constant 0 : index
    %c0_64 = arith.constant 0 : index
    %c0_65 = arith.constant 0 : index
    %183 = vector.load %arg11[%c0_63, %c0_64, %c0_65] : memref<2x128x512xbf16, #tpu.memory_space<vmem>>, vector<1x128x512xbf16>
    %184 = vector.shape_cast %183 : vector<1x128x512xbf16> to vector<128x512xbf16>
    %cst_66 = arith.constant dense<0.000000e+00> : vector<64x512xf32>
    %185 = tpu.matmul %182, %184, %cst_66 {dimension_numbers = #tpu.dot_dimension_numbers<[1], [0], [0], [1], [0, 0, 1, 1], [], []>} : vector<64x128xbf16>, vector<128x512xbf16>, vector<64x512xf32> -> vector<64x512xf32>
    %c0_67 = arith.constant 0 : index
    %c0_68 = arith.constant 0 : index
    %c0_69 = arith.constant 0 : index
    %186 = vector.load %arg12[%c0_67, %c0_68, %c0_69] : memref<2x1x512xf32, #tpu.memory_space<vmem>>, vector<1x1x512xf32>
    %187 = vector.shape_cast %186 : vector<1x1x512xf32> to vector<1x512xf32>
    %188 = vector.broadcast %187 : vector<1x512xf32> to vector<64x512xf32>
    %189 = arith.addf %185, %188 : vector<64x512xf32>
    %cst_70 = arith.constant 0.000000e+00 : f32
    %190 = vector.broadcast %cst_70 : f32 to vector<64x512xf32>
    %191 = arith.maximumf %189, %190 : vector<64x512xf32>
    %192 = arith.truncf %191 : vector<64x512xf32> to vector<64x512xbf16>
    %c0_71 = arith.constant 0 : index
    %c0_72 = arith.constant 0 : index
    %c0_73 = arith.constant 0 : index
    %193 = vector.load %arg13[%c0_71, %c0_72, %c0_73] : memref<2x512x128xbf16, #tpu.memory_space<vmem>>, vector<1x512x128xbf16>
    %194 = vector.shape_cast %193 : vector<1x512x128xbf16> to vector<512x128xbf16>
    %cst_74 = arith.constant dense<0.000000e+00> : vector<64x128xf32>
    %195 = tpu.matmul %192, %194, %cst_74 {dimension_numbers = #tpu.dot_dimension_numbers<[1], [0], [0], [1], [0, 0, 1, 1], [], []>} : vector<64x512xbf16>, vector<512x128xbf16>, vector<64x128xf32> -> vector<64x128xf32>
    %c0_75 = arith.constant 0 : index
    %c0_76 = arith.constant 0 : index
    %c0_77 = arith.constant 0 : index
    %196 = vector.load %arg14[%c0_75, %c0_76, %c0_77] : memref<2x1x128xf32, #tpu.memory_space<vmem>>, vector<1x1x128xf32>
    %197 = vector.shape_cast %196 : vector<1x1x128xf32> to vector<1x128xf32>
    %198 = vector.broadcast %197 : vector<1x128xf32> to vector<64x128xf32>
    %199 = arith.addf %195, %198 : vector<64x128xf32>
    %200 = arith.addf %155, %199 : vector<64x128xf32>
    %c1 = arith.constant 1 : index
    %c0_78 = arith.constant 0 : index
    %c0_79 = arith.constant 0 : index
    %201 = vector.load %arg4[%c1, %c0_78, %c0_79] : memref<2x1x128xf32, #tpu.memory_space<vmem>>, vector<1x1x128xf32>
    %202 = vector.shape_cast %201 : vector<1x1x128xf32> to vector<1x128xf32>
    %c1_80 = arith.constant 1 : index
    %c0_81 = arith.constant 0 : index
    %c0_82 = arith.constant 0 : index
    %203 = vector.load %arg5[%c1_80, %c0_81, %c0_82] : memref<2x1x128xf32, #tpu.memory_space<vmem>>, vector<1x1x128xf32>
    %204 = vector.shape_cast %203 : vector<1x1x128xf32> to vector<1x128xf32>
    %cst_83 = arith.constant dense<0.000000e+00> : vector<64xf32>
    %205 = vector.multi_reduction <add>, %200, %cst_83 [1] : vector<64x128xf32> to vector<64xf32>
    %206 = vector.shape_cast %205 : vector<64xf32> to vector<64x1xf32>
    %cst_84 = arith.constant 1.280000e+02 : f32
    %207 = vector.broadcast %cst_84 : f32 to vector<64x1xf32>
    %208 = arith.divf %206, %207 : vector<64x1xf32>
    %209 = vector.broadcast %208 : vector<64x1xf32> to vector<64x128xf32>
    %210 = arith.subf %200, %209 : vector<64x128xf32>
    %211 = arith.mulf %210, %210 : vector<64x128xf32>
    %cst_85 = arith.constant dense<0.000000e+00> : vector<64xf32>
    %212 = vector.multi_reduction <add>, %211, %cst_85 [1] : vector<64x128xf32> to vector<64xf32>
    %213 = vector.shape_cast %212 : vector<64xf32> to vector<64x1xf32>
    %cst_86 = arith.constant 1.280000e+02 : f32
    %214 = vector.broadcast %cst_86 : f32 to vector<64x1xf32>
    %215 = arith.divf %213, %214 : vector<64x1xf32>
    %216 = vector.broadcast %208 : vector<64x1xf32> to vector<64x128xf32>
    %217 = arith.subf %200, %216 : vector<64x128xf32>
    %cst_87 = arith.constant 9.99999974E-6 : f32
    %218 = vector.broadcast %cst_87 : f32 to vector<64x1xf32>
    %219 = arith.addf %215, %218 : vector<64x1xf32>
    %220 = math.rsqrt %219 : vector<64x1xf32>
    %221 = vector.broadcast %220 : vector<64x1xf32> to vector<64x128xf32>
    %222 = arith.mulf %217, %221 : vector<64x128xf32>
    %223 = vector.broadcast %202 : vector<1x128xf32> to vector<64x128xf32>
    %224 = arith.mulf %222, %223 : vector<64x128xf32>
    %225 = vector.broadcast %204 : vector<1x128xf32> to vector<64x128xf32>
    %226 = arith.addf %224, %225 : vector<64x128xf32>
    %227 = arith.truncf %226 : vector<64x128xf32> to vector<64x128xbf16>
    %c1_88 = arith.constant 1 : index
    %c0_89 = arith.constant 0 : index
    %c0_90 = arith.constant 0 : index
    %228 = vector.load %arg6[%c1_88, %c0_89, %c0_90] : memref<2x128x384xbf16, #tpu.memory_space<vmem>>, vector<1x128x384xbf16>
    %229 = vector.shape_cast %228 : vector<1x128x384xbf16> to vector<128x384xbf16>
    %cst_91 = arith.constant dense<0.000000e+00> : vector<64x384xf32>
    %230 = tpu.matmul %227, %229, %cst_91 {dimension_numbers = #tpu.dot_dimension_numbers<[1], [0], [0], [1], [0, 0, 1, 1], [], []>} : vector<64x128xbf16>, vector<128x384xbf16>, vector<64x384xf32> -> vector<64x384xf32>
    %231 = arith.truncf %230 : vector<64x384xf32> to vector<64x384xbf16>
    %232 = vector.extract_strided_slice %231 {offsets = [0, 0], sizes = [64, 32], strides = [1, 1]} : vector<64x384xbf16> to vector<64x32xbf16>
    %233 = vector.shape_cast %232 : vector<64x32xbf16> to vector<1x64x32xbf16>
    %234 = vector.extract_strided_slice %231 {offsets = [0, 128], sizes = [64, 32], strides = [1, 1]} : vector<64x384xbf16> to vector<64x32xbf16>
    %235 = vector.shape_cast %234 : vector<64x32xbf16> to vector<1x64x32xbf16>
    %236 = vector.extract_strided_slice %231 {offsets = [0, 256], sizes = [64, 32], strides = [1, 1]} : vector<64x384xbf16> to vector<64x32xbf16>
    %237 = vector.shape_cast %236 : vector<64x32xbf16> to vector<1x64x32xbf16>
    %cst_92 = arith.constant dense<0.000000e+00> : vector<1x64x64xf32>
    %238 = tpu.matmul %233, %235, %cst_92 {dimension_numbers = #tpu.dot_dimension_numbers<[2], [2], [1], [1], [0, 0, 0, 1, 1, 1], [0], [0]>} : vector<1x64x32xbf16>, vector<1x64x32xbf16>, vector<1x64x64xf32> -> vector<1x64x64xf32>
    %239 = vector.shape_cast %19 : vector<64x64xf32> to vector<1x64x64xf32>
    %240 = arith.addf %238, %239 : vector<1x64x64xf32>
    %cst_93 = arith.constant dense<0xFF800000> : vector<1x64xf32>
    %241 = vector.multi_reduction <maximumf>, %240, %cst_93 [2] : vector<1x64x64xf32> to vector<1x64xf32>
    %242 = vector.shape_cast %241 : vector<1x64xf32> to vector<1x64x1xf32>
    %243 = vector.broadcast %242 : vector<1x64x1xf32> to vector<1x64x64xf32>
    %244 = arith.subf %240, %243 : vector<1x64x64xf32>
    %245 = math.exp %244 : vector<1x64x64xf32>
    %cst_94 = arith.constant dense<0.000000e+00> : vector<1x64xf32>
    %246 = vector.multi_reduction <add>, %245, %cst_94 [2] : vector<1x64x64xf32> to vector<1x64xf32>
    %247 = vector.shape_cast %246 : vector<1x64xf32> to vector<1x64x1xf32>
    %248 = tpu.reciprocal %247 {approx = true} : vector<1x64x1xf32> -> vector<1x64x1xf32>
    %249 = vector.broadcast %248 : vector<1x64x1xf32> to vector<1x64x64xf32>
    %250 = arith.mulf %245, %249 : vector<1x64x64xf32>
    %251 = arith.truncf %250 : vector<1x64x64xf32> to vector<1x64x64xbf16>
    %cst_95 = arith.constant dense<0.000000e+00> : vector<1x64x32xf32>
    %252 = tpu.matmul %251, %237, %cst_95 {dimension_numbers = #tpu.dot_dimension_numbers<[2], [1], [1], [2], [0, 0, 0, 1, 1, 2], [0], [0]>} : vector<1x64x64xbf16>, vector<1x64x32xbf16>, vector<1x64x32xf32> -> vector<1x64x32xf32>
    %253 = vector.shape_cast %252 : vector<1x64x32xf32> to vector<64x32xf32>
    %254 = arith.truncf %253 : vector<64x32xf32> to vector<64x32xbf16>
    %c0_96 = arith.constant 0 : index
    %c0_97 = arith.constant 0 : index
    %255 = vector.load %arg20[%c0_96, %c0_97] : memref<64x128xbf16, #tpu.memory_space<vmem>>, vector<64x32xbf16>
    tpu.vector_store %arg20[%c0_96, %c0_97], %254 {strides = array<i32>} : memref<64x128xbf16, #tpu.memory_space<vmem>>, vector<64x32xbf16>,
    %256 = vector.extract_strided_slice %231 {offsets = [0, 32], sizes = [64, 32], strides = [1, 1]} : vector<64x384xbf16> to vector<64x32xbf16>
    %257 = vector.shape_cast %256 : vector<64x32xbf16> to vector<1x64x32xbf16>
    %258 = vector.extract_strided_slice %231 {offsets = [0, 160], sizes = [64, 32], strides = [1, 1]} : vector<64x384xbf16> to vector<64x32xbf16>
    %259 = vector.shape_cast %258 : vector<64x32xbf16> to vector<1x64x32xbf16>
    %260 = vector.extract_strided_slice %231 {offsets = [0, 288], sizes = [64, 32], strides = [1, 1]} : vector<64x384xbf16> to vector<64x32xbf16>
    %261 = vector.shape_cast %260 : vector<64x32xbf16> to vector<1x64x32xbf16>
    %cst_98 = arith.constant dense<0.000000e+00> : vector<1x64x64xf32>
    %262 = tpu.matmul %257, %259, %cst_98 {dimension_numbers = #tpu.dot_dimension_numbers<[2], [2], [1], [1], [0, 0, 0, 1, 1, 1], [0], [0]>} : vector<1x64x32xbf16>, vector<1x64x32xbf16>, vector<1x64x64xf32> -> vector<1x64x64xf32>
    %263 = vector.shape_cast %19 : vector<64x64xf32> to vector<1x64x64xf32>
    %264 = arith.addf %262, %263 : vector<1x64x64xf32>
    %cst_99 = arith.constant dense<0xFF800000> : vector<1x64xf32>
    %265 = vector.multi_reduction <maximumf>, %264, %cst_99 [2] : vector<1x64x64xf32> to vector<1x64xf32>
    %266 = vector.shape_cast %265 : vector<1x64xf32> to vector<1x64x1xf32>
    %267 = vector.broadcast %266 : vector<1x64x1xf32> to vector<1x64x64xf32>
    %268 = arith.subf %264, %267 : vector<1x64x64xf32>
    %269 = math.exp %268 : vector<1x64x64xf32>
    %cst_100 = arith.constant dense<0.000000e+00> : vector<1x64xf32>
    %270 = vector.multi_reduction <add>, %269, %cst_100 [2] : vector<1x64x64xf32> to vector<1x64xf32>
    %271 = vector.shape_cast %270 : vector<1x64xf32> to vector<1x64x1xf32>
    %272 = tpu.reciprocal %271 {approx = true} : vector<1x64x1xf32> -> vector<1x64x1xf32>
    %273 = vector.broadcast %272 : vector<1x64x1xf32> to vector<1x64x64xf32>
    %274 = arith.mulf %269, %273 : vector<1x64x64xf32>
    %275 = arith.truncf %274 : vector<1x64x64xf32> to vector<1x64x64xbf16>
    %cst_101 = arith.constant dense<0.000000e+00> : vector<1x64x32xf32>
    %276 = tpu.matmul %275, %261, %cst_101 {dimension_numbers = #tpu.dot_dimension_numbers<[2], [1], [1], [2], [0, 0, 0, 1, 1, 2], [0], [0]>} : vector<1x64x64xbf16>, vector<1x64x32xbf16>, vector<1x64x32xf32> -> vector<1x64x32xf32>
    %277 = vector.shape_cast %276 : vector<1x64x32xf32> to vector<64x32xf32>
    %278 = arith.truncf %277 : vector<64x32xf32> to vector<64x32xbf16>
    %c0_102 = arith.constant 0 : index
    %c32_103 = arith.constant 32 : index
    %279 = vector.load %arg20[%c0_102, %c32_103] : memref<64x128xbf16, #tpu.memory_space<vmem>>, vector<64x32xbf16>
    tpu.vector_store %arg20[%c0_102, %c32_103], %278 {strides = array<i32>} : memref<64x128xbf16, #tpu.memory_space<vmem>>, vector<64x32xbf16>,
    %280 = vector.extract_strided_slice %231 {offsets = [0, 64], sizes = [64, 32], strides = [1, 1]} : vector<64x384xbf16> to vector<64x32xbf16>
    %281 = vector.shape_cast %280 : vector<64x32xbf16> to vector<1x64x32xbf16>
    %282 = vector.extract_strided_slice %231 {offsets = [0, 192], sizes = [64, 32], strides = [1, 1]} : vector<64x384xbf16> to vector<64x32xbf16>
    %283 = vector.shape_cast %282 : vector<64x32xbf16> to vector<1x64x32xbf16>
    %284 = vector.extract_strided_slice %231 {offsets = [0, 320], sizes = [64, 32], strides = [1, 1]} : vector<64x384xbf16> to vector<64x32xbf16>
    %285 = vector.shape_cast %284 : vector<64x32xbf16> to vector<1x64x32xbf16>
    %cst_104 = arith.constant dense<0.000000e+00> : vector<1x64x64xf32>
    %286 = tpu.matmul %281, %283, %cst_104 {dimension_numbers = #tpu.dot_dimension_numbers<[2], [2], [1], [1], [0, 0, 0, 1, 1, 1], [0], [0]>} : vector<1x64x32xbf16>, vector<1x64x32xbf16>, vector<1x64x64xf32> -> vector<1x64x64xf32>
    %287 = vector.shape_cast %19 : vector<64x64xf32> to vector<1x64x64xf32>
    %288 = arith.addf %286, %287 : vector<1x64x64xf32>
    %cst_105 = arith.constant dense<0xFF800000> : vector<1x64xf32>
    %289 = vector.multi_reduction <maximumf>, %288, %cst_105 [2] : vector<1x64x64xf32> to vector<1x64xf32>
    %290 = vector.shape_cast %289 : vector<1x64xf32> to vector<1x64x1xf32>
    %291 = vector.broadcast %290 : vector<1x64x1xf32> to vector<1x64x64xf32>
    %292 = arith.subf %288, %291 : vector<1x64x64xf32>
    %293 = math.exp %292 : vector<1x64x64xf32>
    %cst_106 = arith.constant dense<0.000000e+00> : vector<1x64xf32>
    %294 = vector.multi_reduction <add>, %293, %cst_106 [2] : vector<1x64x64xf32> to vector<1x64xf32>
    %295 = vector.shape_cast %294 : vector<1x64xf32> to vector<1x64x1xf32>
    %296 = tpu.reciprocal %295 {approx = true} : vector<1x64x1xf32> -> vector<1x64x1xf32>
    %297 = vector.broadcast %296 : vector<1x64x1xf32> to vector<1x64x64xf32>
    %298 = arith.mulf %293, %297 : vector<1x64x64xf32>
    %299 = arith.truncf %298 : vector<1x64x64xf32> to vector<1x64x64xbf16>
    %cst_107 = arith.constant dense<0.000000e+00> : vector<1x64x32xf32>
    %300 = tpu.matmul %299, %285, %cst_107 {dimension_numbers = #tpu.dot_dimension_numbers<[2], [1], [1], [2], [0, 0, 0, 1, 1, 2], [0], [0]>} : vector<1x64x64xbf16>, vector<1x64x32xbf16>, vector<1x64x32xf32> -> vector<1x64x32xf32>
    %301 = vector.shape_cast %300 : vector<1x64x32xf32> to vector<64x32xf32>
    %302 = arith.truncf %301 : vector<64x32xf32> to vector<64x32xbf16>
    %c0_108 = arith.constant 0 : index
    %c64_109 = arith.constant 64 : index
    %303 = vector.load %arg20[%c0_108, %c64_109] : memref<64x128xbf16, #tpu.memory_space<vmem>>, vector<64x32xbf16>
    tpu.vector_store %arg20[%c0_108, %c64_109], %302 {strides = array<i32>} : memref<64x128xbf16, #tpu.memory_space<vmem>>, vector<64x32xbf16>,
    %304 = vector.extract_strided_slice %231 {offsets = [0, 96], sizes = [64, 32], strides = [1, 1]} : vector<64x384xbf16> to vector<64x32xbf16>
    %305 = vector.shape_cast %304 : vector<64x32xbf16> to vector<1x64x32xbf16>
    %306 = vector.extract_strided_slice %231 {offsets = [0, 224], sizes = [64, 32], strides = [1, 1]} : vector<64x384xbf16> to vector<64x32xbf16>
    %307 = vector.shape_cast %306 : vector<64x32xbf16> to vector<1x64x32xbf16>
    %308 = vector.extract_strided_slice %231 {offsets = [0, 352], sizes = [64, 32], strides = [1, 1]} : vector<64x384xbf16> to vector<64x32xbf16>
    %309 = vector.shape_cast %308 : vector<64x32xbf16> to vector<1x64x32xbf16>
    %cst_110 = arith.constant dense<0.000000e+00> : vector<1x64x64xf32>
    %310 = tpu.matmul %305, %307, %cst_110 {dimension_numbers = #tpu.dot_dimension_numbers<[2], [2], [1], [1], [0, 0, 0, 1, 1, 1], [0], [0]>} : vector<1x64x32xbf16>, vector<1x64x32xbf16>, vector<1x64x64xf32> -> vector<1x64x64xf32>
    %311 = vector.shape_cast %19 : vector<64x64xf32> to vector<1x64x64xf32>
    %312 = arith.addf %310, %311 : vector<1x64x64xf32>
    %cst_111 = arith.constant dense<0xFF800000> : vector<1x64xf32>
    %313 = vector.multi_reduction <maximumf>, %312, %cst_111 [2] : vector<1x64x64xf32> to vector<1x64xf32>
    %314 = vector.shape_cast %313 : vector<1x64xf32> to vector<1x64x1xf32>
    %315 = vector.broadcast %314 : vector<1x64x1xf32> to vector<1x64x64xf32>
    %316 = arith.subf %312, %315 : vector<1x64x64xf32>
    %317 = math.exp %316 : vector<1x64x64xf32>
    %cst_112 = arith.constant dense<0.000000e+00> : vector<1x64xf32>
    %318 = vector.multi_reduction <add>, %317, %cst_112 [2] : vector<1x64x64xf32> to vector<1x64xf32>
    %319 = vector.shape_cast %318 : vector<1x64xf32> to vector<1x64x1xf32>
    %320 = tpu.reciprocal %319 {approx = true} : vector<1x64x1xf32> -> vector<1x64x1xf32>
    %321 = vector.broadcast %320 : vector<1x64x1xf32> to vector<1x64x64xf32>
    %322 = arith.mulf %317, %321 : vector<1x64x64xf32>
    %323 = arith.truncf %322 : vector<1x64x64xf32> to vector<1x64x64xbf16>
    %cst_113 = arith.constant dense<0.000000e+00> : vector<1x64x32xf32>
    %324 = tpu.matmul %323, %309, %cst_113 {dimension_numbers = #tpu.dot_dimension_numbers<[2], [1], [1], [2], [0, 0, 0, 1, 1, 2], [0], [0]>} : vector<1x64x64xbf16>, vector<1x64x32xbf16>, vector<1x64x32xf32> -> vector<1x64x32xf32>
    %325 = vector.shape_cast %324 : vector<1x64x32xf32> to vector<64x32xf32>
    %326 = arith.truncf %325 : vector<64x32xf32> to vector<64x32xbf16>
    %c0_114 = arith.constant 0 : index
    %c96_115 = arith.constant 96 : index
    %327 = vector.load %arg20[%c0_114, %c96_115] : memref<64x128xbf16, #tpu.memory_space<vmem>>, vector<64x32xbf16>
    tpu.vector_store %arg20[%c0_114, %c96_115], %326 {strides = array<i32>} : memref<64x128xbf16, #tpu.memory_space<vmem>>, vector<64x32xbf16>,
    %c0_116 = arith.constant 0 : index
    %c0_117 = arith.constant 0 : index
    %328 = vector.load %arg20[%c0_116, %c0_117] : memref<64x128xbf16, #tpu.memory_space<vmem>>, vector<64x128xbf16>
    %c1_118 = arith.constant 1 : index
    %c0_119 = arith.constant 0 : index
    %c0_120 = arith.constant 0 : index
    %329 = vector.load %arg7[%c1_118, %c0_119, %c0_120] : memref<2x128x128xbf16, #tpu.memory_space<vmem>>, vector<1x128x128xbf16>
    %330 = vector.shape_cast %329 : vector<1x128x128xbf16> to vector<128x128xbf16>
    %cst_121 = arith.constant dense<0.000000e+00> : vector<64x128xf32>
    %331 = tpu.matmul %328, %330, %cst_121 {dimension_numbers = #tpu.dot_dimension_numbers<[1], [0], [0], [1], [0, 0, 1, 1], [], []>} : vector<64x128xbf16>, vector<128x128xbf16>, vector<64x128xf32> -> vector<64x128xf32>
    %c1_122 = arith.constant 1 : index
    %c0_123 = arith.constant 0 : index
    %c0_124 = arith.constant 0 : index
    %332 = vector.load %arg8[%c1_122, %c0_123, %c0_124] : memref<2x1x128xf32, #tpu.memory_space<vmem>>, vector<1x1x128xf32>
    %333 = vector.shape_cast %332 : vector<1x1x128xf32> to vector<1x128xf32>
    %334 = vector.broadcast %333 : vector<1x128xf32> to vector<64x128xf32>
    %335 = arith.addf %331, %334 : vector<64x128xf32>
    %336 = arith.addf %200, %335 : vector<64x128xf32>
    %c1_125 = arith.constant 1 : index
    %c0_126 = arith.constant 0 : index
    %c0_127 = arith.constant 0 : index
    %337 = vector.load %arg9[%c1_125, %c0_126, %c0_127] : memref<2x1x128xf32, #tpu.memory_space<vmem>>, vector<1x1x128xf32>
    %338 = vector.shape_cast %337 : vector<1x1x128xf32> to vector<1x128xf32>
    %c1_128 = arith.constant 1 : index
    %c0_129 = arith.constant 0 : index
    %c0_130 = arith.constant 0 : index
    %339 = vector.load %arg10[%c1_128, %c0_129, %c0_130] : memref<2x1x128xf32, #tpu.memory_space<vmem>>, vector<1x1x128xf32>
    %340 = vector.shape_cast %339 : vector<1x1x128xf32> to vector<1x128xf32>
    %cst_131 = arith.constant dense<0.000000e+00> : vector<64xf32>
    %341 = vector.multi_reduction <add>, %336, %cst_131 [1] : vector<64x128xf32> to vector<64xf32>
    %342 = vector.shape_cast %341 : vector<64xf32> to vector<64x1xf32>
    %cst_132 = arith.constant 1.280000e+02 : f32
    %343 = vector.broadcast %cst_132 : f32 to vector<64x1xf32>
    %344 = arith.divf %342, %343 : vector<64x1xf32>
    %345 = vector.broadcast %344 : vector<64x1xf32> to vector<64x128xf32>
    %346 = arith.subf %336, %345 : vector<64x128xf32>
    %347 = arith.mulf %346, %346 : vector<64x128xf32>
    %cst_133 = arith.constant dense<0.000000e+00> : vector<64xf32>
    %348 = vector.multi_reduction <add>, %347, %cst_133 [1] : vector<64x128xf32> to vector<64xf32>
    %349 = vector.shape_cast %348 : vector<64xf32> to vector<64x1xf32>
    %cst_134 = arith.constant 1.280000e+02 : f32
    %350 = vector.broadcast %cst_134 : f32 to vector<64x1xf32>
    %351 = arith.divf %349, %350 : vector<64x1xf32>
    %352 = vector.broadcast %344 : vector<64x1xf32> to vector<64x128xf32>
    %353 = arith.subf %336, %352 : vector<64x128xf32>
    %cst_135 = arith.constant 9.99999974E-6 : f32
    %354 = vector.broadcast %cst_135 : f32 to vector<64x1xf32>
    %355 = arith.addf %351, %354 : vector<64x1xf32>
    %356 = math.rsqrt %355 : vector<64x1xf32>
    %357 = vector.broadcast %356 : vector<64x1xf32> to vector<64x128xf32>
    %358 = arith.mulf %353, %357 : vector<64x128xf32>
    %359 = vector.broadcast %338 : vector<1x128xf32> to vector<64x128xf32>
    %360 = arith.mulf %358, %359 : vector<64x128xf32>
    %361 = vector.broadcast %340 : vector<1x128xf32> to vector<64x128xf32>
    %362 = arith.addf %360, %361 : vector<64x128xf32>
    %363 = arith.truncf %362 : vector<64x128xf32> to vector<64x128xbf16>
    %c1_136 = arith.constant 1 : index
    %c0_137 = arith.constant 0 : index
    %c0_138 = arith.constant 0 : index
    %364 = vector.load %arg11[%c1_136, %c0_137, %c0_138] : memref<2x128x512xbf16, #tpu.memory_space<vmem>>, vector<1x128x512xbf16>
    %365 = vector.shape_cast %364 : vector<1x128x512xbf16> to vector<128x512xbf16>
    %cst_139 = arith.constant dense<0.000000e+00> : vector<64x512xf32>
    %366 = tpu.matmul %363, %365, %cst_139 {dimension_numbers = #tpu.dot_dimension_numbers<[1], [0], [0], [1], [0, 0, 1, 1], [], []>} : vector<64x128xbf16>, vector<128x512xbf16>, vector<64x512xf32> -> vector<64x512xf32>
    %c1_140 = arith.constant 1 : index
    %c0_141 = arith.constant 0 : index
    %c0_142 = arith.constant 0 : index
    %367 = vector.load %arg12[%c1_140, %c0_141, %c0_142] : memref<2x1x512xf32, #tpu.memory_space<vmem>>, vector<1x1x512xf32>
    %368 = vector.shape_cast %367 : vector<1x1x512xf32> to vector<1x512xf32>
    %369 = vector.broadcast %368 : vector<1x512xf32> to vector<64x512xf32>
    %370 = arith.addf %366, %369 : vector<64x512xf32>
    %cst_143 = arith.constant 0.000000e+00 : f32
    %371 = vector.broadcast %cst_143 : f32 to vector<64x512xf32>
    %372 = arith.maximumf %370, %371 : vector<64x512xf32>
    %373 = arith.truncf %372 : vector<64x512xf32> to vector<64x512xbf16>
    %c1_144 = arith.constant 1 : index
    %c0_145 = arith.constant 0 : index
    %c0_146 = arith.constant 0 : index
    %374 = vector.load %arg13[%c1_144, %c0_145, %c0_146] : memref<2x512x128xbf16, #tpu.memory_space<vmem>>, vector<1x512x128xbf16>
    %375 = vector.shape_cast %374 : vector<1x512x128xbf16> to vector<512x128xbf16>
    %cst_147 = arith.constant dense<0.000000e+00> : vector<64x128xf32>
    %376 = tpu.matmul %373, %375, %cst_147 {dimension_numbers = #tpu.dot_dimension_numbers<[1], [0], [0], [1], [0, 0, 1, 1], [], []>} : vector<64x512xbf16>, vector<512x128xbf16>, vector<64x128xf32> -> vector<64x128xf32>
    %c1_148 = arith.constant 1 : index
    %c0_149 = arith.constant 0 : index
    %c0_150 = arith.constant 0 : index
    %377 = vector.load %arg14[%c1_148, %c0_149, %c0_150] : memref<2x1x128xf32, #tpu.memory_space<vmem>>, vector<1x1x128xf32>
    %378 = vector.shape_cast %377 : vector<1x1x128xf32> to vector<1x128xf32>
    %379 = vector.broadcast %378 : vector<1x128xf32> to vector<64x128xf32>
    %380 = arith.addf %376, %379 : vector<64x128xf32>
    %381 = arith.addf %336, %380 : vector<64x128xf32>
    %c0_151 = arith.constant 0 : index
    %c0_152 = arith.constant 0 : index
    %382 = vector.load %arg15[%c0_151, %c0_152] : memref<1x128xf32, #tpu.memory_space<vmem>>, vector<1x128xf32>
    %c0_153 = arith.constant 0 : index
    %c0_154 = arith.constant 0 : index
    %383 = vector.load %arg16[%c0_153, %c0_154] : memref<1x128xf32, #tpu.memory_space<vmem>>, vector<1x128xf32>
    %cst_155 = arith.constant dense<0.000000e+00> : vector<64xf32>
    %384 = vector.multi_reduction <add>, %381, %cst_155 [1] : vector<64x128xf32> to vector<64xf32>
    %385 = vector.shape_cast %384 : vector<64xf32> to vector<64x1xf32>
    %cst_156 = arith.constant 1.280000e+02 : f32
    %386 = vector.broadcast %cst_156 : f32 to vector<64x1xf32>
    %387 = arith.divf %385, %386 : vector<64x1xf32>
    %388 = vector.broadcast %387 : vector<64x1xf32> to vector<64x128xf32>
    %389 = arith.subf %381, %388 : vector<64x128xf32>
    %390 = arith.mulf %389, %389 : vector<64x128xf32>
    %cst_157 = arith.constant dense<0.000000e+00> : vector<64xf32>
    %391 = vector.multi_reduction <add>, %390, %cst_157 [1] : vector<64x128xf32> to vector<64xf32>
    %392 = vector.shape_cast %391 : vector<64xf32> to vector<64x1xf32>
    %cst_158 = arith.constant 1.280000e+02 : f32
    %393 = vector.broadcast %cst_158 : f32 to vector<64x1xf32>
    %394 = arith.divf %392, %393 : vector<64x1xf32>
    %395 = vector.broadcast %387 : vector<64x1xf32> to vector<64x128xf32>
    %396 = arith.subf %381, %395 : vector<64x128xf32>
    %cst_159 = arith.constant 9.99999974E-6 : f32
    %397 = vector.broadcast %cst_159 : f32 to vector<64x1xf32>
    %398 = arith.addf %394, %397 : vector<64x1xf32>
    %399 = math.rsqrt %398 : vector<64x1xf32>
    %400 = vector.broadcast %399 : vector<64x1xf32> to vector<64x128xf32>
    %401 = arith.mulf %396, %400 : vector<64x128xf32>
    %402 = vector.broadcast %382 : vector<1x128xf32> to vector<64x128xf32>
    %403 = arith.mulf %401, %402 : vector<64x128xf32>
    %404 = vector.broadcast %383 : vector<1x128xf32> to vector<64x128xf32>
    %405 = arith.addf %403, %404 : vector<64x128xf32>
    %406 = arith.truncf %405 : vector<64x128xf32> to vector<64x128xbf16>
    %c0_160 = arith.constant 0 : index
    %c0_161 = arith.constant 0 : index
    %407 = vector.load %arg17[%c0_160, %c0_161] : memref<128x128xbf16, #tpu.memory_space<vmem>>, vector<128x128xbf16>
    %cst_162 = arith.constant dense<0.000000e+00> : vector<64x128xf32>
    %408 = tpu.matmul %406, %407, %cst_162 {dimension_numbers = #tpu.dot_dimension_numbers<[1], [0], [0], [1], [0, 0, 1, 1], [], []>} : vector<64x128xbf16>, vector<128x128xbf16>, vector<64x128xf32> -> vector<64x128xf32>
    %c0_163 = arith.constant 0 : index
    %c0_164 = arith.constant 0 : index
    %409 = vector.load %arg18[%c0_163, %c0_164] : memref<1x128xf32, #tpu.memory_space<vmem>>, vector<1x128xf32>
    %410 = vector.broadcast %409 : vector<1x128xf32> to vector<64x128xf32>
    %411 = arith.addf %408, %410 : vector<64x128xf32>
    %c0_165 = arith.constant 0 : index
    %c0_166 = arith.constant 0 : index
    %412 = vector.load %arg19[%c0_165, %c0_166] : memref<64x128xf32, #tpu.memory_space<vmem>>, vector<64x128xf32>
    tpu.vector_store %arg19[%c0_165, %c0_166], %411 {strides = array<i32>} : memref<64x128xf32, #tpu.memory_space<vmem>>, vector<64x128xf32>,
    return
  }
  func.func @transform_0(%arg0: i32) -> (i32, i32) {
    %c0_i32 = arith.constant 0 : i32
    %c0_i32_0 = arith.constant 0 : i32
    return %arg0, %c0_i32 : i32, i32
  }
  func.func @transform_1(%arg0: i32) -> (i32, i32) {
    %c0_i32 = arith.constant 0 : i32
    %c0_i32_0 = arith.constant 0 : i32
    %c0_i32_1 = arith.constant 0 : i32
    return %c0_i32, %c0_i32_0 : i32, i32
  }
  func.func @transform_2(%arg0: i32) -> (i32, i32) {
    %c0_i32 = arith.constant 0 : i32
    %c0_i32_0 = arith.constant 0 : i32
    %c0_i32_1 = arith.constant 0 : i32
    return %c0_i32, %c0_i32_0 : i32, i32
  }
  func.func @transform_3(%arg0: i32) -> (i32, i32, i32) {
    %c0_i32 = arith.constant 0 : i32
    %c0_i32_0 = arith.constant 0 : i32
    %c0_i32_1 = arith.constant 0 : i32
    %c0_i32_2 = arith.constant 0 : i32
    return %c0_i32, %c0_i32_0, %c0_i32_1 : i32, i32, i32
  }
  func.func @transform_4(%arg0: i32) -> (i32, i32, i32) {
    %c0_i32 = arith.constant 0 : i32
    %c0_i32_0 = arith.constant 0 : i32
    %c0_i32_1 = arith.constant 0 : i32
    %c0_i32_2 = arith.constant 0 : i32
    return %c0_i32, %c0_i32_0, %c0_i32_1 : i32, i32, i32
  }
  func.func @transform_5(%arg0: i32) -> (i32, i32, i32) {
    %c0_i32 = arith.constant 0 : i32
    %c0_i32_0 = arith.constant 0 : i32
    %c0_i32_1 = arith.constant 0 : i32
    %c0_i32_2 = arith.constant 0 : i32
    return %c0_i32, %c0_i32_0, %c0_i32_1 : i32, i32, i32
  }
  func.func @transform_6(%arg0: i32) -> (i32, i32, i32) {
    %c0_i32 = arith.constant 0 : i32
    %c0_i32_0 = arith.constant 0 : i32
    %c0_i32_1 = arith.constant 0 : i32
    %c0_i32_2 = arith.constant 0 : i32
    return %c0_i32, %c0_i32_0, %c0_i32_1 : i32, i32, i32
  }
  func.func @transform_7(%arg0: i32) -> (i32, i32, i32) {
    %c0_i32 = arith.constant 0 : i32
    %c0_i32_0 = arith.constant 0 : i32
    %c0_i32_1 = arith.constant 0 : i32
    %c0_i32_2 = arith.constant 0 : i32
    return %c0_i32, %c0_i32_0, %c0_i32_1 : i32, i32, i32
  }
  func.func @transform_8(%arg0: i32) -> (i32, i32, i32) {
    %c0_i32 = arith.constant 0 : i32
    %c0_i32_0 = arith.constant 0 : i32
    %c0_i32_1 = arith.constant 0 : i32
    %c0_i32_2 = arith.constant 0 : i32
    return %c0_i32, %c0_i32_0, %c0_i32_1 : i32, i32, i32
  }
  func.func @transform_9(%arg0: i32) -> (i32, i32, i32) {
    %c0_i32 = arith.constant 0 : i32
    %c0_i32_0 = arith.constant 0 : i32
    %c0_i32_1 = arith.constant 0 : i32
    %c0_i32_2 = arith.constant 0 : i32
    return %c0_i32, %c0_i32_0, %c0_i32_1 : i32, i32, i32
  }
  func.func @transform_10(%arg0: i32) -> (i32, i32, i32) {
    %c0_i32 = arith.constant 0 : i32
    %c0_i32_0 = arith.constant 0 : i32
    %c0_i32_1 = arith.constant 0 : i32
    %c0_i32_2 = arith.constant 0 : i32
    return %c0_i32, %c0_i32_0, %c0_i32_1 : i32, i32, i32
  }
  func.func @transform_11(%arg0: i32) -> (i32, i32, i32) {
    %c0_i32 = arith.constant 0 : i32
    %c0_i32_0 = arith.constant 0 : i32
    %c0_i32_1 = arith.constant 0 : i32
    %c0_i32_2 = arith.constant 0 : i32
    return %c0_i32, %c0_i32_0, %c0_i32_1 : i32, i32, i32
  }
  func.func @transform_12(%arg0: i32) -> (i32, i32, i32) {
    %c0_i32 = arith.constant 0 : i32
    %c0_i32_0 = arith.constant 0 : i32
    %c0_i32_1 = arith.constant 0 : i32
    %c0_i32_2 = arith.constant 0 : i32
    return %c0_i32, %c0_i32_0, %c0_i32_1 : i32, i32, i32
  }
  func.func @transform_13(%arg0: i32) -> (i32, i32, i32) {
    %c0_i32 = arith.constant 0 : i32
    %c0_i32_0 = arith.constant 0 : i32
    %c0_i32_1 = arith.constant 0 : i32
    %c0_i32_2 = arith.constant 0 : i32
    return %c0_i32, %c0_i32_0, %c0_i32_1 : i32, i32, i32
  }
  func.func @transform_14(%arg0: i32) -> (i32, i32) {
    %c0_i32 = arith.constant 0 : i32
    %c0_i32_0 = arith.constant 0 : i32
    %c0_i32_1 = arith.constant 0 : i32
    return %c0_i32, %c0_i32_0 : i32, i32
  }
  func.func @transform_15(%arg0: i32) -> (i32, i32) {
    %c0_i32 = arith.constant 0 : i32
    %c0_i32_0 = arith.constant 0 : i32
    %c0_i32_1 = arith.constant 0 : i32
    return %c0_i32, %c0_i32_0 : i32, i32
  }
  func.func @transform_16(%arg0: i32) -> (i32, i32) {
    %c0_i32 = arith.constant 0 : i32
    %c0_i32_0 = arith.constant 0 : i32
    %c0_i32_1 = arith.constant 0 : i32
    return %c0_i32, %c0_i32_0 : i32, i32
  }
  func.func @transform_17(%arg0: i32) -> (i32, i32) {
    %c0_i32 = arith.constant 0 : i32
    %c0_i32_0 = arith.constant 0 : i32
    %c0_i32_1 = arith.constant 0 : i32
    return %c0_i32, %c0_i32_0 : i32, i32
  }
  func.func @transform_18(%arg0: i32) -> (i32, i32) {
    %c0_i32 = arith.constant 0 : i32
    %c0_i32_0 = arith.constant 0 : i32
    return %arg0, %c0_i32 : i32, i32
  }
}

</mosaic_0001>

<bundles_post_ra>
// kernel: gpt_forward.1
= control target key start
LH: loop header
LB: loop body
LE: loop exit
PB: predicated region body
PF: predicated region fallthrough
CT: control target
= control target key end

     0   :  { %s11019_s0 = inlined_call_operand.vmem [shape: s32[128,1], index: 0, kind: input, shape index: {}]   ;;  %s11020_s1 = inlined_call_operand.hbm [shape: bf16[128,128], index: 1, kind: input, shape index: {}]   ;;  %s11021_s2 = inlined_call_operand.hbm [shape: f32[64,128], index: 2, kind: input, shape index: {}]   ;;  %s11022_s3 = inlined_call_operand.vmem [shape: f32[2,1,128], index: 3, kind: input, shape index: {}]   ;;  %s11023_s4 = inlined_call_operand.vmem [shape: f32[2,1,128], index: 4, kind: input, shape index: {}]   ;;  %s11024_s5 = inlined_call_operand.hbm [shape: bf16[2,128,384], index: 5, kind: input, shape index: {}]   ;;  %s11025_s6 = inlined_call_operand.vmem [shape: bf16[2,128,128], index: 6, kind: input, shape index: {}]   ;;  %s11026_s7 = inlined_call_operand.vmem [shape: f32[2,1,128], index: 7, kind: input, shape index: {}]   ;;  %s11027_s8 = inlined_call_operand.vmem [shape: f32[2,1,128], index: 8, kind: input, shape index: {}]   ;;  %s11028_s9 = inlined_call_operand.vmem [shape: f32[2,1,128], index: 9, kind: input, shape index: {}]   ;;  %s11029_s10 = inlined_call_operand.hbm [shape: bf16[2,128,512], index: 10, kind: input, shape index: {}]   ;;  %s11030_s11 = inlined_call_operand.vmem [shape: f32[2,1,512], index: 11, kind: input, shape index: {}]   ;;  %s11031_s12 = inlined_call_operand.hbm [shape: bf16[2,512,128], index: 12, kind: input, shape index: {}]   ;;  %s11032_s13 = inlined_call_operand.vmem [shape: f32[2,1,128], index: 13, kind: input, shape index: {}]   ;;  %s11033_s14 = inlined_call_operand.vmem [shape: f32[1,128], index: 14, kind: input, shape index: {}]   ;;  %s11034_s15 = inlined_call_operand.vmem [shape: f32[1,128], index: 15, kind: input, shape index: {}]   ;;  %s11035_s16 = inlined_call_operand.hbm [shape: bf16[128,128], index: 16, kind: input, shape index: {}]   ;;  %s11036_s17 = inlined_call_operand.vmem [shape: f32[1,128], index: 17, kind: input, shape index: {}]   ;;  %s11037_s18 = inlined_call_operand.hbm [shape: f32[128,128], index: 18, kind: output, shape index: {}]  }
   0x1   :  { %11069 = sst [smem:[#allocation30_spill]] %s11019_s0 }
   0x2   :  { %11070 = sst [smem:[#allocation31_spill]] %s11020_s1 }
   0x3   :  { %11071 = sst [smem:[#allocation32_spill]] %s11021_s2 }
   0x4   :  { %11072 = sst [smem:[#allocation33_spill]] %s11033_s14 }
   0x5   :  { %11073 = sst [smem:[#allocation34_spill]] %s11034_s15 }
   0x6   :  { %11074 = sst [smem:[#allocation35_spill]] %s11036_s17 }
   0x7   :  { %11075 = sst [smem:[#allocation36_spill]] %s11037_s18 }
   0x8   :  { %23 = vsyncpa [#allocation4], 0 }
   0x9   :  { %24 = vsyncpa [#allocation7], 0 }
   0xa   :  { %25 = vsyncpa [#allocation10], 0 }
   0xb   :  { %26 = vsyncpa [#allocation13], 0 }
   0xc   :  { %27 = vsyncpa [#allocation5], 0 }
   0xd   :  { %29 = vsyncpa [#allocation5 + $0x1], 0  ;;  %s8974_s27 = smov 0   ;;  %s8976_s28 = smov 0  }
   0xe   :  { %s8978_s29 = smov 0   ;;  %s8980_s30 = smov 0  }
   0xf LB: > { %11076 = sst [smem:[#allocation20_spill]] %s8842_s27  ;;  %s8995_s0 = sadd.s32 4294967295, %s8854_s30   ;;  %s8854_s30 = sphi %s8980_s30, %s11129_s30   ;;  %s8850_s29 = sphi %s8978_s29, %s11132_s29   ;;  %s8846_s28 = sphi %s8976_s28, %s11131_s28   ;;  %s8842_s27 = sphi %s8974_s27, %s11130_s27  }
  0x10   : > { %11077 = sst [smem:[#allocation21_spill]] %s8846_s28  ;;  %s6755_s19 = sadd.s32 4294967294, %s8854_s30  }
  0x11   : > { %11078 = sst [smem:[#allocation22_spill]] %s8850_s29  ;;  %s8999_s1 = sadd.s32 1, %s8854_s30  }
  0x12   : > { %11079 = sst [smem:[#allocation23_spill]] %s8854_s30  ;;  %s425_s20 = sadd.s32 1, %s8850_s29 }
  0x13   : > { %11080 = sst [smem:[#allocation24_spill]] %s8999_s1  ;;  %s422_s21 = ssub.s32 %s8854_s30, %s8999_s1 }
  0x14   : > { %p435_p0 = scmp.ne.s32.totalorder %s8850_s29, %s8846_s28  ;;  %p423_p1 = scmp.eq.s32.totalorder %s422_s21, 0 }
  0x15   : > { %p436_p2 = scmp.eq.s32.totalorder %s8995_s0, 1  ;;  %p441_p3 = scmp.ne.s32.totalorder %s8846_s28, %s8842_s27 }
  0x16   : > { %p442_p4 = scmp.eq.s32.totalorder %s6755_s19, 1  ;;  %p6756_p7 = scmp.ge.s32.totalorder %s8854_s30, 1 }
  0x17   : > { %s9010_s22 = scalar_select %p423_p1, %s8850_s29, %s425_s20  }
  0x18   : > { %p9012_p5 = por %p436_p2, %p435_p0  ;;  %p9016_p6 = por %p442_p4, %p441_p3 }
  0x19   : > { %11081 = sst [smem:[#allocation25_spill]] %s9010_s22  ;;  %p449_p8 = scmp.lt.s32.totalorder %s8854_s30, 3 }
  0x1a   : > { %s11082_s2 = scalar_select %p9012_p5, 1, 0 }
  0x1b   : > { %s11084_s23 = scalar_select %p9016_p6, 1, 0 }
  0x1c   : > { %11083 = sst [smem:[#allocation26_spill]] %s11082_s2  ;;  %p11047_p9 = scmp.eq.s32.totalorder %s8995_s0, 0 }
  0x1d   : > { %11085 = sst [smem:[#allocation27_spill]] %s11084_s23  ;;  %p9023_p10 = pnand %p6756_p7, %p449_p8 }
  0x1e   : > { %s8856_s25 = smov [#allocation6]   ;;  %s8857_s20 = smov [#allocation9]  }
  0x1f   : > { %s11086_s24 = scalar_select %p9023_p10, 1, 0 }
  0x20   : > { %s474_s26 = sshll.u32 %s8856_s25, 4  ;;  %p7924_p11 = pneg %p9023_p10  ;;  %s475_s26 = int_to_ptr.vmem [resolvable:$true] %s474_s26 }
  0x21   : > { %s518_s21 = sshll.u32 %s8857_s20, 4  ;;  %s11088_s1 = sld [smem:[#allocation32_spill]]  ;;  %s9035_s21 = int_to_ptr.vmem [resolvable:$true] %s518_s21 }
  0x22   : > { %p9031_p12 = pnand %p11047_p9, %p7924_p11 }
  0x24   : > { %p9045_p0 = pneg %p9031_p12 }
  0x27   : > { %s8608_s23 = scalar_lea.hbm %s11088_s1, 1024 }
  0x28   : > { %p8609_p13 = scmp.ne.s32.totalorder %s11088_s1, %s8608_s23  ;;  %p8615_p3 = scmp.lt.u32.totalorder %s8608_s23, %s11088_s1 }
  0x2a   : > { %p8611_p1 = pnand %p9045_p0, %p8609_p13 }
  0x2c   : > { %p8612_p2 = pneg %p8611_p1 }
  0x2e   : > { %p8617_p4 = pnand %p8615_p3, %p8612_p2 }
  0x30   : > { %8620 = shalt.err (!%p8617_p4)
}
  0x31   : > { %s8621_s29 = scalar_lea.vmem %s475_s26, 1024  ;;  %p8629_p9 = scmp.lt.s32.totalorder %s475_s26, %s475_s26 }
  0x32   : > { %p8622_p7 = scmp.ne.s32.totalorder %s475_s26, %s8621_s29  ;;  %p8630_p6 = scmp.lt.s32.totalorder %s8621_s29, %s8621_s29 }
  0x34   : > { %p8624_p8 = pnand %p8622_p7, %p9045_p0  ;;  %p8631_p5 = por %p8630_p6, %p8629_p9 }
  0x36   : > { %p8625_p11 = pneg %p8624_p8 }
  0x38   : > { %p8632_p10 = pnand %p8631_p5, %p8625_p11 }
  0x3a   : > { %8635 = shalt.err (!%p8632_p10)
}
  0x3b   : > { %s8858_s27 = smov 128   ;;  %s8859_s30 = smov 8  }
  0x3c   : > { %7930 = dma.hbm_to_vmem [thread:$0]  (!%p9031_p12), %s11088_s1, 1024, %s475_s26, [#allocation7], %s8858_s27, %s8858_s27, %s8859_s30  }
  0x3d   : > { %s8636_s2 = scalar_lea.hbm %s11029_s10, 8192 }
  0x3e   : > { %p8637_p13 = scmp.ne.s32.totalorder %s11029_s10, %s8636_s2  ;;  %p8643_p9 = scmp.lt.u32.totalorder %s8636_s2, %s11029_s10 }
  0x40   : > { %p8639_p5 = pnand %p8637_p13, %p9045_p0 }
  0x42   : > { %p8640_p6 = pneg %p8639_p5 }
  0x44   : > { %p8645_p10 = pnand %p8643_p9, %p8640_p6 }
  0x46   : > { %8648 = shalt.err (!%p8645_p10)
}
  0x47   : > { %s8649_s26 = scalar_lea.vmem %s9035_s21, 8192  ;;  %p8657_p4 = scmp.lt.s32.totalorder %s9035_s21, %s9035_s21 }
  0x48   : > { %p8650_p1 = scmp.ne.s32.totalorder %s9035_s21, %s8649_s26  ;;  %p8658_p7 = scmp.lt.s32.totalorder %s8649_s26, %s8649_s26 }
  0x4a   : > { %p8652_p2 = pnand %p8650_p1, %p9045_p0  ;;  %p8659_p8 = por %p8658_p7, %p8657_p4 }
  0x4c   : > { %p8653_p3 = pneg %p8652_p2 }
  0x4e   : > { %p8660_p11 = pnand %p8659_p8, %p8653_p3 }
  0x50   : > { %8663 = shalt.err (!%p8660_p11)
}
  0x51   : > { %s8860_s17 = smov 256   ;;  %s8861_s15 = smov 16  }
  0x52   : > { %7936 = dma.hbm_to_vmem [thread:$0]  (!%p9031_p12), %s11029_s10, 8192, %s9035_s21, [#allocation10], %s8860_s17, %s8860_s17, %s8861_s15  }
  0x53   : > { %s8862_s27 = smov [#allocation3]   ;;  %s11090_s23 = sld [smem:[#allocation31_spill]] }
  0x54   : > { %s461_s30 = sshll.u32 %s8862_s27, 4  ;;  %s462_s30 = int_to_ptr.vmem [resolvable:$true] %s461_s30 }
  0x59   : > { %s8664_s20 = scalar_lea.hbm %s11090_s23, 1024 }
  0x5a   : > { %p8665_p13 = scmp.ne.s32.totalorder %s11090_s23, %s8664_s20  ;;  %p8671_p9 = scmp.lt.u32.totalorder %s8664_s20, %s11090_s23 }
  0x5c   : > { %p8667_p5 = pnand %p8665_p13, %p9045_p0 }
  0x5e   : > { %p8668_p6 = pneg %p8667_p5 }
  0x60   : > { %p8673_p10 = pnand %p8671_p9, %p8668_p6 }
  0x62   : > { %8676 = shalt.err (!%p8673_p10)
}
  0x63   : > { %s8677_s21 = scalar_lea.vmem %s462_s30, 1024  ;;  %p8685_p4 = scmp.lt.s32.totalorder %s462_s30, %s462_s30 }
  0x64   : > { %p8678_p1 = scmp.ne.s32.totalorder %s462_s30, %s8677_s21  ;;  %p8686_p7 = scmp.lt.s32.totalorder %s8677_s21, %s8677_s21 }
  0x66   : > { %p8680_p2 = pnand %p8678_p1, %p9045_p0  ;;  %p8687_p8 = por %p8686_p7, %p8685_p4 }
  0x68   : > { %p8681_p3 = pneg %p8680_p2 }
  0x6a   : > { %p8688_p11 = pnand %p8687_p8, %p8681_p3 }
  0x6c   : > { %8691 = shalt.err (!%p8688_p11)
}
  0x6d   : > { %s11055_s17 = smov 64   ;;  %s11057_s15 = smov 4  }
  0x6e   : > { %7927 = dma.hbm_to_vmem [thread:$0]  (!%p9031_p12), %s11090_s23, 1024, %s462_s30, [#allocation4], %s11055_s17, %s11055_s17, %s11057_s15  }
  0x6f   : > { %s8865_s28 = smov [#allocation8]   ;;  %s8692_s22 = scalar_lea.hbm %s11024_s5, 6144 }
  0x70   : > { %s493_s2 = sshll.u32 %s8865_s28, 4  ;;  %p8693_p13 = scmp.ne.s32.totalorder %s11024_s5, %s8692_s22  ;;  %s494_s2 = int_to_ptr.vmem [resolvable:$true] %s493_s2 }
  0x71   : > { %p8699_p9 = scmp.lt.u32.totalorder %s8692_s22, %s11024_s5 }
  0x72   : > { %p8695_p5 = pnand %p8693_p13, %p9045_p0 }
  0x74   : > { %p8696_p6 = pneg %p8695_p5 }
  0x76   : > { %p8701_p10 = pnand %p8699_p9, %p8696_p6 }
  0x78   : > { %8704 = shalt.err (!%p8701_p10)
}
  0x79   : > { %s8705_s30 = scalar_lea.vmem %s494_s2, 6144  ;;  %p8713_p4 = scmp.lt.s32.totalorder %s494_s2, %s494_s2 }
  0x7a   : > { %p8706_p1 = scmp.ne.s32.totalorder %s494_s2, %s8705_s30  ;;  %p8714_p7 = scmp.lt.s32.totalorder %s8705_s30, %s8705_s30 }
  0x7c   : > { %p8708_p2 = pnand %p8706_p1, %p9045_p0  ;;  %p8715_p8 = por %p8714_p7, %p8713_p4 }
  0x7e   : > { %p8709_p3 = pneg %p8708_p2 }
  0x80   : > { %p8716_p11 = pnand %p8715_p8, %p8709_p3 }
  0x82   : > { %8719 = shalt.err (!%p8716_p11)
}
  0x83   : > { %s8866_s14 = smov 192   ;;  %s8867_s1 = smov 12  }
  0x84   : > { %7933 = dma.hbm_to_vmem [thread:$0]  (!%p9031_p12), %s11024_s5, 6144, %s494_s2, [#allocation7], %s8866_s14, %s8866_s14, %s8867_s1  }
  0x85   : > { %s8868_s18 = smov [#allocation11]   ;;  %s8869_s20 = smov [#allocation12]  }
  0x86   : > { %s534_s22 = sshll.u32 %s8868_s18, 4  ;;  %s556_s29 = sshll.u32 %s8869_s20, 4  ;;  %s535_s22 = int_to_ptr.vmem [resolvable:$true] %s534_s22  ;;  %s9123_s29 = int_to_ptr.vmem [resolvable:$true] %s556_s29 }
  0x87   : > { %s8720_s30 = scalar_lea.hbm %s11031_s12, 8192 }
  0x88   : > { %p8721_p13 = scmp.ne.s32.totalorder %s11031_s12, %s8720_s30  ;;  %p8727_p9 = scmp.lt.u32.totalorder %s8720_s30, %s11031_s12 }
  0x8a   : > { %p8723_p5 = pnand %p8721_p13, %p9045_p0 }
  0x8c   : > { %p8724_p6 = pneg %p8723_p5 }
  0x8e   : > { %p8729_p10 = pnand %p8727_p9, %p8724_p6 }
  0x90   : > { %8732 = shalt.err (!%p8729_p10)
}
  0x91   : > { %s8733_s14 = scalar_lea.vmem %s535_s22, 8192  ;;  %p8741_p4 = scmp.lt.s32.totalorder %s535_s22, %s535_s22 }
  0x92   : > { %p8734_p1 = scmp.ne.s32.totalorder %s535_s22, %s8733_s14  ;;  %p8742_p7 = scmp.lt.s32.totalorder %s8733_s14, %s8733_s14 }
  0x94   : > { %p8736_p2 = pnand %p8734_p1, %p9045_p0  ;;  %p8743_p8 = por %p8742_p7, %p8741_p4 }
  0x96   : > { %p8737_p3 = pneg %p8736_p2 }
  0x98   : > { %p8744_p11 = pnand %p8743_p8, %p8737_p3 }
  0x9a   : > { %8747 = shalt.err (!%p8744_p11)
}
  0x9b   : > { %s11091_s17 = smov 4   ;;  %s11092_s15 = smov 64  }
  0x9c   : > { %7939 = dma.hbm_to_vmem [thread:$0]  (!%p9031_p12), %s11031_s12, 8192, %s535_s22, [#allocation10], %s11092_s15, %s11092_s15, %s11091_s17  }
  0x9d   : > { %s8748_s26 = scalar_lea.hbm %s11035_s16, 1024 }
  0x9e   : > { %p8749_p13 = scmp.ne.s32.totalorder %s11035_s16, %s8748_s26  ;;  %p8755_p9 = scmp.lt.u32.totalorder %s8748_s26, %s11035_s16 }
  0xa0   : > { %p8751_p5 = pnand %p8749_p13, %p9045_p0 }
  0xa2   : > { %p8752_p6 = pneg %p8751_p5 }
  0xa4   : > { %p8757_p10 = pnand %p8755_p9, %p8752_p6 }
  0xa6   : > { %8760 = shalt.err (!%p8757_p10)
}
  0xa7   : > { %s8761_s22 = scalar_lea.vmem %s9123_s29, 1024  ;;  %p8769_p4 = scmp.lt.s32.totalorder %s9123_s29, %s9123_s29 }
  0xa8   : > { %p8762_p1 = scmp.ne.s32.totalorder %s9123_s29, %s8761_s22  ;;  %p8770_p7 = scmp.lt.s32.totalorder %s8761_s22, %s8761_s22 }
  0xaa   : > { %p8764_p2 = pnand %p8762_p1, %p9045_p0  ;;  %p8771_p8 = por %p8770_p7, %p8769_p4 }
  0xac   : > { %p8765_p3 = pneg %p8764_p2 }
  0xae   : > { %p8772_p11 = pnand %p8771_p8, %p8765_p3 }
  0xb0   : > { %8775 = shalt.err (!%p8772_p11)
}
  0xb1   : > { %7942 = dma.hbm_to_vmem [thread:$0]  (!%p9031_p12), %s11035_s16, 1024, %s9123_s29, [#allocation13], %s11092_s15, %s11092_s15, %s11091_s17  }
  0xb2   : > { %p11093_p13 = scmp.ne.s32.totalorder %s11086_s24, 0 }
  0xb4   : > { %584 = sbr.rel (%p11093_p13) target bundleno = 8640 (0x21c0), region = 92 }
  0xbb   : > { %p11094_p0 = scmp.eq.s32.totalorder %s8995_s0, 0 }
  0xbd   : > { %8821 = dma.done.wait (%p11094_p0), [#allocation4], 1024   ;;  %p11095_p5 = pmov %p11094_p0 }
  0xbe   : > { %p11096_p6 = pmov %p11094_p0 }
  0xbf   : > { %8823 = vsyncadd (%p11095_p5), [#allocation4], 4294966272 }
  0xc0   : > { %8825 = dma.done.wait (%p11096_p6), [#allocation7], 7168   ;;  %p11097_p9 = pmov %p11094_p0 }
  0xc1   : > { %p11098_p10 = pmov %p11094_p0 }
  0xc2   : > { %8827 = vsyncadd (%p11097_p9), [#allocation7], 4294960128 }
  0xc3   : > { %8829 = dma.done.wait (%p11098_p10), [#allocation10], 16384   ;;  %p11099_p12 = pmov %p11094_p0 }
  0xc4   : > { %p11100_p1 = pmov %p11094_p0 }
  0xc5   : > { %8831 = vsyncadd (%p11099_p12), [#allocation10], 4294950912 }
  0xc6   : > { %8833 = dma.done.wait (%p11100_p1), [#allocation13], 1024   ;;  %p11101_p2 = pmov %p11094_p0 }
  0xc7   : > { %s6772_s24 = sshll.u32 %s8995_s0, 3  ;;  %v11059_v0 = vmov 0   ;;  %s11102_s17 = sld [smem:[#allocation30_spill]]  ;;  %v8016_v5 = vld [vmem:[#allocation3] sm:$0xff]   ;;  %v8017_v6 = vld [vmem:[#allocation3 + $0x8] sm:$0xff]   ;;  %v8018_v10 = vld [vmem:[#allocation3 + $0x10] sm:$0xff]   ;;  %v666_v17 = vlaneseq }
  0xc8   : > { %8835 = vsyncadd (%p11101_p2), [#allocation13], 4294966272  ;;  %8015 = vset.pattern.permute.xlu1 %v11059_v0  ;;  %8014 = vset.pattern.permute.xlu0 %v11059_v0  ;;  %p659_p3 = scmp.lt.s32.totalorder %s6772_s24, 15  ;;  %v8019_v12 = vld [vmem:[#allocation3 + $0x18] sm:$0xff]   ;;  %v8020_v13 = vld [vmem:[#allocation3 + $0x20] sm:$0xff]   ;;  %vm1331_vm12 = vcmask 261120  }
  0xc9   : > { %1213 = vmatprep.mubr.bf16.mxu1 %v11059_v0  ;;  %7466 = vmatprep.subr.bf16.mxu0 %v8016_v5  ;;  %v8021_v14 = vld [vmem:[#allocation3 + $0x28] sm:$0xff]   ;;  %v8022_v15 = vld [vmem:[#allocation3 + $0x30] sm:$0xff]   ;;  %v8023_v16 = vld [vmem:[#allocation3 + $0x38] sm:$0xff]   ;;  %v9198_v20 = vand.u32 127, %v666_v17  ;;  %v8871_v23 = vmov 1.0|1.0  }
  0xca   : > { %s11134_s24 = smov (!%p659_p3, %s6772_s24), 15  ;;  %7467 = vmatpush3.bf16.msra.mxu0 %v8016_v5  ;;  %v857_v28 = vld [vmem:[#allocation6] sm:$0xff]  ;;  %v858_v31 = vld [vmem:[#allocation6 + $0x8] sm:$0xff]  ;;  %v859_v34 = vld [vmem:[#allocation6 + $0x10] sm:$0xff]  ;;  %s8872_s21 = smov 96  }
  0xcb   : > { %s6773_s19 = sshll.u32 %s11134_s24, 3  ;;  %7468 = vmatprep.subr.bf16.mxu0 %v8017_v6  ;;  %v860_v38 = vld [vmem:[#allocation6 + $0x18] sm:$0xff]  ;;  %v861_v39 = vld [vmem:[#allocation6 + $0x20] sm:$0xff]  ;;  %v863_v45 = vld [vmem:[#allocation6 + $0x30] sm:$0xff]  ;;  %s8874_s30 = smov 64  }
  0xcc   : > { %v862_v47 = vld [vmem:[#allocation6 + $0x28] sm:$0xff]  ;;  %v864_v50 = vld [vmem:[#allocation6 + $0x38] sm:$0xff]  ;;  %v8024_v52 = vld [vmem:[#allocation8 + $0x4] ss:$12 sps:$4 sm:$0xff]   ;;  %s8875_s28 = smov 32   ;;  %s11118_s26 = sld [smem:[#allocation33_spill]] }
  0xcd   : > { %s662_s15 = scalar_lea.vmem %s11102_s17, %s6773_s19  ;;  %v8026_v53 = vld [vmem:[#allocation8] ss:$12 sps:$4 sm:$0xff]   ;;  %v8027_v54 = vld [vmem:[#allocation8 + $0x1c] ss:$12 sps:$4 sm:$0xff]   ;;  %1181 = vmatprep.subr.bf16.mxu1 %v8024_v52  ;;  %v8029_v56 = vld [vmem:[#allocation8 + $0x18] ss:$12 sps:$4 sm:$0xff]  }
  0xce   : > { %v670_v1 = vld [vmem:[%s662_s15 + $0x10] sm:$0xff]  ;;  %v668_v2 = vld [vmem:[%s662_s15] sm:$0xff]  ;;  %v671_v3 = vld [vmem:[%s662_s15 + $0x18] sm:$0xff]  ;;  %7469 = vmatpush3.bf16.msra.mxu0 %v8017_v6  ;;  %1182 = vmatpush1.bf16.msra.mxu1 %v8026_v53  ;;  %s11119_s14 = sld [smem:[#allocation34_spill]]  ;;  %s11120_s1 = sld [smem:[#allocation21_spill]] }
  0xcf   : > { %683 = vperm.xlu1 %8015, %v670_v1   ;;  %677 = vperm.xlu0 %8014, %v668_v2   ;;  %v669_v4 = vld [vmem:[%s662_s15 + $0x8] sm:$0xff]  ;;  %v672_v8 = vld [vmem:[%s662_s15 + $0x20] sm:$0xff]  ;;  %v675_v9 = vld [vmem:[%s662_s15 + $0x38] sm:$0xff]  ;;  %s11121_s19 = sld [smem:[#allocation35_spill]]  ;;  %s11123_s20 = sld [smem:[#allocation36_spill]] }
  0xd0   : > { %v673_v7 = vld [vmem:[%s662_s15 + $0x28] sm:$0xff]  ;;  %v674_v11 = vld [vmem:[%s662_s15 + $0x30] sm:$0xff]  ;;  %7470 = vmatprep.subr.bf16.mxu0 %v8018_v10  ;;  %1183 = vmatprep.subr.bf16.mxu1 %v8027_v54  ;;  %v8055_v54 = vld [vmem:[#allocation8 + $0xb0] ss:$12 sps:$4 sm:$0xff]   ;;  %s11122_s17 = sld [smem:[#allocation26_spill]]  ;;  %s7105_s15 = sshll.u32 %s8995_s0, 10 }
  0xd1   : > { %v8030_v55 = vld [vmem:[#allocation8 + $0x8] ss:$12 sps:$4 sm:$0xff]   ;;  %v8054_v53 = vld [vmem:[#allocation8 + $0x98] ss:$12 sps:$4 sm:$0xff]   ;;  %s8876_s22 = smov [#allocation14]  }
  0xd2   : > { %7471 = vmatpush3.bf16.msra.mxu0 %v8018_v10  ;;  %1184 = vmatpush1.bf16.msra.mxu1 %v8029_v56  ;;  %v8053_v52 = vld [vmem:[#allocation8 + $0xa8] ss:$12 sps:$4 sm:$0xff]  }
  0xd3   : > { %686 = vperm.xlu1 %8015, %v671_v3   ;;  %680 = vperm.xlu0 %8014, %v669_v4  }
  0xd4   : > { %7472 = vmatprep.subr.bf16.mxu0 %v8019_v12 }
  0xd6   : > { %7473 = vmatpush3.bf16.msra.mxu0 %v8019_v12  ;;  %p11124_p7 = scmp.ne.s32.totalorder %s11122_s17, 0 }
  0xd7   : > { %692 = vperm.xlu1 %8015, %v673_v7   ;;  %689 = vperm.xlu0 %8014, %v672_v8  }
  0xd8   : > { %7474 = vmatprep.subr.bf16.mxu0 %v8020_v13 }
  0xda   : > { %7475 = vmatpush3.bf16.msra.mxu0 %v8020_v13 }
  0xdb   : > { %698 = vperm.xlu1 %8015, %v675_v9   ;;  %695 = vperm.xlu0 %8014, %v674_v11  }
  0xdc   : > { %7476 = vmatprep.subr.bf16.mxu0 %v8021_v14 }
  0xde   : > { %7477 = vmatpush3.bf16.msra.mxu0 %v8021_v14 }
  0xdf   : > { %7478 = vmatprep.subr.bf16.mxu0 %v8022_v15 }
  0xe2   : > { %7479 = vmatpush3.bf16.msra.mxu0 %v8022_v15 }
  0xe3   : > { %7480 = vmatprep.subr.bf16.mxu0 %v8023_v16 }
  0xe6   : > { %7481 = vmatpush3.bf16.msra.mxu0 %v8023_v16 }
  0xe7   : > { %7490 = vmatprep.subr.bf16.mxu0 %v8030_v55 }
 0x14e   : > { %v684_v18 = vpop.permute.xlu1 %683  ;;  %v678_v19 = vpop.permute.xlu0 %677 }
 0x14f   : > { %vm702_vm0 = vcmp.eq.s32.totalorder %v9198_v20, %v684_v18  ;;  %vm700_vm4 = vcmp.eq.s32.totalorder %v9198_v20, %v678_v19 }
 0x152   : > { %v687_v21 = vpop.permute.xlu1 %686  ;;  %v681_v22 = vpop.permute.xlu0 %680 }
 0x153   : > { %vm703_vm1 = vcmp.eq.s32.totalorder %v9198_v20, %v687_v21  ;;  %vm701_vm2 = vcmp.eq.s32.totalorder %v9198_v20, %v681_v22 }
 0x154   : > { %vm6792_vm3 = vmpackc.low %vm703_vm1, %vm702_vm0  ;;  %vm1421_vm0 = vcmask 523264  }
 0x155   : > { %vm6790_vm5 = vmpackc.low %vm701_vm2, %vm700_vm4 }
 0x156   : > { %7482 = vmatprep.mubr.msk.bf16.mxu0 %vm6790_vm5, %v8871_v23  ;;  %v693_v24 = vpop.permute.xlu1 %692  ;;  %v690_v25 = vpop.permute.xlu0 %689 }
 0x157   : > { %vm705_vm6 = vcmp.eq.s32.totalorder %v9198_v20, %v693_v24  ;;  %7483 = vmatmul.mubr.msk.bf16.vlgmr.msra.gmra.mrb[0].mxu0 %vm6792_vm3, %v8871_v23  ;;  %vm704_vm7 = vcmp.eq.s32.totalorder %v9198_v20, %v690_v25 }
 0x158   : > { %vm6794_vm8 = vmpackc.low %vm705_vm6, %vm704_vm7  ;;  %7491 = vmatpush3.bf16.msra.mxu0 %v8030_v55  ;;  %vm1917_vm6 = vcmask 523520   ;;  %vm2228_vm7 = vcmask 785920  }
 0x159   : > { %7486 = vmatprep.mubr.msk.bf16.mxu0 %vm6794_vm8, %v8871_v23  ;;  %vm2539_vm8 = vcmask 1048320  }
 0x15a   : > { %v699_v26 = vpop.permute.xlu1 %698  ;;  %v696_v27 = vpop.permute.xlu0 %695 }
 0x15b   : > { %vm707_vm9 = vcmp.eq.s32.totalorder %v9198_v20, %v699_v26  ;;  %vm706_vm10 = vcmp.eq.s32.totalorder %v9198_v20, %v696_v27  ;;  %v8031_v27 = vld [vmem:[#allocation8 + $0x34] ss:$12 sps:$4 sm:$0xff]  }
 0x15c   : > { %vm6796_vm11 = vmpackc.low %vm707_vm9, %vm706_vm10  ;;  %1185 = vmatprep.subr.bf16.mxu1 %v8031_v27 }
 0x15f   : > { %7487 = vmatmul.mubr.msk.bf16.gmra.mrb[4].mxu0 %vm6796_vm11, %v8871_v23 }
 0x22a   : > { %v7484_v29 = vpop.f32.mrb[0].mxu0 }
 0x22b   : > { %v826_v30 = vpop.f32.mrb[1].mxu0  ;;  %v9213_v37 = vadd.f32 %v7484_v29, %v859_v34  ;;  %v8033_v29 = vld [vmem:[#allocation8 + $0x30] ss:$12 sps:$4 sm:$0xff]   ;;  %v8038_v34 = vld [vmem:[#allocation8 + $0x38] ss:$12 sps:$4 sm:$0xff]  }
 0x22c   : > { %v9208_v32 = vadd.f32 %v857_v28, %v826_v30  ;;  %v7485_v33 = vpop.f32.mrb[2].mxu0  ;;  %v8034_v30 = vld [vmem:[#allocation8 + $0x20] ss:$12 sps:$4 sm:$0xff]   ;;  %1186 = vmatpush1.bf16.msra.mxu1 %v8033_v29 }
 0x22d   : > { %v829_v35 = vpop.f32.mrb[3].mxu0  ;;  %v9217_v42 = vadd.f32 %v7485_v33, %v860_v38  ;;  %7492 = vmatprep.subr.bf16.mxu0 %v8034_v30  ;;  %v8037_v33 = vld [vmem:[#allocation8 + $0x48] ss:$12 sps:$4 sm:$0xff]   ;;  %v8041_v38 = vld [vmem:[#allocation8 + $0x60] ss:$12 sps:$4 sm:$0xff]  }
 0x22e   : > { %v9210_v36 = vadd.f32 %v858_v31, %v829_v35  ;;  %900 = vadd.xlane.f32.xlu0 %v9208_v32  ;;  %v8035_v31 = vld [vmem:[#allocation8 + $0x4c] ss:$12 sps:$4 sm:$0xff]   ;;  %7493 = vmatpush3.bf16.msra.mxu0 %v8034_v30  ;;  %v8039_v35 = vld [vmem:[#allocation8 + $0x64] ss:$12 sps:$4 sm:$0xff]  }
 0x22f   : > { %1187 = vmatprep.subr.bf16.mxu1 %v8035_v31  ;;  %7494 = vmatprep.subr.bf16.mxu0 %v8038_v34 }
 0x230   : > { %902 = vadd.xlane.f32.xlu1 %v9210_v36  ;;  %1188 = vmatpush1.bf16.msra.mxu1 %v8037_v33 }
 0x231   : > { %1189 = vmatprep.subr.bf16.mxu1 %v8039_v35 }
 0x232   : > { %904 = vadd.xlane.f32.xlu0 %v9213_v37  ;;  %v7488_v40 = vpop.f32.mrb[4].mxu0  ;;  %7495 = vmatpush3.bf16.msra.mxu0 %v8038_v34  ;;  %v6799_v34 = vld [vmem:[%s11023_s4] ss:$0 sm:$0xff] }
 0x233   : > { %v842_v41 = vpop.f32.mrb[5].mxu0  ;;  %v9223_v48 = vadd.f32 %v7488_v40, %v863_v45  ;;  %v8043_v40 = vld [vmem:[#allocation8 + $0x7c] ss:$12 sps:$4 sm:$0xff]   ;;  %v8047_v45 = vld [vmem:[#allocation8 + $0x94] ss:$12 sps:$4 sm:$0xff]  }
 0x234   : > { %v9219_v43 = vadd.f32 %v861_v39, %v842_v41  ;;  %v7489_v44 = vpop.f32.mrb[6].mxu0  ;;  %v8042_v39 = vld [vmem:[#allocation8 + $0x50] ss:$12 sps:$4 sm:$0xff]   ;;  %1190 = vmatpush1.bf16.msra.mxu1 %v8041_v38  ;;  %v8045_v41 = vld [vmem:[#allocation8 + $0x78] ss:$12 sps:$4 sm:$0xff]  }
 0x235   : > { %v845_v46 = vpop.f32.mrb[7].mxu0  ;;  %v9229_v51 = vadd.f32 %v7489_v44, %v864_v50  ;;  %7496 = vmatprep.subr.bf16.mxu0 %v8042_v39  ;;  %1191 = vmatprep.subr.bf16.mxu1 %v8043_v40  ;;  %v8046_v44 = vld [vmem:[#allocation8 + $0x68] ss:$12 sps:$4 sm:$0xff]   ;;  %v8051_v50 = vld [vmem:[#allocation8 + $0xac] ss:$12 sps:$4 sm:$0xff]  }
 0x236   : > { %906 = vadd.xlane.f32.xlu0 %v9217_v42  ;;  %908 = vadd.xlane.f32.xlu1 %v9219_v43  ;;  %v9225_v49 = vadd.f32 %v862_v47, %v845_v46  ;;  %v8049_v46 = vld [vmem:[#allocation8 + $0x90] ss:$12 sps:$4 sm:$0xff]   ;;  %v8050_v47 = vld [vmem:[#allocation8 + $0x80] ss:$12 sps:$4 sm:$0xff]  }
 0x237   : > { %7497 = vmatpush3.bf16.msra.mxu0 %v8042_v39 }
 0x238   : > { %1192 = vmatpush1.bf16.msra.mxu1 %v8045_v41  ;;  %7498 = vmatprep.subr.bf16.mxu0 %v8046_v44 }
 0x239   : > { %1193 = vmatprep.subr.bf16.mxu1 %v8047_v45 }
 0x23a   : > { %912 = vadd.xlane.f32.xlu1 %v9223_v48  ;;  %910 = vadd.xlane.f32.xlu0 %v9225_v49 }
 0x23b   : > { %7499 = vmatpush3.bf16.msra.mxu0 %v8046_v44 }
 0x23c   : > { %1194 = vmatpush1.bf16.msra.mxu1 %v8049_v46  ;;  %7500 = vmatprep.subr.bf16.mxu0 %v8050_v47 }
 0x23d   : > { %1195 = vmatprep.subr.bf16.mxu1 %v8051_v50 }
 0x23e   : > { %914 = vadd.xlane.f32.xlu0 %v9229_v51 }
 0x23f   : > { %7501 = vmatpush3.bf16.msra.mxu0 %v8050_v47 }
 0x240   : > { %1196 = vmatpush1.bf16.msra.mxu1 %v8053_v52  ;;  %7502 = vmatprep.subr.bf16.mxu0 %v8054_v53 }
 0x243   : > { %7503 = vmatpush3.bf16.msra.mxu0 %v8054_v53 }
 0x244   : > { %7504 = vmatprep.subr.bf16.mxu0 %v8055_v54 }
 0x247   : > { %7505 = vmatpush3.bf16.msra.mxu0 %v8055_v54 }
 0x2bb   : > { %v901_v57 = vpop.xlane.xlu0 %900 }
 0x2bc   : > { %v917_v58 = vmul.f32 0.0078125, %v901_v57 }
 0x2bd   : > { %v903_v59 = vpop.xlane.xlu1 %902 }
 0x2be   : > { %v918_v60 = vmul.f32 0.0078125, %v903_v59  ;;  %v9233_v61 = vsub.f32 %v9208_v32, %v917_v58 }
 0x2bf   : > { %v905_v62 = vpop.xlane.xlu0 %904 }
 0x2c0   : > { %v919_v63 = vmul.f32 0.0078125, %v905_v62  ;;  %v933_v1 = vmul.f32 %v9233_v61, %v9233_v61  ;;  %v9238_v2 = vsub.f32 %v9210_v36, %v918_v60 }
 0x2c2   : > { %941 = vadd.xlane.f32.xlu1 %v933_v1  ;;  %v934_v3 = vmul.f32 %v9238_v2, %v9238_v2  ;;  %v9243_v4 = vsub.f32 %v9213_v37, %v919_v63 }
 0x2c3   : > { %v909_v5 = vpop.xlane.xlu1 %908  ;;  %v907_v6 = vpop.xlane.xlu0 %906 }
 0x2c4   : > { %v921_v7 = vmul.f32 0.0078125, %v909_v5  ;;  %v920_v8 = vmul.f32 0.0078125, %v907_v6  ;;  %943 = vadd.xlane.f32.xlu0 %v934_v3  ;;  %v935_v9 = vmul.f32 %v9243_v4, %v9243_v4 }
 0x2c6   : > { %945 = vadd.xlane.f32.xlu1 %v935_v9  ;;  %v9248_v10 = vsub.f32 %v9219_v43, %v921_v7  ;;  %v9251_v11 = vsub.f32 %v9217_v42, %v920_v8 }
 0x2c7   : > { %v913_v12 = vpop.xlane.xlu1 %912  ;;  %v911_v13 = vpop.xlane.xlu0 %910 }
 0x2c8   : > { %v923_v14 = vmul.f32 0.0078125, %v913_v12  ;;  %v922_v15 = vmul.f32 0.0078125, %v911_v13  ;;  %v937_v16 = vmul.f32 %v9248_v10, %v9248_v10  ;;  %v936_v18 = vmul.f32 %v9251_v11, %v9251_v11 }
 0x2ca   : > { %949 = vadd.xlane.f32.xlu1 %v937_v16  ;;  %947 = vadd.xlane.f32.xlu0 %v936_v18  ;;  %v9258_v19 = vsub.f32 %v9223_v48, %v923_v14  ;;  %v9261_v21 = vsub.f32 %v9225_v49, %v922_v15  ;;  %v6798_v18 = vld [vmem:[%s11022_s3] ss:$0 sm:$0xff] }
 0x2cb   : > { %v915_v22 = vpop.xlane.xlu0 %914 }
 0x2cc   : > { %v924_v23 = vmul.f32 0.0078125, %v915_v22  ;;  %v939_v24 = vmul.f32 %v9258_v19, %v9258_v19  ;;  %v938_v25 = vmul.f32 %v9261_v21, %v9261_v21 }
 0x2ce   : > { %953 = vadd.xlane.f32.xlu1 %v939_v24  ;;  %951 = vadd.xlane.f32.xlu0 %v938_v25  ;;  %v9268_v26 = vsub.f32 %v9229_v51, %v924_v23 }
 0x2d0   : > { %v940_v28 = vmul.f32 %v9268_v26, %v9268_v26 }
 0x2d2   : > { %955 = vadd.xlane.f32.xlu0 %v940_v28 }
 0x34f   : > { %v942_v55 = vpop.xlane.xlu1 %941 }
 0x350   : > { %v957_v56 = vmul.f32 0.0078125, %v942_v55 }
 0x351   : > { %v944_v57 = vpop.xlane.xlu0 %943 }
 0x352   : > { %v965_v58 = vadd.f32 1e-05, %v957_v56  ;;  %v958_v59 = vmul.f32 0.0078125, %v944_v57 }
 0x353   : > { %v946_v60 = vpop.xlane.xlu1 %945 }
 0x354   : > { %8272 = vrsqrt.f32 %v965_v58  ;;  %v966_v62 = vadd.f32 1e-05, %v958_v59  ;;  %v959_v63 = vmul.f32 0.0078125, %v946_v60 }
 0x356   : > { %8274 = vrsqrt.f32 %v966_v62  ;;  %v967_v1 = vadd.f32 1e-05, %v959_v63 }
 0x357   : > { %v950_v3 = vpop.xlane.xlu1 %949  ;;  %v948_v5 = vpop.xlane.xlu0 %947 }
 0x358   : > { %8276 = vrsqrt.f32 %v967_v1  ;;  %v961_v6 = vmul.f32 0.0078125, %v950_v3  ;;  %v960_v7 = vmul.f32 0.0078125, %v948_v5 }
 0x35a   : > { %v969_v8 = vadd.f32 1e-05, %v961_v6  ;;  %v968_v9 = vadd.f32 1e-05, %v960_v7 }
 0x35b   : > { %v954_v12 = vpop.xlane.xlu1 %953  ;;  %v952_v13 = vpop.xlane.xlu0 %951 }
 0x35c   : > { %8278 = vrsqrt.f32 %v969_v8  ;;  %v963_v14 = vmul.f32 0.0078125, %v954_v12  ;;  %v962_v15 = vmul.f32 0.0078125, %v952_v13 }
 0x35d   : > { %8280 = vrsqrt.f32 %v968_v9 }
 0x35e   : > { %v8273_v16 = vpop.eup %8272  ;;  %v971_v22 = vadd.f32 1e-05, %v963_v14  ;;  %v970_v23 = vadd.f32 1e-05, %v962_v15 }
 0x35f   : > { %v956_v24 = vpop.xlane.xlu0 %955  ;;  %v981_v25 = vmul.f32 %v8273_v16, %v9233_v61 }
 0x360   : > { %v8275_v27 = vpop.eup %8274  ;;  %8282 = vrsqrt.f32 %v971_v22  ;;  %v964_v28 = vmul.f32 0.0078125, %v956_v24 }
 0x361   : > { %8284 = vrsqrt.f32 %v970_v23  ;;  %v982_v29 = vmul.f32 %v8275_v27, %v9238_v2  ;;  %v995_v30 = vmul.f32 %v6798_v18, %v981_v25 }
 0x362   : > { %v8277_v31 = vpop.eup %8276  ;;  %v972_v33 = vadd.f32 1e-05, %v964_v28 }
 0x363   : > { %v996_v35 = vmul.f32 %v6798_v18, %v982_v29  ;;  %v983_v38 = vmul.f32 %v8277_v31, %v9243_v4  ;;  %v1009_v39 = vadd.f32 %v6799_v34, %v995_v30 }
 0x364   : > { %8286 = vrsqrt.f32 %v972_v33 }
 0x365   : > { %v1010_v40 = vadd.f32 %v6799_v34, %v996_v35  ;;  %v997_v45 = vmul.f32 %v6798_v18, %v983_v38 }
 0x366   : > { %v8279_v61 = vpop.eup %8278 }
 0x367   : > { %v8281_v41 = vpop.eup %8280  ;;  %v1017_v44 = vpack.c.bf16 %v1010_v40, %v1009_v39  ;;  %v985_v2 = vmul.f32 %v8279_v61, %v9248_v10  ;;  %v1011_v53 = vadd.f32 %v6799_v34, %v997_v45 }
 0x368   : > { %v984_v46 = vmul.f32 %v8281_v41, %v9251_v11 }
 0x369   : > { %1214 = vmatmul.mubr.bf16.vlgmr.msra.gmra.mrb[0].mxu1 %v1017_v44  ;;  %7506 = vmatprep.mubr.bf16.mxu0 %v1017_v44  ;;  %v999_v56 = vmul.f32 %v6798_v18, %v985_v2 }
 0x36a   : > { %v8283_v47 = vpop.eup %8282  ;;  %v998_v50 = vmul.f32 %v6798_v18, %v984_v46  ;;  %1223 = vmatprep.mubr.bf16.mxu1 %v11059_v0 }
 0x36b   : > { %v8285_v52 = vpop.eup %8284  ;;  %v987_v4 = vmul.f32 %v8283_v47, %v9258_v19  ;;  %v1013_v60 = vadd.f32 %v6799_v34, %v999_v56 }
 0x36c   : > { %v1012_v54 = vadd.f32 %v6799_v34, %v998_v50  ;;  %v986_v55 = vmul.f32 %v8285_v52, %v9261_v21 }
 0x36d   : > { %v1001_v10 = vmul.f32 %v6798_v18, %v987_v4 }
 0x36e   : > { %v8287_v57 = vpop.eup %8286  ;;  %v1018_v58 = vpack.c.bf16 %v1012_v54, %v1011_v53  ;;  %v1000_v59 = vmul.f32 %v6798_v18, %v986_v55 }
 0x36f   : > { %v988_v11 = vmul.f32 %v8287_v57, %v9268_v26  ;;  %v1015_v19 = vadd.f32 %v6799_v34, %v1001_v10 }
 0x370   : > { %7507 = vmatmul.mubr.bf16.vlgmr.msra.gmra.mrb[8].mxu0 %v1018_v58  ;;  %v1014_v62 = vadd.f32 %v6799_v34, %v1000_v59 }
 0x371   : > { %1224 = vmatmul.mubr.bf16.gmra.mrb[4].mxu1 %v1018_v58  ;;  %v1002_v63 = vmul.f32 %v6798_v18, %v988_v11 }
 0x372   : > { %v1019_v1 = vpack.c.bf16 %v1014_v62, %v1013_v60  ;;  %1233 = vmatprep.mubr.bf16.mxu1 %v11059_v0 }
 0x373   : > { %v1016_v3 = vadd.f32 %v6799_v34, %v1002_v63 }
 0x374   : > { %7510 = vmatprep.mubr.bf16.mxu0 %v1019_v1 }
 0x375   : > { %v1020_v5 = vpack.c.bf16 %v1016_v3, %v1015_v19 }
 0x378   : > { %7511 = vmatmul.mubr.bf16.gmra.mrb[12].mxu0 %v1020_v5 }
 0x379   : > { %1234 = vmatmul.mubr.bf16.gmra.mrb[8].mxu1 %v1019_v1 }
 0x37a   : > { %1243 = vmatprep.mubr.bf16.mxu1 %v11059_v0 }
 0x381   : > { %1244 = vmatmul.mubr.bf16.gmra.mrb[12].mxu1 %v1020_v5  ;;  %v9374_v5 = vshrl.u32 %v666_v17, 7 }
 0x383   : > { %11103 = vst [vmem:[#allocation28_spill] sm:$0xff] %v9374_v5  ;;  %vm882_vm14 = vcmp.le.s32.totalorder %v9198_v20, %v9374_v5 }
 0x43c   : > { %v1215_v21 = vpop.f32.mrb[0].mxu1 }
 0x43d   : > { %v1217_v26 = vpop.f32.mrb[1].mxu1 }
 0x43e   : > { %v1219_v6 = vpop.f32.mrb[2].mxu1 }
 0x43f   : > { %v9289_v7 = vpack.c.bf16 %v1219_v6, %v1215_v21  ;;  %v1221_v8 = vpop.f32.mrb[3].mxu1  ;;  %v876_v21 = vadd.s32 16, %v9374_v5  ;;  %v877_v6 = vadd.s32 24, %v9374_v5 }
 0x440   : > { %v9291_v9 = vpack.c.bf16 %v1221_v8, %v1217_v26  ;;  %v875_v26 = vadd.s32 8, %v9374_v5  ;;  %v8873_v8 = vmov -1e+30  }
 0x441   : > { %7522 = vmatprep.mubr.msk.bf16.mxu1 %vm1331_vm12, %v9289_v7  ;;  %vm884_vm13 = vcmp.le.s32.totalorder %v9198_v20, %v876_v21  ;;  %vm885_vm1 = vcmp.le.s32.totalorder %v9198_v20, %v877_v6 }
 0x442   : > { %1615 = vrot.lane.b32.xlu1 %v9291_v9, %s8872_s21  ;;  %7866 = vmatprep.subr.msk.bf16.mxu1 %vm1331_vm12, %v9291_v9  ;;  %v1345_v12 = vsel %vm1331_vm12, %v9291_v9, 0  ;;  %vm883_vm15 = vcmp.le.s32.totalorder %v9198_v20, %v875_v26 }
 0x443   : > { %v7508_v13 = vpop.f32.mrb[8].mxu0  ;;  %7515 = vmatpush3.bf16.xpose.msra.mxu1 %v1345_v12  ;;  %v9382_v12 = vsel %vm884_vm13, 0.0, %v8873_v8 }
 0x444   : > { %v1288_v14 = vpop.f32.mrb[9].mxu0  ;;  %v1225_v15 = vpop.f32.mrb[4].mxu1 }
 0x445   : > { %v7509_v16 = vpop.f32.mrb[10].mxu0  ;;  %v1227_v18 = vpop.f32.mrb[5].mxu1 }
 0x446   : > { %v9301_v22 = vpack.c.bf16 %v7509_v16, %v7508_v13  ;;  %v1291_v23 = vpop.f32.mrb[11].mxu0  ;;  %v1229_v24 = vpop.f32.mrb[6].mxu1  ;;  %v880_v13 = vadd.s32 48, %v9374_v5 }
 0x447   : > { %v9303_v25 = vpack.c.bf16 %v1291_v23, %v1288_v14  ;;  %v9305_v27 = vpack.c.bf16 %v1229_v24, %v1225_v15  ;;  %v1231_v28 = vpop.f32.mrb[7].mxu1  ;;  %v9386_v14 = vsel %vm882_vm14, 0.0, %v8873_v8  ;;  %v878_v23 = vadd.s32 32, %v9374_v5 }
 0x448   : > { %v9307_v29 = vpack.c.bf16 %v1231_v28, %v1227_v18  ;;  %v9392_v18 = vsel %vm883_vm15, 0.0, %v8873_v8  ;;  %v879_v28 = vadd.s32 40, %v9374_v5  ;;  %vm888_vm2 = vcmp.le.s32.totalorder %v9198_v20, %v880_v13 }
 0x449   : > { %7530 = vmatprep.subr.bf16.mxu0 %v9303_v25  ;;  %vm886_vm3 = vcmp.le.s32.totalorder %v9198_v20, %v878_v23 }
 0x44a   : > { %7531 = vmatpush3.bf16.msra.mxu0 %v9303_v25  ;;  %1617 = vrot.lane.b32.xlu0 %v9307_v29, %s8872_s21  ;;  %v1348_v30 = vsel %vm1331_vm12, %v9307_v29, 0  ;;  %vm887_vm4 = vcmp.le.s32.totalorder %v9198_v20, %v879_v28 }
 0x44b   : > { %7532 = vmatprep.subr.bf16.mxu0 %v9301_v22  ;;  %v7512_v31 = vpop.f32.mrb[12].mxu0  ;;  %7867 = vmatprep.subr.msk.bf16.mxu1 %vm1331_vm12, %v9307_v29 }
 0x44c   : > { %v1304_v33 = vpop.f32.mrb[13].mxu0  ;;  %7517 = vmatpush3.bf16.xpose.msra.mxu1 %v1348_v30  ;;  %v1235_v34 = vpop.f32.mrb[8].mxu1 }
 0x44d   : > { %v7513_v35 = vpop.f32.mrb[14].mxu0  ;;  %v1237_v38 = vpop.f32.mrb[9].mxu1 }
 0x44e   : > { %v9318_v39 = vpack.c.bf16 %v7513_v35, %v7512_v31  ;;  %v1307_v40 = vpop.f32.mrb[15].mxu0  ;;  %7533 = vmatpush3.bf16.msra.mxu0 %v9301_v22  ;;  %1603 = vrot.lane.b32.xlu0 %v9289_v7, %s8872_s21  ;;  %v1239_v61 = vpop.f32.mrb[10].mxu1 }
 0x44f   : > { %v9323_v41 = vpack.c.bf16 %v1307_v40, %v1304_v33  ;;  %v9325_v44 = vpack.c.bf16 %v1239_v61, %v1235_v34  ;;  %v1241_v45 = vpop.f32.mrb[11].mxu1  ;;  %v9402_v34 = vsel %vm885_vm1, 0.0, %v8873_v8  ;;  %v9411_v61 = vsel %vm888_vm2, 0.0, %v8873_v8 }
 0x450   : > { %v9327_v46 = vpack.c.bf16 %v1241_v45, %v1237_v38  ;;  %v881_v38 = vadd.s32 56, %v9374_v5 }
 0x451   : > { %7534 = vmatprep.subr.bf16.mxu0 %v9323_v41 }
 0x452   : > { %7535 = vmatpush3.bf16.msra.mxu0 %v9323_v41  ;;  %1607 = vrot.lane.b32.xlu0 %v9325_v44, %s8872_s21  ;;  %v1351_v2 = vsel %vm1331_vm12, %v9327_v46, 0  ;;  %vm889_vm5 = vcmp.le.s32.totalorder %v9198_v20, %v881_v38 }
 0x453   : > { %1619 = vrot.lane.b32.xlu1 %v9327_v46, %s8872_s21  ;;  %7868 = vmatprep.subr.msk.bf16.mxu1 %vm1331_vm12, %v9327_v46 }
 0x454   : > { %7536 = vmatprep.subr.bf16.mxu0 %v9318_v39  ;;  %7519 = vmatpush3.bf16.xpose.msra.mxu1 %v1351_v2  ;;  %v1245_v47 = vpop.f32.mrb[12].mxu1 }
 0x455   : > { %v1247_v50 = vpop.f32.mrb[13].mxu1 }
 0x456   : > { %7537 = vmatpush3.bf16.msra.mxu0 %v9318_v39  ;;  %v1249_v52 = vpop.f32.mrb[14].mxu1 }
 0x457   : > { %v9341_v4 = vpack.c.bf16 %v1249_v52, %v1245_v47  ;;  %v1251_v53 = vpop.f32.mrb[15].mxu1 }
 0x458   : > { %v9343_v54 = vpack.c.bf16 %v1251_v53, %v1247_v50  ;;  %v9417_v50 = vsel %vm886_vm3, 0.0, %v8873_v8 }
 0x45a   : > { %1621 = vrot.lane.b32.xlu1 %v9343_v54, %s8872_s21  ;;  %7869 = vmatprep.subr.msk.bf16.mxu1 %vm1331_vm12, %v9343_v54  ;;  %v1354_v55 = vsel %vm1331_vm12, %v9343_v54, 0 }
 0x45c   : > { %7521 = vmatpush3.bf16.xpose.msra.mxu1 %v1354_v55  ;;  %v9423_v55 = vsel %vm887_vm4, 0.0, %v8873_v8 }
 0x45e   : > { %1605 = vrot.lane.b32.xlu1 %v9305_v27, %s8872_s21 }
 0x462   : > { %1609 = vrot.lane.b32.xlu1 %v9341_v4, %s8872_s21 }
 0x463   : > { %7523 = vmatmul.mubr.msk.bf16.vlgmr.msra.gmra.mrb[16].mxu1 %vm1331_vm12, %v9305_v27 }
 0x464   : > { %7526 = vmatprep.mubr.msk.bf16.mxu1 %vm1331_vm12, %v9325_v44 }
 0x46b   : > { %7527 = vmatmul.mubr.msk.bf16.gmra.mrb[20].mxu1 %vm1331_vm12, %v9341_v4 }
 0x4b4   : > { %v1616_v56 = vpop.permute.xlu1 %1615 }
 0x4b5   : > { %7870 = vmatprep.subr.msk.bf16.mxu1 %vm1331_vm12, %v1616_v56  ;;  %v1636_v57 = vsel %vm1331_vm12, %v1616_v56, 0 }
 0x4b6   : > { %7547 = vmatpush3.bf16.xpose.msra.mxu1 %v1636_v57 }
 0x4bc   : > { %v1618_v58 = vpop.permute.xlu0 %1617 }
 0x4bd   : > { %7871 = vmatprep.subr.msk.bf16.mxu1 %vm1331_vm12, %v1618_v58  ;;  %v1639_v59 = vsel %vm1331_vm12, %v1618_v58, 0 }
 0x4be   : > { %7549 = vmatpush3.bf16.xpose.msra.mxu1 %v1639_v59 }
 0x4c0   : > { %v1604_v11 = vpop.permute.xlu0 %1603 }
 0x4c1   : > { %7554 = vmatprep.mubr.msk.bf16.mxu1 %vm1331_vm12, %v1604_v11 }
 0x4c4   : > { %v1608_v19 = vpop.permute.xlu0 %1607 }
 0x4c5   : > { %v1620_v10 = vpop.permute.xlu1 %1619 }
 0x4c6   : > { %7872 = vmatprep.subr.msk.bf16.mxu1 %vm1331_vm12, %v1620_v10  ;;  %v1642_v60 = vsel %vm1331_vm12, %v1620_v10, 0  ;;  %v9431_v10 = vsel %vm889_vm5, 0.0, %v8873_v8 }
 0x4c7   : > { %7551 = vmatpush3.bf16.xpose.msra.mxu1 %v1642_v60 }
 0x4cc   : > { %v1622_v62 = vpop.permute.xlu1 %1621 }
 0x4cd   : > { %7873 = vmatprep.subr.msk.bf16.mxu1 %vm1331_vm12, %v1622_v62  ;;  %v1645_v63 = vsel %vm1331_vm12, %v1622_v62, 0 }
 0x4cf   : > { %7553 = vmatpush3.bf16.xpose.msra.mxu1 %v1645_v63 }
 0x4d0   : > { %v1606_v1 = vpop.permute.xlu1 %1605 }
 0x4d4   : > { %v1610_v3 = vpop.permute.xlu1 %1609 }
 0x4d6   : > { %7555 = vmatmul.mubr.msk.bf16.vlgmr.msra.gmra.mrb[24].mxu1 %vm1331_vm12, %v1606_v1 }
 0x4d7   : > { %7558 = vmatprep.mubr.msk.bf16.mxu1 %vm1331_vm12, %v1608_v19 }
 0x4de   : > { %7559 = vmatmul.mubr.msk.bf16.gmra.mrb[28].mxu1 %vm1331_vm12, %v1610_v3 }
 0x536   : > { %v7524_v17 = vpop.f32.mrb[16].mxu1 }
 0x537   : > { %v9389_v15 = vadd.f32 %v7524_v17, %v9382_v12  ;;  %v1390_v16 = vpop.f32.mrb[17].mxu1 }
 0x538   : > { %v7525_v24 = vpop.f32.mrb[18].mxu1  ;;  %v9397_v30 = vadd.f32 %v1390_v16, %v9386_v14 }
 0x539   : > { %v1393_v31 = vpop.f32.mrb[19].mxu1  ;;  %v1428_v33 = vsel %vm1421_vm0, %v9389_v15, -inf  ;;  %v1402_v45 = vadd.f32 %v7525_v24, %v9402_v34 }
 0x53a   : > { %v9405_v35 = vadd.f32 %v1393_v31, %v9392_v18  ;;  %1429 = vmax.xlane.f32.xlu0 %v1428_v33  ;;  %v1422_v2 = vsel %vm1421_vm0, %v9397_v30, -inf }
 0x53b   : > { %v1431_v11 = vsel %vm1421_vm0, %v1402_v45, -inf }
 0x53c   : > { %v1425_v40 = vsel %vm1421_vm0, %v9405_v35, -inf }
 0x53d   : > { %1426 = vmax.xlane.f32.xlu1 %v1425_v40 }
 0x53e   : > { %v7528_v47 = vpop.f32.mrb[20].mxu1  ;;  %1423 = vmax.xlane.f32.xlu0 %v1422_v2 }
 0x53f   : > { %v9420_v52 = vadd.f32 %v7528_v47, %v9411_v61  ;;  %v1406_v53 = vpop.f32.mrb[21].mxu1 }
 0x540   : > { %v7529_v56 = vpop.f32.mrb[22].mxu1  ;;  %v9426_v57 = vadd.f32 %v1406_v53, %v9417_v50 }
 0x541   : > { %v1409_v58 = vpop.f32.mrb[23].mxu1  ;;  %v1440_v59 = vsel %vm1421_vm0, %v9420_v52, -inf  ;;  %v1418_v62 = vadd.f32 %v7529_v56, %v9431_v10 }
 0x542   : > { %v1410_v60 = vadd.f32 %v1409_v58, %v9423_v55  ;;  %1441 = vmax.xlane.f32.xlu1 %v1440_v59  ;;  %1432 = vmax.xlane.f32.xlu0 %v1431_v11  ;;  %v1434_v63 = vsel %vm1421_vm0, %v9426_v57, -inf }
 0x543   : > { %v1443_v1 = vsel %vm1421_vm0, %v1418_v62, -inf }
 0x544   : > { %v1437_v20 = vsel %vm1421_vm0, %v1410_v60, -inf }
 0x546   : > { %1435 = vmax.xlane.f32.xlu1 %v1434_v63  ;;  %1438 = vmax.xlane.f32.xlu0 %v1437_v20 }
 0x54a   : > { %1444 = vmax.xlane.f32.xlu0 %v1443_v1 }
 0x5a9   : > { %v7556_v19 = vpop.f32.mrb[24].mxu1 }
 0x5aa   : > { %v9440_v3 = vadd.f32 %v7556_v19, %v9382_v12  ;;  %v1681_v21 = vpop.f32.mrb[25].mxu1 }
 0x5ab   : > { %v7557_v26 = vpop.f32.mrb[26].mxu1  ;;  %v9443_v6 = vadd.f32 %v1681_v21, %v9386_v14 }
 0x5ac   : > { %v1684_v8 = vpop.f32.mrb[27].mxu1  ;;  %v1718_v13 = vsel %vm1421_vm0, %v9440_v3, -inf  ;;  %v9451_v16 = vadd.f32 %v7557_v26, %v9402_v34 }
 0x5ad   : > { %v9448_v17 = vadd.f32 %v1684_v8, %v9392_v18  ;;  %1719 = vmax.xlane.f32.xlu1 %v1718_v13  ;;  %v1712_v24 = vsel %vm1421_vm0, %v9443_v6, -inf }
 0x5ae   : > { %v1721_v38 = vsel %vm1421_vm0, %v9451_v16, -inf }
 0x5af   : > { %v1715_v23 = vsel %vm1421_vm0, %v9448_v17, -inf }
 0x5b0   : > { %1716 = vmax.xlane.f32.xlu0 %v1715_v23 }
 0x5b1   : > { %1713 = vmax.xlane.f32.xlu1 %v1712_v24  ;;  %v7560_v28 = vpop.f32.mrb[28].mxu1 }
 0x5b2   : > { %v1697_v31 = vpop.f32.mrb[29].mxu1  ;;  %v9475_v8 = vadd.f32 %v7560_v28, %v9411_v61 }
 0x5b3   : > { %v7561_v33 = vpop.f32.mrb[30].mxu1  ;;  %v9478_v24 = vadd.f32 %v1697_v31, %v9417_v50 }
 0x5b4   : > { %v9460_v40 = vadd.f32 %v7561_v33, %v9431_v10  ;;  %1722 = vmax.xlane.f32.xlu0 %v1721_v38  ;;  %v1700_v2 = vpop.f32.mrb[31].mxu1  ;;  %v1730_v33 = vsel %vm1421_vm0, %v9475_v8, -inf }
 0x5b5   : > { %v9465_v53 = vadd.f32 %v1700_v2, %v9423_v55 }
 0x5b6   : > { %v1733_v47 = vsel %vm1421_vm0, %v9460_v40, -inf }
 0x5b7   : > { %v1727_v56 = vsel %vm1421_vm0, %v9465_v53, -inf }
 0x5b8   : > { %1734 = vmax.xlane.f32.xlu0 %v1733_v47 }
 0x5bc   : > { %1728 = vmax.xlane.f32.xlu0 %v1727_v56 }
 0x5c2   : > { %1808 = vrot.lane.b32.xlu1 %v9303_v25, %s8872_s21 }
 0x5c7   : > { %v1430_v58 = vpop.xlane.xlu0 %1429 }
 0x5ca   : > { %v1427_v1 = vpop.xlane.xlu1 %1426 }
 0x5cb   : > { %v1424_v59 = vpop.xlane.xlu0 %1423  ;;  %v1447_v19 = vsub.f32 %v9405_v35, %v1427_v1  ;;  %v1724_v35 = vsel %vm1421_vm0, %v9478_v24, -inf }
 0x5cd   : > { %v1456_v13 = vmul.f32 1.442695, %v1447_v19 }
 0x5cf   : > { %v1433_v11 = vpop.xlane.xlu0 %1432  ;;  %v1442_v1 = vpop.xlane.xlu1 %1441 }
 0x5d0   : > { %v1449_v63 = vsub.f32 %v1402_v45, %v1433_v11 }
 0x5d2   : > { %1810 = vrot.lane.b32.xlu0 %v9301_v22, %s8872_s21  ;;  %v1460_v21 = vmul.f32 1.442695, %v1449_v63  ;;  %v1448_v63 = vsub.f32 %v9389_v15, %v1430_v58 }
 0x5d3   : > { %v1439_v20 = vpop.xlane.xlu0 %1438 }
 0x5d4   : > { %8288 = vpow2.f32 %v1460_v21  ;;  %v1451_v45 = vsub.f32 %v1410_v60, %v1439_v20  ;;  %v1458_v19 = vmul.f32 1.442695, %v1448_v63  ;;  %v1446_v21 = vsub.f32 %v9397_v30, %v1424_v59 }
 0x5d5   : > { %8290 = vpow2.f32 %v1456_v13  ;;  %v1452_v13 = vsub.f32 %v9420_v52, %v1442_v1 }
 0x5d6   : > { %v1464_v2 = vmul.f32 1.442695, %v1451_v45 }
 0x5d7   : > { %v1445_v26 = vpop.xlane.xlu0 %1444 }
 0x5d8   : > { %v1453_v23 = vsub.f32 %v1418_v62, %v1445_v26  ;;  %v1454_v26 = vmul.f32 1.442695, %v1446_v21 }
 0x5da   : > { %v1468_v38 = vmul.f32 1.442695, %v1453_v23  ;;  %v1436_v23 = vpop.xlane.xlu1 %1435 }
 0x5db   : > { %v1450_v45 = vsub.f32 %v9426_v57, %v1436_v23 }
 0x5dc   : > { %8292 = vpow2.f32 %v1468_v38 }
 0x5dd   : > { %8294 = vpow2.f32 %v1464_v2  ;;  %v1462_v38 = vmul.f32 1.442695, %v1450_v45 }
 0x5de   : > { %v9484_v28 = vpop.eup %8288  ;;  %8296 = vpow2.f32 %v1458_v19 }
 0x5df   : > { %v1479_v62 = vsel %vm1421_vm0, %v9484_v28, 0.0  ;;  %v9488_v31 = vpop.eup %8290  ;;  %8298 = vpow2.f32 %v1454_v26 }
 0x5e0   : > { %v1473_v47 = vsel %vm1421_vm0, %v9488_v31, 0.0 }
 0x5e6   : > { %1731 = vmax.xlane.f32.xlu1 %v1730_v33  ;;  %v9492_v60 = vpop.eup %8292  ;;  %v1466_v33 = vmul.f32 1.442695, %v1452_v13 }
 0x5e7   : > { %v1491_v56 = vsel %vm1421_vm0, %v9492_v60, 0.0  ;;  %v9496_v11 = vpop.eup %8294 }
 0x5e8   : > { %v1485_v20 = vsel %vm1421_vm0, %v9496_v11, 0.0  ;;  %8300 = vpow2.f32 %v1466_v33 }
 0x5e9   : > { %8302 = vpow2.f32 %v1462_v38 }
 0x5ea   : > { %1725 = vmax.xlane.f32.xlu1 %v1724_v35  ;;  %v9510_v35 = vpop.eup %8296 }
 0x5eb   : > { %v1476_v15 = vsel %vm1421_vm0, %v9510_v35, 0.0  ;;  %v9514_v58 = vpop.eup %8298 }
 0x5ec   : > { %v1470_v30 = vsel %vm1421_vm0, %v9514_v58, 0.0 }
 0x5f1   : > { %1480 = vadd.xlane.f32.xlu0 %v1479_v62 }
 0x5f2   : > { %v9518_v52 = vpop.eup %8300 }
 0x5f3   : > { %v1488_v57 = vsel %vm1421_vm0, %v9518_v52, 0.0  ;;  %v9522_v59 = vpop.eup %8302 }
 0x5f4   : > { %v1482_v2 = vsel %vm1421_vm0, %v9522_v59, 0.0 }
 0x5f5   : > { %1474 = vadd.xlane.f32.xlu0 %v1473_v47 }
 0x5f9   : > { %1492 = vadd.xlane.f32.xlu0 %v1491_v56 }
 0x5fb   : > { %1812 = vrot.lane.b32.xlu1 %v9323_v41, %s8872_s21 }
 0x5fd   : > { %1486 = vadd.xlane.f32.xlu0 %v1485_v20 }
 0x5ff   : > { %1814 = vrot.lane.b32.xlu1 %v9318_v39, %s8872_s21 }
 0x603   : > { %1930 = vrot.lane.b32.xlu1 %v9291_v9, %s8874_s30 }
 0x627   : > { %1477 = vadd.xlane.f32.xlu1 %v1476_v15 }
 0x62b   : > { %1471 = vadd.xlane.f32.xlu1 %v1470_v30 }
 0x62f   : > { %1489 = vadd.xlane.f32.xlu1 %v1488_v57 }
 0x633   : > { %1483 = vadd.xlane.f32.xlu1 %v1482_v2 }
 0x63a   : > { %v1720_v62 = vpop.xlane.xlu1 %1719 }
 0x63b   : > { %v1738_v47 = vsub.f32 %v9440_v3, %v1720_v62 }
 0x63d   : > { %v1748_v56 = vmul.f32 1.442695, %v1738_v47  ;;  %v1717_v20 = vpop.xlane.xlu0 %1716 }
 0x63e   : > { %v1714_v63 = vpop.xlane.xlu1 %1713  ;;  %v1737_v19 = vsub.f32 %v9448_v17, %v1717_v20 }
 0x63f   : > { %8304 = vpow2.f32 %v1748_v56  ;;  %v1736_v1 = vsub.f32 %v9443_v6, %v1714_v63 }
 0x640   : > { %v1746_v33 = vmul.f32 1.442695, %v1737_v19 }
 0x641   : > { %v1744_v21 = vmul.f32 1.442695, %v1736_v1  ;;  %v1723_v26 = vpop.xlane.xlu0 %1722 }
 0x642   : > { %v1739_v13 = vsub.f32 %v9451_v16, %v1723_v26  ;;  %v9530_v23 = vpop.permute.xlu1 %1808 }
 0x643   : > { %8306 = vpow2.f32 %v1744_v21  ;;  %7562 = vmatprep.subr.bf16.mxu0 %v9530_v23 }
 0x644   : > { %v1750_v45 = vmul.f32 1.442695, %v1739_v13 }
 0x645   : > { %v1735_v2 = vpop.xlane.xlu0 %1734 }
 0x646   : > { %8308 = vpow2.f32 %v1750_v45  ;;  %v1743_v1 = vsub.f32 %v9460_v40, %v1735_v2 }
 0x647   : > { %8310 = vpow2.f32 %v1746_v33 }
 0x648   : > { %v1758_v13 = vmul.f32 1.442695, %v1743_v1 }
 0x649   : > { %v9533_v3 = vpop.eup %8304  ;;  %v1729_v62 = vpop.xlane.xlu0 %1728 }
 0x64a   : > { %v1766_v6 = vsel %vm1421_vm0, %v9533_v3, 0.0  ;;  %v1741_v47 = vsub.f32 %v9465_v53, %v1729_v62 }
 0x64b   : > { %1767 = vadd.xlane.f32.xlu1 %v1766_v6 }
 0x64c   : > { %v1754_v56 = vmul.f32 1.442695, %v1741_v47 }
 0x64d   : > { %v9537_v17 = vpop.eup %8306  ;;  %v1811_v2 = vpop.permute.xlu0 %1810 }
 0x64e   : > { %v1760_v16 = vsel %vm1421_vm0, %v9537_v17, 0.0  ;;  %8312 = vpow2.f32 %v1754_v56 }
 0x64f   : > { %1761 = vadd.xlane.f32.xlu1 %v1760_v16 }
 0x650   : > { %v9541_v38 = vpop.eup %8308 }
 0x651   : > { %v1769_v15 = vsel %vm1421_vm0, %v9541_v38, 0.0  ;;  %v9545_v30 = vpop.eup %8310 }
 0x652   : > { %1770 = vadd.xlane.f32.xlu0 %v1769_v15  ;;  %v1763_v57 = vsel %vm1421_vm0, %v9545_v30, 0.0 }
 0x656   : > { %1764 = vadd.xlane.f32.xlu0 %v1763_v57 }
 0x658   : > { %v9555_v45 = vpop.eup %8312 }
 0x659   : > { %v1775_v40 = vsel %vm1421_vm0, %v9555_v45, 0.0 }
 0x660   : > { %1934 = vrot.lane.b32.xlu1 %v9327_v46, %s8874_s30 }
 0x673   : > { %v1732_v20 = vpop.xlane.xlu1 %1731 }
 0x674   : > { %v1742_v63 = vsub.f32 %v9475_v8, %v1732_v20 }
 0x676   : > { %v1756_v19 = vmul.f32 1.442695, %v1742_v63 }
 0x677   : > { %v1726_v21 = vpop.xlane.xlu1 %1725 }
 0x678   : > { %8314 = vpow2.f32 %v1756_v19  ;;  %v1740_v26 = vsub.f32 %v9478_v24, %v1726_v21 }
 0x67a   : > { %v1752_v33 = vmul.f32 1.442695, %v1740_v26 }
 0x67b   : > { %v1813_v57 = vpop.permute.xlu1 %1812 }
 0x67c   : > { %8316 = vpow2.f32 %v1752_v33 }
 0x67d   : > { %8318 = vpow2.f32 %v1758_v13 }
 0x67e   : > { %v1481_v62 = vpop.xlane.xlu0 %1480 }
 0x67f   : > { %v1815_v47 = vpop.permute.xlu1 %1814 }
 0x682   : > { %v9557_v6 = vpop.eup %8314  ;;  %v1475_v56 = vpop.xlane.xlu0 %1474 }
 0x683   : > { %v1778_v53 = vsel %vm1421_vm0, %v9557_v6, 0.0  ;;  %v9583_v20 = vpop.permute.xlu1 %1930 }
 0x684   : > { %1779 = vadd.xlane.f32.xlu0 %v1778_v53  ;;  %1776 = vadd.xlane.f32.xlu1 %v1775_v40 }
 0x686   : > { %v9563_v8 = vpop.eup %8316  ;;  %v1493_v1 = vpop.xlane.xlu0 %1492 }
 0x687   : > { %v1772_v24 = vsel %vm1421_vm0, %v9563_v8, 0.0  ;;  %v9567_v16 = vpop.eup %8318 }
 0x688   : > { %1773 = vadd.xlane.f32.xlu0 %v1772_v24  ;;  %v1781_v15 = vsel %vm1421_vm0, %v9567_v16, 0.0 }
 0x68a   : > { %v1487_v21 = vpop.xlane.xlu0 %1486 }
 0x68c   : > { %1782 = vadd.xlane.f32.xlu0 %v1781_v15 }
 0x695   : > { %1936 = vrot.lane.b32.xlu1 %v9343_v54, %s8874_s30 }
 0x699   : > { %1924 = vrot.lane.b32.xlu1 %v9305_v27, %s8874_s30 }
 0x69d   : > { %1928 = vrot.lane.b32.xlu1 %v9341_v4, %s8874_s30 }
 0x6a2   : > { %1932 = vrot.lane.b32.xlu0 %v9307_v29, %s8874_s30 }
 0x6a6   : > { %1922 = vrot.lane.b32.xlu0 %v9289_v7, %s8874_s30 }
 0x6aa   : > { %1926 = vrot.lane.b32.xlu0 %v9325_v44, %s8874_s30 }
 0x6b4   : > { %v1478_v63 = vpop.xlane.xlu1 %1477 }
 0x6b5   : > { %8320 = vrcp.f32 %v1478_v63 }
 0x6b6   : > { %8322 = vrcp.f32 %v1475_v56 }
 0x6b7   : > { %8324 = vrcp.f32 %v1481_v62 }
 0x6b8   : > { %v1472_v19 = vpop.xlane.xlu1 %1471 }
 0x6b9   : > { %8326 = vrcp.f32 %v1472_v19 }
 0x6bc   : > { %v1490_v26 = vpop.xlane.xlu1 %1489 }
 0x6bd   : > { %8328 = vrcp.f32 %v1490_v26 }
 0x6be   : > { %8330 = vrcp.f32 %v1487_v21 }
 0x6bf   : > { %v8321_v13 = vpop.eup %8320  ;;  %8332 = vrcp.f32 %v1493_v1 }
 0x6c0   : > { %v1484_v33 = vpop.xlane.xlu1 %1483  ;;  %v8323_v53 = vpop.eup %8322  ;;  %v1504_v15 = vmul.f32 %v8321_v13, %v9510_v35 }
 0x6c1   : > { %8334 = vrcp.f32 %v1484_v33  ;;  %v8325_v40 = vpop.eup %8324  ;;  %v1503_v56 = vmul.f32 %v8323_v53, %v9488_v31 }
 0x6c2   : > { %v1505_v62 = vmul.f32 %v8325_v40, %v9484_v28 }
 0x6c3   : > { %v8327_v24 = vpop.eup %8326 }
 0x6c4   : > { %v1502_v0 = vmul.f32 %v8327_v24, %v9514_v58  ;;  %v1511_v19 = vpack.c.bf16 %v1505_v62, %v1504_v15 }
 0x6c6   : > { %v1510_v63 = vpack.c.bf16 %v1503_v56, %v1502_v0  ;;  %v1951_v56 = vsel %vm1331_vm12, %v9583_v20, 0 }
 0x6c7   : > { %v8329_v5 = vpop.eup %8328 }
 0x6c8   : > { %7538 = vmatprep.mubr.msk.bf16.mxu0 %vm1421_vm0, %v1510_v63  ;;  %v8331_v21 = vpop.eup %8330  ;;  %v1508_v35 = vmul.f32 %v8329_v5, %v9518_v52 }
 0x6c9   : > { %7539 = vmatmul.mubr.msk.bf16.vlgmr.msra.gmra.mrb[16].mxu0 %vm1421_vm0, %v1511_v19  ;;  %v8333_v1 = vpop.eup %8332  ;;  %v1507_v31 = vmul.f32 %v8331_v21, %v9496_v11 }
 0x6ca   : > { %7563 = vmatpush3.bf16.msra.mxu0 %v9530_v23  ;;  %v1509_v0 = vmul.f32 %v8333_v1, %v9492_v60 }
 0x6cb   : > { %v8335_v26 = vpop.eup %8334  ;;  %7564 = vmatprep.subr.bf16.mxu0 %v1811_v2 }
 0x6cc   : > { %v1506_v58 = vmul.f32 %v8335_v26, %v9522_v59  ;;  %v1513_v13 = vpack.c.bf16 %v1509_v0, %v1508_v35 }
 0x6ce   : > { %7565 = vmatpush3.bf16.msra.mxu0 %v1811_v2  ;;  %v1512_v28 = vpack.c.bf16 %v1507_v31, %v1506_v58 }
 0x6cf   : > { %7566 = vmatprep.subr.bf16.mxu0 %v1813_v57 }
 0x6d0   : > { %7542 = vmatprep.mubr.msk.bf16.mxu0 %vm1421_vm0, %v1512_v28 }
 0x6d1   : > { %7543 = vmatmul.mubr.msk.bf16.gmra.mrb[20].mxu0 %vm1421_vm0, %v1513_v13 }
 0x6d2   : > { %7567 = vmatpush3.bf16.msra.mxu0 %v1813_v57 }
 0x6d3   : > { %7568 = vmatprep.subr.bf16.mxu0 %v1815_v47 }
 0x6d6   : > { %7569 = vmatpush3.bf16.msra.mxu0 %v1815_v47 }
 0x6d7   : > { %7874 = vmatprep.subr.msk.bf16.mxu0 %vm1331_vm12, %v9583_v20 }
 0x6d8   : > { %v1768_v5 = vpop.xlane.xlu1 %1767 }
 0x6dc   : > { %v1762_v52 = vpop.xlane.xlu1 %1761 }
 0x6df   : > { %v1771_v59 = vpop.xlane.xlu0 %1770 }
 0x6e0   : > { %8336 = vrcp.f32 %v1771_v59  ;;  %v1935_v62 = vpop.permute.xlu1 %1934 }
 0x6e1   : > { %8338 = vrcp.f32 %v1762_v52  ;;  %v1957_v13 = vsel %vm1331_vm12, %v1935_v62, 0 }
 0x6e2   : > { %8340 = vrcp.f32 %v1768_v5 }
 0x6e3   : > { %v1765_v60 = vpop.xlane.xlu0 %1764 }
 0x6e4   : > { %8342 = vrcp.f32 %v1765_v60 }
 0x6ea   : > { %v8337_v11 = vpop.eup %8336 }
 0x6eb   : > { %v8339_v23 = vpop.eup %8338  ;;  %v1795_v53 = vmul.f32 %v8337_v11, %v9541_v38 }
 0x6ec   : > { %v8341_v2 = vpop.eup %8340  ;;  %v1792_v57 = vmul.f32 %v8339_v23, %v9537_v17 }
 0x6ed   : > { %v1794_v40 = vmul.f32 %v8341_v2, %v9533_v3 }
 0x6ee   : > { %v8343_v33 = vpop.eup %8342 }
 0x6ef   : > { %v1793_v47 = vmul.f32 %v8343_v33, %v9545_v30  ;;  %v1801_v15 = vpack.c.bf16 %v1795_v53, %v1794_v40 }
 0x6f1   : > { %v1800_v24 = vpack.c.bf16 %v1793_v47, %v1792_v57 }
 0x6f3   : > { %7570 = vmatprep.mubr.msk.bf16.mxu0 %vm1421_vm0, %v1800_v24 }
 0x6f4   : > { %7571 = vmatmul.mubr.msk.bf16.vlgmr.msra.gmra.mrb[24].mxu0 %vm1421_vm0, %v1801_v15 }
 0x6f5   : > { %7579 = vmatpush3.bf16.xpose.msra.mxu0 %v1951_v56 }
 0x711   : > { %v1777_v63 = vpop.xlane.xlu1 %1776  ;;  %v1780_v19 = vpop.xlane.xlu0 %1779 }
 0x712   : > { %8344 = vrcp.f32 %v1777_v63 }
 0x715   : > { %v1774_v38 = vpop.xlane.xlu0 %1773  ;;  %v1937_v5 = vpop.permute.xlu1 %1936 }
 0x716   : > { %8346 = vrcp.f32 %v1774_v38 }
 0x717   : > { %8348 = vrcp.f32 %v1780_v19 }
 0x719   : > { %v1783_v17 = vpop.xlane.xlu0 %1782 }
 0x71a   : > { %8350 = vrcp.f32 %v1783_v17 }
 0x71c   : > { %v8345_v30 = vpop.eup %8344 }
 0x71d   : > { %v1933_v3 = vpop.permute.xlu0 %1932  ;;  %v1797_v26 = vmul.f32 %v8345_v30, %v9555_v45  ;;  %v1960_v45 = vsel %vm1331_vm12, %v1937_v5, 0 }
 0x71e   : > { %7875 = vmatprep.subr.msk.bf16.mxu0 %vm1331_vm12, %v1933_v3  ;;  %v1954_v21 = vsel %vm1331_vm12, %v1933_v3, 0 }
 0x71f   : > { %7581 = vmatpush3.bf16.xpose.msra.mxu0 %v1954_v21 }
 0x720   : > { %v8347_v1 = vpop.eup %8346  ;;  %7876 = vmatprep.subr.msk.bf16.mxu0 %vm1331_vm12, %v1935_v62 }
 0x721   : > { %v1796_v20 = vmul.f32 %v8347_v1, %v9563_v8  ;;  %v8349_v35 = vpop.eup %8348  ;;  %v1923_v59 = vpop.permute.xlu0 %1922 }
 0x722   : > { %v1798_v0 = vmul.f32 %v8349_v35, %v9557_v6  ;;  %v1925_v8 = vpop.permute.xlu1 %1924 }
 0x723   : > { %v1802_v58 = vpack.c.bf16 %v1797_v26, %v1796_v20 }
 0x724   : > { %v8351_v31 = vpop.eup %8350 }
 0x725   : > { %7574 = vmatprep.mubr.msk.bf16.mxu0 %vm1421_vm0, %v1802_v58  ;;  %v1799_v28 = vmul.f32 %v8351_v31, %v9567_v16  ;;  %v1927_v60 = vpop.permute.xlu0 %1926 }
 0x726   : > { %v1929_v6 = vpop.permute.xlu1 %1928 }
 0x727   : > { %7583 = vmatpush3.bf16.xpose.msra.mxu0 %v1957_v13  ;;  %v1803_v52 = vpack.c.bf16 %v1799_v28, %v1798_v0 }
 0x728   : > { %7877 = vmatprep.subr.msk.bf16.mxu0 %vm1331_vm12, %v1937_v5 }
 0x729   : > { %7575 = vmatmul.mubr.msk.bf16.gmra.mrb[28].mxu0 %vm1421_vm0, %v1803_v52 }
 0x72a   : > { %7586 = vmatprep.mubr.msk.bf16.mxu0 %vm1331_vm12, %v1923_v59 }
 0x72f   : > { %7585 = vmatpush3.bf16.xpose.msra.mxu0 %v1960_v45 }
 0x736   : > { %7587 = vmatmul.mubr.msk.bf16.vlgmr.msra.gmra.mrb[32].mxu0 %vm1331_vm12, %v1925_v8 }
 0x737   : > { %7590 = vmatprep.mubr.msk.bf16.mxu0 %vm1331_vm12, %v1927_v60 }
 0x73e   : > { %7591 = vmatmul.mubr.msk.bf16.gmra.mrb[36].mxu0 %vm1331_vm12, %v1929_v6 }
 0x79c   : > { %v7540_v16 = vpop.f32.mrb[16].mxu0 }
 0x79d   : > { %v1560_v11 = vpop.f32.mrb[17].mxu0 }
 0x79e   : > { %v7541_v23 = vpop.f32.mrb[18].mxu0 }
 0x79f   : > { %v1592_v2 = vpack.c.bf16 %v7541_v23, %v7540_v16  ;;  %v1563_v33 = vpop.f32.mrb[19].mxu0 }
 0x7a0   : > { %v1591_v53 = vpack.c.bf16 %v1563_v33, %v1560_v11 }
 0x7a1   : > { %1596 = vst.msk [vmem:[#allocation2 + $0x8] sm:$0xff] %vm1331_vm12, %v1592_v2 }
 0x7a2   : > { %1595 = vst.msk [vmem:[#allocation2] sm:$0xff] %vm1331_vm12, %v1591_v53 }
 0x7a4   : > { %v7544_v57 = vpop.f32.mrb[20].mxu0 }
 0x7a5   : > { %v1576_v47 = vpop.f32.mrb[21].mxu0 }
 0x7a6   : > { %v7545_v40 = vpop.f32.mrb[22].mxu0 }
 0x7a7   : > { %v1594_v24 = vpack.c.bf16 %v7545_v40, %v7544_v57  ;;  %v1579_v15 = vpop.f32.mrb[23].mxu0 }
 0x7a8   : > { %v1593_v56 = vpack.c.bf16 %v1579_v15, %v1576_v47 }
 0x7a9   : > { %1598 = vst.msk [vmem:[#allocation2 + $0x18] sm:$0xff] %vm1331_vm12, %v1594_v24 }
 0x7aa   : > { %1597 = vst.msk [vmem:[#allocation2 + $0x10] sm:$0xff] %vm1331_vm12, %v1593_v56 }
 0x7c7   : > { %v9628_v62 = vpop.f32.mrb[24].mxu0 }
 0x7c8   : > { %v9630_v63 = vpop.f32.mrb[25].mxu0 }
 0x7c9   : > { %v9632_v19 = vpop.f32.mrb[26].mxu0 }
 0x7ca   : > { %v1898_v38 = vpack.c.bf16 %v9632_v19, %v9628_v62  ;;  %v9636_v17 = vpop.f32.mrb[27].mxu0 }
 0x7cb   : > { %v1897_v3 = vpack.c.bf16 %v9636_v17, %v9630_v63 }
 0x7fc   : > { %v9640_v30 = vpop.f32.mrb[28].mxu0 }
 0x7fd   : > { %v9642_v21 = vpop.f32.mrb[29].mxu0 }
 0x7fe   : > { %v9644_v1 = vpop.f32.mrb[30].mxu0 }
 0x7ff   : > { %v9648_v26 = vpop.f32.mrb[31].mxu0 }
 0x809   : > { %v7588_v58 = vpop.f32.mrb[32].mxu0 }
 0x80a   : > { %v2005_v31 = vadd.f32 %v7588_v58, %v9382_v12  ;;  %v1996_v0 = vpop.f32.mrb[33].mxu0 }
 0x80b   : > { %v7589_v28 = vpop.f32.mrb[34].mxu0  ;;  %v1997_v13 = vadd.f32 %v1996_v0, %v9386_v14 }
 0x80c   : > { %v1999_v5 = vpop.f32.mrb[35].mxu0  ;;  %v2033_v52 = vsel %vm1421_vm0, %v2005_v31, -inf  ;;  %v2008_v8 = vadd.f32 %v7589_v28, %v9402_v34 }
 0x80d   : > { %v2000_v59 = vadd.f32 %v1999_v5, %v9392_v18  ;;  %2034 = vmax.xlane.f32.xlu0 %v2033_v52  ;;  %v2027_v60 = vsel %vm1421_vm0, %v1997_v13, -inf }
 0x80e   : > { %v2036_v53 = vsel %vm1421_vm0, %v2008_v8, -inf }
 0x80f   : > { %v2030_v45 = vsel %vm1421_vm0, %v2000_v59, -inf }
 0x810   : > { %2031 = vmax.xlane.f32.xlu1 %v2030_v45 }
 0x811   : > { %2028 = vmax.xlane.f32.xlu0 %v2027_v60  ;;  %v7592_v6 = vpop.f32.mrb[36].mxu0 }
 0x812   : > { %v2021_v16 = vadd.f32 %v7592_v6, %v9411_v61  ;;  %v2012_v11 = vpop.f32.mrb[37].mxu0 }
 0x813   : > { %v7593_v23 = vpop.f32.mrb[38].mxu0  ;;  %v2013_v2 = vadd.f32 %v2012_v11, %v9417_v50 }
 0x814   : > { %v2015_v33 = vpop.f32.mrb[39].mxu0  ;;  %v2045_v57 = vsel %vm1421_vm0, %v2021_v16, -inf  ;;  %v2024_v24 = vadd.f32 %v7593_v23, %v9431_v10 }
 0x815   : > { %v9664_v47 = vadd.f32 %v2015_v33, %v9423_v55  ;;  %2037 = vmax.xlane.f32.xlu0 %v2036_v53  ;;  %2046 = vmax.xlane.f32.xlu1 %v2045_v57  ;;  %v2039_v15 = vsel %vm1421_vm0, %v2013_v2, -inf }
 0x816   : > { %v2048_v56 = vsel %vm1421_vm0, %v2024_v24, -inf }
 0x817   : > { %v2042_v40 = vsel %vm1421_vm0, %v9664_v47, -inf }
 0x819   : > { %2043 = vmax.xlane.f32.xlu0 %v2042_v40  ;;  %2040 = vmax.xlane.f32.xlu1 %v2039_v15 }
 0x81d   : > { %2049 = vmax.xlane.f32.xlu0 %v2048_v56 }
 0x82a   : > { %2119 = vrot.lane.b32.xlu1 %v9303_v25, %s8874_s30 }
 0x82e   : > { %2123 = vrot.lane.b32.xlu1 %v9323_v41, %s8874_s30 }
 0x832   : > { %2125 = vrot.lane.b32.xlu1 %v9318_v39, %s8874_s30 }
 0x833   : > { %2121 = vrot.lane.b32.xlu0 %v9301_v22, %s8874_s30 }
 0x836   : > { %2241 = vrot.lane.b32.xlu1 %v9291_v9, %s8875_s28 }
 0x89a   : > { %v2035_v58 = vpop.xlane.xlu0 %2034 }
 0x89b   : > { %v2053_v0 = vsub.f32 %v2005_v31, %v2035_v58 }
 0x89d   : > { %v2063_v28 = vmul.f32 1.442695, %v2053_v0  ;;  %v2032_v5 = vpop.xlane.xlu1 %2031 }
 0x89e   : > { %v2029_v52 = vpop.xlane.xlu0 %2028  ;;  %v2052_v6 = vsub.f32 %v2000_v59, %v2032_v5 }
 0x89f   : > { %8352 = vpow2.f32 %v2063_v28  ;;  %v2051_v45 = vsub.f32 %v1997_v13, %v2029_v52 }
 0x8a0   : > { %v2061_v57 = vmul.f32 1.442695, %v2052_v6 }
 0x8a1   : > { %v2059_v60 = vmul.f32 1.442695, %v2051_v45 }
 0x8a2   : > { %v2047_v11 = vpop.xlane.xlu1 %2046  ;;  %v2038_v23 = vpop.xlane.xlu0 %2037 }
 0x8a3   : > { %8354 = vpow2.f32 %v2059_v60  ;;  %v2054_v33 = vsub.f32 %v2008_v8, %v2038_v23  ;;  %v2057_v40 = vsub.f32 %v2021_v16, %v2047_v11 }
 0x8a5   : > { %v2065_v53 = vmul.f32 1.442695, %v2054_v33  ;;  %v2071_v31 = vmul.f32 1.442695, %v2057_v40 }
 0x8a6   : > { %v2041_v15 = vpop.xlane.xlu1 %2040  ;;  %v2044_v56 = vpop.xlane.xlu0 %2043 }
 0x8a7   : > { %8356 = vpow2.f32 %v2065_v53  ;;  %v2055_v58 = vsub.f32 %v2013_v2, %v2041_v15 }
 0x8a8   : > { %8358 = vpow2.f32 %v2061_v57 }
 0x8a9   : > { %v9681_v9 = vpop.eup %8352  ;;  %8360 = vpow2.f32 %v2071_v31  ;;  %v2067_v8 = vmul.f32 1.442695, %v2055_v58 }
 0x8aa   : > { %v2120_v0 = vpop.permute.xlu1 %2119  ;;  %v2050_v28 = vpop.xlane.xlu0 %2049  ;;  %v2081_v13 = vsel %vm1421_vm0, %v9681_v9, 0.0 }
 0x8ab   : > { %7594 = vmatprep.subr.bf16.mxu1 %v2120_v0  ;;  %2082 = vadd.xlane.f32.xlu1 %v2081_v13  ;;  %v2058_v16 = vsub.f32 %v2024_v24, %v2050_v28  ;;  %8362 = vpow2.f32 %v2067_v8 }
 0x8ac   : > { %7595 = vmatpush3.bf16.msra.mxu1 %v2120_v0  ;;  %v2056_v0 = vsub.f32 %v9664_v47, %v2044_v56 }
 0x8ad   : > { %v9685_v59 = vpop.eup %8354  ;;  %v2073_v60 = vmul.f32 1.442695, %v2058_v16 }
 0x8ae   : > { %v2124_v5 = vpop.permute.xlu1 %2123  ;;  %v2122_v52 = vpop.permute.xlu0 %2121  ;;  %v2075_v45 = vsel %vm1421_vm0, %v9685_v59, 0.0  ;;  %v2069_v28 = vmul.f32 1.442695, %v2056_v0 }
 0x8af   : > { %2076 = vadd.xlane.f32.xlu1 %v2075_v45  ;;  %7596 = vmatprep.subr.bf16.mxu1 %v2122_v52  ;;  %8364 = vpow2.f32 %v2073_v60 }
 0x8b0   : > { %7597 = vmatpush3.bf16.msra.mxu1 %v2122_v52  ;;  %8366 = vpow2.f32 %v2069_v28 }
 0x8b1   : > { %7598 = vmatprep.subr.bf16.mxu1 %v2124_v5  ;;  %v8357_v2 = vpop.eup %8356 }
 0x8b2   : > { %v2126_v6 = vpop.permute.xlu1 %2125  ;;  %v2084_v11 = vsel %vm1421_vm0, %v8357_v2, 0.0  ;;  %v8359_v23 = vpop.eup %8358 }
 0x8b3   : > { %2085 = vadd.xlane.f32.xlu0 %v2084_v11  ;;  %v2078_v24 = vsel %vm1421_vm0, %v8359_v23, 0.0  ;;  %v9691_v33 = vpop.eup %8360 }
 0x8b4   : > { %7599 = vmatpush3.bf16.msra.mxu1 %v2124_v5  ;;  %v2093_v57 = vsel %vm1421_vm0, %v9691_v33, 0.0 }
 0x8b5   : > { %7600 = vmatprep.subr.bf16.mxu1 %v2126_v6  ;;  %v9696_v40 = vpop.eup %8362 }
 0x8b6   : > { %v2242_v53 = vpop.permute.xlu1 %2241  ;;  %v2087_v15 = vsel %vm1421_vm0, %v9696_v40, 0.0 }
 0x8b7   : > { %2079 = vadd.xlane.f32.xlu0 %v2078_v24 }
 0x8b8   : > { %7601 = vmatpush3.bf16.msra.mxu1 %v2126_v6 }
 0x8b9   : > { %7878 = vmatprep.subr.msk.bf16.mxu1 %vm1331_vm12, %v2242_v53  ;;  %v9700_v31 = vpop.eup %8364 }
 0x8ba   : > { %v2096_v58 = vsel %vm1421_vm0, %v9700_v31, 0.0  ;;  %v8367_v13 = vpop.eup %8366 }
 0x8bb   : > { %2094 = vadd.xlane.f32.xlu0 %v2093_v57 }
 0x8bf   : > { %2088 = vadd.xlane.f32.xlu0 %v2087_v15  ;;  %v2262_v15 = vsel %vm1331_vm12, %v2242_v53, 0 }
 0x8c0   : > { %2245 = vrot.lane.b32.xlu1 %v9327_v46, %s8875_s28  ;;  %v2090_v46 = vsel %vm1421_vm0, %v8367_v13, 0.0 }
 0x8c3   : > { %2097 = vadd.xlane.f32.xlu0 %v2096_v58 }
 0x8d9   : > { %2243 = vrot.lane.b32.xlu0 %v9307_v29, %s8875_s28 }
 0x8dd   : > { %2233 = vrot.lane.b32.xlu0 %v9289_v7, %s8875_s28 }
 0x8e1   : > { %2237 = vrot.lane.b32.xlu0 %v9325_v44, %s8875_s28 }
 0x8e4   : > { %2091 = vadd.xlane.f32.xlu1 %v2090_v46 }
 0x8f5   : > { %2247 = vrot.lane.b32.xlu1 %v9343_v54, %s8875_s28 }
 0x8f9   : > { %2235 = vrot.lane.b32.xlu1 %v9305_v27, %s8875_s28 }
 0x8fd   : > { %2239 = vrot.lane.b32.xlu1 %v9341_v4, %s8875_s28 }
 0x938   : > { %v2083_v29 = vpop.xlane.xlu1 %2082 }
 0x93c   : > { %v2077_v47 = vpop.xlane.xlu1 %2076 }
 0x940   : > { %v2086_v56 = vpop.xlane.xlu0 %2085  ;;  %v2246_v58 = vpop.permute.xlu1 %2245 }
 0x941   : > { %8368 = vrcp.f32 %v2086_v56 }
 0x942   : > { %8370 = vrcp.f32 %v2077_v47 }
 0x943   : > { %8372 = vrcp.f32 %v2083_v29 }
 0x944   : > { %v2080_v7 = vpop.xlane.xlu0 %2079 }
 0x945   : > { %8374 = vrcp.f32 %v2080_v7 }
 0x948   : > { %v2095_v44 = vpop.xlane.xlu0 %2094 }
 0x94b   : > { %v8369_v8 = vpop.eup %8368 }
 0x94c   : > { %v2089_v16 = vpop.xlane.xlu0 %2088  ;;  %v8371_v5 = vpop.eup %8370  ;;  %v2110_v45 = vmul.f32 %v8369_v8, %v8357_v2 }
 0x94d   : > { %v8373_v52 = vpop.eup %8372  ;;  %v2107_v27 = vmul.f32 %v8371_v5, %v9685_v59 }
 0x94e   : > { %v2109_v4 = vmul.f32 %v8373_v52, %v9681_v9  ;;  %v2268_v9 = vsel %vm1331_vm12, %v2246_v58, 0 }
 0x94f   : > { %v8375_v54 = vpop.eup %8374 }
 0x950   : > { %v2098_v60 = vpop.xlane.xlu0 %2097  ;;  %v2108_v6 = vmul.f32 %v8375_v54, %v8359_v23  ;;  %v2116_v24 = vpack.c.bf16 %v2110_v45, %v2109_v4 }
 0x951   : > { %8376 = vrcp.f32 %v2098_v60 }
 0x952   : > { %v2115_v11 = vpack.c.bf16 %v2108_v6, %v2107_v27  ;;  %8378 = vrcp.f32 %v2089_v16 }
 0x953   : > { %8380 = vrcp.f32 %v2095_v44 }
 0x954   : > { %7602 = vmatprep.mubr.msk.bf16.mxu1 %vm1421_vm0, %v2115_v11  ;;  %v2244_v57 = vpop.permute.xlu0 %2243 }
 0x955   : > { %7603 = vmatmul.mubr.msk.bf16.vlgmr.msra.gmra.mrb[32].mxu1 %vm1421_vm0, %v2116_v24  ;;  %v2265_v2 = vsel %vm1331_vm12, %v2244_v57, 0 }
 0x956   : > { %7611 = vmatpush3.bf16.xpose.msra.mxu1 %v2262_v15 }
 0x957   : > { %7879 = vmatprep.subr.msk.bf16.mxu1 %vm1331_vm12, %v2244_v57 }
 0x958   : > { %v2234_v5 = vpop.permute.xlu0 %2233 }
 0x95b   : > { %v8377_v0 = vpop.eup %8376 }
 0x95c   : > { %v8379_v28 = vpop.eup %8378  ;;  %v2114_v47 = vmul.f32 %v8377_v0, %v9700_v31  ;;  %v2238_v54 = vpop.permute.xlu0 %2237 }
 0x95d   : > { %v8381_v46 = vpop.eup %8380  ;;  %v2111_v56 = vmul.f32 %v8379_v28, %v9696_v40  ;;  %v11104_v40 = vmov 0  }
 0x95e   : > { %7613 = vmatpush3.bf16.xpose.msra.mxu1 %v2265_v2  ;;  %v2113_v8 = vmul.f32 %v8381_v46, %v9691_v33 }
 0x95f   : > { %7880 = vmatprep.subr.msk.bf16.mxu1 %vm1331_vm12, %v2246_v58 }
 0x960   : > { %v2118_v16 = vpack.c.bf16 %v2114_v47, %v2113_v8 }
 0x966   : > { %7615 = vmatpush3.bf16.xpose.msra.mxu1 %v2268_v9 }
 0x971   : > { %v2092_v59 = vpop.xlane.xlu1 %2091 }
 0x972   : > { %8382 = vrcp.f32 %v2092_v59 }
 0x975   : > { %v2248_v23 = vpop.permute.xlu1 %2247 }
 0x976   : > { %7881 = vmatprep.subr.msk.bf16.mxu1 %vm1331_vm12, %v2248_v23  ;;  %v2271_v53 = vsel %vm1331_vm12, %v2248_v23, 0 }
 0x977   : > { %7617 = vmatpush3.bf16.xpose.msra.mxu1 %v2271_v53 }
 0x979   : > { %v2236_v52 = vpop.permute.xlu1 %2235 }
 0x97c   : > { %v8383_v29 = vpop.eup %8382 }
 0x97d   : > { %v2112_v7 = vmul.f32 %v8383_v29, %v8367_v13  ;;  %v2240_v31 = vpop.permute.xlu1 %2239 }
 0x97f   : > { %v2117_v44 = vpack.c.bf16 %v2112_v7, %v2111_v56 }
 0x981   : > { %7606 = vmatprep.mubr.msk.bf16.mxu1 %vm1421_vm0, %v2117_v44 }
 0x982   : > { %7607 = vmatmul.mubr.msk.bf16.gmra.mrb[36].mxu1 %vm1421_vm0, %v2118_v16 }
 0x983   : > { %7618 = vmatprep.mubr.msk.bf16.mxu1 %vm1331_vm12, %v2234_v5 }
 0x98a   : > { %7619 = vmatmul.mubr.msk.bf16.vlgmr.msra.gmra.mrb[40].mxu1 %vm1331_vm12, %v2236_v52 }
 0x98b   : > { %7622 = vmatprep.mubr.msk.bf16.mxu1 %vm1331_vm12, %v2238_v54 }
 0x992   : > { %7623 = vmatmul.mubr.msk.bf16.gmra.mrb[44].mxu1 %vm1331_vm12, %v2240_v31 }
 0x993   : > { %3060 = vmatprep.mubr.bf16.mxu1 %v11104_v40 }
 0xa28   : > { %v9741_v33 = vpop.f32.mrb[32].mxu1 }
 0xa29   : > { %v9743_v13 = vpop.f32.mrb[33].mxu1 }
 0xa2a   : > { %v9745_v45 = vpop.f32.mrb[34].mxu1 }
 0xa2b   : > { %v9749_v27 = vpop.f32.mrb[35].mxu1 }
 0xa2c   : > { %v2208_v6 = vpack.c.bf16 %v9749_v27, %v9743_v13 }
 0xa55   : > { %v9753_v4 = vpop.f32.mrb[36].mxu1 }
 0xa56   : > { %v9755_v11 = vpop.f32.mrb[37].mxu1 }
 0xa57   : > { %v9757_v24 = vpop.f32.mrb[38].mxu1 }
 0xa58   : > { %v9761_v15 = vpop.f32.mrb[39].mxu1 }
 0xa5d   : > { %v7620_v58 = vpop.f32.mrb[40].mxu1 }
 0xa5e   : > { %v2307_v9 = vpop.f32.mrb[41].mxu1  ;;  %v2316_v0 = vadd.f32 %v7620_v58, %v9382_v12 }
 0xa5f   : > { %v2308_v59 = vadd.f32 %v2307_v9, %v9386_v14  ;;  %v7621_v23 = vpop.f32.mrb[42].mxu1 }
 0xa60   : > { %v2310_v53 = vpop.f32.mrb[43].mxu1  ;;  %v2319_v47 = vadd.f32 %v7621_v23, %v9402_v34  ;;  %v2344_v7 = vsel %vm1421_vm0, %v2316_v0, -inf }
 0xa61   : > { %v2311_v28 = vadd.f32 %v2310_v53, %v9392_v18  ;;  %v2338_v46 = vsel %vm1421_vm0, %v2308_v59, -inf }
 0xa62   : > { %2339 = vmax.xlane.f32.xlu0 %v2338_v46  ;;  %v2347_v31 = vsel %vm1421_vm0, %v2319_v47, -inf }
 0xa63   : > { %v2341_v29 = vsel %vm1421_vm0, %v2311_v28, -inf }
 0xa64   : > { %2342 = vmax.xlane.f32.xlu1 %v2341_v29 }
 0xa65   : > { %v7624_v56 = vpop.f32.mrb[44].mxu1 }
 0xa66   : > { %2345 = vmax.xlane.f32.xlu0 %v2344_v7  ;;  %v2323_v8 = vpop.f32.mrb[45].mxu1  ;;  %v2332_v52 = vadd.f32 %v7624_v56, %v9411_v61 }
 0xa67   : > { %v2324_v44 = vadd.f32 %v2323_v8, %v9417_v50  ;;  %v7625_v16 = vpop.f32.mrb[46].mxu1 }
 0xa68   : > { %v2326_v5 = vpop.f32.mrb[47].mxu1  ;;  %v2335_v9 = vadd.f32 %v7625_v16, %v9431_v10  ;;  %v2356_v53 = vsel %vm1421_vm0, %v2332_v52, -inf }
 0xa69   : > { %v2327_v54 = vadd.f32 %v2326_v5, %v9423_v55  ;;  %v2350_v58 = vsel %vm1421_vm0, %v2324_v44, -inf }
 0xa6a   : > { %2348 = vmax.xlane.f32.xlu0 %v2347_v31  ;;  %2351 = vmax.xlane.f32.xlu1 %v2350_v58  ;;  %v2359_v46 = vsel %vm1421_vm0, %v2335_v9, -inf }
 0xa6b   : > { %v2353_v23 = vsel %vm1421_vm0, %v2327_v54, -inf }
 0xa6e   : > { %2354 = vmax.xlane.f32.xlu0 %v2353_v23  ;;  %2357 = vmax.xlane.f32.xlu1 %v2356_v53 }
 0xa72   : > { %2360 = vmax.xlane.f32.xlu0 %v2359_v46 }
 0xa7f   : > { %2430 = vrot.lane.b32.xlu1 %v9303_v25, %s8875_s28 }
 0xa83   : > { %2432 = vrot.lane.b32.xlu1 %v9301_v22, %s8875_s28 }
 0xaef   : > { %v2340_v29 = vpop.xlane.xlu0 %2339 }
 0xaf0   : > { %v2362_v56 = vsub.f32 %v2308_v59, %v2340_v29 }
 0xaf1   : > { %v2343_v7 = vpop.xlane.xlu1 %2342 }
 0xaf2   : > { %v2370_v5 = vmul.f32 1.442695, %v2362_v56  ;;  %v2363_v58 = vsub.f32 %v2311_v28, %v2343_v7 }
 0xaf3   : > { %v2346_v8 = vpop.xlane.xlu0 %2345 }
 0xaf4   : > { %v2364_v16 = vsub.f32 %v2316_v0, %v2346_v8  ;;  %v2372_v57 = vmul.f32 1.442695, %v2363_v58 }
 0xaf6   : > { %v2374_v31 = vmul.f32 1.442695, %v2364_v16 }
 0xaf7   : > { %v2352_v2 = vpop.xlane.xlu1 %2351  ;;  %v2349_v23 = vpop.xlane.xlu0 %2348 }
 0xaf8   : > { %8384 = vpow2.f32 %v2374_v31  ;;  %v2365_v53 = vsub.f32 %v2319_v47, %v2349_v23  ;;  %v2366_v22 = vsub.f32 %v2324_v44, %v2352_v2 }
 0xaf9   : > { %8386 = vpow2.f32 %v2370_v5 }
 0xafa   : > { %v2376_v46 = vmul.f32 1.442695, %v2365_v53  ;;  %v2378_v28 = vmul.f32 1.442695, %v2366_v22 }
 0xafb   : > { %v2358_v35 = vpop.xlane.xlu1 %2357  ;;  %v2355_v25 = vpop.xlane.xlu0 %2354 }
 0xafc   : > { %v2368_v20 = vsub.f32 %v2332_v52, %v2358_v35  ;;  %8388 = vpow2.f32 %v2376_v46 }
 0xafd   : > { %8390 = vpow2.f32 %v2372_v57 }
 0xafe   : > { %v2382_v59 = vmul.f32 1.442695, %v2368_v20  ;;  %v2367_v20 = vsub.f32 %v2327_v54, %v2355_v25 }
 0xaff   : > { %v2431_v29 = vpop.permute.xlu1 %2430  ;;  %v2361_v60 = vpop.xlane.xlu0 %2360 }
 0xb00   : > { %7626 = vmatprep.subr.bf16.mxu0 %v2431_v29  ;;  %8392 = vpow2.f32 %v2382_v59  ;;  %v2369_v56 = vsub.f32 %v2335_v9, %v2361_v60  ;;  %v2380_v52 = vmul.f32 1.442695, %v2367_v20 }
 0xb01   : > { %7627 = vmatpush3.bf16.msra.mxu0 %v2431_v29  ;;  %8394 = vpow2.f32 %v2378_v28 }
 0xb02   : > { %v9785_v0 = vpop.eup %8384  ;;  %v2384_v57 = vmul.f32 1.442695, %v2369_v56 }
 0xb03   : > { %v2433_v47 = vpop.permute.xlu1 %2432  ;;  %v2392_v7 = vsel %vm1421_vm0, %v9785_v0, 0.0  ;;  %v8387_v8 = vpop.eup %8386 }
 0xb04   : > { %7628 = vmatprep.subr.bf16.mxu0 %v2433_v47  ;;  %2393 = vadd.xlane.f32.xlu1 %v2392_v7  ;;  %v2386_v2 = vsel %vm1421_vm0, %v8387_v8, 0.0  ;;  %8396 = vpow2.f32 %v2384_v57 }
 0xb05   : > { %7629 = vmatpush3.bf16.msra.mxu0 %v2433_v47  ;;  %8398 = vpow2.f32 %v2380_v52 }
 0xb06   : > { %v9789_v35 = vpop.eup %8388 }
 0xb07   : > { %v2395_v44 = vsel %vm1421_vm0, %v9789_v35, 0.0  ;;  %v8391_v60 = vpop.eup %8390 }
 0xb08   : > { %2387 = vadd.xlane.f32.xlu1 %v2386_v2  ;;  %2396 = vadd.xlane.f32.xlu0 %v2395_v44  ;;  %v2389_v9 = vsel %vm1421_vm0, %v8391_v60, 0.0 }
 0xb0a   : > { %v9795_v16 = vpop.eup %8392 }
 0xb0b   : > { %v2404_v54 = vsel %vm1421_vm0, %v9795_v16, 0.0  ;;  %v8395_v5 = vpop.eup %8394 }
 0xb0c   : > { %2390 = vadd.xlane.f32.xlu0 %v2389_v9  ;;  %v2398_v31 = vsel %vm1421_vm0, %v8395_v5, 0.0 }
 0xb0e   : > { %v9800_v58 = vpop.eup %8396 }
 0xb0f   : > { %v2407_v23 = vsel %vm1421_vm0, %v9800_v58, 0.0  ;;  %v8399_v53 = vpop.eup %8398 }
 0xb10   : > { %2405 = vadd.xlane.f32.xlu0 %v2404_v54  ;;  %v2401_v46 = vsel %vm1421_vm0, %v8399_v53, 0.0 }
 0xb14   : > { %2399 = vadd.xlane.f32.xlu0 %v2398_v31 }
 0xb18   : > { %2408 = vadd.xlane.f32.xlu0 %v2407_v23 }
 0xb19   : > { %2436 = vrot.lane.b32.xlu1 %v9318_v39, %s8875_s28  ;;  %v11105_v39 = vpack.c.bf16 %v9745_v45, %v9741_v33 }
 0xb1c   : > { %2402 = vadd.xlane.f32.xlu0 %v2401_v46 }
 0xb1d   : > { %1905 = vrot.lane.b32.xlu1 %v1897_v3, %s8875_s28 }
 0xb21   : > { %1907 = vrot.lane.b32.xlu1 %v1898_v38, %s8875_s28 }
 0xb25   : > { %2216 = vrot.lane.b32.xlu1 %v2208_v6, %s8874_s30 }
 0xb29   : > { %2218 = vrot.lane.b32.xlu1 %v11105_v39, %s8874_s30 }
 0xb32   : > { %2434 = vrot.lane.b32.xlu0 %v9323_v41, %s8875_s28 }
 0xb91   : > { %v2394_v63 = vpop.xlane.xlu1 %2393 }
 0xb95   : > { %v2388_v17 = vpop.xlane.xlu1 %2387  ;;  %v2397_v3 = vpop.xlane.xlu0 %2396 }
 0xb96   : > { %8400 = vrcp.f32 %v2388_v17  ;;  %v8062_v17 = vld [vmem:[%s11025_s6 + $0x30] sm:$0xff]  }
 0xb99   : > { %v2437_v25 = vpop.permute.xlu1 %2436  ;;  %v2391_v62 = vpop.xlane.xlu0 %2390 }
 0xb9a   : > { %8402 = vrcp.f32 %v2391_v62 }
 0xb9b   : > { %8404 = vrcp.f32 %v2397_v3  ;;  %v8063_v3 = vld [vmem:[%s11025_s6 + $0x38] sm:$0xff]  }
 0xb9c   : > { %8406 = vrcp.f32 %v2394_v63  ;;  %v8061_v63 = vld [vmem:[%s11025_s6 + $0x28] sm:$0xff]  }
 0xb9d   : > { %v1906_v19 = vpop.permute.xlu1 %1905  ;;  %v2406_v38 = vpop.xlane.xlu0 %2405 }
 0xb9e   : > { %1918 = vst.msk [vmem:[#allocation2] sm:$0xff] %vm1917_vm6, %v1906_v19 }
 0xba0   : > { %v8401_v45 = vpop.eup %8400 }
 0xba1   : > { %v1908_v13 = vpop.permute.xlu1 %1907  ;;  %v2400_v33 = vpop.xlane.xlu0 %2399  ;;  %v2418_v22 = vmul.f32 %v8401_v45, %v8387_v8 }
 0xba2   : > { %1919 = vst.msk [vmem:[#allocation2 + $0x8] sm:$0xff] %vm1917_vm6, %v1908_v13  ;;  %8408 = vrcp.f32 %v2400_v33 }
 0xba4   : > { %v8403_v41 = vpop.eup %8402 }
 0xba5   : > { %v2217_v27 = vpop.permute.xlu1 %2216  ;;  %v2409_v6 = vpop.xlane.xlu0 %2408  ;;  %v2419_v59 = vmul.f32 %v8403_v41, %v8391_v60  ;;  %v11106_v41 = vpack.c.bf16 %v9644_v1, %v9640_v30  ;;  %v11109_v30 = vpack.c.bf16 %v9761_v15, %v9755_v11 }
 0xba6   : > { %2229 = vst.msk [vmem:[#allocation2] sm:$0xff] %vm2228_vm7, %v2217_v27  ;;  %v8405_v47 = vpop.eup %8404 }
 0xba7   : > { %v2426_v29 = vpack.c.bf16 %v2419_v59, %v2418_v22  ;;  %v8407_v20 = vpop.eup %8406  ;;  %v2421_v57 = vmul.f32 %v8405_v47, %v9789_v35 }
 0xba8   : > { %v2420_v2 = vmul.f32 %v8407_v20, %v9785_v0  ;;  %v8056_v0 = vld [vmem:[%s11025_s6] sm:$0xff]  }
 0xba9   : > { %v2219_v28 = vpop.permute.xlu1 %2218  ;;  %7634 = vmatprep.mubr.msk.bf16.mxu0 %vm1421_vm0, %v2426_v29  ;;  %v2403_v56 = vpop.xlane.xlu0 %2402 }
 0xbaa   : > { %2230 = vst.msk [vmem:[#allocation2 + $0x8] sm:$0xff] %vm2228_vm7, %v2219_v28  ;;  %8410 = vrcp.f32 %v2403_v56  ;;  %v2427_v60 = vpack.c.bf16 %v2421_v57, %v2420_v2  ;;  %v11108_v56 = vpack.c.bf16 %v9757_v24, %v9753_v4  ;;  %v6856_v2 = vld [vmem:[%s11026_s7] ss:$0 sm:$0xff] }
 0xbab   : > { %8412 = vrcp.f32 %v2409_v6  ;;  %v11107_v6 = vpack.c.bf16 %v9648_v26, %v9642_v21 }
 0xbac   : > { %8414 = vrcp.f32 %v2406_v38  ;;  %v8409_v8 = vpop.eup %8408 }
 0xbad   : > { %v2435_v7 = vpop.permute.xlu0 %2434  ;;  %v2422_v9 = vmul.f32 %v8409_v8, %v8395_v5  ;;  %v8057_v5 = vld [vmem:[%s11025_s6 + $0x8] sm:$0xff]  }
 0xbae   : > { %7630 = vmatprep.subr.bf16.mxu0 %v2435_v7 }
 0xbaf   : > { %7631 = vmatpush3.bf16.msra.mxu0 %v2435_v7 }
 0xbb0   : > { %7632 = vmatprep.subr.bf16.mxu0 %v2437_v25 }
 0xbb3   : > { %7633 = vmatpush3.bf16.msra.mxu0 %v2437_v25 }
 0xbb4   : > { %v8411_v44 = vpop.eup %8410  ;;  %7642 = vmatprep.subr.bf16.mxu0 %v8056_v0 }
 0xbb5   : > { %v8413_v52 = vpop.eup %8412  ;;  %v2423_v54 = vmul.f32 %v8411_v44, %v8399_v53  ;;  %v8060_v53 = vld [vmem:[%s11025_s6 + $0x20] sm:$0xff]  }
 0xbb6   : > { %7635 = vmatmul.mubr.msk.bf16.vlgmr.msra.gmra.mrb[40].mxu0 %vm1421_vm0, %v2427_v60  ;;  %v8415_v31 = vpop.eup %8414  ;;  %v2425_v46 = vmul.f32 %v8413_v52, %v9800_v58  ;;  %v8058_v58 = vld [vmem:[%s11025_s6 + $0x10] sm:$0xff]  }
 0xbb7   : > { %v2428_v23 = vpack.c.bf16 %v2423_v54, %v2422_v9  ;;  %v2424_v35 = vmul.f32 %v8415_v31, %v9795_v16  ;;  %7643 = vmatpush3.bf16.msra.mxu0 %v8056_v0  ;;  %v8059_v16 = vld [vmem:[%s11025_s6 + $0x18] sm:$0xff]  }
 0xbb8   : > { %7644 = vmatprep.subr.bf16.mxu0 %v8057_v5 }
 0xbb9   : > { %7638 = vmatprep.mubr.msk.bf16.mxu0 %vm1421_vm0, %v2428_v23  ;;  %v2429_v39 = vpack.c.bf16 %v2425_v46, %v2424_v35 }
 0xbbb   : > { %7645 = vmatpush3.bf16.msra.mxu0 %v8057_v5 }
 0xbbc   : > { %7646 = vmatprep.subr.bf16.mxu0 %v8058_v58 }
 0xbbe   : > { %7639 = vmatmul.mubr.msk.bf16.gmra.mrb[44].mxu0 %vm1421_vm0, %v2429_v39 }
 0xbbf   : > { %7647 = vmatpush3.bf16.msra.mxu0 %v8058_v58 }
 0xbc0   : > { %7648 = vmatprep.subr.bf16.mxu0 %v8059_v16 }
 0xbc3   : > { %7649 = vmatpush3.bf16.msra.mxu0 %v8059_v16 }
 0xbc4   : > { %7650 = vmatprep.subr.bf16.mxu0 %v8060_v53 }
 0xbc7   : > { %7651 = vmatpush3.bf16.msra.mxu0 %v8060_v53 }
 0xbc8   : > { %7652 = vmatprep.subr.bf16.mxu0 %v8061_v63 }
 0xbcb   : > { %7653 = vmatpush3.bf16.msra.mxu0 %v8061_v63 }
 0xbcc   : > { %7654 = vmatprep.subr.bf16.mxu0 %v8062_v17 }
 0xbcf   : > { %7655 = vmatpush3.bf16.msra.mxu0 %v8062_v17 }
 0xbd0   : > { %7656 = vmatprep.subr.bf16.mxu0 %v8063_v3 }
 0xbd3   : > { %7657 = vmatpush3.bf16.msra.mxu0 %v8063_v3 }
 0xc89   : > { %v7636_v25 = vpop.f32.mrb[40].mxu0 }
 0xc8a   : > { %v2488_v62 = vpop.f32.mrb[41].mxu0 }
 0xc8b   : > { %v7637_v19 = vpop.f32.mrb[42].mxu0 }
 0xc8c   : > { %v2520_v38 = vpack.c.bf16 %v7637_v19, %v7636_v25  ;;  %v2491_v13 = vpop.f32.mrb[43].mxu0  ;;  %v8066_v19 = vld [vmem:[#allocation9 + $0x4] ss:$16 sps:$4 sm:$0xff]  }
 0xc8d   : > { %v2519_v33 = vpack.c.bf16 %v2491_v13, %v2488_v62  ;;  %v8069_v13 = vld [vmem:[#allocation9 + $0xc] ss:$16 sps:$4 sm:$0xff]   ;;  %3028 = vmatprep.subr.bf16.mxu1 %v8066_v19  ;;  %v8090_v19 = vld [vmem:[#allocation9 + $0x84] ss:$16 sps:$4 sm:$0xff]  }
 0xc8e   : > { %2529 = vrot.lane.b32.xlu1 %v2520_v38, %s8872_s21  ;;  %v8067_v38 = vld [vmem:[#allocation9 + $0x8] ss:$16 sps:$4 sm:$0xff]   ;;  %3101 = vmatprep.subr.bf16.mxu0 %v8069_v13  ;;  %v8088_v13 = vld [vmem:[#allocation9 + $0x80] ss:$16 sps:$4 sm:$0xff]  }
 0xc8f   : > { %2527 = vrot.lane.b32.xlu0 %v2519_v33, %s8872_s21  ;;  %v8075_v33 = vld [vmem:[#allocation9 + $0x2c] ss:$16 sps:$4 sm:$0xff]  }
 0xc91   : > { %v7640_v45 = vpop.f32.mrb[44].mxu0 }
 0xc92   : > { %1911 = vrot.lane.b32.xlu1 %v11106_v41, %s8875_s28  ;;  %v2504_v27 = vpop.f32.mrb[45].mxu0 }
 0xc93   : > { %1909 = vrot.lane.b32.xlu0 %v11107_v6, %s8875_s28  ;;  %v7641_v22 = vpop.f32.mrb[46].mxu0 }
 0xc94   : > { %v2522_v59 = vpack.c.bf16 %v7641_v22, %v7640_v45  ;;  %v2507_v29 = vpop.f32.mrb[47].mxu0  ;;  %v8073_v45 = vld [vmem:[#allocation9 + $0x28] ss:$16 sps:$4 sm:$0xff]  }
 0xc95   : > { %v2521_v28 = vpack.c.bf16 %v2507_v29, %v2504_v27 }
 0xc96   : > { %2222 = vrot.lane.b32.xlu1 %v11108_v56, %s8874_s30 }
 0xc97   : > { %2220 = vrot.lane.b32.xlu0 %v11109_v30, %s8874_s30 }
 0xc9a   : > { %2533 = vrot.lane.b32.xlu1 %v2522_v59, %s8872_s21 }
 0xc9b   : > { %2531 = vrot.lane.b32.xlu0 %v2521_v28, %s8872_s21 }
 0xd00   : > { %v2530_v21 = vpop.permute.xlu1 %2529 }
 0xd01   : > { %2541 = vst.msk [vmem:[#allocation2 + $0x8] sm:$0xff] %vm2539_vm8, %v2530_v21  ;;  %v2528_v1 = vpop.permute.xlu0 %2527 }
 0xd02   : > { %2540 = vst.msk [vmem:[#allocation2] sm:$0xff] %vm2539_vm8, %v2528_v1 }
 0xd04   : > { %v1912_v26 = vpop.permute.xlu1 %1911 }
 0xd05   : > { %1921 = vst.msk [vmem:[#allocation2 + $0x18] sm:$0xff] %vm1917_vm6, %v1912_v26  ;;  %v1910_v4 = vpop.permute.xlu0 %1909 }
 0xd06   : > { %1920 = vst.msk [vmem:[#allocation2 + $0x10] sm:$0xff] %vm1917_vm6, %v1910_v4 }
 0xd08   : > { %v2223_v24 = vpop.permute.xlu1 %2222  ;;  %v2545_v47 = vld [vmem:[#allocation2 + $0x8] sm:$0xff] }
 0xd09   : > { %2232 = vst.msk [vmem:[#allocation2 + $0x18] sm:$0xff] %vm2228_vm7, %v2223_v24  ;;  %v2221_v11 = vpop.permute.xlu0 %2220  ;;  %v2544_v15 = vld [vmem:[#allocation2] sm:$0xff] }
 0xd0a   : > { %2231 = vst.msk [vmem:[#allocation2 + $0x10] sm:$0xff] %vm2228_vm7, %v2221_v11  ;;  %7658 = vmatprep.mubr.bf16.mxu0 %v2544_v15 }
 0xd0b   : > { %7659 = vmatmul.mubr.bf16.vlgmr.msra.gmra.mrb[48].mxu0 %v2545_v47 }
 0xd0c   : > { %v2534_v7 = vpop.permute.xlu1 %2533  ;;  %3102 = vmatpush1.bf16.msra.mxu0 %v8067_v38  ;;  %v8093_v38 = vld [vmem:[#allocation9 + $0x8c] ss:$16 sps:$4 sm:$0xff]  }
 0xd0d   : > { %2543 = vst.msk [vmem:[#allocation2 + $0x18] sm:$0xff] %vm2539_vm8, %v2534_v7  ;;  %v2532_v20 = vpop.permute.xlu0 %2531  ;;  %3103 = vmatprep.subr.bf16.mxu0 %v8075_v33  ;;  %v8096_v33 = vld [vmem:[#allocation9 + $0xa4] ss:$16 sps:$4 sm:$0xff]  }
 0xd0e   : > { %2542 = vst.msk [vmem:[#allocation2 + $0x10] sm:$0xff] %vm2539_vm8, %v2532_v20 }
 0xd10   : > { %3104 = vmatpush1.bf16.msra.mxu0 %v8073_v45  ;;  %v8094_v45 = vld [vmem:[#allocation9 + $0xa0] ss:$16 sps:$4 sm:$0xff]  }
 0xd14   : > { %v2547_v8 = vld [vmem:[#allocation2 + $0x18] sm:$0xff] }
 0xd15   : > { %v2546_v57 = vld [vmem:[#allocation2 + $0x10] sm:$0xff] }
 0xd16   : > { %7662 = vmatprep.mubr.bf16.mxu0 %v2546_v57 }
 0xd17   : > { %7663 = vmatmul.mubr.bf16.gmra.mrb[52].mxu0 %v2547_v8 }
 0xd18   : > { %3133 = vmatprep.mubr.bf16.mxu0 %v11104_v40 }
 0xdde   : > { %v7660_v44 = vpop.f32.mrb[48].mxu0 }
 0xddf   : > { %v2653_v60 = vpop.f32.mrb[49].mxu0  ;;  %v2662_v31 = vadd.f32 %v7660_v44, %v6856_v2 }
 0xde0   : > { %v2654_v52 = vadd.f32 %v6856_v2, %v2653_v60  ;;  %v7661_v9 = vpop.f32.mrb[50].mxu0 }
 0xde1   : > { %v2656_v54 = vpop.f32.mrb[51].mxu0  ;;  %v9901_v39 = vadd.f32 %v2662_v31, %v9213_v37  ;;  %v2665_v0 = vadd.f32 %v7661_v9, %v6856_v2 }
 0xde2   : > { %v9894_v23 = vadd.f32 %v2654_v52, %v9208_v32  ;;  %v2657_v46 = vadd.f32 %v6856_v2, %v2656_v54 }
 0xde3   : > { %v9906_v5 = vadd.f32 %v2665_v0, %v9217_v42 }
 0xde4   : > { %v9897_v35 = vadd.f32 %v2657_v46, %v9210_v36  ;;  %2694 = vadd.xlane.f32.xlu0 %v9894_v23 }
 0xde6   : > { %2696 = vadd.xlane.f32.xlu1 %v9897_v35 }
 0xde8   : > { %2698 = vadd.xlane.f32.xlu0 %v9901_v39 }
 0xdea   : > { %v7664_v58 = vpop.f32.mrb[52].mxu0 }
 0xdeb   : > { %v2669_v32 = vpop.f32.mrb[53].mxu0  ;;  %v2678_v63 = vadd.f32 %v7664_v58, %v6856_v2  ;;  %v8078_v58 = vld [vmem:[#allocation9 + $0x44] ss:$16 sps:$4 sm:$0xff]  }
 0xdec   : > { %v2670_v16 = vadd.f32 %v6856_v2, %v2669_v32  ;;  %2700 = vadd.xlane.f32.xlu0 %v9906_v5  ;;  %v7665_v36 = vpop.f32.mrb[54].mxu0  ;;  %v8081_v32 = vld [vmem:[#allocation9 + $0x4c] ss:$16 sps:$4 sm:$0xff]  }
 0xded   : > { %v2672_v53 = vpop.f32.mrb[55].mxu0  ;;  %v2681_v3 = vadd.f32 %v7665_v36, %v6856_v2  ;;  %v9917_v42 = vadd.f32 %v2678_v63, %v9223_v48  ;;  %v8070_v48 = vld [vmem:[#allocation9 + $0x20] ss:$16 sps:$4 sm:$0xff]   ;;  %v8079_v36 = vld [vmem:[#allocation9 + $0x48] ss:$16 sps:$4 sm:$0xff]   ;;  %3105 = vmatprep.subr.bf16.mxu0 %v8081_v32 }
 0xdee   : > { %v9910_v17 = vadd.f32 %v2670_v16, %v9219_v43  ;;  %v2673_v37 = vadd.f32 %v6856_v2, %v2672_v53  ;;  %v8064_v43 = vld [vmem:[#allocation9] ss:$16 sps:$4 sm:$0xff]   ;;  %3106 = vmatpush1.bf16.msra.mxu0 %v8079_v36  ;;  %v8084_v63 = vld [vmem:[#allocation9 + $0x64] ss:$16 sps:$4 sm:$0xff]  }
 0xdef   : > { %v9921_v62 = vadd.f32 %v2681_v3, %v9229_v51  ;;  %3029 = vmatpush1.bf16.msra.mxu1 %v8064_v43  ;;  %v8076_v16 = vld [vmem:[#allocation9 + $0x40] ss:$16 sps:$4 sm:$0xff]   ;;  %v8085_v43 = vld [vmem:[#allocation9 + $0x68] ss:$16 sps:$4 sm:$0xff]  }
 0xdf0   : > { %v9913_v25 = vadd.f32 %v2673_v37, %v9225_v49  ;;  %2702 = vadd.xlane.f32.xlu1 %v9910_v17  ;;  %v8072_v49 = vld [vmem:[#allocation9 + $0x24] ss:$16 sps:$4 sm:$0xff]   ;;  %v8087_v37 = vld [vmem:[#allocation9 + $0x6c] ss:$16 sps:$4 sm:$0xff]   ;;  %v8082_v3 = vld [vmem:[#allocation9 + $0x60] ss:$16 sps:$4 sm:$0xff]  }
 0xdf1   : > { %3030 = vmatprep.subr.bf16.mxu1 %v8072_v49  ;;  %3107 = vmatprep.subr.bf16.mxu0 %v8087_v37  ;;  %v8091_v49 = vld [vmem:[#allocation9 + $0x88] ss:$16 sps:$4 sm:$0xff]  }
 0xdf2   : > { %2704 = vadd.xlane.f32.xlu0 %v9913_v25  ;;  %3108 = vmatpush1.bf16.msra.mxu0 %v8085_v43 }
 0xdf3   : > { %3031 = vmatpush1.bf16.msra.mxu1 %v8070_v48  ;;  %3109 = vmatprep.subr.bf16.mxu0 %v8093_v38  ;;  %v8099_v48 = vld [vmem:[#allocation9 + $0xac] ss:$16 sps:$4 sm:$0xff]  }
 0xdf4   : > { %2706 = vadd.xlane.f32.xlu1 %v9917_v42  ;;  %3032 = vmatprep.subr.bf16.mxu1 %v8078_v58 }
 0xdf6   : > { %2708 = vadd.xlane.f32.xlu0 %v9921_v62  ;;  %3110 = vmatpush1.bf16.msra.mxu0 %v8091_v49 }
 0xdf7   : > { %3033 = vmatpush1.bf16.msra.mxu1 %v8076_v16  ;;  %3111 = vmatprep.subr.bf16.mxu0 %v8099_v48 }
 0xdf8   : > { %3034 = vmatprep.subr.bf16.mxu1 %v8084_v63 }
 0xdfb   : > { %3035 = vmatpush1.bf16.msra.mxu1 %v8082_v3 }
 0xdfc   : > { %3036 = vmatprep.subr.bf16.mxu1 %v8090_v19 }
 0xdff   : > { %3037 = vmatpush1.bf16.msra.mxu1 %v8088_v13 }
 0xe00   : > { %3038 = vmatprep.subr.bf16.mxu1 %v8096_v33 }
 0xe03   : > { %3039 = vmatpush1.bf16.msra.mxu1 %v8094_v45 }
 0xe71   : > { %v2695_v51 = vpop.xlane.xlu0 %2694 }
 0xe72   : > { %v2710_v41 = vmul.f32 0.0078125, %v2695_v51  ;;  %v8097_v51 = vld [vmem:[#allocation9 + $0xa8] ss:$16 sps:$4 sm:$0xff]  }
 0xe73   : > { %v2697_v27 = vpop.xlane.xlu1 %2696  ;;  %3112 = vmatpush1.bf16.msra.mxu0 %v8097_v51 }
 0xe74   : > { %v9926_v6 = vsub.f32 %v9894_v23, %v2710_v41  ;;  %v2711_v22 = vmul.f32 0.0078125, %v2697_v27  ;;  %v8102_v41 = vld [vmem:[#allocation9 + $0xc4] ss:$16 sps:$4 sm:$0xff]   ;;  %v8105_v27 = vld [vmem:[#allocation9 + $0xcc] ss:$16 sps:$4 sm:$0xff]  }
 0xe75   : > { %v2699_v59 = vpop.xlane.xlu0 %2698  ;;  %3040 = vmatprep.subr.bf16.mxu1 %v8102_v41  ;;  %3113 = vmatprep.subr.bf16.mxu0 %v8105_v27  ;;  %v9976_v41 = vld [vmem:[%s11028_s9] ss:$0 sm:$0xff] }
 0xe76   : > { %v9929_v29 = vsub.f32 %v9897_v35, %v2711_v22  ;;  %v2712_v28 = vmul.f32 0.0078125, %v2699_v59  ;;  %v2726_v56 = vmul.f32 %v9926_v6, %v9926_v6  ;;  %v8100_v22 = vld [vmem:[#allocation9 + $0xc0] ss:$16 sps:$4 sm:$0xff]   ;;  %v8103_v59 = vld [vmem:[#allocation9 + $0xc8] ss:$16 sps:$4 sm:$0xff]  }
 0xe77   : > { %3041 = vmatpush1.bf16.msra.mxu1 %v8100_v22  ;;  %3114 = vmatpush1.bf16.msra.mxu0 %v8103_v59 }
 0xe78   : > { %v9934_v30 = vsub.f32 %v9901_v39, %v2712_v28  ;;  %2734 = vadd.xlane.f32.xlu1 %v2726_v56  ;;  %v2727_v21 = vmul.f32 %v9929_v29, %v9929_v29  ;;  %v8108_v28 = vld [vmem:[#allocation9 + $0xe4] ss:$16 sps:$4 sm:$0xff]   ;;  %v8111_v56 = vld [vmem:[#allocation9 + $0xec] ss:$16 sps:$4 sm:$0xff]  }
 0xe79   : > { %v2701_v1 = vpop.xlane.xlu0 %2700  ;;  %3042 = vmatprep.subr.bf16.mxu1 %v8108_v28  ;;  %3115 = vmatprep.subr.bf16.mxu0 %v8111_v56 }
 0xe7a   : > { %v2713_v26 = vmul.f32 0.0078125, %v2701_v1  ;;  %2736 = vadd.xlane.f32.xlu0 %v2727_v21  ;;  %v2728_v4 = vmul.f32 %v9934_v30, %v9934_v30  ;;  %v8106_v21 = vld [vmem:[#allocation9 + $0xe0] ss:$16 sps:$4 sm:$0xff]   ;;  %v8109_v1 = vld [vmem:[#allocation9 + $0xe8] ss:$16 sps:$4 sm:$0xff]  }
 0xe7b   : > { %3043 = vmatpush1.bf16.msra.mxu1 %v8106_v21  ;;  %3116 = vmatpush1.bf16.msra.mxu0 %v8109_v1 }
 0xe7c   : > { %v9941_v24 = vsub.f32 %v9906_v5, %v2713_v26  ;;  %2738 = vadd.xlane.f32.xlu1 %v2728_v4  ;;  %v8112_v26 = vld [vmem:[#allocation11 + $0x40] sm:$0xff]  }
 0xe7d   : > { %v2703_v11 = vpop.xlane.xlu1 %2702  ;;  %v8113_v4 = vld [vmem:[#allocation11 + $0xc0] sm:$0xff]   ;;  %7206 = vmatprep.subr.bf16.mxu1 %v8112_v26 }
 0xe7e   : > { %v2714_v15 = vmul.f32 0.0078125, %v2703_v11  ;;  %v2729_v47 = vmul.f32 %v9941_v24, %v9941_v24  ;;  %7246 = vmatprep.subr.bf16.mxu0 %v8113_v4  ;;  %v8114_v26 = vld [vmem:[#allocation11] sm:$0xff]  }
 0xe7f   : > { %v2705_v7 = vpop.xlane.xlu0 %2704  ;;  %v8115_v4 = vld [vmem:[#allocation11 + $0x80] sm:$0xff]  }
 0xe80   : > { %v9946_v20 = vsub.f32 %v9910_v17, %v2714_v15  ;;  %v2715_v57 = vmul.f32 0.0078125, %v2705_v7  ;;  %2740 = vadd.xlane.f32.xlu0 %v2729_v47 }
 0xe81   : > { %v2707_v8 = vpop.xlane.xlu1 %2706 }
 0xe82   : > { %v9949_v2 = vsub.f32 %v9913_v25, %v2715_v57  ;;  %v2716_v44 = vmul.f32 0.0078125, %v2707_v8  ;;  %v2730_v60 = vmul.f32 %v9946_v20, %v9946_v20 }
 0xe83   : > { %v2709_v52 = vpop.xlane.xlu0 %2708 }
 0xe84   : > { %v9954_v9 = vsub.f32 %v9917_v42, %v2716_v44  ;;  %v2717_v54 = vmul.f32 0.0078125, %v2709_v52  ;;  %2742 = vadd.xlane.f32.xlu1 %v2730_v60  ;;  %v2731_v31 = vmul.f32 %v9949_v2, %v9949_v2 }
 0xe86   : > { %v9959_v46 = vsub.f32 %v9921_v62, %v2717_v54  ;;  %2744 = vadd.xlane.f32.xlu0 %v2731_v31  ;;  %v2732_v0 = vmul.f32 %v9954_v9, %v9954_v9 }
 0xe88   : > { %2746 = vadd.xlane.f32.xlu1 %v2732_v0  ;;  %v2733_v53 = vmul.f32 %v9959_v46, %v9959_v46 }
 0xe8a   : > { %2748 = vadd.xlane.f32.xlu0 %v2733_v53  ;;  %v9968_v53 = vld [vmem:[%s11027_s8] ss:$0 sm:$0xff] }
 0xf05   : > { %v2735_v11 = vpop.xlane.xlu1 %2734 }
 0xf06   : > { %v2750_v15 = vmul.f32 0.0078125, %v2735_v11  ;;  %v8116_v11 = vld [vmem:[#allocation11 + $0x48] sm:$0xff]  }
 0xf07   : > { %v2737_v47 = vpop.xlane.xlu0 %2736 }
 0xf08   : > { %v2758_v7 = vadd.f32 1e-05, %v2750_v15  ;;  %v2751_v57 = vmul.f32 0.0078125, %v2737_v47  ;;  %v8117_v15 = vld [vmem:[#allocation11 + $0xc8] sm:$0xff]  }
 0xf09   : > { %v2739_v8 = vpop.xlane.xlu1 %2738 }
 0xf0a   : > { %8416 = vrsqrt.f32 %v2758_v7  ;;  %v2759_v44 = vadd.f32 1e-05, %v2751_v57  ;;  %v2752_v60 = vmul.f32 0.0078125, %v2739_v8  ;;  %v8119_v8 = vld [vmem:[#allocation11 + $0x88] sm:$0xff]  }
 0xf0c   : > { %8418 = vrsqrt.f32 %v2759_v44  ;;  %v2760_v52 = vadd.f32 1e-05, %v2752_v60  ;;  %v8120_v60 = vld [vmem:[#allocation11 + $0x50] sm:$0xff]  }
 0xf0d   : > { %v2741_v54 = vpop.xlane.xlu0 %2740 }
 0xf0e   : > { %8420 = vrsqrt.f32 %v2760_v52  ;;  %v2753_v31 = vmul.f32 0.0078125, %v2741_v54  ;;  %v8121_v52 = vld [vmem:[#allocation11 + $0xd0] sm:$0xff]  }
 0xf10   : > { %v2761_v0 = vadd.f32 1e-05, %v2753_v31 }
 0xf11   : > { %v2743_v58 = vpop.xlane.xlu1 %2742 }
 0xf12   : > { %8422 = vrsqrt.f32 %v2761_v0  ;;  %v2754_v32 = vmul.f32 0.0078125, %v2743_v58 }
 0xf13   : > { %v2745_v16 = vpop.xlane.xlu0 %2744 }
 0xf14   : > { %v8417_v36 = vpop.eup %8416  ;;  %v2762_v63 = vadd.f32 1e-05, %v2754_v32  ;;  %v2755_v37 = vmul.f32 0.0078125, %v2745_v16  ;;  %v8122_v16 = vld [vmem:[#allocation11 + $0x10] sm:$0xff]  }
 0xf15   : > { %v2774_v3 = vmul.f32 %v8417_v36, %v9926_v6  ;;  %v2747_v43 = vpop.xlane.xlu1 %2746  ;;  %v8123_v36 = vld [vmem:[#allocation11 + $0x90] sm:$0xff]  }
 0xf16   : > { %v8419_v19 = vpop.eup %8418  ;;  %8424 = vrsqrt.f32 %v2762_v63  ;;  %v2763_v38 = vadd.f32 1e-05, %v2755_v37  ;;  %v2756_v13 = vmul.f32 0.0078125, %v2747_v43  ;;  %v8124_v37 = vld [vmem:[#allocation11 + $0x58] sm:$0xff]  }
 0xf17   : > { %v2788_v49 = vmul.f32 %v9968_v53, %v2774_v3  ;;  %v2775_v33 = vmul.f32 %v8419_v19, %v9929_v29  ;;  %v2749_v48 = vpop.xlane.xlu0 %2748  ;;  %v8125_v3 = vld [vmem:[#allocation11 + $0xd8] sm:$0xff]  }
 0xf18   : > { %v8421_v45 = vpop.eup %8420  ;;  %8426 = vrsqrt.f32 %v2763_v38  ;;  %v2757_v51 = vmul.f32 0.0078125, %v2749_v48  ;;  %v2764_v27 = vadd.f32 1e-05, %v2756_v13  ;;  %v8126_v38 = vld [vmem:[#allocation11 + $0x18] sm:$0xff]  }
 0xf19   : > { %v2789_v6 = vmul.f32 %v9968_v53, %v2775_v33  ;;  %v2802_v59 = vadd.f32 %v9976_v41, %v2788_v49  ;;  %v2776_v56 = vmul.f32 %v8421_v45, %v9934_v30  ;;  %v8127_v13 = vld [vmem:[#allocation11 + $0x98] sm:$0xff]   ;;  %v8128_v49 = vld [vmem:[#allocation11 + $0x60] sm:$0xff]  }
 0xf1a   : > { %v2765_v22 = vadd.f32 1e-05, %v2757_v51  ;;  %v8129_v33 = vld [vmem:[#allocation11 + $0xe0] sm:$0xff]  }
 0xf1b   : > { %v2803_v28 = vadd.f32 %v9976_v41, %v2789_v6  ;;  %v2790_v47 = vmul.f32 %v9968_v53, %v2776_v56 }
 0xf1c   : > { %v8423_v29 = vpop.eup %8422  ;;  %8428 = vrsqrt.f32 %v2765_v22  ;;  %v8131_v22 = vld [vmem:[#allocation11 + $0xa0] sm:$0xff]  }
 0xf1d   : > { %v2810_v21 = vpack.c.bf16 %v2803_v28, %v2802_v59  ;;  %v2777_v1 = vmul.f32 %v8423_v29, %v9941_v24  ;;  %8430 = vrsqrt.f32 %v2764_v27  ;;  %v8118_v24 = vld [vmem:[#allocation11 + $0x8] sm:$0xff]   ;;  %v2804_v54 = vadd.f32 %v9976_v41, %v2790_v47  ;;  %v8130_v27 = vld [vmem:[#allocation11 + $0x20] sm:$0xff]   ;;  %v8141_v47 = vld [vmem:[#allocation11 + $0xf8] sm:$0xff]  }
 0xf1e   : > { %v8133_v59 = vld [vmem:[#allocation11 + $0xe8] sm:$0xff]  }
 0xf1f   : > { %3061 = vmatmul.mubr.bf16.vlgmr.msra.gmra.mrb[48].mxu1 %v2810_v21  ;;  %3134 = vmatmul.mubr.bf16.vlgmr.msra.gmra.mrb[56].mxu0 %v2810_v21  ;;  %v2791_v7 = vmul.f32 %v9968_v53, %v2777_v1  ;;  %v8134_v21 = vld [vmem:[#allocation11 + $0x28] sm:$0xff]  }
 0xf20   : > { %v8425_v57 = vpop.eup %8424  ;;  %3070 = vmatprep.mubr.bf16.mxu1 %v11104_v40  ;;  %3143 = vmatprep.mubr.bf16.mxu0 %v11104_v40  ;;  %v8135_v1 = vld [vmem:[#allocation11 + $0xa8] sm:$0xff]  }
 0xf21   : > { %v2805_v30 = vadd.f32 %v9976_v41, %v2791_v7  ;;  %7207 = vmatpush3.bf16.msra.mxu1 %v8114_v26  ;;  %7247 = vmatpush3.bf16.msra.mxu0 %v8115_v4  ;;  %v2778_v31 = vmul.f32 %v8425_v57, %v9946_v20  ;;  %v8137_v26 = vld [vmem:[#allocation11 + $0xf0] sm:$0xff]   ;;  %v8142_v7 = vld [vmem:[#allocation11 + $0x38] sm:$0xff]  }
 0xf22   : > { %v8427_v44 = vpop.eup %8426  ;;  %7208 = vmatprep.subr.bf16.mxu1 %v8116_v11  ;;  %7248 = vmatprep.subr.bf16.mxu0 %v8117_v15  ;;  %v8138_v4 = vld [vmem:[#allocation11 + $0x30] sm:$0xff]   ;;  %v8140_v15 = vld [vmem:[#allocation11 + $0x78] sm:$0xff]  }
 0xf23   : > { %v2779_v0 = vmul.f32 %v8427_v44, %v9949_v2  ;;  %v2811_v58 = vpack.c.bf16 %v2805_v30, %v2804_v54  ;;  %v2792_v43 = vmul.f32 %v9968_v53, %v2778_v31  ;;  %v8139_v11 = vld [vmem:[#allocation11 + $0xb0] sm:$0xff]   ;;  %v8143_v57 = vld [vmem:[#allocation11 + $0xb8] sm:$0xff]  }
 0xf25   : > { %v2793_v32 = vmul.f32 %v9968_v53, %v2779_v0  ;;  %7209 = vmatpush3.bf16.msra.mxu1 %v8118_v24  ;;  %7249 = vmatpush3.bf16.msra.mxu0 %v8119_v8  ;;  %v2806_v48 = vadd.f32 %v9976_v41, %v2792_v43  ;;  %v2846_v8 = vld [vmem:[%s11030_s11] sm:$0xf] }
 0xf26   : > { %v8429_v63 = vpop.eup %8428  ;;  %7210 = vmatprep.subr.bf16.mxu1 %v8120_v60  ;;  %7250 = vmatprep.subr.bf16.mxu0 %v8121_v52 }
 0xf27   : > { %3071 = vmatmul.mubr.bf16.gmra.mrb[52].mxu1 %v2811_v58  ;;  %3144 = vmatmul.mubr.bf16.gmra.mrb[60].mxu0 %v2811_v58  ;;  %v8431_v19 = vpop.eup %8430  ;;  %v2807_v20 = vadd.f32 %v9976_v41, %v2793_v32  ;;  %v2781_v2 = vmul.f32 %v8429_v63, %v9959_v46  ;;  %v8132_v46 = vld [vmem:[#allocation11 + $0x68] sm:$0xff]  }
 0xf28   : > { %3080 = vmatprep.mubr.bf16.mxu1 %v11104_v40  ;;  %3153 = vmatprep.mubr.bf16.mxu0 %v11104_v40  ;;  %v2780_v45 = vmul.f32 %v8431_v19, %v9954_v9 }
 0xf29   : > { %7211 = vmatpush3.bf16.msra.mxu1 %v8122_v16  ;;  %7251 = vmatpush3.bf16.msra.mxu0 %v8123_v36  ;;  %v2812_v51 = vpack.c.bf16 %v2807_v20, %v2806_v48  ;;  %v2795_v6 = vmul.f32 %v9968_v53, %v2781_v2 }
 0xf2a   : > { %7212 = vmatprep.subr.bf16.mxu1 %v8124_v37  ;;  %7252 = vmatprep.subr.bf16.mxu0 %v8125_v3  ;;  %v2794_v28 = vmul.f32 %v9968_v53, %v2780_v45  ;;  %v8136_v53 = vld [vmem:[#allocation11 + $0x70] sm:$0xff]  }
 0xf2b   : > { %v2809_v9 = vadd.f32 %v9976_v41, %v2795_v6 }
 0xf2c   : > { %v2808_v56 = vadd.f32 %v9976_v41, %v2794_v28  ;;  %v11110_v41 = vld [vmem:[#allocation28_spill] sm:$0xff] }
 0xf2d   : > { %7213 = vmatpush3.bf16.msra.mxu1 %v8126_v38  ;;  %7253 = vmatpush3.bf16.msra.mxu0 %v8127_v13  ;;  %v11066_v30 = vsub.s32 0, %v11110_v41  ;;  %v11065_v24 = vsub.s32 2, %v11110_v41  ;;  %v11064_v44 = vsub.s32 1, %v11110_v41  ;;  %v11063_v60 = vsub.s32 3, %v11110_v41 }
 0xf2e   : > { %7214 = vmatprep.subr.bf16.mxu1 %v8128_v49  ;;  %7254 = vmatprep.subr.bf16.mxu0 %v8129_v33  ;;  %v2813_v29 = vpack.c.bf16 %v2809_v9, %v2808_v56 }
 0xf2f   : > { %3081 = vmatmul.mubr.bf16.gmra.mrb[56].mxu1 %v2812_v51  ;;  %3154 = vmatmul.mubr.bf16.gmra.mrb[64].mxu0 %v2812_v51  ;;  %v10014_v52 = vrot.slane %v2846_v8, %v11066_v30  ;;  %v10018_v54 = vrot.slane %v2846_v8, %v11065_v24  ;;  %v10022_v31 = vrot.slane %v2846_v8, %v11064_v44 }
 0xf30   : > { %3090 = vmatprep.mubr.bf16.mxu1 %v11104_v40  ;;  %3163 = vmatprep.mubr.bf16.mxu0 %v11104_v40  ;;  %v10026_v0 = vrot.slane %v2846_v8, %v11063_v60 }
 0xf31   : > { %7215 = vmatpush3.bf16.msra.mxu1 %v8130_v27  ;;  %7255 = vmatpush3.bf16.msra.mxu0 %v8131_v22 }
 0xf32   : > { %7216 = vmatprep.subr.bf16.mxu1 %v8132_v46  ;;  %7256 = vmatprep.subr.bf16.mxu0 %v8133_v59 }
 0xf35   : > { %7217 = vmatpush3.bf16.msra.mxu1 %v8134_v21  ;;  %7257 = vmatpush3.bf16.msra.mxu0 %v8135_v1 }
 0xf36   : > { %7218 = vmatprep.subr.bf16.mxu1 %v8136_v53  ;;  %7258 = vmatprep.subr.bf16.mxu0 %v8137_v26 }
 0xf37   : > { %3091 = vmatmul.mubr.bf16.gmra.mrb[60].mxu1 %v2813_v29  ;;  %3164 = vmatmul.mubr.bf16.gmra.mrb[68].mxu0 %v2813_v29 }
 0xf39   : > { %7219 = vmatpush3.bf16.msra.mxu1 %v8138_v4  ;;  %7259 = vmatpush3.bf16.msra.mxu0 %v8139_v11 }
 0xf3a   : > { %7220 = vmatprep.subr.bf16.mxu1 %v8140_v15  ;;  %7260 = vmatprep.subr.bf16.mxu0 %v8141_v47 }
 0xf3d   : > { %7221 = vmatpush3.bf16.msra.mxu1 %v8142_v7  ;;  %7261 = vmatpush3.bf16.msra.mxu0 %v8143_v57 }
 0xff2   : > { %v3062_v58 = vpop.f32.mrb[48].mxu1  ;;  %v3135_v32 = vpop.f32.mrb[56].mxu0 }
 0xff3   : > { %v3063_v16 = vadd.f32 %v3062_v58, %v10014_v52  ;;  %v3136_v36 = vadd.f32 %v3135_v32, %v10018_v54  ;;  %v3064_v63 = vpop.f32.mrb[49].mxu1  ;;  %v3137_v37 = vpop.f32.mrb[57].mxu0 }
 0xff4   : > { %v3065_v3 = vadd.f32 %v3064_v63, %v10022_v31  ;;  %v3138_v43 = vadd.f32 %v3137_v37, %v10026_v0  ;;  %v3066_v19 = vpop.f32.mrb[50].mxu1  ;;  %v3139_v20 = vpop.f32.mrb[58].mxu0 }
 0xff5   : > { %v3067_v2 = vadd.f32 %v3066_v19, %v10014_v52  ;;  %v3140_v38 = vadd.f32 %v3139_v20, %v10018_v54  ;;  %v3068_v13 = vpop.f32.mrb[51].mxu1  ;;  %v3141_v49 = vpop.f32.mrb[59].mxu0  ;;  %v3174_v45 = vmax.f32 %v3063_v16, 0.0  ;;  %v3176_v51 = vmax.f32 %v3136_v36, 0.0 }
 0xff6   : > { %v3069_v33 = vadd.f32 %v3068_v13, %v10022_v31  ;;  %v3142_v48 = vadd.f32 %v3141_v49, %v10026_v0  ;;  %v3175_v22 = vmax.f32 %v3065_v3, 0.0  ;;  %v3177_v46 = vmax.f32 %v3138_v43, 0.0 }
 0xff7   : > { %v3178_v6 = vmax.f32 %v3067_v2, 0.0  ;;  %v3180_v27 = vmax.f32 %v3140_v38, 0.0 }
 0xff8   : > { %v3179_v59 = vmax.f32 %v3069_v33, 0.0  ;;  %v3181_v28 = vmax.f32 %v3142_v48, 0.0 }
 0xff9   : > { %v3206_v9 = vpack.c.bf16 %v3178_v6, %v3174_v45  ;;  %v3208_v56 = vpack.c.bf16 %v3180_v27, %v3176_v51 }
 0xffa   : > { %v3207_v29 = vpack.c.bf16 %v3179_v59, %v3175_v22  ;;  %v3209_v21 = vpack.c.bf16 %v3181_v28, %v3177_v46  ;;  %v3072_v1 = vpop.f32.mrb[52].mxu1  ;;  %v3145_v53 = vpop.f32.mrb[60].mxu0 }
 0xffb   : > { %v3073_v26 = vadd.f32 %v3072_v1, %v10014_v52  ;;  %v3146_v4 = vadd.f32 %v3145_v53, %v10018_v54  ;;  %v3074_v11 = vpop.f32.mrb[53].mxu1  ;;  %v3147_v15 = vpop.f32.mrb[61].mxu0 }
 0xffc   : > { %v3075_v47 = vadd.f32 %v3074_v11, %v10022_v31  ;;  %v3148_v7 = vadd.f32 %v3147_v15, %v10026_v0  ;;  %v3076_v57 = vpop.f32.mrb[54].mxu1  ;;  %v3149_v8 = vpop.f32.mrb[62].mxu0  ;;  %3517 = vmatprep.mubr.bf16.mxu1 %v3207_v29  ;;  %3582 = vmatprep.mubr.bf16.mxu0 %v3209_v21 }
 0xffd   : > { %v3077_v58 = vadd.f32 %v3076_v57, %v10014_v52  ;;  %v3150_v32 = vadd.f32 %v3149_v8, %v10018_v54  ;;  %v3078_v16 = vpop.f32.mrb[55].mxu1  ;;  %v3151_v36 = vpop.f32.mrb[63].mxu0  ;;  %3518 = vmatmul.mubr.bf16.vlgmr.msra.gmra.mrb[64].mxu1 %v3206_v9  ;;  %3583 = vmatmul.mubr.bf16.vlgmr.msra.gmra.mrb[72].mxu0 %v3208_v56  ;;  %v3182_v3 = vmax.f32 %v3073_v26, 0.0  ;;  %v3184_v43 = vmax.f32 %v3146_v4, 0.0 }
 0xffe   : > { %v3079_v63 = vadd.f32 %v3078_v16, %v10022_v31  ;;  %v3152_v37 = vadd.f32 %v3151_v36, %v10026_v0  ;;  %v3183_v2 = vmax.f32 %v3075_v47, 0.0  ;;  %v3185_v38 = vmax.f32 %v3148_v7, 0.0 }
 0xfff   : > { %v3186_v19 = vmax.f32 %v3077_v58, 0.0  ;;  %v3188_v20 = vmax.f32 %v3150_v32, 0.0 }
0x1000   : > { %v3187_v13 = vmax.f32 %v3079_v63, 0.0  ;;  %v3189_v49 = vmax.f32 %v3152_v37, 0.0 }
0x1001   : > { %v3210_v33 = vpack.c.bf16 %v3186_v19, %v3182_v3  ;;  %v3212_v48 = vpack.c.bf16 %v3188_v20, %v3184_v43 }
0x1002   : > { %v3211_v45 = vpack.c.bf16 %v3187_v13, %v3183_v2  ;;  %v3213_v51 = vpack.c.bf16 %v3189_v49, %v3185_v38  ;;  %v3082_v6 = vpop.f32.mrb[56].mxu1  ;;  %v3155_v27 = vpop.f32.mrb[64].mxu0 }
0x1003   : > { %v3083_v22 = vadd.f32 %v3082_v6, %v10014_v52  ;;  %v3156_v46 = vadd.f32 %v3155_v27, %v10018_v54  ;;  %v3084_v59 = vpop.f32.mrb[57].mxu1  ;;  %v3157_v28 = vpop.f32.mrb[65].mxu0 }
0x1004   : > { %v3085_v9 = vadd.f32 %v3084_v59, %v10022_v31  ;;  %v3158_v56 = vadd.f32 %v3157_v28, %v10026_v0  ;;  %v3086_v29 = vpop.f32.mrb[58].mxu1  ;;  %v3159_v21 = vpop.f32.mrb[66].mxu0  ;;  %3525 = vmatprep.mubr.bf16.mxu1 %v3211_v45  ;;  %3590 = vmatprep.mubr.bf16.mxu0 %v3213_v51 }
0x1005   : > { %v3087_v1 = vadd.f32 %v3086_v29, %v10014_v52  ;;  %v3160_v53 = vadd.f32 %v3159_v21, %v10018_v54  ;;  %v3088_v26 = vpop.f32.mrb[59].mxu1  ;;  %v3161_v4 = vpop.f32.mrb[67].mxu0  ;;  %3526 = vmatmul.mubr.bf16.gmra.mrb[68].mxu1 %v3210_v33  ;;  %3591 = vmatmul.mubr.bf16.gmra.mrb[76].mxu0 %v3212_v48  ;;  %v3190_v47 = vmax.f32 %v3083_v22, 0.0  ;;  %v3192_v7 = vmax.f32 %v3156_v46, 0.0 }
0x1006   : > { %v3089_v11 = vadd.f32 %v3088_v26, %v10022_v31  ;;  %v3162_v15 = vadd.f32 %v3161_v4, %v10026_v0  ;;  %v3191_v58 = vmax.f32 %v3085_v9, 0.0  ;;  %v3193_v32 = vmax.f32 %v3158_v56, 0.0 }
0x1007   : > { %v3194_v57 = vmax.f32 %v3087_v1, 0.0  ;;  %v3196_v8 = vmax.f32 %v3160_v53, 0.0 }
0x1008   : > { %v3195_v16 = vmax.f32 %v3089_v11, 0.0  ;;  %v3197_v36 = vmax.f32 %v3162_v15, 0.0 }
0x1009   : > { %v3214_v63 = vpack.c.bf16 %v3194_v57, %v3190_v47  ;;  %v3216_v37 = vpack.c.bf16 %v3196_v8, %v3192_v7  ;;  %v10064_v47 = vld [vmem:[%s11032_s13] ss:$0 sm:$0xff] }
0x100a   : > { %v3215_v3 = vpack.c.bf16 %v3195_v16, %v3191_v58  ;;  %v3217_v43 = vpack.c.bf16 %v3197_v36, %v3193_v32  ;;  %v3092_v19 = vpop.f32.mrb[60].mxu1  ;;  %v3165_v20 = vpop.f32.mrb[68].mxu0 }
0x100b   : > { %v3093_v2 = vadd.f32 %v3092_v19, %v10014_v52  ;;  %v3166_v38 = vadd.f32 %v3165_v20, %v10018_v54  ;;  %v3094_v13 = vpop.f32.mrb[61].mxu1  ;;  %v3167_v49 = vpop.f32.mrb[69].mxu0 }
0x100c   : > { %v3095_v33 = vadd.f32 %v3094_v13, %v10022_v31  ;;  %v3168_v48 = vadd.f32 %v3167_v49, %v10026_v0  ;;  %v3096_v45 = vpop.f32.mrb[62].mxu1  ;;  %v3169_v51 = vpop.f32.mrb[70].mxu0  ;;  %3533 = vmatprep.mubr.bf16.mxu1 %v3215_v3  ;;  %3598 = vmatprep.mubr.bf16.mxu0 %v3217_v43 }
0x100d   : > { %v3097_v6 = vadd.f32 %v3096_v45, %v10014_v52  ;;  %v3170_v27 = vadd.f32 %v3169_v51, %v10018_v54  ;;  %v3098_v22 = vpop.f32.mrb[63].mxu1  ;;  %v3171_v46 = vpop.f32.mrb[71].mxu0  ;;  %3534 = vmatmul.mubr.bf16.gmra.mrb[72].mxu1 %v3214_v63  ;;  %3599 = vmatmul.mubr.bf16.gmra.mrb[80].mxu0 %v3216_v37  ;;  %v3198_v9 = vmax.f32 %v3093_v2, 0.0  ;;  %v3200_v56 = vmax.f32 %v3166_v38, 0.0 }
0x100e   : > { %v3099_v59 = vadd.f32 %v3098_v22, %v10022_v31  ;;  %v3172_v28 = vadd.f32 %v3171_v46, %v10026_v0  ;;  %v3199_v1 = vmax.f32 %v3095_v33, 0.0  ;;  %v3201_v53 = vmax.f32 %v3168_v48, 0.0 }
0x100f   : > { %v3202_v29 = vmax.f32 %v3097_v6, 0.0  ;;  %v3204_v21 = vmax.f32 %v3170_v27, 0.0 }
0x1010   : > { %v3203_v26 = vmax.f32 %v3099_v59, 0.0  ;;  %v3205_v4 = vmax.f32 %v3172_v28, 0.0 }
0x1011   : > { %v3218_v11 = vpack.c.bf16 %v3202_v29, %v3198_v9  ;;  %v3220_v52 = vpack.c.bf16 %v3204_v21, %v3200_v56 }
0x1012   : > { %v3219_v15 = vpack.c.bf16 %v3203_v26, %v3199_v1  ;;  %v3221_v54 = vpack.c.bf16 %v3205_v4, %v3201_v53 }
0x1014   : > { %3541 = vmatprep.mubr.bf16.mxu1 %v3219_v15  ;;  %3606 = vmatprep.mubr.bf16.mxu0 %v3221_v54 }
0x1015   : > { %3542 = vmatmul.mubr.bf16.gmra.mrb[76].mxu1 %v3218_v11  ;;  %3607 = vmatmul.mubr.bf16.gmra.mrb[84].mxu0 %v3220_v52 }
0x1016   : > { %3940 = vmatprep.mubr.bf16.mxu1 %v11104_v40 }
0x10d0   : > { %v7222_v31 = vpop.f32.mrb[64].mxu1  ;;  %v7262_v0 = vpop.f32.mrb[72].mxu0 }
0x10d1   : > { %v7223_v7 = vpop.f32.mrb[65].mxu1  ;;  %v7263_v57 = vpop.f32.mrb[73].mxu0 }
0x10d2   : > { %v7224_v8 = vadd.f32 %v7223_v7, %v7222_v31  ;;  %v7264_v58 = vadd.f32 %v7263_v57, %v7262_v0  ;;  %v7225_v32 = vpop.f32.mrb[66].mxu1  ;;  %v7265_v16 = vpop.f32.mrb[74].mxu0 }
0x10d3   : > { %v7226_v36 = vpop.f32.mrb[67].mxu1  ;;  %v7266_v63 = vpop.f32.mrb[75].mxu0 }
0x10d4   : > { %v3520_v37 = vadd.f32 %v7224_v8, %v10064_v47  ;;  %v7227_v3 = vadd.f32 %v7226_v36, %v7225_v32  ;;  %v7267_v43 = vadd.f32 %v7266_v63, %v7265_v16 }
0x10d6   : > { %v3585_v19 = vadd.f32 %v7264_v58, %v3520_v37  ;;  %v3523_v20 = vadd.f32 %v7227_v3, %v10064_v47 }
0x10d8   : > { %v3588_v2 = vadd.f32 %v7267_v43, %v3523_v20  ;;  %v7228_v38 = vpop.f32.mrb[68].mxu1  ;;  %v7268_v13 = vpop.f32.mrb[76].mxu0  ;;  %v10069_v49 = vadd.f32 %v3585_v19, %v9894_v23 }
0x10d9   : > { %v7229_v33 = vpop.f32.mrb[69].mxu1  ;;  %v7269_v48 = vpop.f32.mrb[77].mxu0 }
0x10da   : > { %v7230_v45 = vadd.f32 %v7229_v33, %v7228_v38  ;;  %v7270_v51 = vadd.f32 %v7269_v48, %v7268_v13  ;;  %v7231_v6 = vpop.f32.mrb[70].mxu1  ;;  %v7271_v27 = vpop.f32.mrb[78].mxu0  ;;  %3627 = vadd.xlane.f32.xlu1 %v10069_v49  ;;  %v10073_v22 = vadd.f32 %v3588_v2, %v9897_v35 }
0x10db   : > { %v7232_v46 = vpop.f32.mrb[71].mxu1  ;;  %v7272_v59 = vpop.f32.mrb[79].mxu0 }
0x10dc   : > { %v3528_v28 = vadd.f32 %v7230_v45, %v10064_v47  ;;  %v7233_v9 = vadd.f32 %v7232_v46, %v7231_v6  ;;  %v7273_v56 = vadd.f32 %v7272_v59, %v7271_v27  ;;  %3629 = vadd.xlane.f32.xlu0 %v10073_v22  ;;  %v8144_v59 = vld [vmem:[#allocation8 + $0xc0] ss:$12 sps:$4 sm:$0xff]  }
0x10de   : > { %v3593_v23 = vadd.f32 %v7270_v51, %v3528_v28  ;;  %v3531_v29 = vadd.f32 %v7233_v9, %v10064_v47  ;;  %v8146_v28 = vld [vmem:[#allocation8 + $0xc4] ss:$12 sps:$4 sm:$0xff]   ;;  %v8149_v9 = vld [vmem:[#allocation8 + $0xdc] ss:$12 sps:$4 sm:$0xff]  }
0x10df   : > { %3908 = vmatprep.subr.bf16.mxu1 %v8146_v28  ;;  %v8158_v28 = vld [vmem:[#allocation8 + $0x120] ss:$12 sps:$4 sm:$0xff]  }
0x10e0   : > { %v3596_v21 = vadd.f32 %v7273_v56, %v3531_v29  ;;  %v7234_v1 = vpop.f32.mrb[72].mxu1  ;;  %v7274_v53 = vpop.f32.mrb[80].mxu0  ;;  %v10079_v26 = vadd.f32 %v3593_v23, %v9901_v39  ;;  %3909 = vmatpush1.bf16.msra.mxu1 %v8144_v59  ;;  %v8147_v56 = vld [vmem:[#allocation8 + $0xd8] ss:$12 sps:$4 sm:$0xff]  }
0x10e1   : > { %v7235_v4 = vpop.f32.mrb[73].mxu1  ;;  %v7275_v35 = vpop.f32.mrb[81].mxu0  ;;  %3910 = vmatprep.subr.bf16.mxu1 %v8149_v9  ;;  %v8161_v59 = vld [vmem:[#allocation8 + $0xf8] ss:$12 sps:$4 sm:$0xff]  }
0x10e2   : > { %v7236_v11 = vadd.f32 %v7235_v4, %v7234_v1  ;;  %v7276_v52 = vadd.f32 %v7275_v35, %v7274_v53  ;;  %v7237_v15 = vpop.f32.mrb[74].mxu1  ;;  %v7277_v54 = vpop.f32.mrb[82].mxu0  ;;  %3631 = vadd.xlane.f32.xlu1 %v10079_v26  ;;  %v10083_v31 = vadd.f32 %v3596_v21, %v9906_v5 }
0x10e3   : > { %v7238_v0 = vpop.f32.mrb[75].mxu1  ;;  %v7278_v7 = vpop.f32.mrb[83].mxu0 }
0x10e4   : > { %v3536_v57 = vadd.f32 %v7236_v11, %v10064_v47  ;;  %v7239_v8 = vadd.f32 %v7238_v0, %v7237_v15  ;;  %v7279_v58 = vadd.f32 %v7278_v7, %v7277_v54  ;;  %3633 = vadd.xlane.f32.xlu0 %v10083_v31  ;;  %3911 = vmatpush1.bf16.msra.mxu1 %v8147_v56  ;;  %v8164_v56 = vld [vmem:[#allocation8 + $0x13c] ss:$12 sps:$4 sm:$0xff]  }
0x10e6   : > { %v3601_v39 = vadd.f32 %v7276_v52, %v3536_v57  ;;  %v3539_v32 = vadd.f32 %v7239_v8, %v10064_v47 }
0x10e8   : > { %v3604_v16 = vadd.f32 %v7279_v58, %v3539_v32  ;;  %v7240_v36 = vpop.f32.mrb[76].mxu1  ;;  %v7280_v63 = vpop.f32.mrb[84].mxu0  ;;  %v10089_v37 = vadd.f32 %v3601_v39, %v9910_v17 }
0x10e9   : > { %v7241_v3 = vpop.f32.mrb[77].mxu1  ;;  %v7281_v5 = vpop.f32.mrb[85].mxu0 }
0x10ea   : > { %v7242_v43 = vadd.f32 %v7241_v3, %v7240_v36  ;;  %v7282_v19 = vadd.f32 %v7281_v5, %v7280_v63  ;;  %v7283_v20 = vpop.f32.mrb[86].mxu0  ;;  %3635 = vadd.xlane.f32.xlu1 %v10089_v37  ;;  %v7243_v2 = vpop.f32.mrb[78].mxu1  ;;  %v10093_v38 = vadd.f32 %v3604_v16, %v9913_v25  ;;  %v8152_v63 = vld [vmem:[#allocation8 + $0xf4] ss:$12 sps:$4 sm:$0xff]   ;;  %v8150_v5 = vld [vmem:[#allocation8 + $0xf0] ss:$12 sps:$4 sm:$0xff]  }
0x10eb   : > { %v7244_v13 = vpop.f32.mrb[79].mxu1  ;;  %v7284_v33 = vpop.f32.mrb[87].mxu0  ;;  %v8153_v3 = vld [vmem:[#allocation8 + $0xc8] ss:$12 sps:$4 sm:$0xff]   ;;  %3912 = vmatprep.subr.bf16.mxu1 %v8152_v63 }
0x10ec   : > { %v3544_v48 = vadd.f32 %v7242_v43, %v10064_v47  ;;  %v7245_v45 = vadd.f32 %v7244_v13, %v7243_v2  ;;  %v7285_v51 = vadd.f32 %v7284_v33, %v7283_v20  ;;  %3637 = vadd.xlane.f32.xlu0 %v10093_v38  ;;  %7666 = vmatprep.subr.bf16.mxu0 %v8153_v3  ;;  %v8156_v2 = vld [vmem:[#allocation8 + $0x10c] ss:$12 sps:$4 sm:$0xff]  }
0x10ed   : > { %3913 = vmatpush1.bf16.msra.mxu1 %v8150_v5  ;;  %7667 = vmatpush3.bf16.msra.mxu0 %v8153_v3  ;;  %v8157_v13 = vld [vmem:[#allocation8 + $0xe0] ss:$12 sps:$4 sm:$0xff]  }
0x10ee   : > { %v3609_v17 = vadd.f32 %v7282_v19, %v3544_v48  ;;  %v3547_v6 = vadd.f32 %v7245_v45, %v10064_v47  ;;  %v8154_v48 = vld [vmem:[#allocation8 + $0x108] ss:$12 sps:$4 sm:$0xff]   ;;  %3914 = vmatprep.subr.bf16.mxu1 %v8156_v2  ;;  %7668 = vmatprep.subr.bf16.mxu0 %v8157_v13  ;;  %v6934_v2 = vld [vmem:[%s11022_s3 + $0x1] ss:$0 sm:$0xff] }
0x10f0   : > { %v3612_v27 = vadd.f32 %v7285_v51, %v3547_v6  ;;  %v10099_v46 = vadd.f32 %v3609_v17, %v9917_v42 }
0x10f1   : > { %3915 = vmatpush1.bf16.msra.mxu1 %v8154_v48  ;;  %7669 = vmatpush3.bf16.msra.mxu0 %v8157_v13 }
0x10f2   : > { %3639 = vadd.xlane.f32.xlu1 %v10099_v46  ;;  %v10103_v25 = vadd.f32 %v3612_v27, %v9921_v62  ;;  %v8160_v27 = vld [vmem:[#allocation8 + $0x124] ss:$12 sps:$4 sm:$0xff]   ;;  %7670 = vmatprep.subr.bf16.mxu0 %v8161_v59 }
0x10f3   : > { %3916 = vmatprep.subr.bf16.mxu1 %v8160_v27 }
0x10f4   : > { %11111 = vst [vmem:[#allocation29_spill] sm:$0xff] %v10103_v25  ;;  %3641 = vadd.xlane.f32.xlu0 %v10103_v25 }
0x10f5   : > { %3917 = vmatpush1.bf16.msra.mxu1 %v8158_v28  ;;  %7671 = vmatpush3.bf16.msra.mxu0 %v8161_v59 }
0x10f6   : > { %3918 = vmatprep.subr.bf16.mxu1 %v8164_v56  ;;  %v6935_v56 = vld [vmem:[%s11023_s4 + $0x1] ss:$0 sm:$0xff] }
0x1167   : > { %v3628_v47 = vpop.xlane.xlu1 %3627 }
0x1168   : > { %v3643_v23 = vmul.f32 0.0078125, %v3628_v47  ;;  %v8165_v47 = vld [vmem:[#allocation8 + $0x110] ss:$12 sps:$4 sm:$0xff]  }
0x1169   : > { %v3630_v29 = vpop.xlane.xlu0 %3629  ;;  %7672 = vmatprep.subr.bf16.mxu0 %v8165_v47 }
0x116a   : > { %v10107_v42 = vsub.f32 %v10069_v49, %v3643_v23  ;;  %v3644_v21 = vmul.f32 0.0078125, %v3630_v29  ;;  %v8162_v23 = vld [vmem:[#allocation8 + $0x138] ss:$12 sps:$4 sm:$0xff]   ;;  %7673 = vmatpush3.bf16.msra.mxu0 %v8165_v47  ;;  %v8168_v29 = vld [vmem:[#allocation8 + $0x154] ss:$12 sps:$4 sm:$0xff]  }
0x116b   : > { %3919 = vmatpush1.bf16.msra.mxu1 %v8162_v23 }
0x116c   : > { %v10110_v62 = vsub.f32 %v10073_v22, %v3644_v21  ;;  %v3659_v1 = vmul.f32 %v10107_v42, %v10107_v42  ;;  %v8169_v21 = vld [vmem:[#allocation8 + $0x128] ss:$12 sps:$4 sm:$0xff]   ;;  %3920 = vmatprep.subr.bf16.mxu1 %v8168_v29 }
0x116d   : > { %7674 = vmatprep.subr.bf16.mxu0 %v8169_v21 }
0x116e   : > { %3667 = vadd.xlane.f32.xlu1 %v3659_v1  ;;  %v3660_v53 = vmul.f32 %v10110_v62, %v10110_v62  ;;  %v8166_v1 = vld [vmem:[#allocation8 + $0x150] ss:$12 sps:$4 sm:$0xff]   ;;  %7675 = vmatpush3.bf16.msra.mxu0 %v8169_v21 }
0x116f   : > { %v3632_v4 = vpop.xlane.xlu1 %3631  ;;  %3921 = vmatpush1.bf16.msra.mxu1 %v8166_v1 }
0x1170   : > { %v3645_v35 = vmul.f32 0.0078125, %v3632_v4  ;;  %3669 = vadd.xlane.f32.xlu0 %v3660_v53  ;;  %v8172_v53 = vld [vmem:[#allocation8 + $0x16c] ss:$12 sps:$4 sm:$0xff]  }
0x1171   : > { %v3634_v11 = vpop.xlane.xlu0 %3633  ;;  %v8173_v4 = vld [vmem:[#allocation8 + $0x140] ss:$12 sps:$4 sm:$0xff]   ;;  %3922 = vmatprep.subr.bf16.mxu1 %v8172_v53 }
0x1172   : > { %v10117_v52 = vsub.f32 %v10079_v26, %v3645_v35  ;;  %v3646_v15 = vmul.f32 0.0078125, %v3634_v11  ;;  %v8170_v35 = vld [vmem:[#allocation8 + $0x168] ss:$12 sps:$4 sm:$0xff]   ;;  %7676 = vmatprep.subr.bf16.mxu0 %v8173_v4  ;;  %v8174_v11 = vld [vmem:[#allocation8 + $0x158] ss:$12 sps:$4 sm:$0xff]  }
0x1173   : > { %3923 = vmatpush1.bf16.msra.mxu1 %v8170_v35  ;;  %7677 = vmatpush3.bf16.msra.mxu0 %v8173_v4 }
0x1174   : > { %v10120_v54 = vsub.f32 %v10083_v31, %v3646_v15  ;;  %v3661_v0 = vmul.f32 %v10117_v52, %v10117_v52  ;;  %7678 = vmatprep.subr.bf16.mxu0 %v8174_v11  ;;  %v8175_v15 = vld [vmem:[#allocation8 + $0x170] ss:$12 sps:$4 sm:$0xff]  }
0x1176   : > { %3671 = vadd.xlane.f32.xlu1 %v3661_v0  ;;  %v3662_v7 = vmul.f32 %v10120_v54, %v10120_v54 }
0x1177   : > { %v3636_v57 = vpop.xlane.xlu1 %3635  ;;  %7679 = vmatpush3.bf16.msra.mxu0 %v8174_v11 }
0x1178   : > { %v3647_v8 = vmul.f32 0.0078125, %v3636_v57  ;;  %3673 = vadd.xlane.f32.xlu0 %v3662_v7  ;;  %7680 = vmatprep.subr.bf16.mxu0 %v8175_v15 }
0x1179   : > { %v3638_v58 = vpop.xlane.xlu0 %3637 }
0x117a   : > { %v10127_v39 = vsub.f32 %v10089_v37, %v3647_v8  ;;  %v3648_v32 = vmul.f32 0.0078125, %v3638_v58 }
0x117b   : > { %7681 = vmatpush3.bf16.msra.mxu0 %v8175_v15 }
0x117c   : > { %v10130_v16 = vsub.f32 %v10093_v38, %v3648_v32  ;;  %v3663_v36 = vmul.f32 %v10127_v39, %v10127_v39 }
0x117e   : > { %3675 = vadd.xlane.f32.xlu1 %v3663_v36  ;;  %v3664_v43 = vmul.f32 %v10130_v16, %v10130_v16 }
0x117f   : > { %v3640_v19 = vpop.xlane.xlu1 %3639 }
0x1180   : > { %v3649_v20 = vmul.f32 0.0078125, %v3640_v19  ;;  %3677 = vadd.xlane.f32.xlu0 %v3664_v43 }
0x1181   : > { %v3642_v33 = vpop.xlane.xlu0 %3641 }
0x1182   : > { %v10137_v45 = vsub.f32 %v10099_v46, %v3649_v20  ;;  %v3650_v51 = vmul.f32 0.0078125, %v3642_v33 }
0x1184   : > { %v10140_v17 = vsub.f32 %v10103_v25, %v3650_v51  ;;  %v3665_v6 = vmul.f32 %v10137_v45, %v10137_v45 }
0x1186   : > { %3679 = vadd.xlane.f32.xlu1 %v3665_v6  ;;  %v3666_v9 = vmul.f32 %v10140_v17, %v10140_v17 }
0x1188   : > { %3681 = vadd.xlane.f32.xlu0 %v3666_v9 }
0x11fb   : > { %v3668_v0 = vpop.xlane.xlu1 %3667 }
0x11fc   : > { %v3683_v7 = vmul.f32 0.0078125, %v3668_v0 }
0x11fd   : > { %v3670_v57 = vpop.xlane.xlu0 %3669 }
0x11fe   : > { %v3691_v8 = vadd.f32 1e-05, %v3683_v7  ;;  %v3684_v58 = vmul.f32 0.0078125, %v3670_v57 }
0x1200   : > { %8432 = vrsqrt.f32 %v3691_v8  ;;  %v3692_v32 = vadd.f32 1e-05, %v3684_v58 }
0x1202   : > { %8434 = vrsqrt.f32 %v3692_v32 }
0x1203   : > { %v3672_v36 = vpop.xlane.xlu1 %3671 }
0x1204   : > { %v3685_v63 = vmul.f32 0.0078125, %v3672_v36 }
0x1205   : > { %v3674_v3 = vpop.xlane.xlu0 %3673 }
0x1206   : > { %v3693_v5 = vadd.f32 1e-05, %v3685_v63  ;;  %v3686_v43 = vmul.f32 0.0078125, %v3674_v3 }
0x1208   : > { %8436 = vrsqrt.f32 %v3693_v5  ;;  %v3694_v19 = vadd.f32 1e-05, %v3686_v43 }
0x120a   : > { %v8433_v20 = vpop.eup %8432  ;;  %8438 = vrsqrt.f32 %v3694_v19 }
0x120b   : > { %v3707_v13 = vmul.f32 %v8433_v20, %v10107_v42  ;;  %v3676_v33 = vpop.xlane.xlu1 %3675 }
0x120c   : > { %v8435_v48 = vpop.eup %8434  ;;  %v3687_v51 = vmul.f32 0.0078125, %v3676_v33 }
0x120d   : > { %v3721_v6 = vmul.f32 %v6934_v2, %v3707_v13  ;;  %v3708_v27 = vmul.f32 %v8435_v48, %v10110_v62  ;;  %v3678_v59 = vpop.xlane.xlu0 %3677 }
0x120e   : > { %v3695_v28 = vadd.f32 1e-05, %v3687_v51  ;;  %v3688_v9 = vmul.f32 0.0078125, %v3678_v59 }
0x120f   : > { %v3722_v47 = vmul.f32 %v6934_v2, %v3708_v27  ;;  %v3735_v29 = vadd.f32 %v6935_v56, %v3721_v6 }
0x1210   : > { %8440 = vrsqrt.f32 %v3695_v28  ;;  %v3696_v23 = vadd.f32 1e-05, %v3688_v9 }
0x1211   : > { %v3736_v21 = vadd.f32 %v6935_v56, %v3722_v47 }
0x1212   : > { %v8437_v1 = vpop.eup %8436  ;;  %8442 = vrsqrt.f32 %v3696_v23 }
0x1213   : > { %v3680_v42 = vpop.xlane.xlu1 %3679  ;;  %v3743_v53 = vpack.c.bf16 %v3736_v21, %v3735_v29  ;;  %v3709_v4 = vmul.f32 %v8437_v1, %v10117_v52 }
0x1214   : > { %v8439_v35 = vpop.eup %8438  ;;  %v3689_v62 = vmul.f32 0.0078125, %v3680_v42 }
0x1215   : > { %v3682_v11 = vpop.xlane.xlu0 %3681  ;;  %3941 = vmatmul.mubr.bf16.vlgmr.msra.gmra.mrb[80].mxu1 %v3743_v53  ;;  %7682 = vmatprep.mubr.bf16.mxu0 %v3743_v53  ;;  %v3710_v15 = vmul.f32 %v8439_v35, %v10120_v54  ;;  %v3723_v0 = vmul.f32 %v6934_v2, %v3709_v4 }
0x1216   : > { %v3697_v7 = vadd.f32 1e-05, %v3689_v62  ;;  %v3690_v57 = vmul.f32 0.0078125, %v3682_v11  ;;  %3950 = vmatprep.mubr.bf16.mxu1 %v11104_v40 }
0x1217   : > { %v3724_v8 = vmul.f32 %v6934_v2, %v3710_v15  ;;  %v3737_v32 = vadd.f32 %v6935_v56, %v3723_v0 }
0x1218   : > { %8444 = vrsqrt.f32 %v3697_v7  ;;  %v3698_v58 = vadd.f32 1e-05, %v3690_v57 }
0x1219   : > { %v3738_v36 = vadd.f32 %v6935_v56, %v3724_v8 }
0x121a   : > { %v8441_v63 = vpop.eup %8440  ;;  %8446 = vrsqrt.f32 %v3698_v58 }
0x121b   : > { %v3744_v52 = vpack.c.bf16 %v3738_v36, %v3737_v32  ;;  %v3711_v3 = vmul.f32 %v8441_v63, %v10127_v39 }
0x121c   : > { %v8443_v5 = vpop.eup %8442 }
0x121d   : > { %3951 = vmatmul.mubr.bf16.gmra.mrb[84].mxu1 %v3744_v52  ;;  %7683 = vmatmul.mubr.bf16.vlgmr.msra.gmra.mrb[88].mxu0 %v3744_v52  ;;  %v3712_v54 = vmul.f32 %v8443_v5, %v10130_v16  ;;  %v3725_v43 = vmul.f32 %v6934_v2, %v3711_v3 }
0x121e   : > { %3960 = vmatprep.mubr.bf16.mxu1 %v11104_v40 }
0x121f   : > { %v3726_v19 = vmul.f32 %v6934_v2, %v3712_v54  ;;  %v3739_v20 = vadd.f32 %v6935_v56, %v3725_v43 }
0x1221   : > { %v3740_v13 = vadd.f32 %v6935_v56, %v3726_v19 }
0x1222   : > { %v8445_v33 = vpop.eup %8444 }
0x1223   : > { %v3745_v48 = vpack.c.bf16 %v3740_v13, %v3739_v20  ;;  %v3713_v51 = vmul.f32 %v8445_v33, %v10137_v45 }
0x1224   : > { %v8447_v6 = vpop.eup %8446 }
0x1225   : > { %3961 = vmatmul.mubr.bf16.gmra.mrb[88].mxu1 %v3745_v48  ;;  %7686 = vmatprep.mubr.bf16.mxu0 %v3745_v48  ;;  %v3714_v39 = vmul.f32 %v8447_v6, %v10140_v17  ;;  %v3727_v27 = vmul.f32 %v6934_v2, %v3713_v51 }
0x1226   : > { %3970 = vmatprep.mubr.bf16.mxu1 %v11104_v40 }
0x1227   : > { %v3728_v59 = vmul.f32 %v6934_v2, %v3714_v39  ;;  %v3741_v16 = vadd.f32 %v6935_v56, %v3727_v27 }
0x1229   : > { %v3742_v28 = vadd.f32 %v6935_v56, %v3728_v59 }
0x122b   : > { %v3746_v9 = vpack.c.bf16 %v3742_v28, %v3741_v16 }
0x122d   : > { %3971 = vmatmul.mubr.bf16.gmra.mrb[92].mxu1 %v3746_v9  ;;  %7687 = vmatmul.mubr.bf16.gmra.mrb[92].mxu0 %v3746_v9 }
0x12e8   : > { %v3942_v47 = vpop.f32.mrb[80].mxu1 }
0x12e9   : > { %v3944_v23 = vpop.f32.mrb[81].mxu1 }
0x12ea   : > { %v3946_v29 = vpop.f32.mrb[82].mxu1 }
0x12eb   : > { %v10163_v21 = vpack.c.bf16 %v3946_v29, %v3942_v47  ;;  %v3948_v45 = vpop.f32.mrb[83].mxu1 }
0x12ec   : > { %v10165_v1 = vpack.c.bf16 %v3948_v45, %v3944_v23 }
0x12ed   : > { %7698 = vmatprep.mubr.msk.bf16.mxu1 %vm1331_vm12, %v10163_v21 }
0x12ee   : > { %4340 = vrot.lane.b32.xlu1 %v10165_v1, %s8872_s21  ;;  %7882 = vmatprep.subr.msk.bf16.mxu1 %vm1331_vm12, %v10165_v1  ;;  %v4071_v17 = vsel %vm1331_vm12, %v10165_v1, 0 }
0x12ef   : > { %7691 = vmatpush3.bf16.xpose.msra.mxu1 %v4071_v17 }
0x12f0   : > { %v3952_v2 = vpop.f32.mrb[84].mxu1  ;;  %v7684_v56 = vpop.f32.mrb[88].mxu0 }
0x12f1   : > { %v3954_v42 = vpop.f32.mrb[85].mxu1  ;;  %v4015_v53 = vpop.f32.mrb[89].mxu0 }
0x12f2   : > { %v3956_v4 = vpop.f32.mrb[86].mxu1  ;;  %v7685_v35 = vpop.f32.mrb[90].mxu0 }
0x12f3   : > { %v10175_v62 = vpack.c.bf16 %v3956_v4, %v3952_v2  ;;  %v10177_v11 = vpack.c.bf16 %v7685_v35, %v7684_v56  ;;  %v3958_v15 = vpop.f32.mrb[87].mxu1  ;;  %v4018_v0 = vpop.f32.mrb[91].mxu0 }
0x12f4   : > { %v10179_v7 = vpack.c.bf16 %v3958_v15, %v3954_v42  ;;  %v10181_v57 = vpack.c.bf16 %v4018_v0, %v4015_v53 }
0x12f6   : > { %7706 = vmatprep.subr.bf16.mxu0 %v10181_v57  ;;  %4342 = vrot.lane.b32.xlu0 %v10179_v7, %s8872_s21  ;;  %v4074_v8 = vsel %vm1331_vm12, %v10179_v7, 0 }
0x12f7   : > { %7883 = vmatprep.subr.msk.bf16.mxu1 %vm1331_vm12, %v10179_v7  ;;  %7707 = vmatpush3.bf16.msra.mxu0 %v10181_v57 }
0x12f8   : > { %7693 = vmatpush3.bf16.xpose.msra.mxu1 %v4074_v8  ;;  %v3962_v58 = vpop.f32.mrb[88].mxu1  ;;  %7708 = vmatprep.subr.bf16.mxu0 %v10177_v11 }
0x12f9   : > { %v3964_v32 = vpop.f32.mrb[89].mxu1 }
0x12fa   : > { %4328 = vrot.lane.b32.xlu0 %v10163_v21, %s8872_s21  ;;  %v3966_v36 = vpop.f32.mrb[90].mxu1 }
0x12fb   : > { %v10194_v63 = vpack.c.bf16 %v3966_v36, %v3962_v58  ;;  %v3968_v52 = vpop.f32.mrb[91].mxu1  ;;  %7709 = vmatpush3.bf16.msra.mxu0 %v10177_v11 }
0x12fc   : > { %v10197_v3 = vpack.c.bf16 %v3968_v52, %v3964_v32 }
0x12fe   : > { %4332 = vrot.lane.b32.xlu0 %v10194_v63, %s8872_s21  ;;  %4344 = vrot.lane.b32.xlu1 %v10197_v3, %s8872_s21  ;;  %v4077_v5 = vsel %vm1331_vm12, %v10197_v3, 0 }
0x12ff   : > { %7884 = vmatprep.subr.msk.bf16.mxu1 %vm1331_vm12, %v10197_v3 }
0x1300   : > { %7695 = vmatpush3.bf16.xpose.msra.mxu1 %v4077_v5  ;;  %v3972_v54 = vpop.f32.mrb[92].mxu1  ;;  %v7688_v43 = vpop.f32.mrb[92].mxu0 }
0x1301   : > { %v3974_v19 = vpop.f32.mrb[93].mxu1  ;;  %v4031_v20 = vpop.f32.mrb[93].mxu0 }
0x1302   : > { %v3976_v13 = vpop.f32.mrb[94].mxu1  ;;  %v7689_v33 = vpop.f32.mrb[94].mxu0 }
0x1303   : > { %v10207_v48 = vpack.c.bf16 %v3976_v13, %v3972_v54  ;;  %v10209_v51 = vpack.c.bf16 %v7689_v33, %v7688_v43  ;;  %v3978_v6 = vpop.f32.mrb[95].mxu1  ;;  %v4034_v39 = vpop.f32.mrb[95].mxu0 }
0x1304   : > { %v10211_v27 = vpack.c.bf16 %v3978_v6, %v3974_v19  ;;  %v10213_v59 = vpack.c.bf16 %v4034_v39, %v4031_v20 }
0x1306   : > { %7710 = vmatprep.subr.bf16.mxu0 %v10213_v59  ;;  %4346 = vrot.lane.b32.xlu1 %v10211_v27, %s8872_s21  ;;  %v4080_v16 = vsel %vm1331_vm12, %v10211_v27, 0 }
0x1307   : > { %7885 = vmatprep.subr.msk.bf16.mxu1 %vm1331_vm12, %v10211_v27  ;;  %7711 = vmatpush3.bf16.msra.mxu0 %v10213_v59 }
0x1308   : > { %7697 = vmatpush3.bf16.xpose.msra.mxu1 %v4080_v16  ;;  %7712 = vmatprep.subr.bf16.mxu0 %v10209_v51 }
0x130a   : > { %4330 = vrot.lane.b32.xlu1 %v10175_v62, %s8872_s21 }
0x130b   : > { %7713 = vmatpush3.bf16.msra.mxu0 %v10209_v51 }
0x130e   : > { %4334 = vrot.lane.b32.xlu1 %v10207_v48, %s8872_s21 }
0x130f   : > { %7699 = vmatmul.mubr.msk.bf16.vlgmr.msra.gmra.mrb[96].mxu1 %vm1331_vm12, %v10175_v62 }
0x1310   : > { %7702 = vmatprep.mubr.msk.bf16.mxu1 %vm1331_vm12, %v10194_v63 }
0x1317   : > { %7703 = vmatmul.mubr.msk.bf16.gmra.mrb[100].mxu1 %vm1331_vm12, %v10207_v48 }
0x1360   : > { %v4341_v28 = vpop.permute.xlu1 %4340 }
0x1361   : > { %7886 = vmatprep.subr.msk.bf16.mxu1 %vm1331_vm12, %v4341_v28  ;;  %v4361_v9 = vsel %vm1331_vm12, %v4341_v28, 0 }
0x1362   : > { %7723 = vmatpush3.bf16.xpose.msra.mxu1 %v4361_v9 }
0x1368   : > { %v4343_v47 = vpop.permute.xlu0 %4342 }
0x1369   : > { %7887 = vmatprep.subr.msk.bf16.mxu1 %vm1331_vm12, %v4343_v47  ;;  %v4364_v23 = vsel %vm1331_vm12, %v4343_v47, 0 }
0x136a   : > { %7725 = vmatpush3.bf16.xpose.msra.mxu1 %v4364_v23 }
0x136c   : > { %v4329_v29 = vpop.permute.xlu0 %4328 }
0x136d   : > { %7730 = vmatprep.mubr.msk.bf16.mxu1 %vm1331_vm12, %v4329_v29 }
0x1370   : > { %v4345_v45 = vpop.permute.xlu1 %4344  ;;  %v4333_v53 = vpop.permute.xlu0 %4332 }
0x1371   : > { %7888 = vmatprep.subr.msk.bf16.mxu1 %vm1331_vm12, %v4345_v45  ;;  %v4367_v17 = vsel %vm1331_vm12, %v4345_v45, 0 }
0x1372   : > { %7727 = vmatpush3.bf16.xpose.msra.mxu1 %v4367_v17 }
0x1378   : > { %v4347_v2 = vpop.permute.xlu1 %4346 }
0x1379   : > { %7889 = vmatprep.subr.msk.bf16.mxu1 %vm1331_vm12, %v4347_v2  ;;  %v4370_v56 = vsel %vm1331_vm12, %v4347_v2, 0 }
0x137a   : > { %7729 = vmatpush3.bf16.xpose.msra.mxu1 %v4370_v56 }
0x137c   : > { %v4331_v42 = vpop.permute.xlu1 %4330 }
0x1380   : > { %v4335_v4 = vpop.permute.xlu1 %4334 }
0x1381   : > { %7731 = vmatmul.mubr.msk.bf16.vlgmr.msra.gmra.mrb[104].mxu1 %vm1331_vm12, %v4331_v42 }
0x1382   : > { %7734 = vmatprep.mubr.msk.bf16.mxu1 %vm1331_vm12, %v4333_v53 }
0x1389   : > { %7735 = vmatmul.mubr.msk.bf16.gmra.mrb[108].mxu1 %vm1331_vm12, %v4335_v4 }
0x13e2   : > { %v7700_v35 = vpop.f32.mrb[96].mxu1 }
0x13e3   : > { %v10248_v15 = vadd.f32 %v7700_v35, %v9382_v12  ;;  %v4116_v0 = vpop.f32.mrb[97].mxu1 }
0x13e4   : > { %v7701_v8 = vpop.f32.mrb[98].mxu1  ;;  %v10251_v58 = vadd.f32 %v4116_v0, %v9386_v14 }
0x13e5   : > { %v4119_v32 = vpop.f32.mrb[99].mxu1  ;;  %v4153_v36 = vsel %vm1421_vm0, %v10248_v15, -inf  ;;  %v4128_v54 = vadd.f32 %v7701_v8, %v9402_v34 }
0x13e6   : > { %v10256_v52 = vadd.f32 %v4119_v32, %v9392_v18  ;;  %4154 = vmax.xlane.f32.xlu0 %v4153_v36  ;;  %v4147_v43 = vsel %vm1421_vm0, %v10251_v58, -inf }
0x13e7   : > { %v4156_v28 = vsel %vm1421_vm0, %v4128_v54, -inf }
0x13e8   : > { %v4150_v5 = vsel %vm1421_vm0, %v10256_v52, -inf }
0x13e9   : > { %4151 = vmax.xlane.f32.xlu1 %v4150_v5 }
0x13ea   : > { %v7704_v19 = vpop.f32.mrb[100].mxu1  ;;  %4148 = vmax.xlane.f32.xlu0 %v4147_v43 }
0x13eb   : > { %v10264_v20 = vadd.f32 %v7704_v19, %v9411_v61  ;;  %v4132_v13 = vpop.f32.mrb[101].mxu1 }
0x13ec   : > { %v7705_v33 = vpop.f32.mrb[102].mxu1  ;;  %v10267_v6 = vadd.f32 %v4132_v13, %v9417_v50 }
0x13ed   : > { %v4135_v39 = vpop.f32.mrb[103].mxu1  ;;  %v4165_v16 = vsel %vm1421_vm0, %v10264_v20, -inf  ;;  %v4144_v23 = vadd.f32 %v7705_v33, %v9431_v10 }
0x13ee   : > { %v4136_v9 = vadd.f32 %v4135_v39, %v9423_v55  ;;  %4166 = vmax.xlane.f32.xlu1 %v4165_v16  ;;  %4157 = vmax.xlane.f32.xlu0 %v4156_v28  ;;  %v4159_v29 = vsel %vm1421_vm0, %v10267_v6, -inf }
0x13ef   : > { %v4168_v45 = vsel %vm1421_vm0, %v4144_v23, -inf }
0x13f0   : > { %v4162_v47 = vsel %vm1421_vm0, %v4136_v9, -inf }
0x13f2   : > { %4160 = vmax.xlane.f32.xlu1 %v4159_v29  ;;  %4163 = vmax.xlane.f32.xlu0 %v4162_v47 }
0x13f6   : > { %4169 = vmax.xlane.f32.xlu0 %v4168_v45 }
0x1454   : > { %v7732_v17 = vpop.f32.mrb[104].mxu1 }
0x1455   : > { %v10279_v2 = vadd.f32 %v7732_v17, %v9382_v12  ;;  %v4406_v56 = vpop.f32.mrb[105].mxu1 }
0x1456   : > { %v7733_v42 = vpop.f32.mrb[106].mxu1  ;;  %v10282_v53 = vadd.f32 %v4406_v56, %v9386_v14 }
0x1457   : > { %v4409_v4 = vpop.f32.mrb[107].mxu1  ;;  %v4443_v35 = vsel %vm1421_vm0, %v10279_v2, -inf  ;;  %v10290_v8 = vadd.f32 %v7733_v42, %v9402_v34 }
0x1458   : > { %v10287_v0 = vadd.f32 %v4409_v4, %v9392_v18  ;;  %4444 = vmax.xlane.f32.xlu1 %v4443_v35  ;;  %v4437_v36 = vsel %vm1421_vm0, %v10282_v53, -inf }
0x1459   : > { %v4446_v13 = vsel %vm1421_vm0, %v10290_v8, -inf }
0x145a   : > { %v4440_v32 = vsel %vm1421_vm0, %v10287_v0, -inf }
0x145b   : > { %4441 = vmax.xlane.f32.xlu0 %v4440_v32 }
0x145c   : > { %4438 = vmax.xlane.f32.xlu1 %v4437_v36  ;;  %v7736_v5 = vpop.f32.mrb[108].mxu1 }
0x145d   : > { %v4422_v43 = vpop.f32.mrb[109].mxu1 }
0x145e   : > { %v7737_v19 = vpop.f32.mrb[110].mxu1 }
0x145f   : > { %v10299_v33 = vadd.f32 %v7737_v19, %v9431_v10  ;;  %4447 = vmax.xlane.f32.xlu0 %v4446_v13  ;;  %v4425_v39 = vpop.f32.mrb[111].mxu1  ;;  %v10314_v19 = vadd.f32 %v7736_v5, %v9411_v61 }
0x1460   : > { %v10304_v28 = vadd.f32 %v4425_v39, %v9423_v55 }
0x1461   : > { %v4458_v16 = vsel %vm1421_vm0, %v10299_v33, -inf }
0x1462   : > { %v4452_v47 = vsel %vm1421_vm0, %v10304_v28, -inf }
0x1463   : > { %4459 = vmax.xlane.f32.xlu0 %v4458_v16  ;;  %v10317_v16 = vadd.f32 %v4422_v43, %v9417_v50 }
0x1467   : > { %4453 = vmax.xlane.f32.xlu0 %v4452_v47  ;;  %v4455_v47 = vsel %vm1421_vm0, %v10314_v19, -inf }
0x146d   : > { %4533 = vrot.lane.b32.xlu1 %v10181_v57, %s8872_s21 }
0x1473   : > { %v4155_v29 = vpop.xlane.xlu0 %4154 }
0x1476   : > { %v4152_v4 = vpop.xlane.xlu1 %4151 }
0x1477   : > { %v4149_v45 = vpop.xlane.xlu0 %4148  ;;  %v4172_v35 = vsub.f32 %v10256_v52, %v4152_v4  ;;  %v4449_v52 = vsel %vm1421_vm0, %v10317_v16, -inf }
0x1479   : > { %v4181_v13 = vmul.f32 1.442695, %v4172_v35 }
0x147b   : > { %v4158_v17 = vpop.xlane.xlu0 %4157 }
0x147c   : > { %v4174_v42 = vsub.f32 %v4128_v54, %v4158_v17 }
0x147d   : > { %4535 = vrot.lane.b32.xlu0 %v10177_v11, %s8872_s21 }
0x147e   : > { %v4185_v32 = vmul.f32 1.442695, %v4174_v42 }
0x147f   : > { %v4164_v56 = vpop.xlane.xlu0 %4163 }
0x1480   : > { %8448 = vpow2.f32 %v4185_v32  ;;  %v4176_v54 = vsub.f32 %v4136_v9, %v4164_v56 }
0x1481   : > { %8450 = vpow2.f32 %v4181_v13  ;;  %v4167_v13 = vpop.xlane.xlu1 %4166 }
0x1482   : > { %v4189_v42 = vmul.f32 1.442695, %v4176_v54 }
0x1483   : > { %v4170_v36 = vpop.xlane.xlu0 %4169 }
0x1484   : > { %v4178_v39 = vsub.f32 %v4144_v23, %v4170_v36  ;;  %v4173_v36 = vsub.f32 %v10248_v15, %v4155_v29 }
0x1486   : > { %v4193_v17 = vmul.f32 1.442695, %v4178_v39  ;;  %v4183_v39 = vmul.f32 1.442695, %v4173_v36 }
0x1488   : > { %8452 = vpow2.f32 %v4193_v17  ;;  %v4177_v17 = vsub.f32 %v10264_v20, %v4167_v13 }
0x1489   : > { %8454 = vpow2.f32 %v4189_v42 }
0x148a   : > { %v10323_v5 = vpop.eup %8448  ;;  %8456 = vpow2.f32 %v4183_v39  ;;  %v4191_v42 = vmul.f32 1.442695, %v4177_v17 }
0x148b   : > { %v4204_v23 = vsel %vm1421_vm0, %v10323_v5, 0.0  ;;  %v10327_v43 = vpop.eup %8450 }
0x148c   : > { %v4198_v4 = vsel %vm1421_vm0, %v10327_v43, 0.0 }
0x1491   : > { %4456 = vmax.xlane.f32.xlu1 %v4455_v47  ;;  %v4171_v47 = vsub.f32 %v10251_v58, %v4149_v45 }
0x1492   : > { %v10331_v9 = vpop.eup %8452 }
0x1493   : > { %v4216_v56 = vsel %vm1421_vm0, %v10331_v9, 0.0  ;;  %v10335_v35 = vpop.eup %8454  ;;  %v4179_v54 = vmul.f32 1.442695, %v4171_v47 }
0x1494   : > { %v4210_v32 = vsel %vm1421_vm0, %v10335_v35, 0.0 }
0x1495   : > { %4450 = vmax.xlane.f32.xlu1 %v4449_v52  ;;  %v4161_v52 = vpop.xlane.xlu1 %4160  ;;  %8458 = vpow2.f32 %v4179_v54 }
0x1496   : > { %8460 = vpow2.f32 %v4191_v42 }
0x149c   : > { %4205 = vadd.xlane.f32.xlu0 %v4204_v23  ;;  %v4175_v23 = vsub.f32 %v10267_v6, %v4161_v52 }
0x14a0   : > { %4199 = vadd.xlane.f32.xlu0 %v4198_v4  ;;  %v4187_v4 = vmul.f32 1.442695, %v4175_v23 }
0x14a2   : > { %8462 = vpow2.f32 %v4187_v4 }
0x14a4   : > { %4217 = vadd.xlane.f32.xlu0 %v4216_v56  ;;  %v10349_v56 = vpop.eup %8456 }
0x14a5   : > { %v4201_v15 = vsel %vm1421_vm0, %v10349_v56, 0.0  ;;  %v10353_v29 = vpop.eup %8458 }
0x14a6   : > { %4537 = vrot.lane.b32.xlu1 %v10213_v59, %s8872_s21  ;;  %v4195_v58 = vsel %vm1421_vm0, %v10353_v29, 0.0  ;;  %v10357_v20 = vpop.eup %8460 }
0x14a7   : > { %v4213_v6 = vsel %vm1421_vm0, %v10357_v20, 0.0 }
0x14a8   : > { %4211 = vadd.xlane.f32.xlu0 %v4210_v32 }
0x14aa   : > { %4539 = vrot.lane.b32.xlu1 %v10209_v51, %s8872_s21 }
0x14ac   : > { %v10361_v45 = vpop.eup %8462 }
0x14ad   : > { %v4207_v32 = vsel %vm1421_vm0, %v10361_v45, 0.0 }
0x14ae   : > { %4654 = vrot.lane.b32.xlu1 %v10165_v1, %s8874_s30 }
0x14d2   : > { %4202 = vadd.xlane.f32.xlu1 %v4201_v15 }
0x14d6   : > { %4196 = vadd.xlane.f32.xlu1 %v4195_v58 }
0x14da   : > { %4214 = vadd.xlane.f32.xlu1 %v4213_v6 }
0x14de   : > { %4208 = vadd.xlane.f32.xlu1 %v4207_v32 }
0x14e5   : > { %v4445_v36 = vpop.xlane.xlu1 %4444 }
0x14e6   : > { %v4463_v13 = vsub.f32 %v10279_v2, %v4445_v36 }
0x14e8   : > { %v4473_v39 = vmul.f32 1.442695, %v4463_v13  ;;  %v4442_v47 = vpop.xlane.xlu0 %4441 }
0x14e9   : > { %v4439_v54 = vpop.xlane.xlu1 %4438  ;;  %v4462_v52 = vsub.f32 %v10287_v0, %v4442_v47 }
0x14ea   : > { %8464 = vpow2.f32 %v4473_v39  ;;  %v4461_v17 = vsub.f32 %v10282_v53, %v4439_v54 }
0x14eb   : > { %v4471_v58 = vmul.f32 1.442695, %v4462_v52 }
0x14ec   : > { %v4469_v42 = vmul.f32 1.442695, %v4461_v17  ;;  %v4448_v23 = vpop.xlane.xlu0 %4447 }
0x14ed   : > { %v4464_v4 = vsub.f32 %v10290_v8, %v4448_v23  ;;  %v10369_v15 = vpop.permute.xlu1 %4533 }
0x14ee   : > { %8466 = vpow2.f32 %v4469_v42  ;;  %7738 = vmatprep.subr.bf16.mxu0 %v10369_v15 }
0x14ef   : > { %v4475_v6 = vmul.f32 1.442695, %v4464_v4 }
0x14f0   : > { %v4460_v47 = vpop.xlane.xlu0 %4459 }
0x14f1   : > { %8468 = vpow2.f32 %v4475_v6  ;;  %v4468_v4 = vsub.f32 %v10299_v33, %v4460_v47 }
0x14f2   : > { %8470 = vpow2.f32 %v4471_v58 }
0x14f4   : > { %v10372_v2 = vpop.eup %8464  ;;  %v4454_v54 = vpop.xlane.xlu0 %4453 }
0x14f5   : > { %v4491_v53 = vsel %vm1421_vm0, %v10372_v2, 0.0  ;;  %v4466_v17 = vsub.f32 %v10304_v28, %v4454_v54 }
0x14f6   : > { %4492 = vadd.xlane.f32.xlu1 %v4491_v53 }
0x14f7   : > { %v4479_v52 = vmul.f32 1.442695, %v4466_v17 }
0x14f8   : > { %v10376_v0 = vpop.eup %8466 }
0x14f9   : > { %v4485_v8 = vsel %vm1421_vm0, %v10376_v0, 0.0  ;;  %8472 = vpow2.f32 %v4479_v52  ;;  %v4536_v52 = vpop.permute.xlu0 %4535 }
0x14fa   : > { %4486 = vadd.xlane.f32.xlu1 %v4485_v8  ;;  %v4483_v8 = vmul.f32 1.442695, %v4468_v4 }
0x14fb   : > { %v10380_v32 = vpop.eup %8468 }
0x14fc   : > { %v4494_v36 = vsel %vm1421_vm0, %v10380_v32, 0.0  ;;  %v10384_v13 = vpop.eup %8470 }
0x14fd   : > { %4495 = vadd.xlane.f32.xlu0 %v4494_v36  ;;  %v4488_v39 = vsel %vm1421_vm0, %v10384_v13, 0.0 }
0x1501   : > { %4489 = vadd.xlane.f32.xlu0 %v4488_v39 }
0x1503   : > { %v10394_v39 = vpop.eup %8472 }
0x1504   : > { %v4500_v28 = vsel %vm1421_vm0, %v10394_v39, 0.0 }
0x150b   : > { %4658 = vrot.lane.b32.xlu1 %v10197_v3, %s8874_s30 }
0x151e   : > { %v4457_v42 = vpop.xlane.xlu1 %4456 }
0x151f   : > { %v4467_v23 = vsub.f32 %v10314_v19, %v4457_v42 }
0x1521   : > { %v4481_v58 = vmul.f32 1.442695, %v4467_v23 }
0x1522   : > { %v4451_v6 = vpop.xlane.xlu1 %4450 }
0x1523   : > { %8474 = vpow2.f32 %v4481_v58  ;;  %v4465_v53 = vsub.f32 %v10317_v16, %v4451_v6 }
0x1525   : > { %v4477_v36 = vmul.f32 1.442695, %v4465_v53 }
0x1526   : > { %v4538_v17 = vpop.permute.xlu1 %4537 }
0x1527   : > { %8476 = vpow2.f32 %v4477_v36 }
0x1528   : > { %8478 = vpow2.f32 %v4483_v8 }
0x1529   : > { %v4206_v42 = vpop.xlane.xlu0 %4205 }
0x152a   : > { %v4540_v23 = vpop.permute.xlu1 %4539 }
0x152d   : > { %v10396_v60 = vpop.eup %8474  ;;  %v4200_v4 = vpop.xlane.xlu0 %4199 }
0x152e   : > { %v4503_v33 = vsel %vm1421_vm0, %v10396_v60, 0.0  ;;  %v10422_v58 = vpop.permute.xlu1 %4654 }
0x152f   : > { %4501 = vadd.xlane.f32.xlu1 %v4500_v28  ;;  %4504 = vadd.xlane.f32.xlu0 %v4503_v33 }
0x1531   : > { %v10402_v19 = vpop.eup %8476  ;;  %v4218_v53 = vpop.xlane.xlu0 %4217 }
0x1532   : > { %v4497_v16 = vsel %vm1421_vm0, %v10402_v19, 0.0  ;;  %v10406_v47 = vpop.eup %8478 }
0x1533   : > { %4498 = vadd.xlane.f32.xlu0 %v4497_v16  ;;  %v4506_v54 = vsel %vm1421_vm0, %v10406_v47, 0.0 }
0x1535   : > { %v4212_v36 = vpop.xlane.xlu0 %4211 }
0x1537   : > { %4507 = vadd.xlane.f32.xlu0 %v4506_v54 }
0x1540   : > { %4660 = vrot.lane.b32.xlu1 %v10211_v27, %s8874_s30 }
0x1544   : > { %4648 = vrot.lane.b32.xlu1 %v10175_v62, %s8874_s30 }
0x1548   : > { %4652 = vrot.lane.b32.xlu1 %v10207_v48, %s8874_s30 }
0x154d   : > { %4656 = vrot.lane.b32.xlu0 %v10179_v7, %s8874_s30 }
0x1551   : > { %4646 = vrot.lane.b32.xlu0 %v10163_v21, %s8874_s30 }
0x1555   : > { %4650 = vrot.lane.b32.xlu0 %v10194_v63, %s8874_s30 }
0x155f   : > { %v4203_v6 = vpop.xlane.xlu1 %4202 }
0x1560   : > { %8480 = vrcp.f32 %v4203_v6 }
0x1561   : > { %8482 = vrcp.f32 %v4200_v4 }
0x1562   : > { %8484 = vrcp.f32 %v4206_v42 }
0x1563   : > { %v4197_v8 = vpop.xlane.xlu1 %4196 }
0x1564   : > { %8486 = vrcp.f32 %v4197_v8 }
0x1567   : > { %v4215_v28 = vpop.xlane.xlu1 %4214 }
0x1568   : > { %8488 = vrcp.f32 %v4215_v28 }
0x1569   : > { %8490 = vrcp.f32 %v4212_v36 }
0x156a   : > { %v8481_v33 = vpop.eup %8480  ;;  %8492 = vrcp.f32 %v4218_v53 }
0x156b   : > { %v4209_v16 = vpop.xlane.xlu1 %4208  ;;  %v8483_v54 = vpop.eup %8482  ;;  %v4229_v30 = vmul.f32 %v8481_v33, %v10349_v56 }
0x156c   : > { %8494 = vrcp.f32 %v4209_v16  ;;  %v8485_v44 = vpop.eup %8484  ;;  %v4228_v4 = vmul.f32 %v8483_v54, %v10327_v43 }
0x156d   : > { %v4230_v42 = vmul.f32 %v8485_v44, %v10323_v5 }
0x156e   : > { %v8487_v24 = vpop.eup %8486 }
0x156f   : > { %v4227_v41 = vmul.f32 %v8487_v24, %v10353_v29  ;;  %v4236_v8 = vpack.c.bf16 %v4230_v42, %v4229_v30 }
0x1571   : > { %v4235_v6 = vpack.c.bf16 %v4228_v4, %v4227_v41  ;;  %v4675_v4 = vsel %vm1331_vm12, %v10422_v58, 0 }
0x1572   : > { %v8489_v25 = vpop.eup %8488 }
0x1573   : > { %7714 = vmatprep.mubr.msk.bf16.mxu0 %vm1421_vm0, %v4235_v6  ;;  %v8491_v36 = vpop.eup %8490  ;;  %v4233_v56 = vmul.f32 %v8489_v25, %v10357_v20 }
0x1574   : > { %7715 = vmatmul.mubr.msk.bf16.vlgmr.msra.gmra.mrb[96].mxu0 %vm1421_vm0, %v4236_v8  ;;  %v8493_v53 = vpop.eup %8492  ;;  %v4232_v43 = vmul.f32 %v8491_v36, %v10335_v35 }
0x1575   : > { %7739 = vmatpush3.bf16.msra.mxu0 %v10369_v15  ;;  %v4234_v41 = vmul.f32 %v8493_v53, %v10331_v9 }
0x1576   : > { %v8495_v28 = vpop.eup %8494  ;;  %7740 = vmatprep.subr.bf16.mxu0 %v4536_v52 }
0x1577   : > { %v4231_v24 = vmul.f32 %v8495_v28, %v10361_v45  ;;  %v4238_v44 = vpack.c.bf16 %v4234_v41, %v4233_v56 }
0x1579   : > { %7741 = vmatpush3.bf16.msra.mxu0 %v4536_v52  ;;  %v4237_v30 = vpack.c.bf16 %v4232_v43, %v4231_v24 }
0x157a   : > { %7742 = vmatprep.subr.bf16.mxu0 %v4538_v17 }
0x157b   : > { %7718 = vmatprep.mubr.msk.bf16.mxu0 %vm1421_vm0, %v4237_v30 }
0x157c   : > { %7719 = vmatmul.mubr.msk.bf16.gmra.mrb[100].mxu0 %vm1421_vm0, %v4238_v44 }
0x157d   : > { %7743 = vmatpush3.bf16.msra.mxu0 %v4538_v17 }
0x157e   : > { %7744 = vmatprep.subr.bf16.mxu0 %v4540_v23 }
0x1581   : > { %7745 = vmatpush3.bf16.msra.mxu0 %v4540_v23 }
0x1582   : > { %7890 = vmatprep.subr.msk.bf16.mxu0 %vm1331_vm12, %v10422_v58 }
0x1583   : > { %v4493_v25 = vpop.xlane.xlu1 %4492 }
0x1587   : > { %v4487_v5 = vpop.xlane.xlu1 %4486 }
0x158a   : > { %v4496_v29 = vpop.xlane.xlu0 %4495 }
0x158b   : > { %8496 = vrcp.f32 %v4496_v29  ;;  %v4659_v42 = vpop.permute.xlu1 %4658 }
0x158c   : > { %8498 = vrcp.f32 %v4487_v5  ;;  %v4681_v44 = vsel %vm1331_vm12, %v4659_v42, 0 }
0x158d   : > { %8500 = vrcp.f32 %v4493_v25 }
0x158e   : > { %v4490_v9 = vpop.xlane.xlu0 %4489 }
0x158f   : > { %8502 = vrcp.f32 %v4490_v9 }
0x1595   : > { %v8497_v35 = vpop.eup %8496 }
0x1596   : > { %v8499_v20 = vpop.eup %8498  ;;  %v4520_v52 = vmul.f32 %v8497_v35, %v10380_v32 }
0x1597   : > { %v8501_v45 = vpop.eup %8500  ;;  %v4517_v17 = vmul.f32 %v8499_v20, %v10376_v0 }
0x1598   : > { %v4519_v33 = vmul.f32 %v8501_v45, %v10372_v2 }
0x1599   : > { %v8503_v15 = vpop.eup %8502 }
0x159a   : > { %v4518_v23 = vmul.f32 %v8503_v15, %v10384_v13  ;;  %v4526_v54 = vpack.c.bf16 %v4520_v52, %v4519_v33 }
0x159c   : > { %v4525_v16 = vpack.c.bf16 %v4518_v23, %v4517_v17 }
0x159e   : > { %7746 = vmatprep.mubr.msk.bf16.mxu0 %vm1421_vm0, %v4525_v16 }
0x159f   : > { %7747 = vmatmul.mubr.msk.bf16.vlgmr.msra.gmra.mrb[104].mxu0 %vm1421_vm0, %v4526_v54 }
0x15a0   : > { %7755 = vmatpush3.bf16.xpose.msra.mxu0 %v4675_v4 }
0x15bc   : > { %v4505_v6 = vpop.xlane.xlu0 %4504  ;;  %v4502_v8 = vpop.xlane.xlu1 %4501 }
0x15bd   : > { %8504 = vrcp.f32 %v4502_v8 }
0x15c0   : > { %v4499_v32 = vpop.xlane.xlu0 %4498  ;;  %v4661_v25 = vpop.permute.xlu1 %4660 }
0x15c1   : > { %8506 = vrcp.f32 %v4499_v32 }
0x15c2   : > { %8508 = vrcp.f32 %v4505_v6 }
0x15c4   : > { %v4508_v0 = vpop.xlane.xlu0 %4507 }
0x15c5   : > { %8510 = vrcp.f32 %v4508_v0 }
0x15c7   : > { %v8505_v13 = vpop.eup %8504 }
0x15c8   : > { %v4657_v2 = vpop.permute.xlu0 %4656  ;;  %v4522_v28 = vmul.f32 %v8505_v13, %v10394_v39  ;;  %v4684_v39 = vsel %vm1331_vm12, %v4661_v25, 0 }
0x15c9   : > { %7891 = vmatprep.subr.msk.bf16.mxu0 %vm1331_vm12, %v4657_v2  ;;  %v4678_v36 = vsel %vm1331_vm12, %v4657_v2, 0 }
0x15ca   : > { %7757 = vmatpush3.bf16.xpose.msra.mxu0 %v4678_v36 }
0x15cb   : > { %v8507_v53 = vpop.eup %8506  ;;  %7892 = vmatprep.subr.msk.bf16.mxu0 %vm1331_vm12, %v4659_v42 }
0x15cc   : > { %v4521_v58 = vmul.f32 %v8507_v53, %v10402_v19  ;;  %v8509_v56 = vpop.eup %8508  ;;  %v4647_v29 = vpop.permute.xlu0 %4646 }
0x15cd   : > { %v4523_v41 = vmul.f32 %v8509_v56, %v10396_v60  ;;  %v4649_v19 = vpop.permute.xlu1 %4648 }
0x15ce   : > { %v4527_v24 = vpack.c.bf16 %v4522_v28, %v4521_v58 }
0x15cf   : > { %v8511_v43 = vpop.eup %8510 }
0x15d0   : > { %7750 = vmatprep.mubr.msk.bf16.mxu0 %vm1421_vm0, %v4527_v24  ;;  %v4524_v30 = vmul.f32 %v8511_v43, %v10406_v47  ;;  %v4651_v9 = vpop.permute.xlu0 %4650 }
0x15d1   : > { %v4653_v60 = vpop.permute.xlu1 %4652 }
0x15d2   : > { %7759 = vmatpush3.bf16.xpose.msra.mxu0 %v4681_v44  ;;  %v4528_v5 = vpack.c.bf16 %v4524_v30, %v4523_v41 }
0x15d3   : > { %7893 = vmatprep.subr.msk.bf16.mxu0 %vm1331_vm12, %v4661_v25 }
0x15d4   : > { %7751 = vmatmul.mubr.msk.bf16.gmra.mrb[108].mxu0 %vm1421_vm0, %v4528_v5 }
0x15d5   : > { %7762 = vmatprep.mubr.msk.bf16.mxu0 %vm1331_vm12, %v4647_v29 }
0x15da   : > { %7761 = vmatpush3.bf16.xpose.msra.mxu0 %v4684_v39 }
0x15e1   : > { %7763 = vmatmul.mubr.msk.bf16.vlgmr.msra.gmra.mrb[112].mxu0 %vm1331_vm12, %v4649_v19 }
0x15e2   : > { %7766 = vmatprep.mubr.msk.bf16.mxu0 %vm1331_vm12, %v4651_v9 }
0x15e9   : > { %7767 = vmatmul.mubr.msk.bf16.gmra.mrb[116].mxu0 %vm1331_vm12, %v4653_v60 }
0x1647   : > { %v7716_v47 = vpop.f32.mrb[96].mxu0 }
0x1648   : > { %v4285_v35 = vpop.f32.mrb[97].mxu0 }
0x1649   : > { %v7717_v20 = vpop.f32.mrb[98].mxu0 }
0x164a   : > { %v4317_v45 = vpack.c.bf16 %v7717_v20, %v7716_v47  ;;  %v4288_v15 = vpop.f32.mrb[99].mxu0 }
0x164b   : > { %v4316_v52 = vpack.c.bf16 %v4288_v15, %v4285_v35 }
0x164c   : > { %4321 = vst.msk [vmem:[#allocation2 + $0x8] sm:$0xff] %vm1331_vm12, %v4317_v45 }
0x164d   : > { %4320 = vst.msk [vmem:[#allocation2] sm:$0xff] %vm1331_vm12, %v4316_v52 }
0x164f   : > { %v7720_v17 = vpop.f32.mrb[100].mxu0 }
0x1650   : > { %v4301_v23 = vpop.f32.mrb[101].mxu0 }
0x1651   : > { %v7721_v33 = vpop.f32.mrb[102].mxu0 }
0x1652   : > { %v4319_v16 = vpack.c.bf16 %v7721_v33, %v7720_v17  ;;  %v4304_v54 = vpop.f32.mrb[103].mxu0 }
0x1653   : > { %v4318_v4 = vpack.c.bf16 %v4304_v54, %v4301_v23 }
0x1654   : > { %4323 = vst.msk [vmem:[#allocation2 + $0x18] sm:$0xff] %vm1331_vm12, %v4319_v16 }
0x1655   : > { %4322 = vst.msk [vmem:[#allocation2 + $0x10] sm:$0xff] %vm1331_vm12, %v4318_v4 }
0x1672   : > { %v10467_v42 = vpop.f32.mrb[104].mxu0 }
0x1673   : > { %v10469_v6 = vpop.f32.mrb[105].mxu0 }
0x1674   : > { %v10471_v8 = vpop.f32.mrb[106].mxu0 }
0x1675   : > { %v4623_v32 = vpack.c.bf16 %v10471_v8, %v10467_v42  ;;  %v10475_v0 = vpop.f32.mrb[107].mxu0 }
0x1676   : > { %v4622_v2 = vpack.c.bf16 %v10475_v0, %v10469_v6 }
0x16a7   : > { %v10479_v13 = vpop.f32.mrb[108].mxu0 }
0x16a8   : > { %v10481_v36 = vpop.f32.mrb[109].mxu0 }
0x16a9   : > { %v10483_v53 = vpop.f32.mrb[110].mxu0 }
0x16aa   : > { %v4625_v58 = vpack.c.bf16 %v10483_v53, %v10479_v13  ;;  %v10487_v28 = vpop.f32.mrb[111].mxu0 }
0x16ab   : > { %v4624_v56 = vpack.c.bf16 %v10487_v28, %v10481_v36 }
0x16b4   : > { %v7764_v24 = vpop.f32.mrb[112].mxu0 }
0x16b5   : > { %v4729_v43 = vadd.f32 %v7764_v24, %v9382_v12  ;;  %v4720_v41 = vpop.f32.mrb[113].mxu0 }
0x16b6   : > { %v7765_v30 = vpop.f32.mrb[114].mxu0  ;;  %v4721_v44 = vadd.f32 %v4720_v41, %v9386_v14 }
0x16b7   : > { %v4723_v25 = vpop.f32.mrb[115].mxu0  ;;  %v4757_v5 = vsel %vm1421_vm0, %v4729_v43, -inf  ;;  %v4732_v19 = vadd.f32 %v7765_v30, %v9402_v34 }
0x16b8   : > { %v4724_v29 = vadd.f32 %v4723_v25, %v9392_v18  ;;  %4758 = vmax.xlane.f32.xlu0 %v4757_v5  ;;  %v4751_v9 = vsel %vm1421_vm0, %v4721_v44, -inf }
0x16b9   : > { %v4760_v52 = vsel %vm1421_vm0, %v4732_v19, -inf }
0x16ba   : > { %v4754_v39 = vsel %vm1421_vm0, %v4724_v29, -inf }
0x16bb   : > { %4755 = vmax.xlane.f32.xlu1 %v4754_v39 }
0x16bc   : > { %4752 = vmax.xlane.f32.xlu0 %v4751_v9  ;;  %v7768_v60 = vpop.f32.mrb[116].mxu0 }
0x16bd   : > { %v4745_v47 = vadd.f32 %v7768_v60, %v9411_v61  ;;  %v4736_v35 = vpop.f32.mrb[117].mxu0 }
0x16be   : > { %v7769_v20 = vpop.f32.mrb[118].mxu0  ;;  %v4737_v45 = vadd.f32 %v4736_v35, %v9417_v50 }
0x16bf   : > { %v4739_v15 = vpop.f32.mrb[119].mxu0  ;;  %v4769_v17 = vsel %vm1421_vm0, %v4745_v47, -inf  ;;  %v4748_v16 = vadd.f32 %v7769_v20, %v9431_v10 }
0x16c0   : > { %v10503_v23 = vadd.f32 %v4739_v15, %v9423_v55  ;;  %4761 = vmax.xlane.f32.xlu0 %v4760_v52  ;;  %4770 = vmax.xlane.f32.xlu1 %v4769_v17  ;;  %v4763_v54 = vsel %vm1421_vm0, %v4737_v45, -inf }
0x16c1   : > { %v4772_v4 = vsel %vm1421_vm0, %v4748_v16, -inf }
0x16c2   : > { %v4766_v33 = vsel %vm1421_vm0, %v10503_v23, -inf }
0x16c4   : > { %4767 = vmax.xlane.f32.xlu0 %v4766_v33  ;;  %4764 = vmax.xlane.f32.xlu1 %v4763_v54 }
0x16c8   : > { %4773 = vmax.xlane.f32.xlu0 %v4772_v4 }
0x16d5   : > { %4843 = vrot.lane.b32.xlu1 %v10181_v57, %s8874_s30 }
0x16d9   : > { %4847 = vrot.lane.b32.xlu1 %v10213_v59, %s8874_s30 }
0x16dd   : > { %4849 = vrot.lane.b32.xlu1 %v10209_v51, %s8874_s30 }
0x16de   : > { %4845 = vrot.lane.b32.xlu0 %v10177_v11, %s8874_s30 }
0x16e1   : > { %4964 = vrot.lane.b32.xlu1 %v10165_v1, %s8875_s28 }
0x1745   : > { %v4759_v24 = vpop.xlane.xlu0 %4758 }
0x1746   : > { %v4777_v41 = vsub.f32 %v4729_v43, %v4759_v24 }
0x1748   : > { %v4787_v30 = vmul.f32 1.442695, %v4777_v41  ;;  %v4756_v25 = vpop.xlane.xlu1 %4755 }
0x1749   : > { %v4753_v5 = vpop.xlane.xlu0 %4752  ;;  %v4776_v9 = vsub.f32 %v4724_v29, %v4756_v25 }
0x174a   : > { %8512 = vpow2.f32 %v4787_v30  ;;  %v4775_v39 = vsub.f32 %v4721_v44, %v4753_v5 }
0x174b   : > { %v4785_v52 = vmul.f32 1.442695, %v4776_v9 }
0x174c   : > { %v4783_v60 = vmul.f32 1.442695, %v4775_v39 }
0x174d   : > { %v4762_v35 = vpop.xlane.xlu0 %4761  ;;  %v4771_v20 = vpop.xlane.xlu1 %4770 }
0x174e   : > { %8514 = vpow2.f32 %v4783_v60  ;;  %v4778_v15 = vsub.f32 %v4732_v19, %v4762_v35  ;;  %v4781_v33 = vsub.f32 %v4745_v47, %v4771_v20 }
0x1750   : > { %v4789_v17 = vmul.f32 1.442695, %v4778_v15  ;;  %v4795_v43 = vmul.f32 1.442695, %v4781_v33 }
0x1751   : > { %v4768_v54 = vpop.xlane.xlu0 %4767  ;;  %v4765_v4 = vpop.xlane.xlu1 %4764 }
0x1752   : > { %8516 = vpow2.f32 %v4789_v17  ;;  %v4779_v24 = vsub.f32 %v4737_v45, %v4765_v4 }
0x1753   : > { %8518 = vpow2.f32 %v4785_v52 }
0x1754   : > { %v10520_v1 = vpop.eup %8512  ;;  %8520 = vpow2.f32 %v4795_v43  ;;  %v4791_v19 = vmul.f32 1.442695, %v4779_v24 }
0x1755   : > { %v4774_v41 = vpop.xlane.xlu0 %4773  ;;  %v4844_v30 = vpop.permute.xlu1 %4843  ;;  %v4805_v44 = vsel %vm1421_vm0, %v10520_v1, 0.0 }
0x1756   : > { %4806 = vadd.xlane.f32.xlu1 %v4805_v44  ;;  %7770 = vmatprep.subr.bf16.mxu1 %v4844_v30  ;;  %v4782_v47 = vsub.f32 %v4748_v16, %v4774_v41  ;;  %8522 = vpow2.f32 %v4791_v19  ;;  %v4780_v41 = vsub.f32 %v10503_v23, %v4768_v54 }
0x1757   : > { %7771 = vmatpush3.bf16.msra.mxu1 %v4844_v30 }
0x1758   : > { %v10524_v29 = vpop.eup %8514  ;;  %v4797_v9 = vmul.f32 1.442695, %v4782_v47  ;;  %v4793_v30 = vmul.f32 1.442695, %v4780_v41 }
0x1759   : > { %v4846_v25 = vpop.permute.xlu0 %4845  ;;  %v4848_v5 = vpop.permute.xlu1 %4847  ;;  %v4799_v39 = vsel %vm1421_vm0, %v10524_v29, 0.0 }
0x175a   : > { %4800 = vadd.xlane.f32.xlu1 %v4799_v39  ;;  %7772 = vmatprep.subr.bf16.mxu1 %v4846_v25  ;;  %8524 = vpow2.f32 %v4797_v9 }
0x175b   : > { %7773 = vmatpush3.bf16.msra.mxu1 %v4846_v25  ;;  %8526 = vpow2.f32 %v4793_v30 }
0x175c   : > { %v8517_v45 = vpop.eup %8516  ;;  %7774 = vmatprep.subr.bf16.mxu1 %v4848_v5 }
0x175d   : > { %v4850_v60 = vpop.permute.xlu1 %4849  ;;  %v4808_v35 = vsel %vm1421_vm0, %v8517_v45, 0.0  ;;  %v8519_v20 = vpop.eup %8518 }
0x175e   : > { %4809 = vadd.xlane.f32.xlu0 %v4808_v35  ;;  %v4802_v16 = vsel %vm1421_vm0, %v8519_v20, 0.0  ;;  %v10530_v15 = vpop.eup %8520 }
0x175f   : > { %7775 = vmatpush3.bf16.msra.mxu1 %v4848_v5  ;;  %v4817_v17 = vsel %vm1421_vm0, %v10530_v15, 0.0 }
0x1760   : > { %7776 = vmatprep.subr.bf16.mxu1 %v4850_v60  ;;  %v10535_v33 = vpop.eup %8522 }
0x1761   : > { %v4965_v52 = vpop.permute.xlu1 %4964  ;;  %v4811_v4 = vsel %vm1421_vm0, %v10535_v33, 0.0 }
0x1762   : > { %4803 = vadd.xlane.f32.xlu0 %v4802_v16 }
0x1763   : > { %7777 = vmatpush3.bf16.msra.mxu1 %v4850_v60 }
0x1764   : > { %7894 = vmatprep.subr.msk.bf16.mxu1 %vm1331_vm12, %v4965_v52  ;;  %v10539_v43 = vpop.eup %8524 }
0x1765   : > { %v4820_v24 = vsel %vm1421_vm0, %v10539_v43, 0.0  ;;  %v8527_v44 = vpop.eup %8526 }
0x1766   : > { %4818 = vadd.xlane.f32.xlu0 %v4817_v17 }
0x176a   : > { %4812 = vadd.xlane.f32.xlu0 %v4811_v4  ;;  %v4985_v4 = vsel %vm1331_vm12, %v4965_v52, 0 }
0x176b   : > { %4968 = vrot.lane.b32.xlu1 %v10197_v3, %s8875_s28  ;;  %v4814_v3 = vsel %vm1421_vm0, %v8527_v44, 0.0 }
0x176e   : > { %4821 = vadd.xlane.f32.xlu0 %v4820_v24 }
0x1784   : > { %4966 = vrot.lane.b32.xlu0 %v10179_v7, %s8875_s28 }
0x1788   : > { %4956 = vrot.lane.b32.xlu0 %v10163_v21, %s8875_s28 }
0x178c   : > { %4960 = vrot.lane.b32.xlu0 %v10194_v63, %s8875_s28 }
0x178f   : > { %4815 = vadd.xlane.f32.xlu1 %v4814_v3 }
0x17a0   : > { %4970 = vrot.lane.b32.xlu1 %v10211_v27, %s8875_s28 }
0x17a4   : > { %4958 = vrot.lane.b32.xlu1 %v10175_v62, %s8875_s28 }
0x17a8   : > { %4962 = vrot.lane.b32.xlu1 %v10207_v48, %s8875_s28 }
0x17e3   : > { %v4807_v7 = vpop.xlane.xlu1 %4806 }
0x17e7   : > { %v4801_v23 = vpop.xlane.xlu1 %4800 }
0x17eb   : > { %v4810_v54 = vpop.xlane.xlu0 %4809  ;;  %v4969_v24 = vpop.permute.xlu1 %4968 }
0x17ec   : > { %8528 = vrcp.f32 %v4810_v54 }
0x17ed   : > { %8530 = vrcp.f32 %v4801_v23 }
0x17ee   : > { %8532 = vrcp.f32 %v4807_v7 }
0x17ef   : > { %v4804_v21 = vpop.xlane.xlu0 %4803 }
0x17f0   : > { %8534 = vrcp.f32 %v4804_v21 }
0x17f3   : > { %v4819_v63 = vpop.xlane.xlu0 %4818 }
0x17f6   : > { %v8529_v19 = vpop.eup %8528 }
0x17f7   : > { %v4813_v47 = vpop.xlane.xlu0 %4812  ;;  %v8531_v25 = vpop.eup %8530  ;;  %v4834_v39 = vmul.f32 %v8529_v19, %v8517_v45 }
0x17f8   : > { %v8533_v5 = vpop.eup %8532  ;;  %v4831_v62 = vmul.f32 %v8531_v25, %v10524_v29 }
0x17f9   : > { %v4833_v48 = vmul.f32 %v8533_v5, %v10520_v1  ;;  %v4991_v1 = vsel %vm1331_vm12, %v4969_v24, 0 }
0x17fa   : > { %v8535_v27 = vpop.eup %8534 }
0x17fb   : > { %v4822_v9 = vpop.xlane.xlu0 %4821  ;;  %v4832_v60 = vmul.f32 %v8535_v27, %v8519_v20  ;;  %v4840_v16 = vpack.c.bf16 %v4834_v39, %v4833_v48 }
0x17fc   : > { %8536 = vrcp.f32 %v4822_v9 }
0x17fd   : > { %v4839_v35 = vpack.c.bf16 %v4832_v60, %v4831_v62  ;;  %8538 = vrcp.f32 %v4813_v47 }
0x17fe   : > { %8540 = vrcp.f32 %v4819_v63 }
0x17ff   : > { %v4967_v17 = vpop.permute.xlu0 %4966  ;;  %7778 = vmatprep.mubr.msk.bf16.mxu1 %vm1421_vm0, %v4839_v35 }
0x1800   : > { %7779 = vmatmul.mubr.msk.bf16.vlgmr.msra.gmra.mrb[112].mxu1 %vm1421_vm0, %v4840_v16  ;;  %v4988_v45 = vsel %vm1331_vm12, %v4967_v17, 0 }
0x1801   : > { %7787 = vmatpush3.bf16.xpose.msra.mxu1 %v4985_v4 }
0x1802   : > { %7895 = vmatprep.subr.msk.bf16.mxu1 %vm1331_vm12, %v4967_v17 }
0x1803   : > { %v4957_v25 = vpop.permute.xlu0 %4956 }
0x1806   : > { %v8537_v41 = vpop.eup %8536 }
0x1807   : > { %v8539_v30 = vpop.eup %8538  ;;  %v4838_v23 = vmul.f32 %v8537_v41, %v10539_v43  ;;  %v4961_v27 = vpop.permute.xlu0 %4960 }
0x1808   : > { %v8541_v3 = vpop.eup %8540  ;;  %v4835_v54 = vmul.f32 %v8539_v30, %v10535_v33 }
0x1809   : > { %7789 = vmatpush3.bf16.xpose.msra.mxu1 %v4988_v45  ;;  %v4837_v19 = vmul.f32 %v8541_v3, %v10530_v15 }
0x180a   : > { %7896 = vmatprep.subr.msk.bf16.mxu1 %vm1331_vm12, %v4969_v24 }
0x180b   : > { %v4842_v47 = vpack.c.bf16 %v4838_v23, %v4837_v19 }
0x1811   : > { %7791 = vmatpush3.bf16.xpose.msra.mxu1 %v4991_v1 }
0x181c   : > { %v4816_v29 = vpop.xlane.xlu1 %4815 }
0x181d   : > { %8542 = vrcp.f32 %v4816_v29 }
0x1820   : > { %v4971_v20 = vpop.permute.xlu1 %4970 }
0x1821   : > { %v4994_v52 = vsel %vm1331_vm12, %v4971_v20, 0  ;;  %7897 = vmatprep.subr.msk.bf16.mxu1 %vm1331_vm12, %v4971_v20 }
0x1822   : > { %7793 = vmatpush3.bf16.xpose.msra.mxu1 %v4994_v52 }
0x1824   : > { %v4959_v5 = vpop.permute.xlu1 %4958 }
0x1827   : > { %v8543_v7 = vpop.eup %8542 }
0x1828   : > { %v4836_v21 = vmul.f32 %v8543_v7, %v8527_v44  ;;  %v4963_v43 = vpop.permute.xlu1 %4962 }
0x182a   : > { %v4841_v63 = vpack.c.bf16 %v4836_v21, %v4835_v54 }
0x182c   : > { %7782 = vmatprep.mubr.msk.bf16.mxu1 %vm1421_vm0, %v4841_v63 }
0x182d   : > { %7783 = vmatmul.mubr.msk.bf16.gmra.mrb[116].mxu1 %vm1421_vm0, %v4842_v47 }
0x182e   : > { %7794 = vmatprep.mubr.msk.bf16.mxu1 %vm1331_vm12, %v4957_v25 }
0x1835   : > { %7795 = vmatmul.mubr.msk.bf16.vlgmr.msra.gmra.mrb[120].mxu1 %vm1331_vm12, %v4959_v5 }
0x1836   : > { %7798 = vmatprep.mubr.msk.bf16.mxu1 %vm1331_vm12, %v4961_v27 }
0x183d   : > { %7799 = vmatmul.mubr.msk.bf16.gmra.mrb[124].mxu1 %vm1331_vm12, %v4963_v43 }
0x183e   : > { %5788 = vmatprep.mubr.bf16.mxu1 %v11104_v40 }
0x18d3   : > { %v10580_v15 = vpop.f32.mrb[112].mxu1 }
0x18d4   : > { %v10582_v33 = vpop.f32.mrb[113].mxu1 }
0x18d5   : > { %v10584_v44 = vpop.f32.mrb[114].mxu1 }
0x18d6   : > { %v4933_v39 = vpack.c.bf16 %v10584_v44, %v10580_v15  ;;  %v10588_v9 = vpop.f32.mrb[115].mxu1 }
0x18d7   : > { %v4932_v62 = vpack.c.bf16 %v10588_v9, %v10582_v33 }
0x1900   : > { %v10592_v60 = vpop.f32.mrb[116].mxu1 }
0x1901   : > { %v10594_v48 = vpop.f32.mrb[117].mxu1 }
0x1902   : > { %v10596_v35 = vpop.f32.mrb[118].mxu1 }
0x1903   : > { %v4935_v16 = vpack.c.bf16 %v10596_v35, %v10592_v60  ;;  %v10600_v17 = vpop.f32.mrb[119].mxu1 }
0x1904   : > { %v4934_v4 = vpack.c.bf16 %v10600_v17, %v10594_v48 }
0x1908   : > { %v7796_v45 = vpop.f32.mrb[120].mxu1 }
0x1909   : > { %v5030_v24 = vpop.f32.mrb[121].mxu1  ;;  %v5039_v52 = vadd.f32 %v7796_v45, %v9382_v12 }
0x190a   : > { %v5031_v1 = vadd.f32 %v5030_v24, %v9386_v14  ;;  %v7797_v29 = vpop.f32.mrb[122].mxu1 }
0x190b   : > { %v5033_v20 = vpop.f32.mrb[123].mxu1  ;;  %v5042_v7 = vadd.f32 %v7797_v29, %v9402_v34  ;;  %v5067_v54 = vsel %vm1421_vm0, %v5039_v52, -inf }
0x190c   : > { %v5034_v41 = vadd.f32 %v5033_v20, %v9392_v18  ;;  %v5061_v30 = vsel %vm1421_vm0, %v5031_v1, -inf }
0x190d   : > { %5062 = vmax.xlane.f32.xlu0 %v5061_v30  ;;  %v5070_v47 = vsel %vm1421_vm0, %v5042_v7, -inf }
0x190e   : > { %v5064_v3 = vsel %vm1421_vm0, %v5034_v41, -inf }
0x190f   : > { %5065 = vmax.xlane.f32.xlu1 %v5064_v3 }
0x1910   : > { %v7800_v23 = vpop.f32.mrb[124].mxu1 }
0x1911   : > { %5068 = vmax.xlane.f32.xlu0 %v5067_v54  ;;  %v5046_v21 = vpop.f32.mrb[125].mxu1  ;;  %v5055_v12 = vadd.f32 %v7800_v23, %v9411_v61 }
0x1912   : > { %v5047_v14 = vadd.f32 %v5046_v21, %v9417_v50  ;;  %v7801_v19 = vpop.f32.mrb[126].mxu1 }
0x1913   : > { %v5049_v63 = vpop.f32.mrb[127].mxu1  ;;  %v5058_v34 = vadd.f32 %v7801_v19, %v9431_v10  ;;  %v5079_v27 = vsel %vm1421_vm0, %v5055_v12, -inf }
0x1914   : > { %v5050_v18 = vadd.f32 %v5049_v63, %v9423_v55  ;;  %v5073_v25 = vsel %vm1421_vm0, %v5047_v14, -inf }
0x1915   : > { %5071 = vmax.xlane.f32.xlu0 %v5070_v47  ;;  %5074 = vmax.xlane.f32.xlu1 %v5073_v25  ;;  %v5082_v50 = vsel %vm1421_vm0, %v5058_v34, -inf }
0x1916   : > { %v5076_v5 = vsel %vm1421_vm0, %v5050_v18, -inf }
0x1919   : > { %5077 = vmax.xlane.f32.xlu0 %v5076_v5  ;;  %5080 = vmax.xlane.f32.xlu1 %v5079_v27 }
0x191d   : > { %5083 = vmax.xlane.f32.xlu0 %v5082_v50 }
0x192a   : > { %5153 = vrot.lane.b32.xlu1 %v10181_v57, %s8875_s28 }
0x192e   : > { %5155 = vrot.lane.b32.xlu1 %v10177_v11, %s8875_s28 }
0x199a   : > { %v5063_v61 = vpop.xlane.xlu0 %5062 }
0x199b   : > { %v5085_v55 = vsub.f32 %v5031_v1, %v5063_v61 }
0x199c   : > { %v5066_v43 = vpop.xlane.xlu1 %5065 }
0x199d   : > { %v5093_v24 = vmul.f32 1.442695, %v5085_v55  ;;  %v5086_v29 = vsub.f32 %v5034_v41, %v5066_v43 }
0x199e   : > { %v5069_v45 = vpop.xlane.xlu0 %5068 }
0x199f   : > { %v5087_v10 = vsub.f32 %v5039_v52, %v5069_v45  ;;  %v5095_v54 = vmul.f32 1.442695, %v5086_v29 }
0x19a1   : > { %v5097_v20 = vmul.f32 1.442695, %v5087_v10 }
0x19a2   : > { %v5072_v30 = vpop.xlane.xlu0 %5071  ;;  %v5075_v3 = vpop.xlane.xlu1 %5074 }
0x19a3   : > { %8544 = vpow2.f32 %v5097_v20  ;;  %v5088_v23 = vsub.f32 %v5042_v7, %v5072_v30  ;;  %v5089_v11 = vsub.f32 %v5047_v14, %v5075_v3 }
0x19a4   : > { %8546 = vpow2.f32 %v5093_v24 }
0x19a5   : > { %v5099_v21 = vmul.f32 1.442695, %v5088_v23  ;;  %v5101_v41 = vmul.f32 1.442695, %v5089_v11 }
0x19a6   : > { %v5078_v19 = vpop.xlane.xlu0 %5077  ;;  %v5081_v57 = vpop.xlane.xlu1 %5080 }
0x19a7   : > { %8548 = vpow2.f32 %v5099_v21  ;;  %v5091_v63 = vsub.f32 %v5055_v12, %v5081_v57  ;;  %v5090_v14 = vsub.f32 %v5050_v18, %v5078_v19 }
0x19a8   : > { %8550 = vpow2.f32 %v5095_v54 }
0x19a9   : > { %v5105_v1 = vmul.f32 1.442695, %v5091_v63 }
0x19aa   : > { %v5084_v47 = vpop.xlane.xlu0 %5083  ;;  %v5154_v25 = vpop.permute.xlu1 %5153 }
0x19ab   : > { %7802 = vmatprep.subr.bf16.mxu0 %v5154_v25  ;;  %8552 = vpow2.f32 %v5105_v1  ;;  %v5092_v5 = vsub.f32 %v5058_v34, %v5084_v47  ;;  %v5103_v34 = vmul.f32 1.442695, %v5090_v14 }
0x19ac   : > { %7803 = vmatpush3.bf16.msra.mxu0 %v5154_v25  ;;  %8554 = vpow2.f32 %v5101_v41 }
0x19ad   : > { %v10624_v52 = vpop.eup %8544  ;;  %v5107_v61 = vmul.f32 1.442695, %v5092_v5 }
0x19ae   : > { %v5156_v7 = vpop.permute.xlu1 %5155  ;;  %v5115_v27 = vsel %vm1421_vm0, %v10624_v52, 0.0  ;;  %v8547_v50 = vpop.eup %8546 }
0x19af   : > { %5116 = vadd.xlane.f32.xlu1 %v5115_v27  ;;  %7804 = vmatprep.subr.bf16.mxu0 %v5156_v7  ;;  %v5109_v43 = vsel %vm1421_vm0, %v8547_v50, 0.0  ;;  %8556 = vpow2.f32 %v5107_v61 }
0x19b0   : > { %7805 = vmatpush3.bf16.msra.mxu0 %v5156_v7  ;;  %8558 = vpow2.f32 %v5103_v34 }
0x19b1   : > { %v10628_v12 = vpop.eup %8548 }
0x19b2   : > { %v5118_v55 = vsel %vm1421_vm0, %v10628_v12, 0.0  ;;  %v8551_v45 = vpop.eup %8550 }
0x19b3   : > { %5119 = vadd.xlane.f32.xlu0 %v5118_v55  ;;  %5110 = vadd.xlane.f32.xlu1 %v5109_v43  ;;  %v5112_v10 = vsel %vm1421_vm0, %v8551_v45, 0.0 }
0x19b5   : > { %v10634_v24 = vpop.eup %8552 }
0x19b6   : > { %v5127_v18 = vsel %vm1421_vm0, %v10634_v24, 0.0  ;;  %v8555_v29 = vpop.eup %8554 }
0x19b7   : > { %5113 = vadd.xlane.f32.xlu0 %v5112_v10  ;;  %v5121_v20 = vsel %vm1421_vm0, %v8555_v29, 0.0  ;;  %v8177_v10 = vld [vmem:[%s11025_s6 + $0x48] sm:$0xff]  }
0x19b9   : > { %v8557_v30 = vpop.eup %8556 }
0x19ba   : > { %v5130_v3 = vsel %vm1421_vm0, %v8557_v30, 0.0  ;;  %v8559_v23 = vpop.eup %8558 }
0x19bb   : > { %5128 = vadd.xlane.f32.xlu0 %v5127_v18  ;;  %v5124_v54 = vsel %vm1421_vm0, %v8559_v23, 0.0  ;;  %v8178_v18 = vld [vmem:[%s11025_s6 + $0x50] sm:$0xff]  }
0x19bf   : > { %5122 = vadd.xlane.f32.xlu0 %v5121_v20  ;;  %v8181_v20 = vld [vmem:[%s11025_s6 + $0x68] sm:$0xff]  }
0x19c3   : > { %5131 = vadd.xlane.f32.xlu0 %v5130_v3  ;;  %v8183_v3 = vld [vmem:[%s11025_s6 + $0x78] sm:$0xff]  }
0x19c4   : > { %5159 = vrot.lane.b32.xlu1 %v10209_v51, %s8875_s28 }
0x19c7   : > { %5125 = vadd.xlane.f32.xlu0 %v5124_v54 }
0x19c8   : > { %4630 = vrot.lane.b32.xlu1 %v4622_v2, %s8875_s28 }
0x19cc   : > { %4632 = vrot.lane.b32.xlu1 %v4623_v32, %s8875_s28 }
0x19d0   : > { %4940 = vrot.lane.b32.xlu1 %v4932_v62, %s8874_s30 }
0x19d4   : > { %4942 = vrot.lane.b32.xlu1 %v4933_v39, %s8874_s30 }
0x19dd   : > { %5157 = vrot.lane.b32.xlu0 %v10213_v59, %s8875_s28 }
0x1a3c   : > { %v5117_v51 = vpop.xlane.xlu1 %5116 }
0x1a40   : > { %v5120_v6 = vpop.xlane.xlu0 %5119  ;;  %v5111_v0 = vpop.xlane.xlu1 %5110 }
0x1a41   : > { %8560 = vrcp.f32 %v5111_v0 }
0x1a44   : > { %v5114_v2 = vpop.xlane.xlu0 %5113  ;;  %v5160_v42 = vpop.permute.xlu1 %5159 }
0x1a45   : > { %8562 = vrcp.f32 %v5114_v2 }
0x1a46   : > { %8564 = vrcp.f32 %v5120_v6 }
0x1a47   : > { %8566 = vrcp.f32 %v5117_v51 }
0x1a48   : > { %v5129_v8 = vpop.xlane.xlu0 %5128  ;;  %v4631_v32 = vpop.permute.xlu1 %4630 }
0x1a49   : > { %4642 = vst.msk [vmem:[#allocation2] sm:$0xff] %vm1917_vm6, %v4631_v32 }
0x1a4b   : > { %v8561_v62 = vpop.eup %8560 }
0x1a4c   : > { %v5123_v33 = vpop.xlane.xlu0 %5122  ;;  %v4633_v9 = vpop.permute.xlu1 %4632  ;;  %v5141_v39 = vmul.f32 %v8561_v62, %v8547_v50 }
0x1a4d   : > { %4643 = vst.msk [vmem:[#allocation2 + $0x8] sm:$0xff] %vm1917_vm6, %v4633_v9  ;;  %8568 = vrcp.f32 %v5123_v33 }
0x1a4f   : > { %v8563_v15 = vpop.eup %8562 }
0x1a50   : > { %v5132_v59 = vpop.xlane.xlu0 %5131  ;;  %v4941_v44 = vpop.permute.xlu1 %4940  ;;  %v5142_v21 = vmul.f32 %v8563_v15, %v8551_v45  ;;  %v7009_v15 = vld [vmem:[%s11026_s7 + $0x1] ss:$0 sm:$0xff] }
0x1a51   : > { %4952 = vst.msk [vmem:[#allocation2] sm:$0xff] %vm2228_vm7, %v4941_v44  ;;  %v8565_v11 = vpop.eup %8564 }
0x1a52   : > { %v5149_v19 = vpack.c.bf16 %v5142_v21, %v5141_v39  ;;  %v8567_v47 = vpop.eup %8566  ;;  %v5144_v25 = vmul.f32 %v8565_v11, %v10628_v12 }
0x1a53   : > { %v5143_v5 = vmul.f32 %v8567_v47, %v10624_v52  ;;  %v8176_v52 = vld [vmem:[%s11025_s6 + $0x40] sm:$0xff]  }
0x1a54   : > { %v5126_v57 = vpop.xlane.xlu0 %5125  ;;  %7810 = vmatprep.mubr.msk.bf16.mxu0 %vm1421_vm0, %v5149_v19  ;;  %v4943_v63 = vpop.permute.xlu1 %4942 }
0x1a55   : > { %8570 = vrcp.f32 %v5126_v57  ;;  %4953 = vst.msk [vmem:[#allocation2 + $0x8] sm:$0xff] %vm2228_vm7, %v4943_v63  ;;  %v5150_v27 = vpack.c.bf16 %v5144_v25, %v5143_v5 }
0x1a56   : > { %8572 = vrcp.f32 %v5132_v59 }
0x1a57   : > { %8574 = vrcp.f32 %v5129_v8  ;;  %v8569_v41 = vpop.eup %8568 }
0x1a58   : > { %v5158_v1 = vpop.permute.xlu0 %5157  ;;  %v5145_v14 = vmul.f32 %v8569_v41, %v8555_v29  ;;  %v8180_v29 = vld [vmem:[%s11025_s6 + $0x60] sm:$0xff]  }
0x1a59   : > { %7806 = vmatprep.subr.bf16.mxu0 %v5158_v1 }
0x1a5a   : > { %7807 = vmatpush3.bf16.msra.mxu0 %v5158_v1 }
0x1a5b   : > { %7808 = vmatprep.subr.bf16.mxu0 %v5160_v42 }
0x1a5e   : > { %7809 = vmatpush3.bf16.msra.mxu0 %v5160_v42 }
0x1a5f   : > { %v8571_v7 = vpop.eup %8570  ;;  %7818 = vmatprep.subr.bf16.mxu0 %v8176_v52 }
0x1a60   : > { %v8573_v50 = vpop.eup %8572  ;;  %v5146_v61 = vmul.f32 %v8571_v7, %v8559_v23 }
0x1a61   : > { %7811 = vmatmul.mubr.msk.bf16.vlgmr.msra.gmra.mrb[120].mxu0 %vm1421_vm0, %v5150_v27  ;;  %v8575_v55 = vpop.eup %8574  ;;  %v5148_v45 = vmul.f32 %v8573_v50, %v8557_v30  ;;  %v8182_v30 = vld [vmem:[%s11025_s6 + $0x70] sm:$0xff]  }
0x1a62   : > { %v5151_v43 = vpack.c.bf16 %v5146_v61, %v5145_v14  ;;  %v5147_v34 = vmul.f32 %v8575_v55, %v10634_v24  ;;  %7819 = vmatpush3.bf16.msra.mxu0 %v8176_v52  ;;  %v8179_v24 = vld [vmem:[%s11025_s6 + $0x58] sm:$0xff]   ;;  %v8189_v52 = vld [vmem:[#allocation9 + $0x10c] ss:$16 sps:$4 sm:$0xff]  }
0x1a63   : > { %7820 = vmatprep.subr.bf16.mxu0 %v8177_v10 }
0x1a64   : > { %7814 = vmatprep.mubr.msk.bf16.mxu0 %vm1421_vm0, %v5151_v43  ;;  %v5152_v12 = vpack.c.bf16 %v5148_v45, %v5147_v34  ;;  %v11112_v43 = vld [vmem:[#allocation29_spill] sm:$0xff]  ;;  %v8186_v34 = vld [vmem:[#allocation9 + $0x104] ss:$16 sps:$4 sm:$0xff]  }
0x1a65   : > { %5756 = vmatprep.subr.bf16.mxu1 %v8186_v34  ;;  %v8222_v34 = vld [vmem:[#allocation9 + $0x1c4] ss:$16 sps:$4 sm:$0xff]  }
0x1a66   : > { %7821 = vmatpush3.bf16.msra.mxu0 %v8177_v10  ;;  %v8195_v10 = vld [vmem:[#allocation9 + $0x12c] ss:$16 sps:$4 sm:$0xff]  }
0x1a67   : > { %7822 = vmatprep.subr.bf16.mxu0 %v8178_v18 }
0x1a69   : > { %7815 = vmatmul.mubr.msk.bf16.gmra.mrb[124].mxu0 %vm1421_vm0, %v5152_v12  ;;  %v8187_v12 = vld [vmem:[#allocation9 + $0x108] ss:$16 sps:$4 sm:$0xff]  }
0x1a6a   : > { %7823 = vmatpush3.bf16.msra.mxu0 %v8178_v18  ;;  %v8193_v18 = vld [vmem:[#allocation9 + $0x128] ss:$16 sps:$4 sm:$0xff]  }
0x1a6b   : > { %7824 = vmatprep.subr.bf16.mxu0 %v8179_v24 }
0x1a6e   : > { %7825 = vmatpush3.bf16.msra.mxu0 %v8179_v24 }
0x1a6f   : > { %7826 = vmatprep.subr.bf16.mxu0 %v8180_v29 }
0x1a72   : > { %7827 = vmatpush3.bf16.msra.mxu0 %v8180_v29 }
0x1a73   : > { %7828 = vmatprep.subr.bf16.mxu0 %v8181_v20 }
0x1a76   : > { %7829 = vmatpush3.bf16.msra.mxu0 %v8181_v20 }
0x1a77   : > { %7830 = vmatprep.subr.bf16.mxu0 %v8182_v30 }
0x1a7a   : > { %7831 = vmatpush3.bf16.msra.mxu0 %v8182_v30 }
0x1a7b   : > { %7832 = vmatprep.subr.bf16.mxu0 %v8183_v3 }
0x1a7e   : > { %7833 = vmatpush3.bf16.msra.mxu0 %v8183_v3 }
0x1a7f   : > { %5829 = vmatprep.subr.bf16.mxu0 %v8189_v52  ;;  %v8220_v52 = vld [vmem:[#allocation9 + $0x1c0] ss:$16 sps:$4 sm:$0xff]  }
0x1b34   : > { %v7812_v23 = vpop.f32.mrb[120].mxu0 }
0x1b35   : > { %v5211_v54 = vpop.f32.mrb[121].mxu0 }
0x1b36   : > { %v7813_v51 = vpop.f32.mrb[122].mxu0 }
0x1b37   : > { %v5243_v6 = vpack.c.bf16 %v7813_v51, %v7812_v23  ;;  %v5214_v0 = vpop.f32.mrb[123].mxu0 }
0x1b38   : > { %v5242_v2 = vpack.c.bf16 %v5214_v0, %v5211_v54 }
0x1b39   : > { %5252 = vrot.lane.b32.xlu1 %v5243_v6, %s8872_s21 }
0x1b3a   : > { %5250 = vrot.lane.b32.xlu0 %v5242_v2, %s8872_s21 }
0x1b3c   : > { %v7816_v42 = vpop.f32.mrb[124].mxu0 }
0x1b3d   : > { %4636 = vrot.lane.b32.xlu1 %v4625_v58, %s8875_s28  ;;  %v5227_v8 = vpop.f32.mrb[125].mxu0 }
0x1b3e   : > { %4634 = vrot.lane.b32.xlu0 %v4624_v56, %s8875_s28  ;;  %v7817_v32 = vpop.f32.mrb[126].mxu0 }
0x1b3f   : > { %v5245_v33 = vpack.c.bf16 %v7817_v32, %v7816_v42  ;;  %v5230_v9 = vpop.f32.mrb[127].mxu0 }
0x1b40   : > { %v5244_v62 = vpack.c.bf16 %v5230_v9, %v5227_v8 }
0x1b41   : > { %4946 = vrot.lane.b32.xlu1 %v4935_v16, %s8874_s30 }
0x1b42   : > { %4944 = vrot.lane.b32.xlu0 %v4934_v4, %s8874_s30 }
0x1b45   : > { %5256 = vrot.lane.b32.xlu1 %v5245_v33, %s8872_s21 }
0x1b46   : > { %5254 = vrot.lane.b32.xlu0 %v5244_v62, %s8872_s21  ;;  %s655_s21 = sand.u32 1, %s11120_s1  }
0x1b47   : > { %s6771_s30 = sshll.u32 %s655_s21, 6  ;;  %s10978_s0 = scalar_lea.sflag [#allocation5], %s655_s21 }
0x1b48   : > { %s657_s25 = scalar_lea.vmem [#allocation14], %s6771_s30 }
0x1b49   : > { %s6633_s29 = sshll.u32 %s657_s25, 4  ;;  %s10969_s29 = int_to_ptr.vmem [resolvable:$true] %s6633_s29 }
0x1b4a   : > { %s8776_s2 = scalar_lea.vmem %s10969_s29, 1024 }
0x1b4b   : > { %p8777_p4 = scmp.ne.s32.totalorder %s10969_s29, %s8776_s2 }
0x1b4d   : > { %p8778_p8 = pnand %p8777_p4, %p11124_p7 }
0x1b4f   : > { %p8779_p11 = pneg %p8778_p8 }
0x1bab   : > { %v5253_v13 = vpop.permute.xlu1 %5252 }
0x1bac   : > { %5263 = vst.msk [vmem:[#allocation2 + $0x8] sm:$0xff] %vm2539_vm8, %v5253_v13  ;;  %v5251_v36 = vpop.permute.xlu0 %5250 }
0x1bad   : > { %5262 = vst.msk [vmem:[#allocation2] sm:$0xff] %vm2539_vm8, %v5251_v36 }
0x1baf   : > { %v4637_v53 = vpop.permute.xlu1 %4636 }
0x1bb0   : > { %4645 = vst.msk [vmem:[#allocation2 + $0x18] sm:$0xff] %vm1917_vm6, %v4637_v53  ;;  %v4635_v58 = vpop.permute.xlu0 %4634 }
0x1bb1   : > { %4644 = vst.msk [vmem:[#allocation2 + $0x10] sm:$0xff] %vm1917_vm6, %v4635_v58 }
0x1bb3   : > { %v4947_v28 = vpop.permute.xlu1 %4946  ;;  %v5267_v48 = vld [vmem:[#allocation2 + $0x8] sm:$0xff] }
0x1bb4   : > { %4955 = vst.msk [vmem:[#allocation2 + $0x18] sm:$0xff] %vm2228_vm7, %v4947_v28  ;;  %v4945_v56 = vpop.permute.xlu0 %4944  ;;  %v5266_v60 = vld [vmem:[#allocation2] sm:$0xff] }
0x1bb5   : > { %4954 = vst.msk [vmem:[#allocation2 + $0x10] sm:$0xff] %vm2228_vm7, %v4945_v56  ;;  %7834 = vmatprep.mubr.bf16.mxu0 %v5266_v60 }
0x1bb6   : > { %7835 = vmatmul.mubr.bf16.vlgmr.msra.gmra.mrb[128].mxu0 %v5267_v48 }
0x1bb7   : > { %v5257_v35 = vpop.permute.xlu1 %5256  ;;  %5830 = vmatpush1.bf16.msra.mxu0 %v8187_v12  ;;  %v8225_v12 = vld [vmem:[#allocation9 + $0x1cc] ss:$16 sps:$4 sm:$0xff]  }
0x1bb8   : > { %5265 = vst.msk [vmem:[#allocation2 + $0x18] sm:$0xff] %vm2539_vm8, %v5257_v35  ;;  %v5255_v16 = vpop.permute.xlu0 %5254  ;;  %5831 = vmatprep.subr.bf16.mxu0 %v8195_v10  ;;  %v8228_v10 = vld [vmem:[#allocation9 + $0x1e4] ss:$16 sps:$4 sm:$0xff]  }
0x1bb9   : > { %5264 = vst.msk [vmem:[#allocation2 + $0x10] sm:$0xff] %vm2539_vm8, %v5255_v16 }
0x1bbb   : > { %5832 = vmatpush1.bf16.msra.mxu0 %v8193_v18  ;;  %v8226_v18 = vld [vmem:[#allocation9 + $0x1e0] ss:$16 sps:$4 sm:$0xff]  }
0x1bbf   : > { %v5269_v4 = vld [vmem:[#allocation2 + $0x18] sm:$0xff] }
0x1bc0   : > { %v5268_v17 = vld [vmem:[#allocation2 + $0x10] sm:$0xff] }
0x1bc1   : > { %7838 = vmatprep.mubr.bf16.mxu0 %v5268_v17 }
0x1bc2   : > { %7839 = vmatmul.mubr.bf16.gmra.mrb[132].mxu0 %v5269_v4 }
0x1bc3   : > { %5861 = vmatprep.mubr.bf16.mxu0 %v11104_v40 }
0x1c89   : > { %v7836_v59 = vpop.f32.mrb[128].mxu0 }
0x1c8a   : > { %v5377_v44 = vpop.f32.mrb[129].mxu0  ;;  %v5386_v57 = vadd.f32 %v7836_v59, %v7009_v15 }
0x1c8b   : > { %v5378_v39 = vadd.f32 %v7009_v15, %v5377_v44  ;;  %v7837_v21 = vpop.f32.mrb[130].mxu0  ;;  %v8198_v44 = vld [vmem:[#allocation9 + $0x144] ss:$16 sps:$4 sm:$0xff]  }
0x1c8c   : > { %v5380_v19 = vpop.f32.mrb[131].mxu0  ;;  %v10736_v47 = vadd.f32 %v5386_v57, %v10079_v26  ;;  %v5389_v25 = vadd.f32 %v7837_v21, %v7009_v15  ;;  %v8199_v57 = vld [vmem:[#allocation9 + $0x148] ss:$16 sps:$4 sm:$0xff]  }
0x1c8d   : > { %v10729_v63 = vadd.f32 %v5378_v39, %v10069_v49  ;;  %v5381_v11 = vadd.f32 %v7009_v15, %v5380_v19  ;;  %v8201_v39 = vld [vmem:[#allocation9 + $0x14c] ss:$16 sps:$4 sm:$0xff]   ;;  %v8196_v19 = vld [vmem:[#allocation9 + $0x140] ss:$16 sps:$4 sm:$0xff]  }
0x1c8e   : > { %v10741_v41 = vadd.f32 %v5389_v25, %v10083_v31  ;;  %5833 = vmatprep.subr.bf16.mxu0 %v8201_v39  ;;  %v8207_v25 = vld [vmem:[#allocation9 + $0x16c] ss:$16 sps:$4 sm:$0xff]  }
0x1c8f   : > { %v10732_v1 = vadd.f32 %v5381_v11, %v10073_v22  ;;  %5420 = vadd.xlane.f32.xlu0 %v10729_v63  ;;  %5834 = vmatpush1.bf16.msra.mxu0 %v8199_v57  ;;  %v8204_v11 = vld [vmem:[#allocation9 + $0x164] ss:$16 sps:$4 sm:$0xff]  }
0x1c90   : > { %5835 = vmatprep.subr.bf16.mxu0 %v8207_v25 }
0x1c91   : > { %5422 = vadd.xlane.f32.xlu1 %v10732_v1 }
0x1c93   : > { %5424 = vadd.xlane.f32.xlu0 %v10736_v47 }
0x1c95   : > { %v7840_v5 = vpop.f32.mrb[132].mxu0 }
0x1c96   : > { %v5393_v49 = vpop.f32.mrb[133].mxu0  ;;  %v5402_v50 = vadd.f32 %v7840_v5, %v7009_v15  ;;  %v8202_v5 = vld [vmem:[#allocation9 + $0x160] ss:$16 sps:$4 sm:$0xff]  }
0x1c97   : > { %v5394_v7 = vadd.f32 %v7009_v15, %v5393_v49  ;;  %5426 = vadd.xlane.f32.xlu0 %v10741_v41  ;;  %v7841_v22 = vpop.f32.mrb[134].mxu0  ;;  %v8205_v49 = vld [vmem:[#allocation9 + $0x168] ss:$16 sps:$4 sm:$0xff]  }
0x1c98   : > { %v5396_v27 = vpop.f32.mrb[135].mxu0  ;;  %v5405_v61 = vadd.f32 %v7841_v22, %v7009_v15  ;;  %v10752_v31 = vadd.f32 %v5402_v50, %v10099_v46  ;;  %v8190_v46 = vld [vmem:[#allocation9 + $0x120] ss:$16 sps:$4 sm:$0xff]   ;;  %5836 = vmatpush1.bf16.msra.mxu0 %v8205_v49  ;;  %v8213_v22 = vld [vmem:[#allocation9 + $0x18c] ss:$16 sps:$4 sm:$0xff]  }
0x1c99   : > { %v10745_v14 = vadd.f32 %v5394_v7, %v10089_v37  ;;  %v5397_v26 = vadd.f32 %v7009_v15, %v5396_v27  ;;  %v8184_v37 = vld [vmem:[#allocation9 + $0x100] ss:$16 sps:$4 sm:$0xff]   ;;  %v8210_v7 = vld [vmem:[#allocation9 + $0x184] ss:$16 sps:$4 sm:$0xff]   ;;  %v8211_v50 = vld [vmem:[#allocation9 + $0x188] ss:$16 sps:$4 sm:$0xff]   ;;  %5837 = vmatprep.subr.bf16.mxu0 %v8213_v22 }
0x1c9a   : > { %v10756_v45 = vadd.f32 %v5405_v61, %v11112_v43  ;;  %5757 = vmatpush1.bf16.msra.mxu1 %v8184_v37  ;;  %v8208_v27 = vld [vmem:[#allocation9 + $0x180] ss:$16 sps:$4 sm:$0xff]   ;;  %v8219_v61 = vld [vmem:[#allocation9 + $0x1ac] ss:$16 sps:$4 sm:$0xff]   ;;  %v8217_v37 = vld [vmem:[#allocation9 + $0x1a8] ss:$16 sps:$4 sm:$0xff]  }
0x1c9b   : > { %v10748_v55 = vadd.f32 %v5397_v26, %v10093_v38  ;;  %5428 = vadd.xlane.f32.xlu1 %v10745_v14  ;;  %v8192_v38 = vld [vmem:[#allocation9 + $0x124] ss:$16 sps:$4 sm:$0xff]   ;;  %v8214_v43 = vld [vmem:[#allocation9 + $0x1a0] ss:$16 sps:$4 sm:$0xff]  }
0x1c9c   : > { %5758 = vmatprep.subr.bf16.mxu1 %v8192_v38  ;;  %5838 = vmatpush1.bf16.msra.mxu0 %v8211_v50  ;;  %v8216_v26 = vld [vmem:[#allocation9 + $0x1a4] ss:$16 sps:$4 sm:$0xff]   ;;  %v8223_v38 = vld [vmem:[#allocation9 + $0x1c8] ss:$16 sps:$4 sm:$0xff]  }
0x1c9d   : > { %5430 = vadd.xlane.f32.xlu0 %v10748_v55  ;;  %5839 = vmatprep.subr.bf16.mxu0 %v8219_v61 }
0x1c9e   : > { %5759 = vmatpush1.bf16.msra.mxu1 %v8190_v46  ;;  %v8231_v46 = vld [vmem:[#allocation9 + $0x1ec] ss:$16 sps:$4 sm:$0xff]  }
0x1c9f   : > { %5432 = vadd.xlane.f32.xlu1 %v10752_v31  ;;  %5760 = vmatprep.subr.bf16.mxu1 %v8198_v44 }
0x1ca0   : > { %5840 = vmatpush1.bf16.msra.mxu0 %v8217_v37 }
0x1ca1   : > { %5434 = vadd.xlane.f32.xlu0 %v10756_v45  ;;  %5841 = vmatprep.subr.bf16.mxu0 %v8225_v12  ;;  %v8235_v12 = vld [vmem:[#allocation11 + $0x180] sm:$0xff]  }
0x1ca2   : > { %5761 = vmatpush1.bf16.msra.mxu1 %v8196_v19 }
0x1ca3   : > { %5762 = vmatprep.subr.bf16.mxu1 %v8204_v11 }
0x1ca4   : > { %5842 = vmatpush1.bf16.msra.mxu0 %v8223_v38  ;;  %v8237_v38 = vld [vmem:[#allocation11 + $0x1c8] sm:$0xff]  }
0x1ca5   : > { %5843 = vmatprep.subr.bf16.mxu0 %v8231_v46 }
0x1ca6   : > { %5763 = vmatpush1.bf16.msra.mxu1 %v8202_v5 }
0x1ca7   : > { %5764 = vmatprep.subr.bf16.mxu1 %v8210_v7  ;;  %v10811_v7 = vld [vmem:[%s11028_s9 + $0x1] ss:$0 sm:$0xff] }
0x1caa   : > { %5765 = vmatpush1.bf16.msra.mxu1 %v8208_v27 }
0x1cab   : > { %5766 = vmatprep.subr.bf16.mxu1 %v8216_v26 }
0x1cae   : > { %5767 = vmatpush1.bf16.msra.mxu1 %v8214_v43 }
0x1caf   : > { %5768 = vmatprep.subr.bf16.mxu1 %v8222_v34  ;;  %v8234_v34 = vld [vmem:[#allocation11 + $0x100] sm:$0xff]  }
0x1cb2   : > { %5769 = vmatpush1.bf16.msra.mxu1 %v8220_v52  ;;  %v8236_v52 = vld [vmem:[#allocation11 + $0x148] sm:$0xff]  }
0x1cb3   : > { %5770 = vmatprep.subr.bf16.mxu1 %v8228_v10 }
0x1cb6   : > { %5771 = vmatpush1.bf16.msra.mxu1 %v8226_v18 }
0x1d1c   : > { %v5421_v24 = vpop.xlane.xlu0 %5420 }
0x1d1d   : > { %v5436_v29 = vmul.f32 0.0078125, %v5421_v24  ;;  %v8229_v24 = vld [vmem:[#allocation9 + $0x1e8] ss:$16 sps:$4 sm:$0xff]  }
0x1d1e   : > { %v5423_v20 = vpop.xlane.xlu1 %5422  ;;  %5844 = vmatpush1.bf16.msra.mxu0 %v8229_v24  ;;  %v8239_v24 = vld [vmem:[#allocation11 + $0x188] sm:$0xff]  }
0x1d1f   : > { %v10761_v30 = vsub.f32 %v10729_v63, %v5436_v29  ;;  %v5437_v3 = vmul.f32 0.0078125, %v5423_v20  ;;  %v8232_v29 = vld [vmem:[#allocation11 + $0x140] sm:$0xff]  }
0x1d20   : > { %v5425_v23 = vpop.xlane.xlu0 %5424  ;;  %v8233_v20 = vld [vmem:[#allocation11 + $0x1c0] sm:$0xff]   ;;  %7374 = vmatprep.subr.bf16.mxu1 %v8232_v29 }
0x1d21   : > { %v10764_v54 = vsub.f32 %v10732_v1, %v5437_v3  ;;  %v5438_v51 = vmul.f32 0.0078125, %v5425_v23  ;;  %v5452_v6 = vmul.f32 %v10761_v30, %v10761_v30  ;;  %7414 = vmatprep.subr.bf16.mxu0 %v8233_v20  ;;  %v8240_v20 = vld [vmem:[#allocation11 + $0x150] sm:$0xff]  }
0x1d23   : > { %v10769_v0 = vsub.f32 %v10736_v47, %v5438_v51  ;;  %5460 = vadd.xlane.f32.xlu1 %v5452_v6  ;;  %v5453_v2 = vmul.f32 %v10764_v54, %v10764_v54 }
0x1d24   : > { %v5427_v42 = vpop.xlane.xlu0 %5426 }
0x1d25   : > { %v5439_v8 = vmul.f32 0.0078125, %v5427_v42  ;;  %5462 = vadd.xlane.f32.xlu0 %v5453_v2  ;;  %v5454_v32 = vmul.f32 %v10769_v0, %v10769_v0 }
0x1d27   : > { %v10776_v33 = vsub.f32 %v10741_v41, %v5439_v8  ;;  %5464 = vadd.xlane.f32.xlu1 %v5454_v32 }
0x1d28   : > { %v5429_v9 = vpop.xlane.xlu1 %5428 }
0x1d29   : > { %v5440_v62 = vmul.f32 0.0078125, %v5429_v9  ;;  %v5455_v13 = vmul.f32 %v10776_v33, %v10776_v33 }
0x1d2a   : > { %v5431_v36 = vpop.xlane.xlu0 %5430 }
0x1d2b   : > { %v10781_v53 = vsub.f32 %v10745_v14, %v5440_v62  ;;  %v5441_v58 = vmul.f32 0.0078125, %v5431_v36  ;;  %5466 = vadd.xlane.f32.xlu0 %v5455_v13 }
0x1d2c   : > { %v5433_v28 = vpop.xlane.xlu1 %5432 }
0x1d2d   : > { %v10784_v56 = vsub.f32 %v10748_v55, %v5441_v58  ;;  %v5442_v60 = vmul.f32 0.0078125, %v5433_v28  ;;  %v5456_v48 = vmul.f32 %v10781_v53, %v10781_v53 }
0x1d2e   : > { %v5435_v35 = vpop.xlane.xlu0 %5434 }
0x1d2f   : > { %v10789_v16 = vsub.f32 %v10752_v31, %v5442_v60  ;;  %v5443_v17 = vmul.f32 0.0078125, %v5435_v35  ;;  %5468 = vadd.xlane.f32.xlu1 %v5456_v48  ;;  %v5457_v4 = vmul.f32 %v10784_v56, %v10784_v56  ;;  %v10803_v35 = vld [vmem:[%s11027_s8 + $0x1] ss:$0 sm:$0xff] }
0x1d31   : > { %v10794_v15 = vsub.f32 %v10756_v45, %v5443_v17  ;;  %5470 = vadd.xlane.f32.xlu0 %v5457_v4  ;;  %v5458_v59 = vmul.f32 %v10789_v16, %v10789_v16 }
0x1d33   : > { %5472 = vadd.xlane.f32.xlu1 %v5458_v59  ;;  %v5459_v21 = vmul.f32 %v10794_v15, %v10794_v15 }
0x1d35   : > { %5474 = vadd.xlane.f32.xlu0 %v5459_v21 }
0x1db0   : > { %v5461_v3 = vpop.xlane.xlu1 %5460 }
0x1db1   : > { %v5476_v23 = vmul.f32 0.0078125, %v5461_v3  ;;  %v8241_v3 = vld [vmem:[#allocation11 + $0x1d0] sm:$0xff]  }
0x1db2   : > { %v5463_v51 = vpop.xlane.xlu0 %5462 }
0x1db3   : > { %v5484_v6 = vadd.f32 1e-05, %v5476_v23  ;;  %v5477_v2 = vmul.f32 0.0078125, %v5463_v51 }
0x1db4   : > { %v5465_v42 = vpop.xlane.xlu1 %5464 }
0x1db5   : > { %8576 = vrsqrt.f32 %v5484_v6  ;;  %v5485_v8 = vadd.f32 1e-05, %v5477_v2  ;;  %v5478_v32 = vmul.f32 0.0078125, %v5465_v42 }
0x1db7   : > { %8578 = vrsqrt.f32 %v5485_v8  ;;  %v5486_v9 = vadd.f32 1e-05, %v5478_v32  ;;  %v8242_v8 = vld [vmem:[#allocation11 + $0x110] sm:$0xff]  }
0x1db8   : > { %v5467_v62 = vpop.xlane.xlu0 %5466  ;;  %v8243_v32 = vld [vmem:[#allocation11 + $0x190] sm:$0xff]  }
0x1db9   : > { %8580 = vrsqrt.f32 %v5486_v9  ;;  %v5479_v13 = vmul.f32 0.0078125, %v5467_v62  ;;  %v8244_v62 = vld [vmem:[#allocation11 + $0x158] sm:$0xff]  }
0x1dbb   : > { %v5487_v36 = vadd.f32 1e-05, %v5479_v13  ;;  %v8245_v13 = vld [vmem:[#allocation11 + $0x1d8] sm:$0xff]  }
0x1dbc   : > { %v5469_v58 = vpop.xlane.xlu1 %5468 }
0x1dbd   : > { %8582 = vrsqrt.f32 %v5487_v36  ;;  %v5480_v28 = vmul.f32 0.0078125, %v5469_v58 }
0x1dbe   : > { %v5471_v60 = vpop.xlane.xlu0 %5470 }
0x1dbf   : > { %v8577_v48 = vpop.eup %8576  ;;  %v5488_v17 = vadd.f32 1e-05, %v5480_v28  ;;  %v5481_v4 = vmul.f32 0.0078125, %v5471_v60  ;;  %v8246_v28 = vld [vmem:[#allocation11 + $0x118] sm:$0xff]  }
0x1dc0   : > { %v5500_v59 = vmul.f32 %v8577_v48, %v10761_v30  ;;  %v5473_v44 = vpop.xlane.xlu1 %5472  ;;  %v8247_v60 = vld [vmem:[#allocation11 + $0x198] sm:$0xff]   ;;  %v8248_v48 = vld [vmem:[#allocation11 + $0x160] sm:$0xff]  }
0x1dc1   : > { %v8579_v39 = vpop.eup %8578  ;;  %8584 = vrsqrt.f32 %v5488_v17  ;;  %v5489_v21 = vadd.f32 1e-05, %v5481_v4  ;;  %v5482_v19 = vmul.f32 0.0078125, %v5473_v44  ;;  %v8249_v17 = vld [vmem:[#allocation11 + $0x1e0] sm:$0xff]  }
0x1dc2   : > { %v5514_v57 = vmul.f32 %v10803_v35, %v5500_v59  ;;  %v5501_v11 = vmul.f32 %v8579_v39, %v10764_v54  ;;  %v5475_v25 = vpop.xlane.xlu0 %5474 }
0x1dc3   : > { %v8581_v5 = vpop.eup %8580  ;;  %8586 = vrsqrt.f32 %v5489_v21  ;;  %v5483_v49 = vmul.f32 0.0078125, %v5475_v25  ;;  %v5490_v22 = vadd.f32 1e-05, %v5482_v19  ;;  %v8250_v21 = vld [vmem:[#allocation11 + $0x120] sm:$0xff]  }
0x1dc4   : > { %v5515_v30 = vmul.f32 %v10803_v35, %v5501_v11  ;;  %v5528_v50 = vadd.f32 %v10811_v7, %v5514_v57  ;;  %v5502_v61 = vmul.f32 %v8581_v5, %v10769_v0  ;;  %v8251_v19 = vld [vmem:[#allocation11 + $0x1a0] sm:$0xff]   ;;  %v8253_v57 = vld [vmem:[#allocation11 + $0x1e8] sm:$0xff]  }
0x1dc5   : > { %v5491_v27 = vadd.f32 1e-05, %v5483_v49  ;;  %v8254_v49 = vld [vmem:[#allocation11 + $0x128] sm:$0xff]  }
0x1dc6   : > { %v5529_v26 = vadd.f32 %v10811_v7, %v5515_v30  ;;  %v5516_v10 = vmul.f32 %v10803_v35, %v5502_v61  ;;  %v8255_v30 = vld [vmem:[#allocation11 + $0x1a8] sm:$0xff]   ;;  %v8262_v61 = vld [vmem:[#allocation11 + $0x138] sm:$0xff]  }
0x1dc7   : > { %v8583_v54 = vpop.eup %8582  ;;  %8588 = vrsqrt.f32 %v5491_v27  ;;  %v8258_v27 = vld [vmem:[#allocation11 + $0x130] sm:$0xff]  }
0x1dc8   : > { %v5536_v43 = vpack.c.bf16 %v5529_v26, %v5528_v50  ;;  %v5503_v37 = vmul.f32 %v8583_v54, %v10776_v33  ;;  %8590 = vrsqrt.f32 %v5490_v22  ;;  %v8238_v33 = vld [vmem:[#allocation11 + $0x108] sm:$0xff]   ;;  %v5530_v23 = vadd.f32 %v10811_v7, %v5516_v10  ;;  %v8257_v22 = vld [vmem:[#allocation11 + $0x1f0] sm:$0xff]   ;;  %v8261_v26 = vld [vmem:[#allocation11 + $0x1f8] sm:$0xff]  }
0x1dc9   : > { %v8259_v50 = vld [vmem:[#allocation11 + $0x1b0] sm:$0xff]   ;;  %v8263_v54 = vld [vmem:[#allocation11 + $0x1b8] sm:$0xff]  }
0x1dca   : > { %5789 = vmatmul.mubr.bf16.vlgmr.msra.gmra.mrb[128].mxu1 %v5536_v43  ;;  %5862 = vmatmul.mubr.bf16.vlgmr.msra.gmra.mrb[136].mxu0 %v5536_v43  ;;  %v5517_v46 = vmul.f32 %v10803_v35, %v5503_v37  ;;  %v11113_v43 = vld [vmem:[#allocation28_spill] sm:$0xff] }
0x1dcb   : > { %v8585_v18 = vpop.eup %8584  ;;  %5798 = vmatprep.mubr.bf16.mxu1 %v11104_v40  ;;  %5871 = vmatprep.mubr.bf16.mxu0 %v11104_v40  ;;  %v11114_v37 = vsub.s32 0, %v11113_v43 }
0x1dcc   : > { %v5531_v0 = vadd.f32 %v10811_v7, %v5517_v46  ;;  %7375 = vmatpush3.bf16.msra.mxu1 %v8234_v34  ;;  %7415 = vmatpush3.bf16.msra.mxu0 %v8235_v12  ;;  %v5504_v51 = vmul.f32 %v8585_v18, %v10781_v53  ;;  %v11115_v12 = vsub.s32 2, %v11113_v43  ;;  %v11117_v46 = vsub.s32 3, %v11113_v43 }
0x1dcd   : > { %v8587_v29 = vpop.eup %8586  ;;  %7376 = vmatprep.subr.bf16.mxu1 %v8236_v52  ;;  %7416 = vmatprep.subr.bf16.mxu0 %v8237_v38  ;;  %v11116_v38 = vsub.s32 1, %v11113_v43 }
0x1dce   : > { %v5505_v6 = vmul.f32 %v8587_v29, %v10784_v56  ;;  %v5537_v2 = vpack.c.bf16 %v5531_v0, %v5530_v23  ;;  %v5518_v36 = vmul.f32 %v10803_v35, %v5504_v51 }
0x1dd0   : > { %v5519_v42 = vmul.f32 %v10803_v35, %v5505_v6  ;;  %7377 = vmatpush3.bf16.msra.mxu1 %v8238_v33  ;;  %7417 = vmatpush3.bf16.msra.mxu0 %v8239_v24  ;;  %v5532_v4 = vadd.f32 %v10811_v7, %v5518_v36 }
0x1dd1   : > { %v8589_v9 = vpop.eup %8588  ;;  %7378 = vmatprep.subr.bf16.mxu1 %v8240_v20  ;;  %7418 = vmatprep.subr.bf16.mxu0 %v8241_v3 }
0x1dd2   : > { %5799 = vmatmul.mubr.bf16.gmra.mrb[132].mxu1 %v5537_v2  ;;  %5872 = vmatmul.mubr.bf16.gmra.mrb[140].mxu0 %v5537_v2  ;;  %v8591_v58 = vpop.eup %8590  ;;  %v5533_v53 = vadd.f32 %v10811_v7, %v5519_v42  ;;  %v5507_v56 = vmul.f32 %v8589_v9, %v10794_v15  ;;  %v8252_v15 = vld [vmem:[#allocation11 + $0x168] sm:$0xff]  }
0x1dd3   : > { %5808 = vmatprep.mubr.bf16.mxu1 %v11104_v40  ;;  %5881 = vmatprep.mubr.bf16.mxu0 %v11104_v40  ;;  %v5506_v59 = vmul.f32 %v8591_v58, %v10789_v16 }
0x1dd4   : > { %7379 = vmatpush3.bf16.msra.mxu1 %v8242_v8  ;;  %7419 = vmatpush3.bf16.msra.mxu0 %v8243_v32  ;;  %v5538_v44 = vpack.c.bf16 %v5533_v53, %v5532_v4  ;;  %v5521_v39 = vmul.f32 %v10803_v35, %v5507_v56 }
0x1dd5   : > { %7380 = vmatprep.subr.bf16.mxu1 %v8244_v62  ;;  %7420 = vmatprep.subr.bf16.mxu0 %v8245_v13  ;;  %v5520_v11 = vmul.f32 %v10803_v35, %v5506_v59  ;;  %v8256_v35 = vld [vmem:[#allocation11 + $0x170] sm:$0xff]  }
0x1dd6   : > { %v5535_v16 = vadd.f32 %v10811_v7, %v5521_v39 }
0x1dd7   : > { %v5534_v25 = vadd.f32 %v10811_v7, %v5520_v11  ;;  %v7022_v7 = vld [vmem:[%s11030_s11 + $0x4] sm:$0xf] }
0x1dd8   : > { %7381 = vmatpush3.bf16.msra.mxu1 %v8246_v28  ;;  %7421 = vmatpush3.bf16.msra.mxu0 %v8247_v60  ;;  %v10845_v34 = vrot.slane %v7022_v7, %v11114_v37  ;;  %v10849_v52 = vrot.slane %v7022_v7, %v11115_v12  ;;  %v10853_v10 = vrot.slane %v7022_v7, %v11116_v38 }
0x1dd9   : > { %7382 = vmatprep.subr.bf16.mxu1 %v8248_v48  ;;  %7422 = vmatprep.subr.bf16.mxu0 %v8249_v17  ;;  %v5539_v5 = vpack.c.bf16 %v5535_v16, %v5534_v25  ;;  %v10857_v18 = vrot.slane %v7022_v7, %v11117_v46 }
0x1dda   : > { %5809 = vmatmul.mubr.bf16.gmra.mrb[136].mxu1 %v5538_v44  ;;  %5882 = vmatmul.mubr.bf16.gmra.mrb[144].mxu0 %v5538_v44 }
0x1ddb   : > { %5818 = vmatprep.mubr.bf16.mxu1 %v11104_v40  ;;  %5891 = vmatprep.mubr.bf16.mxu0 %v11104_v40  ;;  %v8260_v40 = vld [vmem:[#allocation11 + $0x178] sm:$0xff]  }
0x1ddc   : > { %7383 = vmatpush3.bf16.msra.mxu1 %v8250_v21  ;;  %7423 = vmatpush3.bf16.msra.mxu0 %v8251_v19 }
0x1ddd   : > { %7384 = vmatprep.subr.bf16.mxu1 %v8252_v15  ;;  %7424 = vmatprep.subr.bf16.mxu0 %v8253_v57 }
0x1de0   : > { %7385 = vmatpush3.bf16.msra.mxu1 %v8254_v49  ;;  %7425 = vmatpush3.bf16.msra.mxu0 %v8255_v30 }
0x1de1   : > { %7386 = vmatprep.subr.bf16.mxu1 %v8256_v35  ;;  %7426 = vmatprep.subr.bf16.mxu0 %v8257_v22 }
0x1de2   : > { %5819 = vmatmul.mubr.bf16.gmra.mrb[140].mxu1 %v5539_v5  ;;  %5892 = vmatmul.mubr.bf16.gmra.mrb[148].mxu0 %v5539_v5 }
0x1de4   : > { %7387 = vmatpush3.bf16.msra.mxu1 %v8258_v27  ;;  %7427 = vmatpush3.bf16.msra.mxu0 %v8259_v50 }
0x1de5   : > { %7388 = vmatprep.subr.bf16.mxu1 %v8260_v40  ;;  %7428 = vmatprep.subr.bf16.mxu0 %v8261_v26 }
0x1de8   : > { %7389 = vmatpush3.bf16.msra.mxu1 %v8262_v61  ;;  %7429 = vmatpush3.bf16.msra.mxu0 %v8263_v54 }
0x1e9d   : > { %v5790_v0 = vpop.f32.mrb[128].mxu1  ;;  %v5863_v33 = vpop.f32.mrb[136].mxu0 }
0x1e9e   : > { %v5791_v24 = vadd.f32 %v5790_v0, %v10845_v34  ;;  %v5864_v29 = vadd.f32 %v5863_v33, %v10849_v52  ;;  %v5792_v20 = vpop.f32.mrb[129].mxu1  ;;  %v5865_v3 = vpop.f32.mrb[137].mxu0 }
0x1e9f   : > { %v5793_v23 = vadd.f32 %v5792_v20, %v10853_v10  ;;  %v5866_v51 = vadd.f32 %v5865_v3, %v10857_v18  ;;  %v5794_v6 = vpop.f32.mrb[130].mxu1  ;;  %v5867_v2 = vpop.f32.mrb[138].mxu0 }
0x1ea0   : > { %v5795_v42 = vadd.f32 %v5794_v6, %v10845_v34  ;;  %v5868_v8 = vadd.f32 %v5867_v2, %v10849_v52  ;;  %v5796_v32 = vpop.f32.mrb[131].mxu1  ;;  %v5869_v9 = vpop.f32.mrb[139].mxu0  ;;  %v5902_v36 = vmax.f32 %v5791_v24, 0.0  ;;  %v5904_v58 = vmax.f32 %v5864_v29, 0.0 }
0x1ea1   : > { %v5797_v62 = vadd.f32 %v5796_v32, %v10853_v10  ;;  %v5870_v13 = vadd.f32 %v5869_v9, %v10857_v18  ;;  %v5903_v28 = vmax.f32 %v5793_v23, 0.0  ;;  %v5905_v60 = vmax.f32 %v5866_v51, 0.0 }
0x1ea2   : > { %v5906_v53 = vmax.f32 %v5795_v42, 0.0  ;;  %v5908_v56 = vmax.f32 %v5868_v8, 0.0 }
0x1ea3   : > { %v5907_v48 = vmax.f32 %v5797_v62, 0.0  ;;  %v5909_v17 = vmax.f32 %v5870_v13, 0.0 }
0x1ea4   : > { %v5934_v4 = vpack.c.bf16 %v5906_v53, %v5902_v36  ;;  %v5936_v59 = vpack.c.bf16 %v5908_v56, %v5904_v58 }
0x1ea5   : > { %v5935_v44 = vpack.c.bf16 %v5907_v48, %v5903_v28  ;;  %v5937_v39 = vpack.c.bf16 %v5909_v17, %v5905_v60  ;;  %v5800_v21 = vpop.f32.mrb[132].mxu1  ;;  %v5873_v19 = vpop.f32.mrb[140].mxu0 }
0x1ea6   : > { %v5801_v15 = vadd.f32 %v5800_v21, %v10845_v34  ;;  %v5874_v57 = vadd.f32 %v5873_v19, %v10849_v52  ;;  %v5802_v11 = vpop.f32.mrb[133].mxu1  ;;  %v5875_v16 = vpop.f32.mrb[141].mxu0 }
0x1ea7   : > { %v5803_v25 = vadd.f32 %v5802_v11, %v10853_v10  ;;  %v5876_v5 = vadd.f32 %v5875_v16, %v10857_v18  ;;  %v5804_v49 = vpop.f32.mrb[134].mxu1  ;;  %v5877_v30 = vpop.f32.mrb[142].mxu0  ;;  %6247 = vmatprep.mubr.bf16.mxu1 %v5935_v44  ;;  %6312 = vmatprep.mubr.bf16.mxu0 %v5937_v39 }
0x1ea8   : > { %v5805_v35 = vadd.f32 %v5804_v49, %v10845_v34  ;;  %v5878_v22 = vadd.f32 %v5877_v30, %v10849_v52  ;;  %v5806_v27 = vpop.f32.mrb[135].mxu1  ;;  %v5879_v50 = vpop.f32.mrb[143].mxu0  ;;  %6248 = vmatmul.mubr.bf16.vlgmr.msra.gmra.mrb[144].mxu1 %v5934_v4  ;;  %6313 = vmatmul.mubr.bf16.vlgmr.msra.gmra.mrb[152].mxu0 %v5936_v59  ;;  %v5910_v61 = vmax.f32 %v5801_v15, 0.0  ;;  %v5912_v54 = vmax.f32 %v5874_v57, 0.0 }
0x1ea9   : > { %v5807_v40 = vadd.f32 %v5806_v27, %v10853_v10  ;;  %v5880_v26 = vadd.f32 %v5879_v50, %v10857_v18  ;;  %v5911_v37 = vmax.f32 %v5803_v25, 0.0  ;;  %v5913_v12 = vmax.f32 %v5876_v5, 0.0 }
0x1eaa   : > { %v5914_v7 = vmax.f32 %v5805_v35, 0.0  ;;  %v5916_v43 = vmax.f32 %v5878_v22, 0.0 }
0x1eab   : > { %v5915_v38 = vmax.f32 %v5807_v40, 0.0  ;;  %v5917_v46 = vmax.f32 %v5880_v26, 0.0 }
0x1eac   : > { %v5938_v0 = vpack.c.bf16 %v5914_v7, %v5910_v61  ;;  %v5940_v33 = vpack.c.bf16 %v5916_v43, %v5912_v54 }
0x1ead   : > { %v5939_v24 = vpack.c.bf16 %v5915_v38, %v5911_v37  ;;  %v5941_v29 = vpack.c.bf16 %v5917_v46, %v5913_v12  ;;  %v5810_v20 = vpop.f32.mrb[136].mxu1  ;;  %v5883_v3 = vpop.f32.mrb[144].mxu0 }
0x1eae   : > { %v5811_v23 = vadd.f32 %v5810_v20, %v10845_v34  ;;  %v5884_v51 = vadd.f32 %v5883_v3, %v10849_v52  ;;  %v5812_v6 = vpop.f32.mrb[137].mxu1  ;;  %v5885_v2 = vpop.f32.mrb[145].mxu0 }
0x1eaf   : > { %v5813_v42 = vadd.f32 %v5812_v6, %v10853_v10  ;;  %v5886_v8 = vadd.f32 %v5885_v2, %v10857_v18  ;;  %v5814_v32 = vpop.f32.mrb[138].mxu1  ;;  %v5887_v9 = vpop.f32.mrb[146].mxu0  ;;  %6255 = vmatprep.mubr.bf16.mxu1 %v5939_v24  ;;  %6320 = vmatprep.mubr.bf16.mxu0 %v5941_v29 }
0x1eb0   : > { %v5815_v62 = vadd.f32 %v5814_v32, %v10845_v34  ;;  %v5888_v13 = vadd.f32 %v5887_v9, %v10849_v52  ;;  %v5816_v36 = vpop.f32.mrb[139].mxu1  ;;  %v5889_v58 = vpop.f32.mrb[147].mxu0  ;;  %6256 = vmatmul.mubr.bf16.gmra.mrb[148].mxu1 %v5938_v0  ;;  %6321 = vmatmul.mubr.bf16.gmra.mrb[156].mxu0 %v5940_v33  ;;  %v5918_v28 = vmax.f32 %v5811_v23, 0.0  ;;  %v5920_v60 = vmax.f32 %v5884_v51, 0.0 }
0x1eb1   : > { %v5817_v53 = vadd.f32 %v5816_v36, %v10853_v10  ;;  %v5890_v56 = vadd.f32 %v5889_v58, %v10857_v18  ;;  %v5919_v4 = vmax.f32 %v5813_v42, 0.0  ;;  %v5921_v59 = vmax.f32 %v5886_v8, 0.0 }
0x1eb2   : > { %v5922_v48 = vmax.f32 %v5815_v62, 0.0  ;;  %v5924_v17 = vmax.f32 %v5888_v13, 0.0 }
0x1eb3   : > { %v5923_v44 = vmax.f32 %v5817_v53, 0.0  ;;  %v5925_v39 = vmax.f32 %v5890_v56, 0.0 }
0x1eb4   : > { %v5942_v21 = vpack.c.bf16 %v5922_v48, %v5918_v28  ;;  %v5944_v19 = vpack.c.bf16 %v5924_v17, %v5920_v60 }
0x1eb5   : > { %v5943_v15 = vpack.c.bf16 %v5923_v44, %v5919_v4  ;;  %v5945_v57 = vpack.c.bf16 %v5925_v39, %v5921_v59  ;;  %v5820_v11 = vpop.f32.mrb[140].mxu1  ;;  %v5893_v16 = vpop.f32.mrb[148].mxu0 }
0x1eb6   : > { %v5821_v25 = vadd.f32 %v5820_v11, %v10845_v34  ;;  %v5894_v5 = vadd.f32 %v5893_v16, %v10849_v52  ;;  %v5822_v49 = vpop.f32.mrb[141].mxu1  ;;  %v5895_v30 = vpop.f32.mrb[149].mxu0 }
0x1eb7   : > { %v5823_v35 = vadd.f32 %v5822_v49, %v10853_v10  ;;  %v5896_v22 = vadd.f32 %v5895_v30, %v10857_v18  ;;  %v5824_v27 = vpop.f32.mrb[142].mxu1  ;;  %v5897_v50 = vpop.f32.mrb[150].mxu0  ;;  %6263 = vmatprep.mubr.bf16.mxu1 %v5943_v15  ;;  %6328 = vmatprep.mubr.bf16.mxu0 %v5945_v57 }
0x1eb8   : > { %v5825_v40 = vadd.f32 %v5824_v27, %v10845_v34  ;;  %v5898_v26 = vadd.f32 %v5897_v50, %v10849_v52  ;;  %v5826_v61 = vpop.f32.mrb[143].mxu1  ;;  %v5899_v54 = vpop.f32.mrb[151].mxu0  ;;  %6264 = vmatmul.mubr.bf16.gmra.mrb[152].mxu1 %v5942_v21  ;;  %6329 = vmatmul.mubr.bf16.gmra.mrb[160].mxu0 %v5944_v19  ;;  %v5926_v37 = vmax.f32 %v5821_v25, 0.0  ;;  %v5928_v12 = vmax.f32 %v5894_v5, 0.0 }
0x1eb9   : > { %v5827_v7 = vadd.f32 %v5826_v61, %v10853_v10  ;;  %v5900_v43 = vadd.f32 %v5899_v54, %v10857_v18  ;;  %v5927_v0 = vmax.f32 %v5823_v35, 0.0  ;;  %v5929_v33 = vmax.f32 %v5896_v22, 0.0  ;;  %v10894_v18 = vld [vmem:[%s11032_s13 + $0x1] ss:$0 sm:$0xff] }
0x1eba   : > { %v5930_v38 = vmax.f32 %v5825_v40, 0.0  ;;  %v5932_v46 = vmax.f32 %v5898_v26, 0.0 }
0x1ebb   : > { %v5931_v24 = vmax.f32 %v5827_v7, 0.0  ;;  %v5933_v29 = vmax.f32 %v5900_v43, 0.0 }
0x1ebc   : > { %v5946_v20 = vpack.c.bf16 %v5930_v38, %v5926_v37  ;;  %v5948_v34 = vpack.c.bf16 %v5932_v46, %v5928_v12 }
0x1ebd   : > { %v5947_v3 = vpack.c.bf16 %v5931_v24, %v5927_v0  ;;  %v5949_v52 = vpack.c.bf16 %v5933_v29, %v5929_v33 }
0x1ebf   : > { %6271 = vmatprep.mubr.bf16.mxu1 %v5947_v3  ;;  %6336 = vmatprep.mubr.bf16.mxu0 %v5949_v52 }
0x1ec0   : > { %6272 = vmatmul.mubr.bf16.gmra.mrb[156].mxu1 %v5946_v20  ;;  %6337 = vmatmul.mubr.bf16.gmra.mrb[164].mxu0 %v5948_v34 }
0x1f7b   : > { %v7390_v23 = vpop.f32.mrb[144].mxu1  ;;  %v7430_v10 = vpop.f32.mrb[152].mxu0 }
0x1f7c   : > { %v7391_v51 = vpop.f32.mrb[145].mxu1  ;;  %v7431_v6 = vpop.f32.mrb[153].mxu0 }
0x1f7d   : > { %v7392_v2 = vadd.f32 %v7391_v51, %v7390_v23  ;;  %v7432_v42 = vadd.f32 %v7431_v6, %v7430_v10  ;;  %v7393_v8 = vpop.f32.mrb[146].mxu1  ;;  %v7433_v32 = vpop.f32.mrb[154].mxu0 }
0x1f7e   : > { %v7394_v9 = vpop.f32.mrb[147].mxu1  ;;  %v7434_v62 = vpop.f32.mrb[155].mxu0 }
0x1f7f   : > { %v6250_v13 = vadd.f32 %v7392_v2, %v10894_v18  ;;  %v7395_v36 = vadd.f32 %v7394_v9, %v7393_v8  ;;  %v7435_v58 = vadd.f32 %v7434_v62, %v7433_v32 }
0x1f81   : > { %v6315_v53 = vadd.f32 %v7432_v42, %v6250_v13  ;;  %v6253_v56 = vadd.f32 %v7395_v36, %v10894_v18 }
0x1f83   : > { %v6318_v28 = vadd.f32 %v7435_v58, %v6253_v56  ;;  %v7396_v60 = vpop.f32.mrb[148].mxu1  ;;  %v7436_v48 = vpop.f32.mrb[156].mxu0  ;;  %v10899_v17 = vadd.f32 %v6315_v53, %v10729_v63 }
0x1f84   : > { %v7397_v4 = vpop.f32.mrb[149].mxu1  ;;  %v7437_v59 = vpop.f32.mrb[157].mxu0 }
0x1f85   : > { %v7398_v44 = vadd.f32 %v7397_v4, %v7396_v60  ;;  %v7438_v39 = vadd.f32 %v7437_v59, %v7436_v48  ;;  %v7399_v21 = vpop.f32.mrb[150].mxu1  ;;  %v7439_v19 = vpop.f32.mrb[158].mxu0  ;;  %6355 = vadd.xlane.f32.xlu1 %v10899_v17  ;;  %v6346_v15 = vadd.f32 %v6318_v28, %v10732_v1 }
0x1f86   : > { %v7400_v57 = vpop.f32.mrb[151].mxu1  ;;  %v7440_v11 = vpop.f32.mrb[159].mxu0 }
0x1f87   : > { %v6258_v16 = vadd.f32 %v7398_v44, %v10894_v18  ;;  %v7401_v25 = vadd.f32 %v7400_v57, %v7399_v21  ;;  %v7441_v5 = vadd.f32 %v7440_v11, %v7439_v19  ;;  %6357 = vadd.xlane.f32.xlu0 %v6346_v15 }
0x1f89   : > { %v6323_v49 = vadd.f32 %v7438_v39, %v6258_v16  ;;  %v6261_v63 = vadd.f32 %v7401_v25, %v10894_v18 }
0x1f8b   : > { %v6326_v30 = vadd.f32 %v7441_v5, %v6261_v63  ;;  %v7402_v35 = vpop.f32.mrb[152].mxu1  ;;  %v7442_v22 = vpop.f32.mrb[160].mxu0  ;;  %v6347_v27 = vadd.f32 %v6323_v49, %v10736_v47  ;;  %v8264_v49 = vld [vmem:[#allocation12] sm:$0xff]  }
0x1f8c   : > { %v7403_v50 = vpop.f32.mrb[153].mxu1  ;;  %v7443_v40 = vpop.f32.mrb[161].mxu0  ;;  %7842 = vmatprep.subr.bf16.mxu1 %v8264_v49 }
0x1f8d   : > { %v7404_v26 = vadd.f32 %v7403_v50, %v7402_v35  ;;  %v7444_v61 = vadd.f32 %v7443_v40, %v7442_v22  ;;  %v7405_v1 = vpop.f32.mrb[154].mxu1  ;;  %v7445_v54 = vpop.f32.mrb[162].mxu0  ;;  %6359 = vadd.xlane.f32.xlu1 %v6347_v27  ;;  %v6348_v7 = vadd.f32 %v6326_v30, %v10741_v41  ;;  %7843 = vmatpush3.bf16.msra.mxu1 %v8264_v49 }
0x1f8e   : > { %v7406_v43 = vpop.f32.mrb[155].mxu1  ;;  %v7446_v37 = vpop.f32.mrb[163].mxu0 }
0x1f8f   : > { %v6266_v12 = vadd.f32 %v7404_v26, %v10894_v18  ;;  %v7407_v38 = vadd.f32 %v7406_v43, %v7405_v1  ;;  %v7447_v46 = vadd.f32 %v7446_v37, %v7445_v54  ;;  %6361 = vadd.xlane.f32.xlu0 %v6348_v7  ;;  %v8266_v1 = vld [vmem:[#allocation12 + $0x10] sm:$0xff]   ;;  %v8268_v43 = vld [vmem:[#allocation12 + $0x20] sm:$0xff]   ;;  %v8269_v37 = vld [vmem:[#allocation12 + $0x28] sm:$0xff]  }
0x1f91   : > { %v6331_v0 = vadd.f32 %v7444_v61, %v6266_v12  ;;  %v6269_v33 = vadd.f32 %v7407_v38, %v10894_v18  ;;  %v8270_v12 = vld [vmem:[#allocation12 + $0x30] sm:$0xff]   ;;  %v8271_v38 = vld [vmem:[#allocation12 + $0x38] sm:$0xff]  }
0x1f93   : > { %v6334_v47 = vadd.f32 %v7447_v46, %v6269_v33  ;;  %v7408_v24 = vpop.f32.mrb[156].mxu1  ;;  %v7448_v29 = vpop.f32.mrb[164].mxu0  ;;  %v6349_v20 = vadd.f32 %v6331_v0, %v10745_v14 }
0x1f94   : > { %v7409_v34 = vpop.f32.mrb[157].mxu1  ;;  %v7449_v3 = vpop.f32.mrb[165].mxu0 }
0x1f95   : > { %v7410_v52 = vadd.f32 %v7409_v34, %v7408_v24  ;;  %v7450_v23 = vadd.f32 %v7449_v3, %v7448_v29  ;;  %v7451_v41 = vpop.f32.mrb[166].mxu0  ;;  %6363 = vadd.xlane.f32.xlu1 %v6349_v20  ;;  %v7411_v10 = vpop.f32.mrb[158].mxu1  ;;  %v6350_v51 = vadd.f32 %v6334_v47, %v10748_v55 }
0x1f96   : > { %v7412_v6 = vpop.f32.mrb[159].mxu1  ;;  %v7452_v2 = vpop.f32.mrb[167].mxu0 }
0x1f97   : > { %v6274_v42 = vadd.f32 %v7410_v52, %v10894_v18  ;;  %v7413_v8 = vadd.f32 %v7412_v6, %v7411_v10  ;;  %v7453_v32 = vadd.f32 %v7452_v2, %v7451_v41  ;;  %6365 = vadd.xlane.f32.xlu0 %v6350_v51 }
0x1f99   : > { %v6339_v9 = vadd.f32 %v7450_v23, %v6274_v42  ;;  %v6277_v62 = vadd.f32 %v7413_v8, %v10894_v18 }
0x1f9b   : > { %v6342_v14 = vadd.f32 %v7453_v32, %v6277_v62  ;;  %v6351_v13 = vadd.f32 %v6339_v9, %v10752_v31 }
0x1f9d   : > { %6367 = vadd.xlane.f32.xlu1 %v6351_v13  ;;  %v6352_v36 = vadd.f32 %v6342_v14, %v10756_v45 }
0x1f9f   : > { %6369 = vadd.xlane.f32.xlu0 %v6352_v36 }
0x2012   : > { %v6356_v58 = vpop.xlane.xlu1 %6355 }
0x2013   : > { %v6371_v53 = vmul.f32 0.0078125, %v6356_v58 }
0x2014   : > { %v6358_v55 = vpop.xlane.xlu0 %6357 }
0x2015   : > { %v10916_v56 = vsub.f32 %v10899_v17, %v6371_v53  ;;  %v6372_v28 = vmul.f32 0.0078125, %v6358_v55 }
0x2017   : > { %v10918_v60 = vsub.f32 %v6346_v15, %v6372_v28  ;;  %v6387_v48 = vmul.f32 %v10916_v56, %v10916_v56 }
0x2019   : > { %6395 = vadd.xlane.f32.xlu1 %v6387_v48  ;;  %v6388_v31 = vmul.f32 %v10918_v60, %v10918_v60 }
0x201a   : > { %v6360_v18 = vpop.xlane.xlu1 %6359 }
0x201b   : > { %v6373_v4 = vmul.f32 0.0078125, %v6360_v18  ;;  %6397 = vadd.xlane.f32.xlu0 %v6388_v31 }
0x201c   : > { %v6362_v45 = vpop.xlane.xlu0 %6361 }
0x201d   : > { %v10924_v59 = vsub.f32 %v6347_v27, %v6373_v4  ;;  %v6374_v44 = vmul.f32 0.0078125, %v6362_v45  ;;  %v8265_v27 = vld [vmem:[#allocation12 + $0x8] sm:$0xff]  }
0x201e   : > { %7844 = vmatprep.subr.bf16.mxu1 %v8265_v27 }
0x201f   : > { %v10926_v39 = vsub.f32 %v6348_v7, %v6374_v44  ;;  %v6389_v17 = vmul.f32 %v10924_v59, %v10924_v59  ;;  %7845 = vmatpush3.bf16.msra.mxu1 %v8265_v27  ;;  %v8267_v7 = vld [vmem:[#allocation12 + $0x18] sm:$0xff]  }
0x2020   : > { %7846 = vmatprep.subr.bf16.mxu1 %v8266_v1 }
0x2021   : > { %6399 = vadd.xlane.f32.xlu1 %v6389_v17  ;;  %v6390_v21 = vmul.f32 %v10926_v39, %v10926_v39 }
0x2022   : > { %v6364_v19 = vpop.xlane.xlu1 %6363 }
0x2023   : > { %v6375_v15 = vmul.f32 0.0078125, %v6364_v19  ;;  %6401 = vadd.xlane.f32.xlu0 %v6390_v21  ;;  %7847 = vmatpush3.bf16.msra.mxu1 %v8266_v1 }
0x2024   : > { %v6366_v57 = vpop.xlane.xlu0 %6365  ;;  %7848 = vmatprep.subr.bf16.mxu1 %v8267_v7 }
0x2025   : > { %v10932_v11 = vsub.f32 %v6349_v20, %v6375_v15  ;;  %v6376_v16 = vmul.f32 0.0078125, %v6366_v57 }
0x2027   : > { %v10934_v25 = vsub.f32 %v6350_v51, %v6376_v16  ;;  %v6391_v5 = vmul.f32 %v10932_v11, %v10932_v11  ;;  %7849 = vmatpush3.bf16.msra.mxu1 %v8267_v7  ;;  %v7089_v51 = vld [vmem:[%s11118_s26] ss:$0 sm:$0xff]  ;;  %s10974_s26 = scalar_lea.hbm %s11123_s20, %s7105_s15 }
0x2028   : > { %7850 = vmatprep.subr.bf16.mxu1 %v8268_v43 }
0x2029   : > { %6403 = vadd.xlane.f32.xlu1 %v6391_v5  ;;  %v6392_v63 = vmul.f32 %v10934_v25, %v10934_v25 }
0x202a   : > { %v6368_v30 = vpop.xlane.xlu1 %6367 }
0x202b   : > { %v6377_v35 = vmul.f32 0.0078125, %v6368_v30  ;;  %6405 = vadd.xlane.f32.xlu0 %v6392_v63  ;;  %7851 = vmatpush3.bf16.msra.mxu1 %v8268_v43 }
0x202c   : > { %v6370_v22 = vpop.xlane.xlu0 %6369  ;;  %7852 = vmatprep.subr.bf16.mxu1 %v8269_v37 }
0x202d   : > { %v10940_v50 = vsub.f32 %v6351_v13, %v6377_v35  ;;  %v6378_v40 = vmul.f32 0.0078125, %v6370_v22 }
0x202f   : > { %v10942_v26 = vsub.f32 %v6352_v36, %v6378_v40  ;;  %v6393_v61 = vmul.f32 %v10940_v50, %v10940_v50  ;;  %7853 = vmatpush3.bf16.msra.mxu1 %v8269_v37  ;;  %v7090_v36 = vld [vmem:[%s11119_s14] ss:$0 sm:$0xff]  ;;  %s8780_s14 = sshll.u32 %s8876_s22, 4  ;;  %s8781_s14 = int_to_ptr.vmem [resolvable:$false] %s8780_s14 }
0x2030   : > { %7854 = vmatprep.subr.bf16.mxu1 %v8270_v12  ;;  %s8782_s30 = scalar_lea.vmem %s8781_s14, 2048  ;;  %p8783_p13 = scmp.lt.s32.totalorder %s10969_s29, %s8781_s14 }
0x2031   : > { %6407 = vadd.xlane.f32.xlu1 %v6393_v61  ;;  %v6394_v54 = vmul.f32 %v10942_v26, %v10942_v26  ;;  %p8784_p0 = scmp.lt.s32.totalorder %s8782_s30, %s8776_s2 }
0x2033   : > { %6409 = vadd.xlane.f32.xlu0 %v6394_v54  ;;  %7855 = vmatpush3.bf16.msra.mxu1 %v8270_v12  ;;  %p8785_p5 = por %p8784_p0, %p8783_p13 }
0x2034   : > { %7856 = vmatprep.subr.bf16.mxu1 %v8271_v38 }
0x2035   : > { %p8786_p6 = pnand %p8785_p5, %p8779_p11 }
0x2037   : > { %7857 = vmatpush3.bf16.msra.mxu1 %v8271_v38 }
0x20a6   : > { %v6396_v46 = vpop.xlane.xlu1 %6395 }
0x20a7   : > { %v6411_v0 = vmul.f32 0.0078125, %v6396_v46 }
0x20a8   : > { %v6398_v33 = vpop.xlane.xlu0 %6397 }
0x20a9   : > { %v6419_v47 = vadd.f32 1e-05, %v6411_v0  ;;  %v6412_v24 = vmul.f32 0.0078125, %v6398_v33 }
0x20ab   : > { %8592 = vrsqrt.f32 %v6419_v47  ;;  %v6420_v29 = vadd.f32 1e-05, %v6412_v24 }
0x20ad   : > { %8594 = vrsqrt.f32 %v6420_v29 }
0x20ae   : > { %v6400_v20 = vpop.xlane.xlu1 %6399 }
0x20af   : > { %v6413_v34 = vmul.f32 0.0078125, %v6400_v20 }
0x20b0   : > { %v6402_v3 = vpop.xlane.xlu0 %6401 }
0x20b1   : > { %v6421_v52 = vadd.f32 1e-05, %v6413_v34  ;;  %v6414_v23 = vmul.f32 0.0078125, %v6402_v3 }
0x20b3   : > { %8596 = vrsqrt.f32 %v6421_v52  ;;  %v6422_v41 = vadd.f32 1e-05, %v6414_v23 }
0x20b5   : > { %v8593_v10 = vpop.eup %8592  ;;  %8598 = vrsqrt.f32 %v6422_v41 }
0x20b6   : > { %v6404_v6 = vpop.xlane.xlu1 %6403  ;;  %v6435_v2 = vmul.f32 %v8593_v10, %v10916_v56 }
0x20b7   : > { %v8595_v42 = vpop.eup %8594  ;;  %v6415_v8 = vmul.f32 0.0078125, %v6404_v6 }
0x20b8   : > { %v6406_v32 = vpop.xlane.xlu0 %6405  ;;  %v6436_v9 = vmul.f32 %v8595_v42, %v10918_v60  ;;  %v6449_v62 = vmul.f32 %v7089_v51, %v6435_v2 }
0x20b9   : > { %v6423_v14 = vadd.f32 1e-05, %v6415_v8  ;;  %v6416_v13 = vmul.f32 0.0078125, %v6406_v32 }
0x20ba   : > { %v6450_v58 = vmul.f32 %v7089_v51, %v6436_v9  ;;  %v6463_v55 = vadd.f32 %v7090_v36, %v6449_v62 }
0x20bb   : > { %8600 = vrsqrt.f32 %v6423_v14  ;;  %v6424_v53 = vadd.f32 1e-05, %v6416_v13 }
0x20bc   : > { %v6464_v28 = vadd.f32 %v7090_v36, %v6450_v58 }
0x20bd   : > { %v8597_v48 = vpop.eup %8596  ;;  %8602 = vrsqrt.f32 %v6424_v53 }
0x20be   : > { %v6437_v56 = vmul.f32 %v8597_v48, %v10924_v59  ;;  %v6408_v31 = vpop.xlane.xlu1 %6407  ;;  %v6471_v18 = vpack.c.bf16 %v6464_v28, %v6463_v55 }
0x20bf   : > { %v8599_v4 = vpop.eup %8598  ;;  %v6417_v60 = vmul.f32 0.0078125, %v6408_v31 }
0x20c0   : > { %v6451_v45 = vmul.f32 %v7089_v51, %v6437_v56  ;;  %v6438_v44 = vmul.f32 %v8599_v4, %v10926_v39  ;;  %v6410_v17 = vpop.xlane.xlu0 %6409  ;;  %7858 = vmatprep.mubr.bf16.mxu1 %v6471_v18 }
0x20c1   : > { %v6425_v21 = vadd.f32 1e-05, %v6417_v60  ;;  %v6418_v19 = vmul.f32 0.0078125, %v6410_v17 }
0x20c2   : > { %v6452_v15 = vmul.f32 %v7089_v51, %v6438_v44  ;;  %v6465_v16 = vadd.f32 %v7090_v36, %v6451_v45 }
0x20c3   : > { %8604 = vrsqrt.f32 %v6425_v21  ;;  %v6426_v57 = vadd.f32 1e-05, %v6418_v19 }
0x20c4   : > { %v6466_v5 = vadd.f32 %v7090_v36, %v6452_v15 }
0x20c5   : > { %v8601_v49 = vpop.eup %8600  ;;  %8606 = vrsqrt.f32 %v6426_v57 }
0x20c6   : > { %v6472_v63 = vpack.c.bf16 %v6466_v5, %v6465_v16  ;;  %v6439_v59 = vmul.f32 %v8601_v49, %v10932_v11 }
0x20c7   : > { %v8603_v30 = vpop.eup %8602 }
0x20c8   : > { %7859 = vmatmul.mubr.bf16.vlgmr.msra.gmra.mrb[160].mxu1 %v6472_v63  ;;  %v6440_v35 = vmul.f32 %v8603_v30, %v10934_v25  ;;  %v6453_v22 = vmul.f32 %v7089_v51, %v6439_v59  ;;  %v7091_v25 = vld [vmem:[%s11121_s19] ss:$0 sm:$0xff] }
0x20ca   : > { %v6454_v39 = vmul.f32 %v7089_v51, %v6440_v35  ;;  %v6467_v27 = vadd.f32 %v7090_v36, %v6453_v22 }
0x20cc   : > { %v6468_v40 = vadd.f32 %v7090_v36, %v6454_v39 }
0x20cd   : > { %v8605_v61 = vpop.eup %8604 }
0x20ce   : > { %v6473_v1 = vpack.c.bf16 %v6468_v40, %v6467_v27  ;;  %v6441_v54 = vmul.f32 %v8605_v61, %v10940_v50 }
0x20cf   : > { %v8607_v7 = vpop.eup %8606 }
0x20d0   : > { %7862 = vmatprep.mubr.bf16.mxu1 %v6473_v1  ;;  %v6442_v43 = vmul.f32 %v8607_v7, %v10942_v26  ;;  %v6455_v37 = vmul.f32 %v7089_v51, %v6441_v54 }
0x20d2   : > { %v6456_v11 = vmul.f32 %v7089_v51, %v6442_v43  ;;  %v6469_v12 = vadd.f32 %v7090_v36, %v6455_v37 }
0x20d4   : > { %v6470_v38 = vadd.f32 %v7090_v36, %v6456_v11 }
0x20d6   : > { %v6474_v46 = vpack.c.bf16 %v6470_v38, %v6469_v12 }
0x20d8   : > { %7863 = vmatmul.mubr.bf16.gmra.mrb[164].mxu1 %v6474_v46 }
0x219b   : > { %v7860_v0 = vpop.f32.mrb[160].mxu1 }
0x219c   : > { %v6589_v33 = vadd.f32 %v7860_v0, %v7091_v25  ;;  %v6580_v50 = vpop.f32.mrb[161].mxu1 }
0x219d   : > { %v6581_v47 = vadd.f32 %v7091_v25, %v6580_v50  ;;  %v7861_v24 = vpop.f32.mrb[162].mxu1 }
0x219e   : > { %6613 = vst [vmem:[%s657_s25 + $0x10] sm:$0xff] %v6589_v33  ;;  %v6592_v26 = vadd.f32 %v7861_v24, %v7091_v25  ;;  %v6583_v29 = vpop.f32.mrb[163].mxu1 }
0x219f   : > { %6611 = vst [vmem:[%s657_s25] sm:$0xff] %v6581_v47  ;;  %v6584_v20 = vadd.f32 %v7091_v25, %v6583_v29 }
0x21a0   : > { %6614 = vst [vmem:[%s657_s25 + $0x18] sm:$0xff] %v6592_v26 }
0x21a1   : > { %6612 = vst [vmem:[%s657_s25 + $0x8] sm:$0xff] %v6584_v20 }
0x21ab   : > { %v7864_v34 = vpop.f32.mrb[164].mxu1 }
0x21ac   : > { %v6605_v3 = vadd.f32 %v7864_v34, %v7091_v25  ;;  %v6596_v52 = vpop.f32.mrb[165].mxu1 }
0x21ad   : > { %v6597_v23 = vadd.f32 %v7091_v25, %v6596_v52  ;;  %v7865_v41 = vpop.f32.mrb[166].mxu1 }
0x21ae   : > { %6617 = vst [vmem:[%s657_s25 + $0x30] sm:$0xff] %v6605_v3  ;;  %v6608_v10 = vadd.f32 %v7865_v41, %v7091_v25  ;;  %v6599_v51 = vpop.f32.mrb[167].mxu1 }
0x21af   : > { %6615 = vst [vmem:[%s657_s25 + $0x20] sm:$0xff] %v6597_v23  ;;  %v6600_v6 = vadd.f32 %v7091_v25, %v6599_v51 }
0x21b0   : > { %6618 = vst [vmem:[%s657_s25 + $0x38] sm:$0xff] %v6608_v10 }
0x21b1   : > { %6616 = vst [vmem:[%s657_s25 + $0x28] sm:$0xff] %v6600_v6 }
0x21b2   : > { %8789 = shalt.err (!%p8786_p6)
}
0x21b3   : > { %s8790_s1 = scalar_lea.hbm %s10974_s26, 1024  ;;  %s8794_s24 = scalar_lea.hbm %s11123_s20, 2048 }
0x21b4   : > { %p8791_p9 = scmp.ne.s32.totalorder %s10974_s26, %s8790_s1  ;;  %p8795_p1 = scmp.lt.u32.totalorder %s10974_s26, %s11123_s20 }
0x21b5   : > { %p8796_p2 = scmp.lt.u32.totalorder %s8794_s24, %s8790_s1  ;;  %p8798_p4 = scmp.lt.u32.totalorder %s8790_s1, %s10974_s26 }
0x21b6   : > { %p8792_p10 = pnand %p8791_p9, %p11124_p7 }
0x21b7   : > { %p8797_p3 = por %p8796_p2, %p8795_p1 }
0x21b8   : > { %p8793_p12 = pneg %p8792_p10 }
0x21b9   : > { %p8799_p8 = por %p8798_p4, %p8797_p3 }
0x21bb   : > { %p8800_p11 = pnand %p8799_p8, %p8793_p12 }
0x21bd   : > { %8803 = shalt.err (!%p8800_p11)
}
0x21be   : > { %s8877_s15 = smov 128   ;;  %s8878_s27 = smov 8  }
0x21bf   : > { %7922 = dma.vmem_to_hbm [thread:$0]  (%p11124_p7), %s10969_s29, 1024, %s10974_s26, %s10978_s0, %s8877_s15, %s8877_s15, %s8878_s27  }
0x21c0 PF: > { %s11125_s18 = sld [smem:[#allocation23_spill]]  ;;  %s11126_s2 = sld [smem:[#allocation20_spill]] }
0x21c1   : > { %s11127_s22 = sld [smem:[#allocation27_spill]] }
0x21c6   : > { %p7959_p13 = scmp.ge.s32.totalorder %s11125_s18, 2  ;;  %s6648_s14 = sand.u32 1, %s11126_s2  }
0x21c7   : > { %p11128_p0 = scmp.ne.s32.totalorder %s11127_s22, 0  ;;  %s6649_s30 = scalar_lea.sflag [#allocation5], %s6648_s14 }
0x21c9   : > { %p7944_p5 = pnand %p7959_p13, %p11128_p0 }
0x21cb   : > { %8837 = dma.done.wait (!%p7944_p5), %s6649_s30, 1024  }
0x21cc   : > { %8839 = vsyncadd (!%p7944_p5), %s6649_s30, 4294966272  ;;  %s11129_s30 = sld [smem:[#allocation24_spill]]  ;;  %s11130_s27 = sld [smem:[#allocation21_spill]] }
0x21cd   : > { %s11131_s28 = sld [smem:[#allocation22_spill]]  ;;  %s11132_s29 = sld [smem:[#allocation25_spill]] }
0x21d2   : > { %p32_p6 = scmp.ge.s32.totalorder %s11129_s30, 4  }
0x21d4   :  { %34 = sbr.rel (!%p32_p6) target bundleno = 15 (0xf), region = 163 }
0x21db   :  { %6654 = vsyncpa [#allocation4], 1 }
0x21dc   :  { %6656 = vsyncpa [#allocation4 + $0x1], 1 }
0x21dd   :  { %6657 = vsyncpa [#allocation7], 1 }
0x21de   :  { %6658 = vsyncpa [#allocation10], 1 }
0x21df   :  { %6659 = vsyncpa [#allocation13], 1 }
0x21e0   :  { %6660 = vsyncpa [#allocation5], 1 }
0x21e1   :  { %6662 = vsyncpa [#allocation5 + $0x1], 1 }

</bundles_post_ra>
